<compile_context>
chip_gen: v7x
topology: tpu7x:2x2x1
jax: 0.10.0
libtpu: 0.0.40
codegen_flags: <defaults>
</compile_context>

<pallas_src>
import functools

import jax
import jax.numpy as jnp
from jax.experimental import pallas as pl
from jax.experimental.pallas import tpu as pltpu

_VMEM_LIMIT = 32 * 1024 * 1024  # safe on v5e/v6e (128 MiB) and v7x (64 MiB) VMEM


# ----------------------------------------------------------------------------
# small helpers
# ----------------------------------------------------------------------------
def _round_up(x, m):
    return (x + m - 1) // m * m


def _conv_geometry(h, w, kh, kw, stride, pad):
    ho = (h + 2 * pad - kh) // stride + 1
    wo = (w + 2 * pad - kw) // stride + 1
    return ho, wo


def _pad_channels(x_nhwc, mult=8):
    """Pad channels to a sublane multiple so kh*kw*Cin is 128-aligned."""
    c = x_nhwc.shape[-1]
    cp = _round_up(c, mult)
    if cp == c:
        return x_nhwc
    return jnp.pad(x_nhwc, ((0, 0), (0, 0), (0, 0), (0, cp - c)))


def _space_to_depth(x_nhwc, stride, pad):
    """Conv zero-pad + space-to-depth: (N,H,W,C) -> (N,Hq,Wq,stride*stride*C).

    s2d[n, hq, wq, (ph*stride + pw)*C + c] == x_padded[n, hq*s + ph, wq*s + pw, c]
    so every conv tap becomes a contiguous slice inside the Pallas kernel.
    Total traffic = one pass over the input (no im2col expansion).
    """
    n, h, w, c = x_nhwc.shape
    hp, wp = h + 2 * pad, w + 2 * pad
    hq, wq = -(-hp // stride), -(-wp // stride)
    xp = jnp.pad(x_nhwc, ((0, 0),
                          (pad, pad + hq * stride - hp),
                          (pad, pad + wq * stride - wp),
                          (0, 0)))
    xp = xp.reshape(n, hq, stride, wq, stride, c)
    xp = jnp.transpose(xp, (0, 1, 3, 2, 4, 5))
    return xp.reshape(n, hq, wq, stride * stride * c)


# ----------------------------------------------------------------------------
# In-kernel im2col gather (static, contiguous copies only)
# ----------------------------------------------------------------------------
def _gather_patch(x_ref, patch_ref, *, kh, kw, stride, cin, ho, wo):
    """Assemble the (ho*wo, kh*kw*cin) im2col patch for one image in VMEM.

    x_ref is the space-to-depth image block (1, Hq, Wq, stride*stride*cin);
    tap (i, j) reads x_s2d[r + i//s, col + j//s, ((i%s)*s + j%s)*cin : +cin],
    so every access is a static, contiguous 2-D copy (no strided / dynamic
    indexing, no value reshapes).
    """
    # TODO(synk): for large Ho (e.g. 128x128 inputs) switch the static row
    # loop to a fori_loop / row-tiled grid axis to bound program size.
    t = 0
    for i in range(kh):
        for j in range(kw):
            di, dj = i // stride, j // stride
            ch0 = ((i % stride) * stride + (j % stride)) * cin
            c0 = t * cin
            for r in range(ho):
                patch_ref[r * wo:(r + 1) * wo, c0:c0 + cin] = (
                    x_ref[0, r + di, dj:dj + wo, ch0:ch0 + cin])
            t += 1


# ----------------------------------------------------------------------------
# Kernel 1: fused conv (im2col in VMEM) + LeakyReLU   (conv1, no BN)
# ----------------------------------------------------------------------------
def _conv_lrelu_kernel(x_ref, w_ref, y_ref, patch_ref, *,
                       kh, kw, stride, cin, ho, wo, slope):
    _gather_patch(x_ref, patch_ref, kh=kh, kw=kw, stride=stride,
                  cin=cin, ho=ho, wo=wo)
    acc = jnp.dot(patch_ref[...], w_ref[...],
                  preferred_element_type=jnp.float32)     # (ho*wo, cout) f32
    y = jnp.maximum(acc, slope * acc)                     # LeakyReLU in f32
    y_ref[0] = y.astype(y_ref.dtype)


# ----------------------------------------------------------------------------
# Kernel 2: fused conv + per-channel sum / sumsq accumulation (BN pass 1)
# ----------------------------------------------------------------------------
def _conv_stats_kernel(x_ref, w_ref, y_ref, s_ref, patch_ref, *,
                       kh, kw, stride, cin, ho, wo):
    _gather_patch(x_ref, patch_ref, kh=kh, kw=kw, stride=stride,
                  cin=cin, ho=ho, wo=wo)
    acc = jnp.dot(patch_ref[...], w_ref[...],
                  preferred_element_type=jnp.float32)     # (ho*wo, cout) f32

    @pl.when(pl.program_id(1) == 0)
    def _init():
        s_ref[...] = jnp.zeros_like(s_ref)

    # Sublane-sliced accumulation of the resident stats block (review item 3).
    s_ref[0, 0:1, :] = s_ref[0, 0:1, :] + jnp.sum(acc, axis=0, keepdims=True)
    s_ref[0, 1:2, :] = s_ref[0, 1:2, :] + jnp.sum(acc * acc, axis=0,
                                                  keepdims=True)
    # Pre-BN activations stored in bf16 (review item 2); stats already f32.
    y_ref[0] = acc.astype(y_ref.dtype)


# ----------------------------------------------------------------------------
# Kernel 3: folded BN scale/shift + LeakyReLU (BN pass 2, bf16 in / bf16 out)
# ----------------------------------------------------------------------------
def _scale_shift_lrelu_kernel(y_ref, sc_ref, sh_ref, o_ref, *, slope):
    z = y_ref[...].astype(jnp.float32) * sc_ref[...] + sh_ref[...]
    o_ref[...] = jnp.maximum(z, slope * z).astype(o_ref.dtype)


# ----------------------------------------------------------------------------
# Conv wrappers
# ----------------------------------------------------------------------------
def conv2d_lrelu(x_nhwc, wmat, *, stride, pad, kh=4, kw=4, slope=0.2):
    """NHWC Conv2d(bias=False) + LeakyReLU(0.2), im2col fused in the kernel."""
    x_nhwc = _pad_channels(x_nhwc.astype(jnp.bfloat16))
    n, h, w, cin = x_nhwc.shape
    cout = wmat.shape[1]
    assert wmat.shape[0] == kh * kw * cin
    ho, wo = _conv_geometry(h, w, kh, kw, stride, pad)
    xs = _space_to_depth(x_nhwc, stride, pad)
    _, hq, wq, cs = xs.shape

    kern = functools.partial(_conv_lrelu_kernel, kh=kh, kw=kw, stride=stride,
                             cin=cin, ho=ho, wo=wo, slope=slope)
    cost = pl.CostEstimate(
        flops=2 * n * ho * wo * kh * kw * cin * cout, transcendentals=0,
        bytes_accessed=xs.size * 2 + wmat.size * 2 + n * ho * wo * cout * 2)
    y = pl.pallas_call(
        kern,
        out_shape=jax.ShapeDtypeStruct((n, ho * wo, cout), jnp.bfloat16),
        grid=(n,),
        in_specs=[
            pl.BlockSpec((1, hq, wq, cs), lambda i: (i, 0, 0, 0)),
            pl.BlockSpec((kh * kw * cin, cout), lambda i: (0, 0)),
        ],
        out_specs=pl.BlockSpec((1, ho * wo, cout), lambda i: (i, 0, 0)),
        scratch_shapes=[pltpu.VMEM((ho * wo, kh * kw * cin), jnp.bfloat16)],
        compiler_params=pltpu.CompilerParams(
            dimension_semantics=("parallel",), vmem_limit_bytes=_VMEM_LIMIT),
        cost_estimate=cost,
    )(xs, wmat)
    return y.reshape(n, ho, wo, cout)


def conv2d_bn_lrelu(x_nhwc, wmat, gamma, beta, *, stride, pad, eps=0.8,
                    slope=0.2, kh=4, kw=4):
    """NHWC Conv2d(bias=False) + training-mode BatchNorm2d + LeakyReLU(0.2)."""
    x_nhwc = _pad_channels(x_nhwc.astype(jnp.bfloat16))
    n, h, w, cin = x_nhwc.shape
    cout = wmat.shape[1]
    assert wmat.shape[0] == kh * kw * cin
    ho, wo = _conv_geometry(h, w, kh, kw, stride, pad)
    xs = _space_to_depth(x_nhwc, stride, pad)
    _, hq, wq, cs = xs.shape

    # Leading size-2 "parallel" axis so both v7x TensorCores get work on the
    # dominant matmul+stats pass; each group owns its own partial-stats block
    # (review item 4).  The image axis stays "arbitrary" (resident stats).
    groups = 2 if (n % 2 == 0 and n >= 2) else 1
    per = n // groups

    kern = functools.partial(_conv_stats_kernel, kh=kh, kw=kw, stride=stride,
                             cin=cin, ho=ho, wo=wo)
    cost = pl.CostEstimate(
        flops=2 * n * ho * wo * kh * kw * cin * cout + 4 * n * ho * wo * cout,
        transcendentals=0,
        bytes_accessed=(xs.size * 2 + wmat.size * 2 + n * ho * wo * cout * 2
                        + groups * 2 * cout * 4))
    y, stats = pl.pallas_call(
        kern,
        out_shape=(jax.ShapeDtypeStruct((n, ho * wo, cout), jnp.bfloat16),
                   jax.ShapeDtypeStruct((groups, 2, cout), jnp.float32)),
        grid=(groups, per),
        in_specs=[
            pl.BlockSpec((1, hq, wq, cs), lambda g, m: (g * per + m, 0, 0, 0)),
            pl.BlockSpec((kh * kw * cin, cout), lambda g, m: (0, 0)),
        ],
        out_specs=[
            pl.BlockSpec((1, ho * wo, cout), lambda g, m: (g * per + m, 0, 0)),
            pl.BlockSpec((1, 2, cout), lambda g, m: (g, 0, 0)),
        ],
        scratch_shapes=[pltpu.VMEM((ho * wo, kh * kw * cin), jnp.bfloat16)],
        compiler_params=pltpu.CompilerParams(
            dimension_semantics=("parallel", "arbitrary"),
            vmem_limit_bytes=_VMEM_LIMIT),
        cost_estimate=cost,
    )(xs, wmat)

    # Tiny per-channel fold in XLA (only Cout numbers).  One-pass variance is
    # clamped at 0; eps=0.8 (module value) dominates any cancellation error.
    cnt = jnp.float32(n * ho * wo)
    tot = jnp.sum(stats, axis=0)                          # (2, cout)
    mu = tot[0] / cnt
    var = jnp.maximum(tot[1] / cnt - mu * mu, 0.0)
    scale = gamma.astype(jnp.float32) * jax.lax.rsqrt(var + eps)
    shift = beta.astype(jnp.float32) - mu * scale
    sc = scale.reshape(1, 1, cout)
    sh = shift.reshape(1, 1, cout)

    bn_cost = pl.CostEstimate(
        flops=4 * n * ho * wo * cout, transcendentals=0,
        bytes_accessed=4 * n * ho * wo * cout)
    out = pl.pallas_call(
        functools.partial(_scale_shift_lrelu_kernel, slope=slope),
        out_shape=jax.ShapeDtypeStruct((n, ho * wo, cout), jnp.bfloat16),
        grid=(n,),
        in_specs=[
            pl.BlockSpec((1, ho * wo, cout), lambda i: (i, 0, 0)),
            pl.BlockSpec((1, 1, cout), lambda i: (0, 0, 0)),
            pl.BlockSpec((1, 1, cout), lambda i: (0, 0, 0)),
        ],
        out_specs=pl.BlockSpec((1, ho * wo, cout), lambda i: (i, 0, 0)),
        compiler_params=pltpu.CompilerParams(
            dimension_semantics=("parallel",), vmem_limit_bytes=_VMEM_LIMIT),
        cost_estimate=bn_cost,
    )(y, sc, sh)
    return out.reshape(n, ho, wo, cout)


# ----------------------------------------------------------------------------
# Deterministic parameter init (PyTorch layout) + one-time layout prep
# ----------------------------------------------------------------------------
def _conv_out(s, k, stride, pad):
    return (s + 2 * pad - k) // stride + 1


def init_params(key, img_shape=(3, 16, 16), emb_dim=16, base=8,
                n_phase_classes=5, n_tool_dims=6):
    c, h, w = img_shape
    img_prod = c * h * w
    ks = list(jax.random.split(key, 24))

    def nrm(k, shape, scale=0.05):
        return scale * jax.random.normal(k, shape, jnp.float32)

    hh, ww = h, w
    for (s, p) in [(2, 1), (3, 2), (3, 2), (3, 2), (3, 2)]:
        hh = _conv_out(hh, 4, s, p)
        ww = _conv_out(ww, 4, s, p)
    flat_feats = base * 16 * hh * ww

    p = dict(img_shape=img_shape, base=base)
    p["phase_emb"] = nrm(ks[0], (n_phase_classes, emb_dim), 0.2)
    p["phase_fc_w"] = nrm(ks[1], (img_prod, emb_dim))      # PyTorch (out, in)
    p["phase_fc_b"] = nrm(ks[2], (img_prod,), 0.01)
    p["tool_fc1_w"] = nrm(ks[3], (emb_dim, n_tool_dims))
    p["tool_fc1_b"] = nrm(ks[4], (emb_dim,), 0.01)
    p["tool_fc2_w"] = nrm(ks[5], (img_prod, emb_dim))
    p["tool_fc2_b"] = nrm(ks[6], (img_prod,), 0.01)
    disc_in = c + 3 + 3
    p["conv1_w"] = nrm(ks[7], (base, disc_in, 4, 4))
    p["conv2_w"] = nrm(ks[8], (base * 2, base, 4, 4))
    p["bn2_g"] = 1.0 + nrm(ks[9], (base * 2,), 0.1)
    p["bn2_b"] = nrm(ks[10], (base * 2,), 0.1)
    p["conv3_w"] = nrm(ks[11], (base * 4, base * 2, 4, 4))
    p["bn3_g"] = 1.0 + nrm(ks[12], (base * 4,), 0.1)
    p["bn3_b"] = nrm(ks[13], (base * 4,), 0.1)
    p["conv4_w"] = nrm(ks[14], (base * 8, base * 4, 4, 4))
    p["bn4_g"] = 1.0 + nrm(ks[15], (base * 8,), 0.1)
    p["bn4_b"] = nrm(ks[16], (base * 8,), 0.1)
    p["conv5_w"] = nrm(ks[17], (base * 16, base * 8, 4, 4))
    p["bn5_g"] = 1.0 + nrm(ks[18], (base * 16,), 0.1)
    p["bn5_b"] = nrm(ks[19], (base * 16,), 0.1)
    p["fc_w"] = nrm(ks[20], (1, flat_feats))
    p["fc_b"] = nrm(ks[21], (1,), 0.01)
    return p


def prepare_params(p):
    """One-time layout prep: conv OIHW -> bf16 (kh*kw*Cin_pad, Cout) matmul
    matrices (Cin padded to a sublane multiple with zero rows), fc transposes.
    Nothing is padded or cast per forward call (review item 6)."""
    def conv_wmat(w_oihw):
        cout, cin, kh, kw = w_oihw.shape
        cinp = _round_up(cin, 8)
        w = jnp.transpose(w_oihw, (2, 3, 1, 0))           # (kh, kw, cin, cout)
        w = jnp.pad(w, ((0, 0), (0, 0), (0, cinp - cin), (0, 0)))
        return w.reshape(kh * kw * cinp, cout).astype(jnp.bfloat16)

    prep = {
        "phase_emb": p["phase_emb"],
        "phase_fc_wT": p["phase_fc_w"].T, "phase_fc_b": p["phase_fc_b"],
        "tool_fc1_wT": p["tool_fc1_w"].T, "tool_fc1_b": p["tool_fc1_b"],
        "tool_fc2_wT": p["tool_fc2_w"].T, "tool_fc2_b": p["tool_fc2_b"],
        "fc_wT": p["fc_w"].T, "fc_b": p["fc_b"],
    }
    for i in range(1, 6):
        prep[f"conv{i}_wmat"] = conv_wmat(p[f"conv{i}_w"])
    for i in range(2, 6):
        prep[f"bn{i}_g"] = p[f"bn{i}_g"]
        prep[f"bn{i}_b"] = p[f"bn{i}_b"]
    return prep


# ----------------------------------------------------------------------------
# Forward pass
# ----------------------------------------------------------------------------
def discriminator_forward(prep, img, phase_label, tool_label):
    """img is NCHW (PyTorch convention); conv stack runs NHWC/bf16 in Pallas."""
    B, C, H, W = img.shape
    lrelu = lambda v: jnp.maximum(v, 0.2 * v)

    # Label branches + final FC in plain XLA (review item 7: tiny matmuls were
    # dominated by padding copies and pallas_call launch overhead).
    emb = prep["phase_emb"][phase_label]                              # (B, emb)
    phase_flat = emb @ prep["phase_fc_wT"] + prep["phase_fc_b"]
    phase_nhwc = jnp.transpose(phase_flat.reshape(B, C, H, W), (0, 2, 3, 1))

    t = lrelu(tool_label @ prep["tool_fc1_wT"] + prep["tool_fc1_b"])
    t = lrelu(t @ prep["tool_fc2_wT"] + prep["tool_fc2_b"])
    tool_nhwc = jnp.transpose(t.reshape(B, C, H, W), (0, 2, 3, 1))

    img_nhwc = jnp.transpose(img, (0, 2, 3, 1))
    x = jnp.concatenate([img_nhwc, phase_nhwc, tool_nhwc], axis=-1)   # (B,H,W,9)

    # conv stack (Pallas, fused im2col + matmul per image)
    x = conv2d_lrelu(x, prep["conv1_wmat"], stride=2, pad=1)
    x = conv2d_bn_lrelu(x, prep["conv2_wmat"], prep["bn2_g"], prep["bn2_b"],
                        stride=3, pad=2)
    x = conv2d_bn_lrelu(x, prep["conv3_wmat"], prep["bn3_g"], prep["bn3_b"],
                        stride=3, pad=2)
    x = conv2d_bn_lrelu(x, prep["conv4_wmat"], prep["bn4_g"], prep["bn4_b"],
                        stride=3, pad=2)
    x = conv2d_bn_lrelu(x, prep["conv5_wmat"], prep["bn5_g"], prep["bn5_b"],
                        stride=3, pad=2)

    # Flatten in NCHW order to match PyTorch Flatten(start_dim=1).
    feat = jnp.transpose(x, (0, 3, 1, 2)).reshape(B, -1).astype(jnp.float32)
    return feat @ prep["fc_wT"] + prep["fc_b"]                         # (B, 1)


# ----------------------------------------------------------------------------
# Pure-JAX reference (correctness check only; f32, NCHW)
# ----------------------------------------------------------------------------
def _ref_forward(params, img, phase_label, tool_label):
    B = img.shape[0]
    C, H, W = params["img_shape"]
    lrelu = lambda v: jnp.where(v >= 0, v, 0.2 * v)

    def conv(v, wgt, s, p):
        return jax.lax.conv_general_dilated(
            v, wgt, (s, s), ((p, p), (p, p)),
            dimension_numbers=("NCHW", "OIHW", "NCHW"))

    def bn(v, g, b, eps=0.8):
        mu = v.mean(axis=(0, 2, 3), keepdims=True)
        var = ((v - mu) ** 2).mean(axis=(0, 2, 3), keepdims=True)
        return ((v - mu) / jnp.sqrt(var + eps) * g.reshape(1, -1, 1, 1)
                + b.reshape(1, -1, 1, 1))

    emb = params["phase_emb"][phase_label]
    phase_img = (emb @ params["phase_fc_w"].T
                 + params["phase_fc_b"]).reshape(B, C, H, W)
    t = lrelu(tool_label @ params["tool_fc1_w"].T + params["tool_fc1_b"])
    tool_img = lrelu(t @ params["tool_fc2_w"].T
                     + params["tool_fc2_b"]).reshape(B, C, H, W)
    x = jnp.concatenate([img, phase_img, tool_img], axis=1)
    x = lrelu(conv(x, params["conv1_w"], 2, 1))
    x = lrelu(bn(conv(x, params["conv2_w"], 3, 2), params["bn2_g"], params["bn2_b"]))
    x = lrelu(bn(conv(x, params["conv3_w"], 3, 2), params["bn3_g"], params["bn3_b"]))
    x = lrelu(bn(conv(x, params["conv4_w"], 3, 2), params["bn4_g"], params["bn4_b"]))
    x = lrelu(bn(conv(x, params["conv5_w"], 3, 2), params["bn5_g"], params["bn5_b"]))
    x = x.reshape(B, -1)
    return x @ params["fc_w"].T + params["fc_b"]


# ----------------------------------------------------------------------------
if __name__ == "__main__":
    key = jax.random.PRNGKey(0)
    k_img, k_phase, k_tool, k_params = jax.random.split(key, 4)

    B = 2
    img_shape = (3, 16, 16)            # small stand-in for (3, 128, 128)
    n_phase_classes, n_tool_dims = 5, 6

    params = init_params(k_params, img_shape=img_shape, emb_dim=16, base=8,
                         n_phase_classes=n_phase_classes,
                         n_tool_dims=n_tool_dims)
    prep = prepare_params(params)

    img = jax.random.normal(k_img, (B,) + img_shape, jnp.float32)
    phase_label = jax.random.randint(k_phase, (B,), 0, n_phase_classes)
    tool_label = jax.random.normal(k_tool, (B, n_tool_dims), jnp.float32)

    fwd = jax.jit(discriminator_forward)
    out = jax.block_until_ready(fwd(prep, img, phase_label, tool_label))
    assert out.shape == (B, 1), out.shape

    ref = jax.block_until_ready(_ref_forward(params, img, phase_label, tool_label))
    # bf16 MXU inputs (f32 accumulation) vs f32 reference -> bf16-scale tolerance.
    assert jnp.allclose(out, ref, atol=5e-2, rtol=5e-2), (out, ref)

    # TODO(synk): GaussianNoise/Dropout are identity here (noise_std=0,
    # dropout=0 module defaults); stochastic training-time noise paths and
    # eval-mode BN (running stats) are not modeled.
    print("KERNEL_OK")
</pallas_src>

<mosaic_0001>
module attributes {stable_mosaic.version = 11 : i64} {
  func.func @_conv_lrelu_kernel(%arg0: i32, %arg1: memref<1x9x9x64xbf16, #tpu.memory_space<vmem>>, %arg2: memref<256x8xbf16, #tpu.memory_space<vmem>>, %arg3: memref<1x64x8xbf16, #tpu.memory_space<vmem>>, %arg4: memref<64x256xbf16, #tpu.memory_space<vmem>>) attributes {dimension_semantics = [#tpu.dimension_semantics<parallel>], iteration_bounds = array<i64: 2>, scalar_prefetch = 0 : i64, scratch_operands = 1 : i64, tpu.core_type = #tpu.core_type<tc>, window_params = [{transform_indices = @transform_0, window_bounds = array<i64: 1, 9, 9, 64>}, {pipeline_mode = #tpu.pipeline_mode<synchronous>, transform_indices = @transform_1, window_bounds = array<i64: 256, 8>}, {transform_indices = @transform_2, window_bounds = array<i64: 1, 64, 8>}]} {
    %c0 = arith.constant 0 : index
    %c0_0 = arith.constant 0 : index
    %c0_1 = arith.constant 0 : index
    %c0_2 = arith.constant 0 : index
    %0 = vector.load %arg1[%c0, %c0_0, %c0_1, %c0_2] : memref<1x9x9x64xbf16, #tpu.memory_space<vmem>>, vector<1x1x8x16xbf16>
    %1 = vector.shape_cast %0 : vector<1x1x8x16xbf16> to vector<8x16xbf16>
    %c0_3 = arith.constant 0 : index
    %c0_4 = arith.constant 0 : index
    %2 = vector.load %arg4[%c0_3, %c0_4] : memref<64x256xbf16, #tpu.memory_space<vmem>>, vector<8x16xbf16>
    tpu.vector_store %arg4[%c0_3, %c0_4], %1 {strides = array<i32>} : memref<64x256xbf16, #tpu.memory_space<vmem>>, vector<8x16xbf16>,
    %c0_5 = arith.constant 0 : index
    %c1 = arith.constant 1 : index
    %c0_6 = arith.constant 0 : index
    %c0_7 = arith.constant 0 : index
    %3 = vector.load %arg1[%c0_5, %c1, %c0_6, %c0_7] : memref<1x9x9x64xbf16, #tpu.memory_space<vmem>>, vector<1x1x8x16xbf16>
    %4 = vector.shape_cast %3 : vector<1x1x8x16xbf16> to vector<8x16xbf16>
    %c8 = arith.constant 8 : index
    %c0_8 = arith.constant 0 : index
    %5 = vector.load %arg4[%c8, %c0_8] : memref<64x256xbf16, #tpu.memory_space<vmem>>, vector<8x16xbf16>
    tpu.vector_store %arg4[%c8, %c0_8], %4 {strides = array<i32>} : memref<64x256xbf16, #tpu.memory_space<vmem>>, vector<8x16xbf16>,
    %c0_9 = arith.constant 0 : index
    %c2 = arith.constant 2 : index
    %c0_10 = arith.constant 0 : index
    %c0_11 = arith.constant 0 : index
    %6 = vector.load %arg1[%c0_9, %c2, %c0_10, %c0_11] : memref<1x9x9x64xbf16, #tpu.memory_space<vmem>>, vector<1x1x8x16xbf16>
    %7 = vector.shape_cast %6 : vector<1x1x8x16xbf16> to vector<8x16xbf16>
    %c16 = arith.constant 16 : index
    %c0_12 = arith.constant 0 : index
    %8 = vector.load %arg4[%c16, %c0_12] : memref<64x256xbf16, #tpu.memory_space<vmem>>, vector<8x16xbf16>
    tpu.vector_store %arg4[%c16, %c0_12], %7 {strides = array<i32>} : memref<64x256xbf16, #tpu.memory_space<vmem>>, vector<8x16xbf16>,
    %c0_13 = arith.constant 0 : index
    %c3 = arith.constant 3 : index
    %c0_14 = arith.constant 0 : index
    %c0_15 = arith.constant 0 : index
    %9 = vector.load %arg1[%c0_13, %c3, %c0_14, %c0_15] : memref<1x9x9x64xbf16, #tpu.memory_space<vmem>>, vector<1x1x8x16xbf16>
    %10 = vector.shape_cast %9 : vector<1x1x8x16xbf16> to vector<8x16xbf16>
    %c24 = arith.constant 24 : index
    %c0_16 = arith.constant 0 : index
    %11 = vector.load %arg4[%c24, %c0_16] : memref<64x256xbf16, #tpu.memory_space<vmem>>, vector<8x16xbf16>
    tpu.vector_store %arg4[%c24, %c0_16], %10 {strides = array<i32>} : memref<64x256xbf16, #tpu.memory_space<vmem>>, vector<8x16xbf16>,
    %c0_17 = arith.constant 0 : index
    %c4 = arith.constant 4 : index
    %c0_18 = arith.constant 0 : index
    %c0_19 = arith.constant 0 : index
    %12 = vector.load %arg1[%c0_17, %c4, %c0_18, %c0_19] : memref<1x9x9x64xbf16, #tpu.memory_space<vmem>>, vector<1x1x8x16xbf16>
    %13 = vector.shape_cast %12 : vector<1x1x8x16xbf16> to vector<8x16xbf16>
    %c32 = arith.constant 32 : index
    %c0_20 = arith.constant 0 : index
    %14 = vector.load %arg4[%c32, %c0_20] : memref<64x256xbf16, #tpu.memory_space<vmem>>, vector<8x16xbf16>
    tpu.vector_store %arg4[%c32, %c0_20], %13 {strides = array<i32>} : memref<64x256xbf16, #tpu.memory_space<vmem>>, vector<8x16xbf16>,
    %c0_21 = arith.constant 0 : index
    %c5 = arith.constant 5 : index
    %c0_22 = arith.constant 0 : index
    %c0_23 = arith.constant 0 : index
    %15 = vector.load %arg1[%c0_21, %c5, %c0_22, %c0_23] : memref<1x9x9x64xbf16, #tpu.memory_space<vmem>>, vector<1x1x8x16xbf16>
    %16 = vector.shape_cast %15 : vector<1x1x8x16xbf16> to vector<8x16xbf16>
    %c40 = arith.constant 40 : index
    %c0_24 = arith.constant 0 : index
    %17 = vector.load %arg4[%c40, %c0_24] : memref<64x256xbf16, #tpu.memory_space<vmem>>, vector<8x16xbf16>
    tpu.vector_store %arg4[%c40, %c0_24], %16 {strides = array<i32>} : memref<64x256xbf16, #tpu.memory_space<vmem>>, vector<8x16xbf16>,
    %c0_25 = arith.constant 0 : index
    %c6 = arith.constant 6 : index
    %c0_26 = arith.constant 0 : index
    %c0_27 = arith.constant 0 : index
    %18 = vector.load %arg1[%c0_25, %c6, %c0_26, %c0_27] : memref<1x9x9x64xbf16, #tpu.memory_space<vmem>>, vector<1x1x8x16xbf16>
    %19 = vector.shape_cast %18 : vector<1x1x8x16xbf16> to vector<8x16xbf16>
    %c48 = arith.constant 48 : index
    %c0_28 = arith.constant 0 : index
    %20 = vector.load %arg4[%c48, %c0_28] : memref<64x256xbf16, #tpu.memory_space<vmem>>, vector<8x16xbf16>
    tpu.vector_store %arg4[%c48, %c0_28], %19 {strides = array<i32>} : memref<64x256xbf16, #tpu.memory_space<vmem>>, vector<8x16xbf16>,
    %c0_29 = arith.constant 0 : index
    %c7 = arith.constant 7 : index
    %c0_30 = arith.constant 0 : index
    %c0_31 = arith.constant 0 : index
    %21 = vector.load %arg1[%c0_29, %c7, %c0_30, %c0_31] : memref<1x9x9x64xbf16, #tpu.memory_space<vmem>>, vector<1x1x8x16xbf16>
    %22 = vector.shape_cast %21 : vector<1x1x8x16xbf16> to vector<8x16xbf16>
    %c56 = arith.constant 56 : index
    %c0_32 = arith.constant 0 : index
    %23 = vector.load %arg4[%c56, %c0_32] : memref<64x256xbf16, #tpu.memory_space<vmem>>, vector<8x16xbf16>
    tpu.vector_store %arg4[%c56, %c0_32], %22 {strides = array<i32>} : memref<64x256xbf16, #tpu.memory_space<vmem>>, vector<8x16xbf16>,
    %c0_33 = arith.constant 0 : index
    %c0_34 = arith.constant 0 : index
    %c0_35 = arith.constant 0 : index
    %c16_36 = arith.constant 16 : index
    %24 = vector.load %arg1[%c0_33, %c0_34, %c0_35, %c16_36] : memref<1x9x9x64xbf16, #tpu.memory_space<vmem>>, vector<1x1x8x16xbf16>
    %25 = vector.shape_cast %24 : vector<1x1x8x16xbf16> to vector<8x16xbf16>
    %c0_37 = arith.constant 0 : index
    %c16_38 = arith.constant 16 : index
    %26 = vector.load %arg4[%c0_37, %c16_38] : memref<64x256xbf16, #tpu.memory_space<vmem>>, vector<8x16xbf16>
    tpu.vector_store %arg4[%c0_37, %c16_38], %25 {strides = array<i32>} : memref<64x256xbf16, #tpu.memory_space<vmem>>, vector<8x16xbf16>,
    %c0_39 = arith.constant 0 : index
    %c1_40 = arith.constant 1 : index
    %c0_41 = arith.constant 0 : index
    %c16_42 = arith.constant 16 : index
    %27 = vector.load %arg1[%c0_39, %c1_40, %c0_41, %c16_42] : memref<1x9x9x64xbf16, #tpu.memory_space<vmem>>, vector<1x1x8x16xbf16>
    %28 = vector.shape_cast %27 : vector<1x1x8x16xbf16> to vector<8x16xbf16>
    %c8_43 = arith.constant 8 : index
    %c16_44 = arith.constant 16 : index
    %29 = vector.load %arg4[%c8_43, %c16_44] : memref<64x256xbf16, #tpu.memory_space<vmem>>, vector<8x16xbf16>
    tpu.vector_store %arg4[%c8_43, %c16_44], %28 {strides = array<i32>} : memref<64x256xbf16, #tpu.memory_space<vmem>>, vector<8x16xbf16>,
    %c0_45 = arith.constant 0 : index
    %c2_46 = arith.constant 2 : index
    %c0_47 = arith.constant 0 : index
    %c16_48 = arith.constant 16 : index
    %30 = vector.load %arg1[%c0_45, %c2_46, %c0_47, %c16_48] : memref<1x9x9x64xbf16, #tpu.memory_space<vmem>>, vector<1x1x8x16xbf16>
    %31 = vector.shape_cast %30 : vector<1x1x8x16xbf16> to vector<8x16xbf16>
    %c16_49 = arith.constant 16 : index
    %c16_50 = arith.constant 16 : index
    %32 = vector.load %arg4[%c16_49, %c16_50] : memref<64x256xbf16, #tpu.memory_space<vmem>>, vector<8x16xbf16>
    tpu.vector_store %arg4[%c16_49, %c16_50], %31 {strides = array<i32>} : memref<64x256xbf16, #tpu.memory_space<vmem>>, vector<8x16xbf16>,
    %c0_51 = arith.constant 0 : index
    %c3_52 = arith.constant 3 : index
    %c0_53 = arith.constant 0 : index
    %c16_54 = arith.constant 16 : index
    %33 = vector.load %arg1[%c0_51, %c3_52, %c0_53, %c16_54] : memref<1x9x9x64xbf16, #tpu.memory_space<vmem>>, vector<1x1x8x16xbf16>
    %34 = vector.shape_cast %33 : vector<1x1x8x16xbf16> to vector<8x16xbf16>
    %c24_55 = arith.constant 24 : index
    %c16_56 = arith.constant 16 : index
    %35 = vector.load %arg4[%c24_55, %c16_56] : memref<64x256xbf16, #tpu.memory_space<vmem>>, vector<8x16xbf16>
    tpu.vector_store %arg4[%c24_55, %c16_56], %34 {strides = array<i32>} : memref<64x256xbf16, #tpu.memory_space<vmem>>, vector<8x16xbf16>,
    %c0_57 = arith.constant 0 : index
    %c4_58 = arith.constant 4 : index
    %c0_59 = arith.constant 0 : index
    %c16_60 = arith.constant 16 : index
    %36 = vector.load %arg1[%c0_57, %c4_58, %c0_59, %c16_60] : memref<1x9x9x64xbf16, #tpu.memory_space<vmem>>, vector<1x1x8x16xbf16>
    %37 = vector.shape_cast %36 : vector<1x1x8x16xbf16> to vector<8x16xbf16>
    %c32_61 = arith.constant 32 : index
    %c16_62 = arith.constant 16 : index
    %38 = vector.load %arg4[%c32_61, %c16_62] : memref<64x256xbf16, #tpu.memory_space<vmem>>, vector<8x16xbf16>
    tpu.vector_store %arg4[%c32_61, %c16_62], %37 {strides = array<i32>} : memref<64x256xbf16, #tpu.memory_space<vmem>>, vector<8x16xbf16>,
    %c0_63 = arith.constant 0 : index
    %c5_64 = arith.constant 5 : index
    %c0_65 = arith.constant 0 : index
    %c16_66 = arith.constant 16 : index
    %39 = vector.load %arg1[%c0_63, %c5_64, %c0_65, %c16_66] : memref<1x9x9x64xbf16, #tpu.memory_space<vmem>>, vector<1x1x8x16xbf16>
    %40 = vector.shape_cast %39 : vector<1x1x8x16xbf16> to vector<8x16xbf16>
    %c40_67 = arith.constant 40 : index
    %c16_68 = arith.constant 16 : index
    %41 = vector.load %arg4[%c40_67, %c16_68] : memref<64x256xbf16, #tpu.memory_space<vmem>>, vector<8x16xbf16>
    tpu.vector_store %arg4[%c40_67, %c16_68], %40 {strides = array<i32>} : memref<64x256xbf16, #tpu.memory_space<vmem>>, vector<8x16xbf16>,
    %c0_69 = arith.constant 0 : index
    %c6_70 = arith.constant 6 : index
    %c0_71 = arith.constant 0 : index
    %c16_72 = arith.constant 16 : index
    %42 = vector.load %arg1[%c0_69, %c6_70, %c0_71, %c16_72] : memref<1x9x9x64xbf16, #tpu.memory_space<vmem>>, vector<1x1x8x16xbf16>
    %43 = vector.shape_cast %42 : vector<1x1x8x16xbf16> to vector<8x16xbf16>
    %c48_73 = arith.constant 48 : index
    %c16_74 = arith.constant 16 : index
    %44 = vector.load %arg4[%c48_73, %c16_74] : memref<64x256xbf16, #tpu.memory_space<vmem>>, vector<8x16xbf16>
    tpu.vector_store %arg4[%c48_73, %c16_74], %43 {strides = array<i32>} : memref<64x256xbf16, #tpu.memory_space<vmem>>, vector<8x16xbf16>,
    %c0_75 = arith.constant 0 : index
    %c7_76 = arith.constant 7 : index
    %c0_77 = arith.constant 0 : index
    %c16_78 = arith.constant 16 : index
    %45 = vector.load %arg1[%c0_75, %c7_76, %c0_77, %c16_78] : memref<1x9x9x64xbf16, #tpu.memory_space<vmem>>, vector<1x1x8x16xbf16>
    %46 = vector.shape_cast %45 : vector<1x1x8x16xbf16> to vector<8x16xbf16>
    %c56_79 = arith.constant 56 : index
    %c16_80 = arith.constant 16 : index
    %47 = vector.load %arg4[%c56_79, %c16_80] : memref<64x256xbf16, #tpu.memory_space<vmem>>, vector<8x16xbf16>
    tpu.vector_store %arg4[%c56_79, %c16_80], %46 {strides = array<i32>} : memref<64x256xbf16, #tpu.memory_space<vmem>>, vector<8x16xbf16>,
    %c0_81 = arith.constant 0 : index
    %c0_82 = arith.constant 0 : index
    %c1_83 = arith.constant 1 : index
    %c0_84 = arith.constant 0 : index
    %48 = vector.load %arg1[%c0_81, %c0_82, %c1_83, %c0_84] : memref<1x9x9x64xbf16, #tpu.memory_space<vmem>>, vector<1x1x8x16xbf16>
    %49 = vector.shape_cast %48 : vector<1x1x8x16xbf16> to vector<8x16xbf16>
    %c0_85 = arith.constant 0 : index
    %c32_86 = arith.constant 32 : index
    %50 = vector.load %arg4[%c0_85, %c32_86] : memref<64x256xbf16, #tpu.memory_space<vmem>>, vector<8x16xbf16>
    tpu.vector_store %arg4[%c0_85, %c32_86], %49 {strides = array<i32>} : memref<64x256xbf16, #tpu.memory_space<vmem>>, vector<8x16xbf16>,
    %c0_87 = arith.constant 0 : index
    %c1_88 = arith.constant 1 : index
    %c1_89 = arith.constant 1 : index
    %c0_90 = arith.constant 0 : index
    %51 = vector.load %arg1[%c0_87, %c1_88, %c1_89, %c0_90] : memref<1x9x9x64xbf16, #tpu.memory_space<vmem>>, vector<1x1x8x16xbf16>
    %52 = vector.shape_cast %51 : vector<1x1x8x16xbf16> to vector<8x16xbf16>
    %c8_91 = arith.constant 8 : index
    %c32_92 = arith.constant 32 : index
    %53 = vector.load %arg4[%c8_91, %c32_92] : memref<64x256xbf16, #tpu.memory_space<vmem>>, vector<8x16xbf16>
    tpu.vector_store %arg4[%c8_91, %c32_92], %52 {strides = array<i32>} : memref<64x256xbf16, #tpu.memory_space<vmem>>, vector<8x16xbf16>,
    %c0_93 = arith.constant 0 : index
    %c2_94 = arith.constant 2 : index
    %c1_95 = arith.constant 1 : index
    %c0_96 = arith.constant 0 : index
    %54 = vector.load %arg1[%c0_93, %c2_94, %c1_95, %c0_96] : memref<1x9x9x64xbf16, #tpu.memory_space<vmem>>, vector<1x1x8x16xbf16>
    %55 = vector.shape_cast %54 : vector<1x1x8x16xbf16> to vector<8x16xbf16>
    %c16_97 = arith.constant 16 : index
    %c32_98 = arith.constant 32 : index
    %56 = vector.load %arg4[%c16_97, %c32_98] : memref<64x256xbf16, #tpu.memory_space<vmem>>, vector<8x16xbf16>
    tpu.vector_store %arg4[%c16_97, %c32_98], %55 {strides = array<i32>} : memref<64x256xbf16, #tpu.memory_space<vmem>>, vector<8x16xbf16>,
    %c0_99 = arith.constant 0 : index
    %c3_100 = arith.constant 3 : index
    %c1_101 = arith.constant 1 : index
    %c0_102 = arith.constant 0 : index
    %57 = vector.load %arg1[%c0_99, %c3_100, %c1_101, %c0_102] : memref<1x9x9x64xbf16, #tpu.memory_space<vmem>>, vector<1x1x8x16xbf16>
    %58 = vector.shape_cast %57 : vector<1x1x8x16xbf16> to vector<8x16xbf16>
    %c24_103 = arith.constant 24 : index
    %c32_104 = arith.constant 32 : index
    %59 = vector.load %arg4[%c24_103, %c32_104] : memref<64x256xbf16, #tpu.memory_space<vmem>>, vector<8x16xbf16>
    tpu.vector_store %arg4[%c24_103, %c32_104], %58 {strides = array<i32>} : memref<64x256xbf16, #tpu.memory_space<vmem>>, vector<8x16xbf16>,
    %c0_105 = arith.constant 0 : index
    %c4_106 = arith.constant 4 : index
    %c1_107 = arith.constant 1 : index
    %c0_108 = arith.constant 0 : index
    %60 = vector.load %arg1[%c0_105, %c4_106, %c1_107, %c0_108] : memref<1x9x9x64xbf16, #tpu.memory_space<vmem>>, vector<1x1x8x16xbf16>
    %61 = vector.shape_cast %60 : vector<1x1x8x16xbf16> to vector<8x16xbf16>
    %c32_109 = arith.constant 32 : index
    %c32_110 = arith.constant 32 : index
    %62 = vector.load %arg4[%c32_109, %c32_110] : memref<64x256xbf16, #tpu.memory_space<vmem>>, vector<8x16xbf16>
    tpu.vector_store %arg4[%c32_109, %c32_110], %61 {strides = array<i32>} : memref<64x256xbf16, #tpu.memory_space<vmem>>, vector<8x16xbf16>,
    %c0_111 = arith.constant 0 : index
    %c5_112 = arith.constant 5 : index
    %c1_113 = arith.constant 1 : index
    %c0_114 = arith.constant 0 : index
    %63 = vector.load %arg1[%c0_111, %c5_112, %c1_113, %c0_114] : memref<1x9x9x64xbf16, #tpu.memory_space<vmem>>, vector<1x1x8x16xbf16>
    %64 = vector.shape_cast %63 : vector<1x1x8x16xbf16> to vector<8x16xbf16>
    %c40_115 = arith.constant 40 : index
    %c32_116 = arith.constant 32 : index
    %65 = vector.load %arg4[%c40_115, %c32_116] : memref<64x256xbf16, #tpu.memory_space<vmem>>, vector<8x16xbf16>
    tpu.vector_store %arg4[%c40_115, %c32_116], %64 {strides = array<i32>} : memref<64x256xbf16, #tpu.memory_space<vmem>>, vector<8x16xbf16>,
    %c0_117 = arith.constant 0 : index
    %c6_118 = arith.constant 6 : index
    %c1_119 = arith.constant 1 : index
    %c0_120 = arith.constant 0 : index
    %66 = vector.load %arg1[%c0_117, %c6_118, %c1_119, %c0_120] : memref<1x9x9x64xbf16, #tpu.memory_space<vmem>>, vector<1x1x8x16xbf16>
    %67 = vector.shape_cast %66 : vector<1x1x8x16xbf16> to vector<8x16xbf16>
    %c48_121 = arith.constant 48 : index
    %c32_122 = arith.constant 32 : index
    %68 = vector.load %arg4[%c48_121, %c32_122] : memref<64x256xbf16, #tpu.memory_space<vmem>>, vector<8x16xbf16>
    tpu.vector_store %arg4[%c48_121, %c32_122], %67 {strides = array<i32>} : memref<64x256xbf16, #tpu.memory_space<vmem>>, vector<8x16xbf16>,
    %c0_123 = arith.constant 0 : index
    %c7_124 = arith.constant 7 : index
    %c1_125 = arith.constant 1 : index
    %c0_126 = arith.constant 0 : index
    %69 = vector.load %arg1[%c0_123, %c7_124, %c1_125, %c0_126] : memref<1x9x9x64xbf16, #tpu.memory_space<vmem>>, vector<1x1x8x16xbf16>
    %70 = vector.shape_cast %69 : vector<1x1x8x16xbf16> to vector<8x16xbf16>
    %c56_127 = arith.constant 56 : index
    %c32_128 = arith.constant 32 : index
    %71 = vector.load %arg4[%c56_127, %c32_128] : memref<64x256xbf16, #tpu.memory_space<vmem>>, vector<8x16xbf16>
    tpu.vector_store %arg4[%c56_127, %c32_128], %70 {strides = array<i32>} : memref<64x256xbf16, #tpu.memory_space<vmem>>, vector<8x16xbf16>,
    %c0_129 = arith.constant 0 : index
    %c0_130 = arith.constant 0 : index
    %c1_131 = arith.constant 1 : index
    %c16_132 = arith.constant 16 : index
    %72 = vector.load %arg1[%c0_129, %c0_130, %c1_131, %c16_132] : memref<1x9x9x64xbf16, #tpu.memory_space<vmem>>, vector<1x1x8x16xbf16>
    %73 = vector.shape_cast %72 : vector<1x1x8x16xbf16> to vector<8x16xbf16>
    %c0_133 = arith.constant 0 : index
    %c48_134 = arith.constant 48 : index
    %74 = vector.load %arg4[%c0_133, %c48_134] : memref<64x256xbf16, #tpu.memory_space<vmem>>, vector<8x16xbf16>
    tpu.vector_store %arg4[%c0_133, %c48_134], %73 {strides = array<i32>} : memref<64x256xbf16, #tpu.memory_space<vmem>>, vector<8x16xbf16>,
    %c0_135 = arith.constant 0 : index
    %c1_136 = arith.constant 1 : index
    %c1_137 = arith.constant 1 : index
    %c16_138 = arith.constant 16 : index
    %75 = vector.load %arg1[%c0_135, %c1_136, %c1_137, %c16_138] : memref<1x9x9x64xbf16, #tpu.memory_space<vmem>>, vector<1x1x8x16xbf16>
    %76 = vector.shape_cast %75 : vector<1x1x8x16xbf16> to vector<8x16xbf16>
    %c8_139 = arith.constant 8 : index
    %c48_140 = arith.constant 48 : index
    %77 = vector.load %arg4[%c8_139, %c48_140] : memref<64x256xbf16, #tpu.memory_space<vmem>>, vector<8x16xbf16>
    tpu.vector_store %arg4[%c8_139, %c48_140], %76 {strides = array<i32>} : memref<64x256xbf16, #tpu.memory_space<vmem>>, vector<8x16xbf16>,
    %c0_141 = arith.constant 0 : index
    %c2_142 = arith.constant 2 : index
    %c1_143 = arith.constant 1 : index
    %c16_144 = arith.constant 16 : index
    %78 = vector.load %arg1[%c0_141, %c2_142, %c1_143, %c16_144] : memref<1x9x9x64xbf16, #tpu.memory_space<vmem>>, vector<1x1x8x16xbf16>
    %79 = vector.shape_cast %78 : vector<1x1x8x16xbf16> to vector<8x16xbf16>
    %c16_145 = arith.constant 16 : index
    %c48_146 = arith.constant 48 : index
    %80 = vector.load %arg4[%c16_145, %c48_146] : memref<64x256xbf16, #tpu.memory_space<vmem>>, vector<8x16xbf16>
    tpu.vector_store %arg4[%c16_145, %c48_146], %79 {strides = array<i32>} : memref<64x256xbf16, #tpu.memory_space<vmem>>, vector<8x16xbf16>,
    %c0_147 = arith.constant 0 : index
    %c3_148 = arith.constant 3 : index
    %c1_149 = arith.constant 1 : index
    %c16_150 = arith.constant 16 : index
    %81 = vector.load %arg1[%c0_147, %c3_148, %c1_149, %c16_150] : memref<1x9x9x64xbf16, #tpu.memory_space<vmem>>, vector<1x1x8x16xbf16>
    %82 = vector.shape_cast %81 : vector<1x1x8x16xbf16> to vector<8x16xbf16>
    %c24_151 = arith.constant 24 : index
    %c48_152 = arith.constant 48 : index
    %83 = vector.load %arg4[%c24_151, %c48_152] : memref<64x256xbf16, #tpu.memory_space<vmem>>, vector<8x16xbf16>
    tpu.vector_store %arg4[%c24_151, %c48_152], %82 {strides = array<i32>} : memref<64x256xbf16, #tpu.memory_space<vmem>>, vector<8x16xbf16>,
    %c0_153 = arith.constant 0 : index
    %c4_154 = arith.constant 4 : index
    %c1_155 = arith.constant 1 : index
    %c16_156 = arith.constant 16 : index
    %84 = vector.load %arg1[%c0_153, %c4_154, %c1_155, %c16_156] : memref<1x9x9x64xbf16, #tpu.memory_space<vmem>>, vector<1x1x8x16xbf16>
    %85 = vector.shape_cast %84 : vector<1x1x8x16xbf16> to vector<8x16xbf16>
    %c32_157 = arith.constant 32 : index
    %c48_158 = arith.constant 48 : index
    %86 = vector.load %arg4[%c32_157, %c48_158] : memref<64x256xbf16, #tpu.memory_space<vmem>>, vector<8x16xbf16>
    tpu.vector_store %arg4[%c32_157, %c48_158], %85 {strides = array<i32>} : memref<64x256xbf16, #tpu.memory_space<vmem>>, vector<8x16xbf16>,
    %c0_159 = arith.constant 0 : index
    %c5_160 = arith.constant 5 : index
    %c1_161 = arith.constant 1 : index
    %c16_162 = arith.constant 16 : index
    %87 = vector.load %arg1[%c0_159, %c5_160, %c1_161, %c16_162] : memref<1x9x9x64xbf16, #tpu.memory_space<vmem>>, vector<1x1x8x16xbf16>
    %88 = vector.shape_cast %87 : vector<1x1x8x16xbf16> to vector<8x16xbf16>
    %c40_163 = arith.constant 40 : index
    %c48_164 = arith.constant 48 : index
    %89 = vector.load %arg4[%c40_163, %c48_164] : memref<64x256xbf16, #tpu.memory_space<vmem>>, vector<8x16xbf16>
    tpu.vector_store %arg4[%c40_163, %c48_164], %88 {strides = array<i32>} : memref<64x256xbf16, #tpu.memory_space<vmem>>, vector<8x16xbf16>,
    %c0_165 = arith.constant 0 : index
    %c6_166 = arith.constant 6 : index
    %c1_167 = arith.constant 1 : index
    %c16_168 = arith.constant 16 : index
    %90 = vector.load %arg1[%c0_165, %c6_166, %c1_167, %c16_168] : memref<1x9x9x64xbf16, #tpu.memory_space<vmem>>, vector<1x1x8x16xbf16>
    %91 = vector.shape_cast %90 : vector<1x1x8x16xbf16> to vector<8x16xbf16>
    %c48_169 = arith.constant 48 : index
    %c48_170 = arith.constant 48 : index
    %92 = vector.load %arg4[%c48_169, %c48_170] : memref<64x256xbf16, #tpu.memory_space<vmem>>, vector<8x16xbf16>
    tpu.vector_store %arg4[%c48_169, %c48_170], %91 {strides = array<i32>} : memref<64x256xbf16, #tpu.memory_space<vmem>>, vector<8x16xbf16>,
    %c0_171 = arith.constant 0 : index
    %c7_172 = arith.constant 7 : index
    %c1_173 = arith.constant 1 : index
    %c16_174 = arith.constant 16 : index
    %93 = vector.load %arg1[%c0_171, %c7_172, %c1_173, %c16_174] : memref<1x9x9x64xbf16, #tpu.memory_space<vmem>>, vector<1x1x8x16xbf16>
    %94 = vector.shape_cast %93 : vector<1x1x8x16xbf16> to vector<8x16xbf16>
    %c56_175 = arith.constant 56 : index
    %c48_176 = arith.constant 48 : index
    %95 = vector.load %arg4[%c56_175, %c48_176] : memref<64x256xbf16, #tpu.memory_space<vmem>>, vector<8x16xbf16>
    tpu.vector_store %arg4[%c56_175, %c48_176], %94 {strides = array<i32>} : memref<64x256xbf16, #tpu.memory_space<vmem>>, vector<8x16xbf16>,
    %c0_177 = arith.constant 0 : index
    %c0_178 = arith.constant 0 : index
    %c0_179 = arith.constant 0 : index
    %c32_180 = arith.constant 32 : index
    %96 = vector.load %arg1[%c0_177, %c0_178, %c0_179, %c32_180] : memref<1x9x9x64xbf16, #tpu.memory_space<vmem>>, vector<1x1x8x16xbf16>
    %97 = vector.shape_cast %96 : vector<1x1x8x16xbf16> to vector<8x16xbf16>
    %c0_181 = arith.constant 0 : index
    %c64 = arith.constant 64 : index
    %98 = vector.load %arg4[%c0_181, %c64] : memref<64x256xbf16, #tpu.memory_space<vmem>>, vector<8x16xbf16>
    tpu.vector_store %arg4[%c0_181, %c64], %97 {strides = array<i32>} : memref<64x256xbf16, #tpu.memory_space<vmem>>, vector<8x16xbf16>,
    %c0_182 = arith.constant 0 : index
    %c1_183 = arith.constant 1 : index
    %c0_184 = arith.constant 0 : index
    %c32_185 = arith.constant 32 : index
    %99 = vector.load %arg1[%c0_182, %c1_183, %c0_184, %c32_185] : memref<1x9x9x64xbf16, #tpu.memory_space<vmem>>, vector<1x1x8x16xbf16>
    %100 = vector.shape_cast %99 : vector<1x1x8x16xbf16> to vector<8x16xbf16>
    %c8_186 = arith.constant 8 : index
    %c64_187 = arith.constant 64 : index
    %101 = vector.load %arg4[%c8_186, %c64_187] : memref<64x256xbf16, #tpu.memory_space<vmem>>, vector<8x16xbf16>
    tpu.vector_store %arg4[%c8_186, %c64_187], %100 {strides = array<i32>} : memref<64x256xbf16, #tpu.memory_space<vmem>>, vector<8x16xbf16>,
    %c0_188 = arith.constant 0 : index
    %c2_189 = arith.constant 2 : index
    %c0_190 = arith.constant 0 : index
    %c32_191 = arith.constant 32 : index
    %102 = vector.load %arg1[%c0_188, %c2_189, %c0_190, %c32_191] : memref<1x9x9x64xbf16, #tpu.memory_space<vmem>>, vector<1x1x8x16xbf16>
    %103 = vector.shape_cast %102 : vector<1x1x8x16xbf16> to vector<8x16xbf16>
    %c16_192 = arith.constant 16 : index
    %c64_193 = arith.constant 64 : index
    %104 = vector.load %arg4[%c16_192, %c64_193] : memref<64x256xbf16, #tpu.memory_space<vmem>>, vector<8x16xbf16>
    tpu.vector_store %arg4[%c16_192, %c64_193], %103 {strides = array<i32>} : memref<64x256xbf16, #tpu.memory_space<vmem>>, vector<8x16xbf16>,
    %c0_194 = arith.constant 0 : index
    %c3_195 = arith.constant 3 : index
    %c0_196 = arith.constant 0 : index
    %c32_197 = arith.constant 32 : index
    %105 = vector.load %arg1[%c0_194, %c3_195, %c0_196, %c32_197] : memref<1x9x9x64xbf16, #tpu.memory_space<vmem>>, vector<1x1x8x16xbf16>
    %106 = vector.shape_cast %105 : vector<1x1x8x16xbf16> to vector<8x16xbf16>
    %c24_198 = arith.constant 24 : index
    %c64_199 = arith.constant 64 : index
    %107 = vector.load %arg4[%c24_198, %c64_199] : memref<64x256xbf16, #tpu.memory_space<vmem>>, vector<8x16xbf16>
    tpu.vector_store %arg4[%c24_198, %c64_199], %106 {strides = array<i32>} : memref<64x256xbf16, #tpu.memory_space<vmem>>, vector<8x16xbf16>,
    %c0_200 = arith.constant 0 : index
    %c4_201 = arith.constant 4 : index
    %c0_202 = arith.constant 0 : index
    %c32_203 = arith.constant 32 : index
    %108 = vector.load %arg1[%c0_200, %c4_201, %c0_202, %c32_203] : memref<1x9x9x64xbf16, #tpu.memory_space<vmem>>, vector<1x1x8x16xbf16>
    %109 = vector.shape_cast %108 : vector<1x1x8x16xbf16> to vector<8x16xbf16>
    %c32_204 = arith.constant 32 : index
    %c64_205 = arith.constant 64 : index
    %110 = vector.load %arg4[%c32_204, %c64_205] : memref<64x256xbf16, #tpu.memory_space<vmem>>, vector<8x16xbf16>
    tpu.vector_store %arg4[%c32_204, %c64_205], %109 {strides = array<i32>} : memref<64x256xbf16, #tpu.memory_space<vmem>>, vector<8x16xbf16>,
    %c0_206 = arith.constant 0 : index
    %c5_207 = arith.constant 5 : index
    %c0_208 = arith.constant 0 : index
    %c32_209 = arith.constant 32 : index
    %111 = vector.load %arg1[%c0_206, %c5_207, %c0_208, %c32_209] : memref<1x9x9x64xbf16, #tpu.memory_space<vmem>>, vector<1x1x8x16xbf16>
    %112 = vector.shape_cast %111 : vector<1x1x8x16xbf16> to vector<8x16xbf16>
    %c40_210 = arith.constant 40 : index
    %c64_211 = arith.constant 64 : index
    %113 = vector.load %arg4[%c40_210, %c64_211] : memref<64x256xbf16, #tpu.memory_space<vmem>>, vector<8x16xbf16>
    tpu.vector_store %arg4[%c40_210, %c64_211], %112 {strides = array<i32>} : memref<64x256xbf16, #tpu.memory_space<vmem>>, vector<8x16xbf16>,
    %c0_212 = arith.constant 0 : index
    %c6_213 = arith.constant 6 : index
    %c0_214 = arith.constant 0 : index
    %c32_215 = arith.constant 32 : index
    %114 = vector.load %arg1[%c0_212, %c6_213, %c0_214, %c32_215] : memref<1x9x9x64xbf16, #tpu.memory_space<vmem>>, vector<1x1x8x16xbf16>
    %115 = vector.shape_cast %114 : vector<1x1x8x16xbf16> to vector<8x16xbf16>
    %c48_216 = arith.constant 48 : index
    %c64_217 = arith.constant 64 : index
    %116 = vector.load %arg4[%c48_216, %c64_217] : memref<64x256xbf16, #tpu.memory_space<vmem>>, vector<8x16xbf16>
    tpu.vector_store %arg4[%c48_216, %c64_217], %115 {strides = array<i32>} : memref<64x256xbf16, #tpu.memory_space<vmem>>, vector<8x16xbf16>,
    %c0_218 = arith.constant 0 : index
    %c7_219 = arith.constant 7 : index
    %c0_220 = arith.constant 0 : index
    %c32_221 = arith.constant 32 : index
    %117 = vector.load %arg1[%c0_218, %c7_219, %c0_220, %c32_221] : memref<1x9x9x64xbf16, #tpu.memory_space<vmem>>, vector<1x1x8x16xbf16>
    %118 = vector.shape_cast %117 : vector<1x1x8x16xbf16> to vector<8x16xbf16>
    %c56_222 = arith.constant 56 : index
    %c64_223 = arith.constant 64 : index
    %119 = vector.load %arg4[%c56_222, %c64_223] : memref<64x256xbf16, #tpu.memory_space<vmem>>, vector<8x16xbf16>
    tpu.vector_store %arg4[%c56_222, %c64_223], %118 {strides = array<i32>} : memref<64x256xbf16, #tpu.memory_space<vmem>>, vector<8x16xbf16>,
    %c0_224 = arith.constant 0 : index
    %c0_225 = arith.constant 0 : index
    %c0_226 = arith.constant 0 : index
    %c48_227 = arith.constant 48 : index
    %120 = vector.load %arg1[%c0_224, %c0_225, %c0_226, %c48_227] : memref<1x9x9x64xbf16, #tpu.memory_space<vmem>>, vector<1x1x8x16xbf16>
    %121 = vector.shape_cast %120 : vector<1x1x8x16xbf16> to vector<8x16xbf16>
    %c0_228 = arith.constant 0 : index
    %c80 = arith.constant 80 : index
    %122 = vector.load %arg4[%c0_228, %c80] : memref<64x256xbf16, #tpu.memory_space<vmem>>, vector<8x16xbf16>
    tpu.vector_store %arg4[%c0_228, %c80], %121 {strides = array<i32>} : memref<64x256xbf16, #tpu.memory_space<vmem>>, vector<8x16xbf16>,
    %c0_229 = arith.constant 0 : index
    %c1_230 = arith.constant 1 : index
    %c0_231 = arith.constant 0 : index
    %c48_232 = arith.constant 48 : index
    %123 = vector.load %arg1[%c0_229, %c1_230, %c0_231, %c48_232] : memref<1x9x9x64xbf16, #tpu.memory_space<vmem>>, vector<1x1x8x16xbf16>
    %124 = vector.shape_cast %123 : vector<1x1x8x16xbf16> to vector<8x16xbf16>
    %c8_233 = arith.constant 8 : index
    %c80_234 = arith.constant 80 : index
    %125 = vector.load %arg4[%c8_233, %c80_234] : memref<64x256xbf16, #tpu.memory_space<vmem>>, vector<8x16xbf16>
    tpu.vector_store %arg4[%c8_233, %c80_234], %124 {strides = array<i32>} : memref<64x256xbf16, #tpu.memory_space<vmem>>, vector<8x16xbf16>,
    %c0_235 = arith.constant 0 : index
    %c2_236 = arith.constant 2 : index
    %c0_237 = arith.constant 0 : index
    %c48_238 = arith.constant 48 : index
    %126 = vector.load %arg1[%c0_235, %c2_236, %c0_237, %c48_238] : memref<1x9x9x64xbf16, #tpu.memory_space<vmem>>, vector<1x1x8x16xbf16>
    %127 = vector.shape_cast %126 : vector<1x1x8x16xbf16> to vector<8x16xbf16>
    %c16_239 = arith.constant 16 : index
    %c80_240 = arith.constant 80 : index
    %128 = vector.load %arg4[%c16_239, %c80_240] : memref<64x256xbf16, #tpu.memory_space<vmem>>, vector<8x16xbf16>
    tpu.vector_store %arg4[%c16_239, %c80_240], %127 {strides = array<i32>} : memref<64x256xbf16, #tpu.memory_space<vmem>>, vector<8x16xbf16>,
    %c0_241 = arith.constant 0 : index
    %c3_242 = arith.constant 3 : index
    %c0_243 = arith.constant 0 : index
    %c48_244 = arith.constant 48 : index
    %129 = vector.load %arg1[%c0_241, %c3_242, %c0_243, %c48_244] : memref<1x9x9x64xbf16, #tpu.memory_space<vmem>>, vector<1x1x8x16xbf16>
    %130 = vector.shape_cast %129 : vector<1x1x8x16xbf16> to vector<8x16xbf16>
    %c24_245 = arith.constant 24 : index
    %c80_246 = arith.constant 80 : index
    %131 = vector.load %arg4[%c24_245, %c80_246] : memref<64x256xbf16, #tpu.memory_space<vmem>>, vector<8x16xbf16>
    tpu.vector_store %arg4[%c24_245, %c80_246], %130 {strides = array<i32>} : memref<64x256xbf16, #tpu.memory_space<vmem>>, vector<8x16xbf16>,
    %c0_247 = arith.constant 0 : index
    %c4_248 = arith.constant 4 : index
    %c0_249 = arith.constant 0 : index
    %c48_250 = arith.constant 48 : index
    %132 = vector.load %arg1[%c0_247, %c4_248, %c0_249, %c48_250] : memref<1x9x9x64xbf16, #tpu.memory_space<vmem>>, vector<1x1x8x16xbf16>
    %133 = vector.shape_cast %132 : vector<1x1x8x16xbf16> to vector<8x16xbf16>
    %c32_251 = arith.constant 32 : index
    %c80_252 = arith.constant 80 : index
    %134 = vector.load %arg4[%c32_251, %c80_252] : memref<64x256xbf16, #tpu.memory_space<vmem>>, vector<8x16xbf16>
    tpu.vector_store %arg4[%c32_251, %c80_252], %133 {strides = array<i32>} : memref<64x256xbf16, #tpu.memory_space<vmem>>, vector<8x16xbf16>,
    %c0_253 = arith.constant 0 : index
    %c5_254 = arith.constant 5 : index
    %c0_255 = arith.constant 0 : index
    %c48_256 = arith.constant 48 : index
    %135 = vector.load %arg1[%c0_253, %c5_254, %c0_255, %c48_256] : memref<1x9x9x64xbf16, #tpu.memory_space<vmem>>, vector<1x1x8x16xbf16>
    %136 = vector.shape_cast %135 : vector<1x1x8x16xbf16> to vector<8x16xbf16>
    %c40_257 = arith.constant 40 : index
    %c80_258 = arith.constant 80 : index
    %137 = vector.load %arg4[%c40_257, %c80_258] : memref<64x256xbf16, #tpu.memory_space<vmem>>, vector<8x16xbf16>
    tpu.vector_store %arg4[%c40_257, %c80_258], %136 {strides = array<i32>} : memref<64x256xbf16, #tpu.memory_space<vmem>>, vector<8x16xbf16>,
    %c0_259 = arith.constant 0 : index
    %c6_260 = arith.constant 6 : index
    %c0_261 = arith.constant 0 : index
    %c48_262 = arith.constant 48 : index
    %138 = vector.load %arg1[%c0_259, %c6_260, %c0_261, %c48_262] : memref<1x9x9x64xbf16, #tpu.memory_space<vmem>>, vector<1x1x8x16xbf16>
    %139 = vector.shape_cast %138 : vector<1x1x8x16xbf16> to vector<8x16xbf16>
    %c48_263 = arith.constant 48 : index
    %c80_264 = arith.constant 80 : index
    %140 = vector.load %arg4[%c48_263, %c80_264] : memref<64x256xbf16, #tpu.memory_space<vmem>>, vector<8x16xbf16>
    tpu.vector_store %arg4[%c48_263, %c80_264], %139 {strides = array<i32>} : memref<64x256xbf16, #tpu.memory_space<vmem>>, vector<8x16xbf16>,
    %c0_265 = arith.constant 0 : index
    %c7_266 = arith.constant 7 : index
    %c0_267 = arith.constant 0 : index
    %c48_268 = arith.constant 48 : index
    %141 = vector.load %arg1[%c0_265, %c7_266, %c0_267, %c48_268] : memref<1x9x9x64xbf16, #tpu.memory_space<vmem>>, vector<1x1x8x16xbf16>
    %142 = vector.shape_cast %141 : vector<1x1x8x16xbf16> to vector<8x16xbf16>
    %c56_269 = arith.constant 56 : index
    %c80_270 = arith.constant 80 : index
    %143 = vector.load %arg4[%c56_269, %c80_270] : memref<64x256xbf16, #tpu.memory_space<vmem>>, vector<8x16xbf16>
    tpu.vector_store %arg4[%c56_269, %c80_270], %142 {strides = array<i32>} : memref<64x256xbf16, #tpu.memory_space<vmem>>, vector<8x16xbf16>,
    %c0_271 = arith.constant 0 : index
    %c0_272 = arith.constant 0 : index
    %c1_273 = arith.constant 1 : index
    %c32_274 = arith.constant 32 : index
    %144 = vector.load %arg1[%c0_271, %c0_272, %c1_273, %c32_274] : memref<1x9x9x64xbf16, #tpu.memory_space<vmem>>, vector<1x1x8x16xbf16>
    %145 = vector.shape_cast %144 : vector<1x1x8x16xbf16> to vector<8x16xbf16>
    %c0_275 = arith.constant 0 : index
    %c96 = arith.constant 96 : index
    %146 = vector.load %arg4[%c0_275, %c96] : memref<64x256xbf16, #tpu.memory_space<vmem>>, vector<8x16xbf16>
    tpu.vector_store %arg4[%c0_275, %c96], %145 {strides = array<i32>} : memref<64x256xbf16, #tpu.memory_space<vmem>>, vector<8x16xbf16>,
    %c0_276 = arith.constant 0 : index
    %c1_277 = arith.constant 1 : index
    %c1_278 = arith.constant 1 : index
    %c32_279 = arith.constant 32 : index
    %147 = vector.load %arg1[%c0_276, %c1_277, %c1_278, %c32_279] : memref<1x9x9x64xbf16, #tpu.memory_space<vmem>>, vector<1x1x8x16xbf16>
    %148 = vector.shape_cast %147 : vector<1x1x8x16xbf16> to vector<8x16xbf16>
    %c8_280 = arith.constant 8 : index
    %c96_281 = arith.constant 96 : index
    %149 = vector.load %arg4[%c8_280, %c96_281] : memref<64x256xbf16, #tpu.memory_space<vmem>>, vector<8x16xbf16>
    tpu.vector_store %arg4[%c8_280, %c96_281], %148 {strides = array<i32>} : memref<64x256xbf16, #tpu.memory_space<vmem>>, vector<8x16xbf16>,
    %c0_282 = arith.constant 0 : index
    %c2_283 = arith.constant 2 : index
    %c1_284 = arith.constant 1 : index
    %c32_285 = arith.constant 32 : index
    %150 = vector.load %arg1[%c0_282, %c2_283, %c1_284, %c32_285] : memref<1x9x9x64xbf16, #tpu.memory_space<vmem>>, vector<1x1x8x16xbf16>
    %151 = vector.shape_cast %150 : vector<1x1x8x16xbf16> to vector<8x16xbf16>
    %c16_286 = arith.constant 16 : index
    %c96_287 = arith.constant 96 : index
    %152 = vector.load %arg4[%c16_286, %c96_287] : memref<64x256xbf16, #tpu.memory_space<vmem>>, vector<8x16xbf16>
    tpu.vector_store %arg4[%c16_286, %c96_287], %151 {strides = array<i32>} : memref<64x256xbf16, #tpu.memory_space<vmem>>, vector<8x16xbf16>,
    %c0_288 = arith.constant 0 : index
    %c3_289 = arith.constant 3 : index
    %c1_290 = arith.constant 1 : index
    %c32_291 = arith.constant 32 : index
    %153 = vector.load %arg1[%c0_288, %c3_289, %c1_290, %c32_291] : memref<1x9x9x64xbf16, #tpu.memory_space<vmem>>, vector<1x1x8x16xbf16>
    %154 = vector.shape_cast %153 : vector<1x1x8x16xbf16> to vector<8x16xbf16>
    %c24_292 = arith.constant 24 : index
    %c96_293 = arith.constant 96 : index
    %155 = vector.load %arg4[%c24_292, %c96_293] : memref<64x256xbf16, #tpu.memory_space<vmem>>, vector<8x16xbf16>
    tpu.vector_store %arg4[%c24_292, %c96_293], %154 {strides = array<i32>} : memref<64x256xbf16, #tpu.memory_space<vmem>>, vector<8x16xbf16>,
    %c0_294 = arith.constant 0 : index
    %c4_295 = arith.constant 4 : index
    %c1_296 = arith.constant 1 : index
    %c32_297 = arith.constant 32 : index
    %156 = vector.load %arg1[%c0_294, %c4_295, %c1_296, %c32_297] : memref<1x9x9x64xbf16, #tpu.memory_space<vmem>>, vector<1x1x8x16xbf16>
    %157 = vector.shape_cast %156 : vector<1x1x8x16xbf16> to vector<8x16xbf16>
    %c32_298 = arith.constant 32 : index
    %c96_299 = arith.constant 96 : index
    %158 = vector.load %arg4[%c32_298, %c96_299] : memref<64x256xbf16, #tpu.memory_space<vmem>>, vector<8x16xbf16>
    tpu.vector_store %arg4[%c32_298, %c96_299], %157 {strides = array<i32>} : memref<64x256xbf16, #tpu.memory_space<vmem>>, vector<8x16xbf16>,
    %c0_300 = arith.constant 0 : index
    %c5_301 = arith.constant 5 : index
    %c1_302 = arith.constant 1 : index
    %c32_303 = arith.constant 32 : index
    %159 = vector.load %arg1[%c0_300, %c5_301, %c1_302, %c32_303] : memref<1x9x9x64xbf16, #tpu.memory_space<vmem>>, vector<1x1x8x16xbf16>
    %160 = vector.shape_cast %159 : vector<1x1x8x16xbf16> to vector<8x16xbf16>
    %c40_304 = arith.constant 40 : index
    %c96_305 = arith.constant 96 : index
    %161 = vector.load %arg4[%c40_304, %c96_305] : memref<64x256xbf16, #tpu.memory_space<vmem>>, vector<8x16xbf16>
    tpu.vector_store %arg4[%c40_304, %c96_305], %160 {strides = array<i32>} : memref<64x256xbf16, #tpu.memory_space<vmem>>, vector<8x16xbf16>,
    %c0_306 = arith.constant 0 : index
    %c6_307 = arith.constant 6 : index
    %c1_308 = arith.constant 1 : index
    %c32_309 = arith.constant 32 : index
    %162 = vector.load %arg1[%c0_306, %c6_307, %c1_308, %c32_309] : memref<1x9x9x64xbf16, #tpu.memory_space<vmem>>, vector<1x1x8x16xbf16>
    %163 = vector.shape_cast %162 : vector<1x1x8x16xbf16> to vector<8x16xbf16>
    %c48_310 = arith.constant 48 : index
    %c96_311 = arith.constant 96 : index
    %164 = vector.load %arg4[%c48_310, %c96_311] : memref<64x256xbf16, #tpu.memory_space<vmem>>, vector<8x16xbf16>
    tpu.vector_store %arg4[%c48_310, %c96_311], %163 {strides = array<i32>} : memref<64x256xbf16, #tpu.memory_space<vmem>>, vector<8x16xbf16>,
    %c0_312 = arith.constant 0 : index
    %c7_313 = arith.constant 7 : index
    %c1_314 = arith.constant 1 : index
    %c32_315 = arith.constant 32 : index
    %165 = vector.load %arg1[%c0_312, %c7_313, %c1_314, %c32_315] : memref<1x9x9x64xbf16, #tpu.memory_space<vmem>>, vector<1x1x8x16xbf16>
    %166 = vector.shape_cast %165 : vector<1x1x8x16xbf16> to vector<8x16xbf16>
    %c56_316 = arith.constant 56 : index
    %c96_317 = arith.constant 96 : index
    %167 = vector.load %arg4[%c56_316, %c96_317] : memref<64x256xbf16, #tpu.memory_space<vmem>>, vector<8x16xbf16>
    tpu.vector_store %arg4[%c56_316, %c96_317], %166 {strides = array<i32>} : memref<64x256xbf16, #tpu.memory_space<vmem>>, vector<8x16xbf16>,
    %c0_318 = arith.constant 0 : index
    %c0_319 = arith.constant 0 : index
    %c1_320 = arith.constant 1 : index
    %c48_321 = arith.constant 48 : index
    %168 = vector.load %arg1[%c0_318, %c0_319, %c1_320, %c48_321] : memref<1x9x9x64xbf16, #tpu.memory_space<vmem>>, vector<1x1x8x16xbf16>
    %169 = vector.shape_cast %168 : vector<1x1x8x16xbf16> to vector<8x16xbf16>
    %c0_322 = arith.constant 0 : index
    %c112 = arith.constant 112 : index
    %170 = vector.load %arg4[%c0_322, %c112] : memref<64x256xbf16, #tpu.memory_space<vmem>>, vector<8x16xbf16>
    tpu.vector_store %arg4[%c0_322, %c112], %169 {strides = array<i32>} : memref<64x256xbf16, #tpu.memory_space<vmem>>, vector<8x16xbf16>,
    %c0_323 = arith.constant 0 : index
    %c1_324 = arith.constant 1 : index
    %c1_325 = arith.constant 1 : index
    %c48_326 = arith.constant 48 : index
    %171 = vector.load %arg1[%c0_323, %c1_324, %c1_325, %c48_326] : memref<1x9x9x64xbf16, #tpu.memory_space<vmem>>, vector<1x1x8x16xbf16>
    %172 = vector.shape_cast %171 : vector<1x1x8x16xbf16> to vector<8x16xbf16>
    %c8_327 = arith.constant 8 : index
    %c112_328 = arith.constant 112 : index
    %173 = vector.load %arg4[%c8_327, %c112_328] : memref<64x256xbf16, #tpu.memory_space<vmem>>, vector<8x16xbf16>
    tpu.vector_store %arg4[%c8_327, %c112_328], %172 {strides = array<i32>} : memref<64x256xbf16, #tpu.memory_space<vmem>>, vector<8x16xbf16>,
    %c0_329 = arith.constant 0 : index
    %c2_330 = arith.constant 2 : index
    %c1_331 = arith.constant 1 : index
    %c48_332 = arith.constant 48 : index
    %174 = vector.load %arg1[%c0_329, %c2_330, %c1_331, %c48_332] : memref<1x9x9x64xbf16, #tpu.memory_space<vmem>>, vector<1x1x8x16xbf16>
    %175 = vector.shape_cast %174 : vector<1x1x8x16xbf16> to vector<8x16xbf16>
    %c16_333 = arith.constant 16 : index
    %c112_334 = arith.constant 112 : index
    %176 = vector.load %arg4[%c16_333, %c112_334] : memref<64x256xbf16, #tpu.memory_space<vmem>>, vector<8x16xbf16>
    tpu.vector_store %arg4[%c16_333, %c112_334], %175 {strides = array<i32>} : memref<64x256xbf16, #tpu.memory_space<vmem>>, vector<8x16xbf16>,
    %c0_335 = arith.constant 0 : index
    %c3_336 = arith.constant 3 : index
    %c1_337 = arith.constant 1 : index
    %c48_338 = arith.constant 48 : index
    %177 = vector.load %arg1[%c0_335, %c3_336, %c1_337, %c48_338] : memref<1x9x9x64xbf16, #tpu.memory_space<vmem>>, vector<1x1x8x16xbf16>
    %178 = vector.shape_cast %177 : vector<1x1x8x16xbf16> to vector<8x16xbf16>
    %c24_339 = arith.constant 24 : index
    %c112_340 = arith.constant 112 : index
    %179 = vector.load %arg4[%c24_339, %c112_340] : memref<64x256xbf16, #tpu.memory_space<vmem>>, vector<8x16xbf16>
    tpu.vector_store %arg4[%c24_339, %c112_340], %178 {strides = array<i32>} : memref<64x256xbf16, #tpu.memory_space<vmem>>, vector<8x16xbf16>,
    %c0_341 = arith.constant 0 : index
    %c4_342 = arith.constant 4 : index
    %c1_343 = arith.constant 1 : index
    %c48_344 = arith.constant 48 : index
    %180 = vector.load %arg1[%c0_341, %c4_342, %c1_343, %c48_344] : memref<1x9x9x64xbf16, #tpu.memory_space<vmem>>, vector<1x1x8x16xbf16>
    %181 = vector.shape_cast %180 : vector<1x1x8x16xbf16> to vector<8x16xbf16>
    %c32_345 = arith.constant 32 : index
    %c112_346 = arith.constant 112 : index
    %182 = vector.load %arg4[%c32_345, %c112_346] : memref<64x256xbf16, #tpu.memory_space<vmem>>, vector<8x16xbf16>
    tpu.vector_store %arg4[%c32_345, %c112_346], %181 {strides = array<i32>} : memref<64x256xbf16, #tpu.memory_space<vmem>>, vector<8x16xbf16>,
    %c0_347 = arith.constant 0 : index
    %c5_348 = arith.constant 5 : index
    %c1_349 = arith.constant 1 : index
    %c48_350 = arith.constant 48 : index
    %183 = vector.load %arg1[%c0_347, %c5_348, %c1_349, %c48_350] : memref<1x9x9x64xbf16, #tpu.memory_space<vmem>>, vector<1x1x8x16xbf16>
    %184 = vector.shape_cast %183 : vector<1x1x8x16xbf16> to vector<8x16xbf16>
    %c40_351 = arith.constant 40 : index
    %c112_352 = arith.constant 112 : index
    %185 = vector.load %arg4[%c40_351, %c112_352] : memref<64x256xbf16, #tpu.memory_space<vmem>>, vector<8x16xbf16>
    tpu.vector_store %arg4[%c40_351, %c112_352], %184 {strides = array<i32>} : memref<64x256xbf16, #tpu.memory_space<vmem>>, vector<8x16xbf16>,
    %c0_353 = arith.constant 0 : index
    %c6_354 = arith.constant 6 : index
    %c1_355 = arith.constant 1 : index
    %c48_356 = arith.constant 48 : index
    %186 = vector.load %arg1[%c0_353, %c6_354, %c1_355, %c48_356] : memref<1x9x9x64xbf16, #tpu.memory_space<vmem>>, vector<1x1x8x16xbf16>
    %187 = vector.shape_cast %186 : vector<1x1x8x16xbf16> to vector<8x16xbf16>
    %c48_357 = arith.constant 48 : index
    %c112_358 = arith.constant 112 : index
    %188 = vector.load %arg4[%c48_357, %c112_358] : memref<64x256xbf16, #tpu.memory_space<vmem>>, vector<8x16xbf16>
    tpu.vector_store %arg4[%c48_357, %c112_358], %187 {strides = array<i32>} : memref<64x256xbf16, #tpu.memory_space<vmem>>, vector<8x16xbf16>,
    %c0_359 = arith.constant 0 : index
    %c7_360 = arith.constant 7 : index
    %c1_361 = arith.constant 1 : index
    %c48_362 = arith.constant 48 : index
    %189 = vector.load %arg1[%c0_359, %c7_360, %c1_361, %c48_362] : memref<1x9x9x64xbf16, #tpu.memory_space<vmem>>, vector<1x1x8x16xbf16>
    %190 = vector.shape_cast %189 : vector<1x1x8x16xbf16> to vector<8x16xbf16>
    %c56_363 = arith.constant 56 : index
    %c112_364 = arith.constant 112 : index
    %191 = vector.load %arg4[%c56_363, %c112_364] : memref<64x256xbf16, #tpu.memory_space<vmem>>, vector<8x16xbf16>
    tpu.vector_store %arg4[%c56_363, %c112_364], %190 {strides = array<i32>} : memref<64x256xbf16, #tpu.memory_space<vmem>>, vector<8x16xbf16>,
    %c0_365 = arith.constant 0 : index
    %c1_366 = arith.constant 1 : index
    %c0_367 = arith.constant 0 : index
    %c0_368 = arith.constant 0 : index
    %192 = vector.load %arg1[%c0_365, %c1_366, %c0_367, %c0_368] : memref<1x9x9x64xbf16, #tpu.memory_space<vmem>>, vector<1x1x8x16xbf16>
    %193 = vector.shape_cast %192 : vector<1x1x8x16xbf16> to vector<8x16xbf16>
    %c0_369 = arith.constant 0 : index
    %c128 = arith.constant 128 : index
    %194 = vector.load %arg4[%c0_369, %c128] : memref<64x256xbf16, #tpu.memory_space<vmem>>, vector<8x16xbf16>
    tpu.vector_store %arg4[%c0_369, %c128], %193 {strides = array<i32>} : memref<64x256xbf16, #tpu.memory_space<vmem>>, vector<8x16xbf16>,
    %c0_370 = arith.constant 0 : index
    %c2_371 = arith.constant 2 : index
    %c0_372 = arith.constant 0 : index
    %c0_373 = arith.constant 0 : index
    %195 = vector.load %arg1[%c0_370, %c2_371, %c0_372, %c0_373] : memref<1x9x9x64xbf16, #tpu.memory_space<vmem>>, vector<1x1x8x16xbf16>
    %196 = vector.shape_cast %195 : vector<1x1x8x16xbf16> to vector<8x16xbf16>
    %c8_374 = arith.constant 8 : index
    %c128_375 = arith.constant 128 : index
    %197 = vector.load %arg4[%c8_374, %c128_375] : memref<64x256xbf16, #tpu.memory_space<vmem>>, vector<8x16xbf16>
    tpu.vector_store %arg4[%c8_374, %c128_375], %196 {strides = array<i32>} : memref<64x256xbf16, #tpu.memory_space<vmem>>, vector<8x16xbf16>,
    %c0_376 = arith.constant 0 : index
    %c3_377 = arith.constant 3 : index
    %c0_378 = arith.constant 0 : index
    %c0_379 = arith.constant 0 : index
    %198 = vector.load %arg1[%c0_376, %c3_377, %c0_378, %c0_379] : memref<1x9x9x64xbf16, #tpu.memory_space<vmem>>, vector<1x1x8x16xbf16>
    %199 = vector.shape_cast %198 : vector<1x1x8x16xbf16> to vector<8x16xbf16>
    %c16_380 = arith.constant 16 : index
    %c128_381 = arith.constant 128 : index
    %200 = vector.load %arg4[%c16_380, %c128_381] : memref<64x256xbf16, #tpu.memory_space<vmem>>, vector<8x16xbf16>
    tpu.vector_store %arg4[%c16_380, %c128_381], %199 {strides = array<i32>} : memref<64x256xbf16, #tpu.memory_space<vmem>>, vector<8x16xbf16>,
    %c0_382 = arith.constant 0 : index
    %c4_383 = arith.constant 4 : index
    %c0_384 = arith.constant 0 : index
    %c0_385 = arith.constant 0 : index
    %201 = vector.load %arg1[%c0_382, %c4_383, %c0_384, %c0_385] : memref<1x9x9x64xbf16, #tpu.memory_space<vmem>>, vector<1x1x8x16xbf16>
    %202 = vector.shape_cast %201 : vector<1x1x8x16xbf16> to vector<8x16xbf16>
    %c24_386 = arith.constant 24 : index
    %c128_387 = arith.constant 128 : index
    %203 = vector.load %arg4[%c24_386, %c128_387] : memref<64x256xbf16, #tpu.memory_space<vmem>>, vector<8x16xbf16>
    tpu.vector_store %arg4[%c24_386, %c128_387], %202 {strides = array<i32>} : memref<64x256xbf16, #tpu.memory_space<vmem>>, vector<8x16xbf16>,
    %c0_388 = arith.constant 0 : index
    %c5_389 = arith.constant 5 : index
    %c0_390 = arith.constant 0 : index
    %c0_391 = arith.constant 0 : index
    %204 = vector.load %arg1[%c0_388, %c5_389, %c0_390, %c0_391] : memref<1x9x9x64xbf16, #tpu.memory_space<vmem>>, vector<1x1x8x16xbf16>
    %205 = vector.shape_cast %204 : vector<1x1x8x16xbf16> to vector<8x16xbf16>
    %c32_392 = arith.constant 32 : index
    %c128_393 = arith.constant 128 : index
    %206 = vector.load %arg4[%c32_392, %c128_393] : memref<64x256xbf16, #tpu.memory_space<vmem>>, vector<8x16xbf16>
    tpu.vector_store %arg4[%c32_392, %c128_393], %205 {strides = array<i32>} : memref<64x256xbf16, #tpu.memory_space<vmem>>, vector<8x16xbf16>,
    %c0_394 = arith.constant 0 : index
    %c6_395 = arith.constant 6 : index
    %c0_396 = arith.constant 0 : index
    %c0_397 = arith.constant 0 : index
    %207 = vector.load %arg1[%c0_394, %c6_395, %c0_396, %c0_397] : memref<1x9x9x64xbf16, #tpu.memory_space<vmem>>, vector<1x1x8x16xbf16>
    %208 = vector.shape_cast %207 : vector<1x1x8x16xbf16> to vector<8x16xbf16>
    %c40_398 = arith.constant 40 : index
    %c128_399 = arith.constant 128 : index
    %209 = vector.load %arg4[%c40_398, %c128_399] : memref<64x256xbf16, #tpu.memory_space<vmem>>, vector<8x16xbf16>
    tpu.vector_store %arg4[%c40_398, %c128_399], %208 {strides = array<i32>} : memref<64x256xbf16, #tpu.memory_space<vmem>>, vector<8x16xbf16>,
    %c0_400 = arith.constant 0 : index
    %c7_401 = arith.constant 7 : index
    %c0_402 = arith.constant 0 : index
    %c0_403 = arith.constant 0 : index
    %210 = vector.load %arg1[%c0_400, %c7_401, %c0_402, %c0_403] : memref<1x9x9x64xbf16, #tpu.memory_space<vmem>>, vector<1x1x8x16xbf16>
    %211 = vector.shape_cast %210 : vector<1x1x8x16xbf16> to vector<8x16xbf16>
    %c48_404 = arith.constant 48 : index
    %c128_405 = arith.constant 128 : index
    %212 = vector.load %arg4[%c48_404, %c128_405] : memref<64x256xbf16, #tpu.memory_space<vmem>>, vector<8x16xbf16>
    tpu.vector_store %arg4[%c48_404, %c128_405], %211 {strides = array<i32>} : memref<64x256xbf16, #tpu.memory_space<vmem>>, vector<8x16xbf16>,
    %c0_406 = arith.constant 0 : index
    %c8_407 = arith.constant 8 : index
    %c0_408 = arith.constant 0 : index
    %c0_409 = arith.constant 0 : index
    %213 = vector.load %arg1[%c0_406, %c8_407, %c0_408, %c0_409] : memref<1x9x9x64xbf16, #tpu.memory_space<vmem>>, vector<1x1x8x16xbf16>
    %214 = vector.shape_cast %213 : vector<1x1x8x16xbf16> to vector<8x16xbf16>
    %c56_410 = arith.constant 56 : index
    %c128_411 = arith.constant 128 : index
    %215 = vector.load %arg4[%c56_410, %c128_411] : memref<64x256xbf16, #tpu.memory_space<vmem>>, vector<8x16xbf16>
    tpu.vector_store %arg4[%c56_410, %c128_411], %214 {strides = array<i32>} : memref<64x256xbf16, #tpu.memory_space<vmem>>, vector<8x16xbf16>,
    %c0_412 = arith.constant 0 : index
    %c1_413 = arith.constant 1 : index
    %c0_414 = arith.constant 0 : index
    %c16_415 = arith.constant 16 : index
    %216 = vector.load %arg1[%c0_412, %c1_413, %c0_414, %c16_415] : memref<1x9x9x64xbf16, #tpu.memory_space<vmem>>, vector<1x1x8x16xbf16>
    %217 = vector.shape_cast %216 : vector<1x1x8x16xbf16> to vector<8x16xbf16>
    %c0_416 = arith.constant 0 : index
    %c144 = arith.constant 144 : index
    %218 = vector.load %arg4[%c0_416, %c144] : memref<64x256xbf16, #tpu.memory_space<vmem>>, vector<8x16xbf16>
    tpu.vector_store %arg4[%c0_416, %c144], %217 {strides = array<i32>} : memref<64x256xbf16, #tpu.memory_space<vmem>>, vector<8x16xbf16>,
    %c0_417 = arith.constant 0 : index
    %c2_418 = arith.constant 2 : index
    %c0_419 = arith.constant 0 : index
    %c16_420 = arith.constant 16 : index
    %219 = vector.load %arg1[%c0_417, %c2_418, %c0_419, %c16_420] : memref<1x9x9x64xbf16, #tpu.memory_space<vmem>>, vector<1x1x8x16xbf16>
    %220 = vector.shape_cast %219 : vector<1x1x8x16xbf16> to vector<8x16xbf16>
    %c8_421 = arith.constant 8 : index
    %c144_422 = arith.constant 144 : index
    %221 = vector.load %arg4[%c8_421, %c144_422] : memref<64x256xbf16, #tpu.memory_space<vmem>>, vector<8x16xbf16>
    tpu.vector_store %arg4[%c8_421, %c144_422], %220 {strides = array<i32>} : memref<64x256xbf16, #tpu.memory_space<vmem>>, vector<8x16xbf16>,
    %c0_423 = arith.constant 0 : index
    %c3_424 = arith.constant 3 : index
    %c0_425 = arith.constant 0 : index
    %c16_426 = arith.constant 16 : index
    %222 = vector.load %arg1[%c0_423, %c3_424, %c0_425, %c16_426] : memref<1x9x9x64xbf16, #tpu.memory_space<vmem>>, vector<1x1x8x16xbf16>
    %223 = vector.shape_cast %222 : vector<1x1x8x16xbf16> to vector<8x16xbf16>
    %c16_427 = arith.constant 16 : index
    %c144_428 = arith.constant 144 : index
    %224 = vector.load %arg4[%c16_427, %c144_428] : memref<64x256xbf16, #tpu.memory_space<vmem>>, vector<8x16xbf16>
    tpu.vector_store %arg4[%c16_427, %c144_428], %223 {strides = array<i32>} : memref<64x256xbf16, #tpu.memory_space<vmem>>, vector<8x16xbf16>,
    %c0_429 = arith.constant 0 : index
    %c4_430 = arith.constant 4 : index
    %c0_431 = arith.constant 0 : index
    %c16_432 = arith.constant 16 : index
    %225 = vector.load %arg1[%c0_429, %c4_430, %c0_431, %c16_432] : memref<1x9x9x64xbf16, #tpu.memory_space<vmem>>, vector<1x1x8x16xbf16>
    %226 = vector.shape_cast %225 : vector<1x1x8x16xbf16> to vector<8x16xbf16>
    %c24_433 = arith.constant 24 : index
    %c144_434 = arith.constant 144 : index
    %227 = vector.load %arg4[%c24_433, %c144_434] : memref<64x256xbf16, #tpu.memory_space<vmem>>, vector<8x16xbf16>
    tpu.vector_store %arg4[%c24_433, %c144_434], %226 {strides = array<i32>} : memref<64x256xbf16, #tpu.memory_space<vmem>>, vector<8x16xbf16>,
    %c0_435 = arith.constant 0 : index
    %c5_436 = arith.constant 5 : index
    %c0_437 = arith.constant 0 : index
    %c16_438 = arith.constant 16 : index
    %228 = vector.load %arg1[%c0_435, %c5_436, %c0_437, %c16_438] : memref<1x9x9x64xbf16, #tpu.memory_space<vmem>>, vector<1x1x8x16xbf16>
    %229 = vector.shape_cast %228 : vector<1x1x8x16xbf16> to vector<8x16xbf16>
    %c32_439 = arith.constant 32 : index
    %c144_440 = arith.constant 144 : index
    %230 = vector.load %arg4[%c32_439, %c144_440] : memref<64x256xbf16, #tpu.memory_space<vmem>>, vector<8x16xbf16>
    tpu.vector_store %arg4[%c32_439, %c144_440], %229 {strides = array<i32>} : memref<64x256xbf16, #tpu.memory_space<vmem>>, vector<8x16xbf16>,
    %c0_441 = arith.constant 0 : index
    %c6_442 = arith.constant 6 : index
    %c0_443 = arith.constant 0 : index
    %c16_444 = arith.constant 16 : index
    %231 = vector.load %arg1[%c0_441, %c6_442, %c0_443, %c16_444] : memref<1x9x9x64xbf16, #tpu.memory_space<vmem>>, vector<1x1x8x16xbf16>
    %232 = vector.shape_cast %231 : vector<1x1x8x16xbf16> to vector<8x16xbf16>
    %c40_445 = arith.constant 40 : index
    %c144_446 = arith.constant 144 : index
    %233 = vector.load %arg4[%c40_445, %c144_446] : memref<64x256xbf16, #tpu.memory_space<vmem>>, vector<8x16xbf16>
    tpu.vector_store %arg4[%c40_445, %c144_446], %232 {strides = array<i32>} : memref<64x256xbf16, #tpu.memory_space<vmem>>, vector<8x16xbf16>,
    %c0_447 = arith.constant 0 : index
    %c7_448 = arith.constant 7 : index
    %c0_449 = arith.constant 0 : index
    %c16_450 = arith.constant 16 : index
    %234 = vector.load %arg1[%c0_447, %c7_448, %c0_449, %c16_450] : memref<1x9x9x64xbf16, #tpu.memory_space<vmem>>, vector<1x1x8x16xbf16>
    %235 = vector.shape_cast %234 : vector<1x1x8x16xbf16> to vector<8x16xbf16>
    %c48_451 = arith.constant 48 : index
    %c144_452 = arith.constant 144 : index
    %236 = vector.load %arg4[%c48_451, %c144_452] : memref<64x256xbf16, #tpu.memory_space<vmem>>, vector<8x16xbf16>
    tpu.vector_store %arg4[%c48_451, %c144_452], %235 {strides = array<i32>} : memref<64x256xbf16, #tpu.memory_space<vmem>>, vector<8x16xbf16>,
    %c0_453 = arith.constant 0 : index
    %c8_454 = arith.constant 8 : index
    %c0_455 = arith.constant 0 : index
    %c16_456 = arith.constant 16 : index
    %237 = vector.load %arg1[%c0_453, %c8_454, %c0_455, %c16_456] : memref<1x9x9x64xbf16, #tpu.memory_space<vmem>>, vector<1x1x8x16xbf16>
    %238 = vector.shape_cast %237 : vector<1x1x8x16xbf16> to vector<8x16xbf16>
    %c56_457 = arith.constant 56 : index
    %c144_458 = arith.constant 144 : index
    %239 = vector.load %arg4[%c56_457, %c144_458] : memref<64x256xbf16, #tpu.memory_space<vmem>>, vector<8x16xbf16>
    tpu.vector_store %arg4[%c56_457, %c144_458], %238 {strides = array<i32>} : memref<64x256xbf16, #tpu.memory_space<vmem>>, vector<8x16xbf16>,
    %c0_459 = arith.constant 0 : index
    %c1_460 = arith.constant 1 : index
    %c1_461 = arith.constant 1 : index
    %c0_462 = arith.constant 0 : index
    %240 = vector.load %arg1[%c0_459, %c1_460, %c1_461, %c0_462] : memref<1x9x9x64xbf16, #tpu.memory_space<vmem>>, vector<1x1x8x16xbf16>
    %241 = vector.shape_cast %240 : vector<1x1x8x16xbf16> to vector<8x16xbf16>
    %c0_463 = arith.constant 0 : index
    %c160 = arith.constant 160 : index
    %242 = vector.load %arg4[%c0_463, %c160] : memref<64x256xbf16, #tpu.memory_space<vmem>>, vector<8x16xbf16>
    tpu.vector_store %arg4[%c0_463, %c160], %241 {strides = array<i32>} : memref<64x256xbf16, #tpu.memory_space<vmem>>, vector<8x16xbf16>,
    %c0_464 = arith.constant 0 : index
    %c2_465 = arith.constant 2 : index
    %c1_466 = arith.constant 1 : index
    %c0_467 = arith.constant 0 : index
    %243 = vector.load %arg1[%c0_464, %c2_465, %c1_466, %c0_467] : memref<1x9x9x64xbf16, #tpu.memory_space<vmem>>, vector<1x1x8x16xbf16>
    %244 = vector.shape_cast %243 : vector<1x1x8x16xbf16> to vector<8x16xbf16>
    %c8_468 = arith.constant 8 : index
    %c160_469 = arith.constant 160 : index
    %245 = vector.load %arg4[%c8_468, %c160_469] : memref<64x256xbf16, #tpu.memory_space<vmem>>, vector<8x16xbf16>
    tpu.vector_store %arg4[%c8_468, %c160_469], %244 {strides = array<i32>} : memref<64x256xbf16, #tpu.memory_space<vmem>>, vector<8x16xbf16>,
    %c0_470 = arith.constant 0 : index
    %c3_471 = arith.constant 3 : index
    %c1_472 = arith.constant 1 : index
    %c0_473 = arith.constant 0 : index
    %246 = vector.load %arg1[%c0_470, %c3_471, %c1_472, %c0_473] : memref<1x9x9x64xbf16, #tpu.memory_space<vmem>>, vector<1x1x8x16xbf16>
    %247 = vector.shape_cast %246 : vector<1x1x8x16xbf16> to vector<8x16xbf16>
    %c16_474 = arith.constant 16 : index
    %c160_475 = arith.constant 160 : index
    %248 = vector.load %arg4[%c16_474, %c160_475] : memref<64x256xbf16, #tpu.memory_space<vmem>>, vector<8x16xbf16>
    tpu.vector_store %arg4[%c16_474, %c160_475], %247 {strides = array<i32>} : memref<64x256xbf16, #tpu.memory_space<vmem>>, vector<8x16xbf16>,
    %c0_476 = arith.constant 0 : index
    %c4_477 = arith.constant 4 : index
    %c1_478 = arith.constant 1 : index
    %c0_479 = arith.constant 0 : index
    %249 = vector.load %arg1[%c0_476, %c4_477, %c1_478, %c0_479] : memref<1x9x9x64xbf16, #tpu.memory_space<vmem>>, vector<1x1x8x16xbf16>
    %250 = vector.shape_cast %249 : vector<1x1x8x16xbf16> to vector<8x16xbf16>
    %c24_480 = arith.constant 24 : index
    %c160_481 = arith.constant 160 : index
    %251 = vector.load %arg4[%c24_480, %c160_481] : memref<64x256xbf16, #tpu.memory_space<vmem>>, vector<8x16xbf16>
    tpu.vector_store %arg4[%c24_480, %c160_481], %250 {strides = array<i32>} : memref<64x256xbf16, #tpu.memory_space<vmem>>, vector<8x16xbf16>,
    %c0_482 = arith.constant 0 : index
    %c5_483 = arith.constant 5 : index
    %c1_484 = arith.constant 1 : index
    %c0_485 = arith.constant 0 : index
    %252 = vector.load %arg1[%c0_482, %c5_483, %c1_484, %c0_485] : memref<1x9x9x64xbf16, #tpu.memory_space<vmem>>, vector<1x1x8x16xbf16>
    %253 = vector.shape_cast %252 : vector<1x1x8x16xbf16> to vector<8x16xbf16>
    %c32_486 = arith.constant 32 : index
    %c160_487 = arith.constant 160 : index
    %254 = vector.load %arg4[%c32_486, %c160_487] : memref<64x256xbf16, #tpu.memory_space<vmem>>, vector<8x16xbf16>
    tpu.vector_store %arg4[%c32_486, %c160_487], %253 {strides = array<i32>} : memref<64x256xbf16, #tpu.memory_space<vmem>>, vector<8x16xbf16>,
    %c0_488 = arith.constant 0 : index
    %c6_489 = arith.constant 6 : index
    %c1_490 = arith.constant 1 : index
    %c0_491 = arith.constant 0 : index
    %255 = vector.load %arg1[%c0_488, %c6_489, %c1_490, %c0_491] : memref<1x9x9x64xbf16, #tpu.memory_space<vmem>>, vector<1x1x8x16xbf16>
    %256 = vector.shape_cast %255 : vector<1x1x8x16xbf16> to vector<8x16xbf16>
    %c40_492 = arith.constant 40 : index
    %c160_493 = arith.constant 160 : index
    %257 = vector.load %arg4[%c40_492, %c160_493] : memref<64x256xbf16, #tpu.memory_space<vmem>>, vector<8x16xbf16>
    tpu.vector_store %arg4[%c40_492, %c160_493], %256 {strides = array<i32>} : memref<64x256xbf16, #tpu.memory_space<vmem>>, vector<8x16xbf16>,
    %c0_494 = arith.constant 0 : index
    %c7_495 = arith.constant 7 : index
    %c1_496 = arith.constant 1 : index
    %c0_497 = arith.constant 0 : index
    %258 = vector.load %arg1[%c0_494, %c7_495, %c1_496, %c0_497] : memref<1x9x9x64xbf16, #tpu.memory_space<vmem>>, vector<1x1x8x16xbf16>
    %259 = vector.shape_cast %258 : vector<1x1x8x16xbf16> to vector<8x16xbf16>
    %c48_498 = arith.constant 48 : index
    %c160_499 = arith.constant 160 : index
    %260 = vector.load %arg4[%c48_498, %c160_499] : memref<64x256xbf16, #tpu.memory_space<vmem>>, vector<8x16xbf16>
    tpu.vector_store %arg4[%c48_498, %c160_499], %259 {strides = array<i32>} : memref<64x256xbf16, #tpu.memory_space<vmem>>, vector<8x16xbf16>,
    %c0_500 = arith.constant 0 : index
    %c8_501 = arith.constant 8 : index
    %c1_502 = arith.constant 1 : index
    %c0_503 = arith.constant 0 : index
    %261 = vector.load %arg1[%c0_500, %c8_501, %c1_502, %c0_503] : memref<1x9x9x64xbf16, #tpu.memory_space<vmem>>, vector<1x1x8x16xbf16>
    %262 = vector.shape_cast %261 : vector<1x1x8x16xbf16> to vector<8x16xbf16>
    %c56_504 = arith.constant 56 : index
    %c160_505 = arith.constant 160 : index
    %263 = vector.load %arg4[%c56_504, %c160_505] : memref<64x256xbf16, #tpu.memory_space<vmem>>, vector<8x16xbf16>
    tpu.vector_store %arg4[%c56_504, %c160_505], %262 {strides = array<i32>} : memref<64x256xbf16, #tpu.memory_space<vmem>>, vector<8x16xbf16>,
    %c0_506 = arith.constant 0 : index
    %c1_507 = arith.constant 1 : index
    %c1_508 = arith.constant 1 : index
    %c16_509 = arith.constant 16 : index
    %264 = vector.load %arg1[%c0_506, %c1_507, %c1_508, %c16_509] : memref<1x9x9x64xbf16, #tpu.memory_space<vmem>>, vector<1x1x8x16xbf16>
    %265 = vector.shape_cast %264 : vector<1x1x8x16xbf16> to vector<8x16xbf16>
    %c0_510 = arith.constant 0 : index
    %c176 = arith.constant 176 : index
    %266 = vector.load %arg4[%c0_510, %c176] : memref<64x256xbf16, #tpu.memory_space<vmem>>, vector<8x16xbf16>
    tpu.vector_store %arg4[%c0_510, %c176], %265 {strides = array<i32>} : memref<64x256xbf16, #tpu.memory_space<vmem>>, vector<8x16xbf16>,
    %c0_511 = arith.constant 0 : index
    %c2_512 = arith.constant 2 : index
    %c1_513 = arith.constant 1 : index
    %c16_514 = arith.constant 16 : index
    %267 = vector.load %arg1[%c0_511, %c2_512, %c1_513, %c16_514] : memref<1x9x9x64xbf16, #tpu.memory_space<vmem>>, vector<1x1x8x16xbf16>
    %268 = vector.shape_cast %267 : vector<1x1x8x16xbf16> to vector<8x16xbf16>
    %c8_515 = arith.constant 8 : index
    %c176_516 = arith.constant 176 : index
    %269 = vector.load %arg4[%c8_515, %c176_516] : memref<64x256xbf16, #tpu.memory_space<vmem>>, vector<8x16xbf16>
    tpu.vector_store %arg4[%c8_515, %c176_516], %268 {strides = array<i32>} : memref<64x256xbf16, #tpu.memory_space<vmem>>, vector<8x16xbf16>,
    %c0_517 = arith.constant 0 : index
    %c3_518 = arith.constant 3 : index
    %c1_519 = arith.constant 1 : index
    %c16_520 = arith.constant 16 : index
    %270 = vector.load %arg1[%c0_517, %c3_518, %c1_519, %c16_520] : memref<1x9x9x64xbf16, #tpu.memory_space<vmem>>, vector<1x1x8x16xbf16>
    %271 = vector.shape_cast %270 : vector<1x1x8x16xbf16> to vector<8x16xbf16>
    %c16_521 = arith.constant 16 : index
    %c176_522 = arith.constant 176 : index
    %272 = vector.load %arg4[%c16_521, %c176_522] : memref<64x256xbf16, #tpu.memory_space<vmem>>, vector<8x16xbf16>
    tpu.vector_store %arg4[%c16_521, %c176_522], %271 {strides = array<i32>} : memref<64x256xbf16, #tpu.memory_space<vmem>>, vector<8x16xbf16>,
    %c0_523 = arith.constant 0 : index
    %c4_524 = arith.constant 4 : index
    %c1_525 = arith.constant 1 : index
    %c16_526 = arith.constant 16 : index
    %273 = vector.load %arg1[%c0_523, %c4_524, %c1_525, %c16_526] : memref<1x9x9x64xbf16, #tpu.memory_space<vmem>>, vector<1x1x8x16xbf16>
    %274 = vector.shape_cast %273 : vector<1x1x8x16xbf16> to vector<8x16xbf16>
    %c24_527 = arith.constant 24 : index
    %c176_528 = arith.constant 176 : index
    %275 = vector.load %arg4[%c24_527, %c176_528] : memref<64x256xbf16, #tpu.memory_space<vmem>>, vector<8x16xbf16>
    tpu.vector_store %arg4[%c24_527, %c176_528], %274 {strides = array<i32>} : memref<64x256xbf16, #tpu.memory_space<vmem>>, vector<8x16xbf16>,
    %c0_529 = arith.constant 0 : index
    %c5_530 = arith.constant 5 : index
    %c1_531 = arith.constant 1 : index
    %c16_532 = arith.constant 16 : index
    %276 = vector.load %arg1[%c0_529, %c5_530, %c1_531, %c16_532] : memref<1x9x9x64xbf16, #tpu.memory_space<vmem>>, vector<1x1x8x16xbf16>
    %277 = vector.shape_cast %276 : vector<1x1x8x16xbf16> to vector<8x16xbf16>
    %c32_533 = arith.constant 32 : index
    %c176_534 = arith.constant 176 : index
    %278 = vector.load %arg4[%c32_533, %c176_534] : memref<64x256xbf16, #tpu.memory_space<vmem>>, vector<8x16xbf16>
    tpu.vector_store %arg4[%c32_533, %c176_534], %277 {strides = array<i32>} : memref<64x256xbf16, #tpu.memory_space<vmem>>, vector<8x16xbf16>,
    %c0_535 = arith.constant 0 : index
    %c6_536 = arith.constant 6 : index
    %c1_537 = arith.constant 1 : index
    %c16_538 = arith.constant 16 : index
    %279 = vector.load %arg1[%c0_535, %c6_536, %c1_537, %c16_538] : memref<1x9x9x64xbf16, #tpu.memory_space<vmem>>, vector<1x1x8x16xbf16>
    %280 = vector.shape_cast %279 : vector<1x1x8x16xbf16> to vector<8x16xbf16>
    %c40_539 = arith.constant 40 : index
    %c176_540 = arith.constant 176 : index
    %281 = vector.load %arg4[%c40_539, %c176_540] : memref<64x256xbf16, #tpu.memory_space<vmem>>, vector<8x16xbf16>
    tpu.vector_store %arg4[%c40_539, %c176_540], %280 {strides = array<i32>} : memref<64x256xbf16, #tpu.memory_space<vmem>>, vector<8x16xbf16>,
    %c0_541 = arith.constant 0 : index
    %c7_542 = arith.constant 7 : index
    %c1_543 = arith.constant 1 : index
    %c16_544 = arith.constant 16 : index
    %282 = vector.load %arg1[%c0_541, %c7_542, %c1_543, %c16_544] : memref<1x9x9x64xbf16, #tpu.memory_space<vmem>>, vector<1x1x8x16xbf16>
    %283 = vector.shape_cast %282 : vector<1x1x8x16xbf16> to vector<8x16xbf16>
    %c48_545 = arith.constant 48 : index
    %c176_546 = arith.constant 176 : index
    %284 = vector.load %arg4[%c48_545, %c176_546] : memref<64x256xbf16, #tpu.memory_space<vmem>>, vector<8x16xbf16>
    tpu.vector_store %arg4[%c48_545, %c176_546], %283 {strides = array<i32>} : memref<64x256xbf16, #tpu.memory_space<vmem>>, vector<8x16xbf16>,
    %c0_547 = arith.constant 0 : index
    %c8_548 = arith.constant 8 : index
    %c1_549 = arith.constant 1 : index
    %c16_550 = arith.constant 16 : index
    %285 = vector.load %arg1[%c0_547, %c8_548, %c1_549, %c16_550] : memref<1x9x9x64xbf16, #tpu.memory_space<vmem>>, vector<1x1x8x16xbf16>
    %286 = vector.shape_cast %285 : vector<1x1x8x16xbf16> to vector<8x16xbf16>
    %c56_551 = arith.constant 56 : index
    %c176_552 = arith.constant 176 : index
    %287 = vector.load %arg4[%c56_551, %c176_552] : memref<64x256xbf16, #tpu.memory_space<vmem>>, vector<8x16xbf16>
    tpu.vector_store %arg4[%c56_551, %c176_552], %286 {strides = array<i32>} : memref<64x256xbf16, #tpu.memory_space<vmem>>, vector<8x16xbf16>,
    %c0_553 = arith.constant 0 : index
    %c1_554 = arith.constant 1 : index
    %c0_555 = arith.constant 0 : index
    %c32_556 = arith.constant 32 : index
    %288 = vector.load %arg1[%c0_553, %c1_554, %c0_555, %c32_556] : memref<1x9x9x64xbf16, #tpu.memory_space<vmem>>, vector<1x1x8x16xbf16>
    %289 = vector.shape_cast %288 : vector<1x1x8x16xbf16> to vector<8x16xbf16>
    %c0_557 = arith.constant 0 : index
    %c192 = arith.constant 192 : index
    %290 = vector.load %arg4[%c0_557, %c192] : memref<64x256xbf16, #tpu.memory_space<vmem>>, vector<8x16xbf16>
    tpu.vector_store %arg4[%c0_557, %c192], %289 {strides = array<i32>} : memref<64x256xbf16, #tpu.memory_space<vmem>>, vector<8x16xbf16>,
    %c0_558 = arith.constant 0 : index
    %c2_559 = arith.constant 2 : index
    %c0_560 = arith.constant 0 : index
    %c32_561 = arith.constant 32 : index
    %291 = vector.load %arg1[%c0_558, %c2_559, %c0_560, %c32_561] : memref<1x9x9x64xbf16, #tpu.memory_space<vmem>>, vector<1x1x8x16xbf16>
    %292 = vector.shape_cast %291 : vector<1x1x8x16xbf16> to vector<8x16xbf16>
    %c8_562 = arith.constant 8 : index
    %c192_563 = arith.constant 192 : index
    %293 = vector.load %arg4[%c8_562, %c192_563] : memref<64x256xbf16, #tpu.memory_space<vmem>>, vector<8x16xbf16>
    tpu.vector_store %arg4[%c8_562, %c192_563], %292 {strides = array<i32>} : memref<64x256xbf16, #tpu.memory_space<vmem>>, vector<8x16xbf16>,
    %c0_564 = arith.constant 0 : index
    %c3_565 = arith.constant 3 : index
    %c0_566 = arith.constant 0 : index
    %c32_567 = arith.constant 32 : index
    %294 = vector.load %arg1[%c0_564, %c3_565, %c0_566, %c32_567] : memref<1x9x9x64xbf16, #tpu.memory_space<vmem>>, vector<1x1x8x16xbf16>
    %295 = vector.shape_cast %294 : vector<1x1x8x16xbf16> to vector<8x16xbf16>
    %c16_568 = arith.constant 16 : index
    %c192_569 = arith.constant 192 : index
    %296 = vector.load %arg4[%c16_568, %c192_569] : memref<64x256xbf16, #tpu.memory_space<vmem>>, vector<8x16xbf16>
    tpu.vector_store %arg4[%c16_568, %c192_569], %295 {strides = array<i32>} : memref<64x256xbf16, #tpu.memory_space<vmem>>, vector<8x16xbf16>,
    %c0_570 = arith.constant 0 : index
    %c4_571 = arith.constant 4 : index
    %c0_572 = arith.constant 0 : index
    %c32_573 = arith.constant 32 : index
    %297 = vector.load %arg1[%c0_570, %c4_571, %c0_572, %c32_573] : memref<1x9x9x64xbf16, #tpu.memory_space<vmem>>, vector<1x1x8x16xbf16>
    %298 = vector.shape_cast %297 : vector<1x1x8x16xbf16> to vector<8x16xbf16>
    %c24_574 = arith.constant 24 : index
    %c192_575 = arith.constant 192 : index
    %299 = vector.load %arg4[%c24_574, %c192_575] : memref<64x256xbf16, #tpu.memory_space<vmem>>, vector<8x16xbf16>
    tpu.vector_store %arg4[%c24_574, %c192_575], %298 {strides = array<i32>} : memref<64x256xbf16, #tpu.memory_space<vmem>>, vector<8x16xbf16>,
    %c0_576 = arith.constant 0 : index
    %c5_577 = arith.constant 5 : index
    %c0_578 = arith.constant 0 : index
    %c32_579 = arith.constant 32 : index
    %300 = vector.load %arg1[%c0_576, %c5_577, %c0_578, %c32_579] : memref<1x9x9x64xbf16, #tpu.memory_space<vmem>>, vector<1x1x8x16xbf16>
    %301 = vector.shape_cast %300 : vector<1x1x8x16xbf16> to vector<8x16xbf16>
    %c32_580 = arith.constant 32 : index
    %c192_581 = arith.constant 192 : index
    %302 = vector.load %arg4[%c32_580, %c192_581] : memref<64x256xbf16, #tpu.memory_space<vmem>>, vector<8x16xbf16>
    tpu.vector_store %arg4[%c32_580, %c192_581], %301 {strides = array<i32>} : memref<64x256xbf16, #tpu.memory_space<vmem>>, vector<8x16xbf16>,
    %c0_582 = arith.constant 0 : index
    %c6_583 = arith.constant 6 : index
    %c0_584 = arith.constant 0 : index
    %c32_585 = arith.constant 32 : index
    %303 = vector.load %arg1[%c0_582, %c6_583, %c0_584, %c32_585] : memref<1x9x9x64xbf16, #tpu.memory_space<vmem>>, vector<1x1x8x16xbf16>
    %304 = vector.shape_cast %303 : vector<1x1x8x16xbf16> to vector<8x16xbf16>
    %c40_586 = arith.constant 40 : index
    %c192_587 = arith.constant 192 : index
    %305 = vector.load %arg4[%c40_586, %c192_587] : memref<64x256xbf16, #tpu.memory_space<vmem>>, vector<8x16xbf16>
    tpu.vector_store %arg4[%c40_586, %c192_587], %304 {strides = array<i32>} : memref<64x256xbf16, #tpu.memory_space<vmem>>, vector<8x16xbf16>,
    %c0_588 = arith.constant 0 : index
    %c7_589 = arith.constant 7 : index
    %c0_590 = arith.constant 0 : index
    %c32_591 = arith.constant 32 : index
    %306 = vector.load %arg1[%c0_588, %c7_589, %c0_590, %c32_591] : memref<1x9x9x64xbf16, #tpu.memory_space<vmem>>, vector<1x1x8x16xbf16>
    %307 = vector.shape_cast %306 : vector<1x1x8x16xbf16> to vector<8x16xbf16>
    %c48_592 = arith.constant 48 : index
    %c192_593 = arith.constant 192 : index
    %308 = vector.load %arg4[%c48_592, %c192_593] : memref<64x256xbf16, #tpu.memory_space<vmem>>, vector<8x16xbf16>
    tpu.vector_store %arg4[%c48_592, %c192_593], %307 {strides = array<i32>} : memref<64x256xbf16, #tpu.memory_space<vmem>>, vector<8x16xbf16>,
    %c0_594 = arith.constant 0 : index
    %c8_595 = arith.constant 8 : index
    %c0_596 = arith.constant 0 : index
    %c32_597 = arith.constant 32 : index
    %309 = vector.load %arg1[%c0_594, %c8_595, %c0_596, %c32_597] : memref<1x9x9x64xbf16, #tpu.memory_space<vmem>>, vector<1x1x8x16xbf16>
    %310 = vector.shape_cast %309 : vector<1x1x8x16xbf16> to vector<8x16xbf16>
    %c56_598 = arith.constant 56 : index
    %c192_599 = arith.constant 192 : index
    %311 = vector.load %arg4[%c56_598, %c192_599] : memref<64x256xbf16, #tpu.memory_space<vmem>>, vector<8x16xbf16>
    tpu.vector_store %arg4[%c56_598, %c192_599], %310 {strides = array<i32>} : memref<64x256xbf16, #tpu.memory_space<vmem>>, vector<8x16xbf16>,
    %c0_600 = arith.constant 0 : index
    %c1_601 = arith.constant 1 : index
    %c0_602 = arith.constant 0 : index
    %c48_603 = arith.constant 48 : index
    %312 = vector.load %arg1[%c0_600, %c1_601, %c0_602, %c48_603] : memref<1x9x9x64xbf16, #tpu.memory_space<vmem>>, vector<1x1x8x16xbf16>
    %313 = vector.shape_cast %312 : vector<1x1x8x16xbf16> to vector<8x16xbf16>
    %c0_604 = arith.constant 0 : index
    %c208 = arith.constant 208 : index
    %314 = vector.load %arg4[%c0_604, %c208] : memref<64x256xbf16, #tpu.memory_space<vmem>>, vector<8x16xbf16>
    tpu.vector_store %arg4[%c0_604, %c208], %313 {strides = array<i32>} : memref<64x256xbf16, #tpu.memory_space<vmem>>, vector<8x16xbf16>,
    %c0_605 = arith.constant 0 : index
    %c2_606 = arith.constant 2 : index
    %c0_607 = arith.constant 0 : index
    %c48_608 = arith.constant 48 : index
    %315 = vector.load %arg1[%c0_605, %c2_606, %c0_607, %c48_608] : memref<1x9x9x64xbf16, #tpu.memory_space<vmem>>, vector<1x1x8x16xbf16>
    %316 = vector.shape_cast %315 : vector<1x1x8x16xbf16> to vector<8x16xbf16>
    %c8_609 = arith.constant 8 : index
    %c208_610 = arith.constant 208 : index
    %317 = vector.load %arg4[%c8_609, %c208_610] : memref<64x256xbf16, #tpu.memory_space<vmem>>, vector<8x16xbf16>
    tpu.vector_store %arg4[%c8_609, %c208_610], %316 {strides = array<i32>} : memref<64x256xbf16, #tpu.memory_space<vmem>>, vector<8x16xbf16>,
    %c0_611 = arith.constant 0 : index
    %c3_612 = arith.constant 3 : index
    %c0_613 = arith.constant 0 : index
    %c48_614 = arith.constant 48 : index
    %318 = vector.load %arg1[%c0_611, %c3_612, %c0_613, %c48_614] : memref<1x9x9x64xbf16, #tpu.memory_space<vmem>>, vector<1x1x8x16xbf16>
    %319 = vector.shape_cast %318 : vector<1x1x8x16xbf16> to vector<8x16xbf16>
    %c16_615 = arith.constant 16 : index
    %c208_616 = arith.constant 208 : index
    %320 = vector.load %arg4[%c16_615, %c208_616] : memref<64x256xbf16, #tpu.memory_space<vmem>>, vector<8x16xbf16>
    tpu.vector_store %arg4[%c16_615, %c208_616], %319 {strides = array<i32>} : memref<64x256xbf16, #tpu.memory_space<vmem>>, vector<8x16xbf16>,
    %c0_617 = arith.constant 0 : index
    %c4_618 = arith.constant 4 : index
    %c0_619 = arith.constant 0 : index
    %c48_620 = arith.constant 48 : index
    %321 = vector.load %arg1[%c0_617, %c4_618, %c0_619, %c48_620] : memref<1x9x9x64xbf16, #tpu.memory_space<vmem>>, vector<1x1x8x16xbf16>
    %322 = vector.shape_cast %321 : vector<1x1x8x16xbf16> to vector<8x16xbf16>
    %c24_621 = arith.constant 24 : index
    %c208_622 = arith.constant 208 : index
    %323 = vector.load %arg4[%c24_621, %c208_622] : memref<64x256xbf16, #tpu.memory_space<vmem>>, vector<8x16xbf16>
    tpu.vector_store %arg4[%c24_621, %c208_622], %322 {strides = array<i32>} : memref<64x256xbf16, #tpu.memory_space<vmem>>, vector<8x16xbf16>,
    %c0_623 = arith.constant 0 : index
    %c5_624 = arith.constant 5 : index
    %c0_625 = arith.constant 0 : index
    %c48_626 = arith.constant 48 : index
    %324 = vector.load %arg1[%c0_623, %c5_624, %c0_625, %c48_626] : memref<1x9x9x64xbf16, #tpu.memory_space<vmem>>, vector<1x1x8x16xbf16>
    %325 = vector.shape_cast %324 : vector<1x1x8x16xbf16> to vector<8x16xbf16>
    %c32_627 = arith.constant 32 : index
    %c208_628 = arith.constant 208 : index
    %326 = vector.load %arg4[%c32_627, %c208_628] : memref<64x256xbf16, #tpu.memory_space<vmem>>, vector<8x16xbf16>
    tpu.vector_store %arg4[%c32_627, %c208_628], %325 {strides = array<i32>} : memref<64x256xbf16, #tpu.memory_space<vmem>>, vector<8x16xbf16>,
    %c0_629 = arith.constant 0 : index
    %c6_630 = arith.constant 6 : index
    %c0_631 = arith.constant 0 : index
    %c48_632 = arith.constant 48 : index
    %327 = vector.load %arg1[%c0_629, %c6_630, %c0_631, %c48_632] : memref<1x9x9x64xbf16, #tpu.memory_space<vmem>>, vector<1x1x8x16xbf16>
    %328 = vector.shape_cast %327 : vector<1x1x8x16xbf16> to vector<8x16xbf16>
    %c40_633 = arith.constant 40 : index
    %c208_634 = arith.constant 208 : index
    %329 = vector.load %arg4[%c40_633, %c208_634] : memref<64x256xbf16, #tpu.memory_space<vmem>>, vector<8x16xbf16>
    tpu.vector_store %arg4[%c40_633, %c208_634], %328 {strides = array<i32>} : memref<64x256xbf16, #tpu.memory_space<vmem>>, vector<8x16xbf16>,
    %c0_635 = arith.constant 0 : index
    %c7_636 = arith.constant 7 : index
    %c0_637 = arith.constant 0 : index
    %c48_638 = arith.constant 48 : index
    %330 = vector.load %arg1[%c0_635, %c7_636, %c0_637, %c48_638] : memref<1x9x9x64xbf16, #tpu.memory_space<vmem>>, vector<1x1x8x16xbf16>
    %331 = vector.shape_cast %330 : vector<1x1x8x16xbf16> to vector<8x16xbf16>
    %c48_639 = arith.constant 48 : index
    %c208_640 = arith.constant 208 : index
    %332 = vector.load %arg4[%c48_639, %c208_640] : memref<64x256xbf16, #tpu.memory_space<vmem>>, vector<8x16xbf16>
    tpu.vector_store %arg4[%c48_639, %c208_640], %331 {strides = array<i32>} : memref<64x256xbf16, #tpu.memory_space<vmem>>, vector<8x16xbf16>,
    %c0_641 = arith.constant 0 : index
    %c8_642 = arith.constant 8 : index
    %c0_643 = arith.constant 0 : index
    %c48_644 = arith.constant 48 : index
    %333 = vector.load %arg1[%c0_641, %c8_642, %c0_643, %c48_644] : memref<1x9x9x64xbf16, #tpu.memory_space<vmem>>, vector<1x1x8x16xbf16>
    %334 = vector.shape_cast %333 : vector<1x1x8x16xbf16> to vector<8x16xbf16>
    %c56_645 = arith.constant 56 : index
    %c208_646 = arith.constant 208 : index
    %335 = vector.load %arg4[%c56_645, %c208_646] : memref<64x256xbf16, #tpu.memory_space<vmem>>, vector<8x16xbf16>
    tpu.vector_store %arg4[%c56_645, %c208_646], %334 {strides = array<i32>} : memref<64x256xbf16, #tpu.memory_space<vmem>>, vector<8x16xbf16>,
    %c0_647 = arith.constant 0 : index
    %c1_648 = arith.constant 1 : index
    %c1_649 = arith.constant 1 : index
    %c32_650 = arith.constant 32 : index
    %336 = vector.load %arg1[%c0_647, %c1_648, %c1_649, %c32_650] : memref<1x9x9x64xbf16, #tpu.memory_space<vmem>>, vector<1x1x8x16xbf16>
    %337 = vector.shape_cast %336 : vector<1x1x8x16xbf16> to vector<8x16xbf16>
    %c0_651 = arith.constant 0 : index
    %c224 = arith.constant 224 : index
    %338 = vector.load %arg4[%c0_651, %c224] : memref<64x256xbf16, #tpu.memory_space<vmem>>, vector<8x16xbf16>
    tpu.vector_store %arg4[%c0_651, %c224], %337 {strides = array<i32>} : memref<64x256xbf16, #tpu.memory_space<vmem>>, vector<8x16xbf16>,
    %c0_652 = arith.constant 0 : index
    %c2_653 = arith.constant 2 : index
    %c1_654 = arith.constant 1 : index
    %c32_655 = arith.constant 32 : index
    %339 = vector.load %arg1[%c0_652, %c2_653, %c1_654, %c32_655] : memref<1x9x9x64xbf16, #tpu.memory_space<vmem>>, vector<1x1x8x16xbf16>
    %340 = vector.shape_cast %339 : vector<1x1x8x16xbf16> to vector<8x16xbf16>
    %c8_656 = arith.constant 8 : index
    %c224_657 = arith.constant 224 : index
    %341 = vector.load %arg4[%c8_656, %c224_657] : memref<64x256xbf16, #tpu.memory_space<vmem>>, vector<8x16xbf16>
    tpu.vector_store %arg4[%c8_656, %c224_657], %340 {strides = array<i32>} : memref<64x256xbf16, #tpu.memory_space<vmem>>, vector<8x16xbf16>,
    %c0_658 = arith.constant 0 : index
    %c3_659 = arith.constant 3 : index
    %c1_660 = arith.constant 1 : index
    %c32_661 = arith.constant 32 : index
    %342 = vector.load %arg1[%c0_658, %c3_659, %c1_660, %c32_661] : memref<1x9x9x64xbf16, #tpu.memory_space<vmem>>, vector<1x1x8x16xbf16>
    %343 = vector.shape_cast %342 : vector<1x1x8x16xbf16> to vector<8x16xbf16>
    %c16_662 = arith.constant 16 : index
    %c224_663 = arith.constant 224 : index
    %344 = vector.load %arg4[%c16_662, %c224_663] : memref<64x256xbf16, #tpu.memory_space<vmem>>, vector<8x16xbf16>
    tpu.vector_store %arg4[%c16_662, %c224_663], %343 {strides = array<i32>} : memref<64x256xbf16, #tpu.memory_space<vmem>>, vector<8x16xbf16>,
    %c0_664 = arith.constant 0 : index
    %c4_665 = arith.constant 4 : index
    %c1_666 = arith.constant 1 : index
    %c32_667 = arith.constant 32 : index
    %345 = vector.load %arg1[%c0_664, %c4_665, %c1_666, %c32_667] : memref<1x9x9x64xbf16, #tpu.memory_space<vmem>>, vector<1x1x8x16xbf16>
    %346 = vector.shape_cast %345 : vector<1x1x8x16xbf16> to vector<8x16xbf16>
    %c24_668 = arith.constant 24 : index
    %c224_669 = arith.constant 224 : index
    %347 = vector.load %arg4[%c24_668, %c224_669] : memref<64x256xbf16, #tpu.memory_space<vmem>>, vector<8x16xbf16>
    tpu.vector_store %arg4[%c24_668, %c224_669], %346 {strides = array<i32>} : memref<64x256xbf16, #tpu.memory_space<vmem>>, vector<8x16xbf16>,
    %c0_670 = arith.constant 0 : index
    %c5_671 = arith.constant 5 : index
    %c1_672 = arith.constant 1 : index
    %c32_673 = arith.constant 32 : index
    %348 = vector.load %arg1[%c0_670, %c5_671, %c1_672, %c32_673] : memref<1x9x9x64xbf16, #tpu.memory_space<vmem>>, vector<1x1x8x16xbf16>
    %349 = vector.shape_cast %348 : vector<1x1x8x16xbf16> to vector<8x16xbf16>
    %c32_674 = arith.constant 32 : index
    %c224_675 = arith.constant 224 : index
    %350 = vector.load %arg4[%c32_674, %c224_675] : memref<64x256xbf16, #tpu.memory_space<vmem>>, vector<8x16xbf16>
    tpu.vector_store %arg4[%c32_674, %c224_675], %349 {strides = array<i32>} : memref<64x256xbf16, #tpu.memory_space<vmem>>, vector<8x16xbf16>,
    %c0_676 = arith.constant 0 : index
    %c6_677 = arith.constant 6 : index
    %c1_678 = arith.constant 1 : index
    %c32_679 = arith.constant 32 : index
    %351 = vector.load %arg1[%c0_676, %c6_677, %c1_678, %c32_679] : memref<1x9x9x64xbf16, #tpu.memory_space<vmem>>, vector<1x1x8x16xbf16>
    %352 = vector.shape_cast %351 : vector<1x1x8x16xbf16> to vector<8x16xbf16>
    %c40_680 = arith.constant 40 : index
    %c224_681 = arith.constant 224 : index
    %353 = vector.load %arg4[%c40_680, %c224_681] : memref<64x256xbf16, #tpu.memory_space<vmem>>, vector<8x16xbf16>
    tpu.vector_store %arg4[%c40_680, %c224_681], %352 {strides = array<i32>} : memref<64x256xbf16, #tpu.memory_space<vmem>>, vector<8x16xbf16>,
    %c0_682 = arith.constant 0 : index
    %c7_683 = arith.constant 7 : index
    %c1_684 = arith.constant 1 : index
    %c32_685 = arith.constant 32 : index
    %354 = vector.load %arg1[%c0_682, %c7_683, %c1_684, %c32_685] : memref<1x9x9x64xbf16, #tpu.memory_space<vmem>>, vector<1x1x8x16xbf16>
    %355 = vector.shape_cast %354 : vector<1x1x8x16xbf16> to vector<8x16xbf16>
    %c48_686 = arith.constant 48 : index
    %c224_687 = arith.constant 224 : index
    %356 = vector.load %arg4[%c48_686, %c224_687] : memref<64x256xbf16, #tpu.memory_space<vmem>>, vector<8x16xbf16>
    tpu.vector_store %arg4[%c48_686, %c224_687], %355 {strides = array<i32>} : memref<64x256xbf16, #tpu.memory_space<vmem>>, vector<8x16xbf16>,
    %c0_688 = arith.constant 0 : index
    %c8_689 = arith.constant 8 : index
    %c1_690 = arith.constant 1 : index
    %c32_691 = arith.constant 32 : index
    %357 = vector.load %arg1[%c0_688, %c8_689, %c1_690, %c32_691] : memref<1x9x9x64xbf16, #tpu.memory_space<vmem>>, vector<1x1x8x16xbf16>
    %358 = vector.shape_cast %357 : vector<1x1x8x16xbf16> to vector<8x16xbf16>
    %c56_692 = arith.constant 56 : index
    %c224_693 = arith.constant 224 : index
    %359 = vector.load %arg4[%c56_692, %c224_693] : memref<64x256xbf16, #tpu.memory_space<vmem>>, vector<8x16xbf16>
    tpu.vector_store %arg4[%c56_692, %c224_693], %358 {strides = array<i32>} : memref<64x256xbf16, #tpu.memory_space<vmem>>, vector<8x16xbf16>,
    %c0_694 = arith.constant 0 : index
    %c1_695 = arith.constant 1 : index
    %c1_696 = arith.constant 1 : index
    %c48_697 = arith.constant 48 : index
    %360 = vector.load %arg1[%c0_694, %c1_695, %c1_696, %c48_697] : memref<1x9x9x64xbf16, #tpu.memory_space<vmem>>, vector<1x1x8x16xbf16>
    %361 = vector.shape_cast %360 : vector<1x1x8x16xbf16> to vector<8x16xbf16>
    %c0_698 = arith.constant 0 : index
    %c240 = arith.constant 240 : index
    %362 = vector.load %arg4[%c0_698, %c240] : memref<64x256xbf16, #tpu.memory_space<vmem>>, vector<8x16xbf16>
    tpu.vector_store %arg4[%c0_698, %c240], %361 {strides = array<i32>} : memref<64x256xbf16, #tpu.memory_space<vmem>>, vector<8x16xbf16>,
    %c0_699 = arith.constant 0 : index
    %c2_700 = arith.constant 2 : index
    %c1_701 = arith.constant 1 : index
    %c48_702 = arith.constant 48 : index
    %363 = vector.load %arg1[%c0_699, %c2_700, %c1_701, %c48_702] : memref<1x9x9x64xbf16, #tpu.memory_space<vmem>>, vector<1x1x8x16xbf16>
    %364 = vector.shape_cast %363 : vector<1x1x8x16xbf16> to vector<8x16xbf16>
    %c8_703 = arith.constant 8 : index
    %c240_704 = arith.constant 240 : index
    %365 = vector.load %arg4[%c8_703, %c240_704] : memref<64x256xbf16, #tpu.memory_space<vmem>>, vector<8x16xbf16>
    tpu.vector_store %arg4[%c8_703, %c240_704], %364 {strides = array<i32>} : memref<64x256xbf16, #tpu.memory_space<vmem>>, vector<8x16xbf16>,
    %c0_705 = arith.constant 0 : index
    %c3_706 = arith.constant 3 : index
    %c1_707 = arith.constant 1 : index
    %c48_708 = arith.constant 48 : index
    %366 = vector.load %arg1[%c0_705, %c3_706, %c1_707, %c48_708] : memref<1x9x9x64xbf16, #tpu.memory_space<vmem>>, vector<1x1x8x16xbf16>
    %367 = vector.shape_cast %366 : vector<1x1x8x16xbf16> to vector<8x16xbf16>
    %c16_709 = arith.constant 16 : index
    %c240_710 = arith.constant 240 : index
    %368 = vector.load %arg4[%c16_709, %c240_710] : memref<64x256xbf16, #tpu.memory_space<vmem>>, vector<8x16xbf16>
    tpu.vector_store %arg4[%c16_709, %c240_710], %367 {strides = array<i32>} : memref<64x256xbf16, #tpu.memory_space<vmem>>, vector<8x16xbf16>,
    %c0_711 = arith.constant 0 : index
    %c4_712 = arith.constant 4 : index
    %c1_713 = arith.constant 1 : index
    %c48_714 = arith.constant 48 : index
    %369 = vector.load %arg1[%c0_711, %c4_712, %c1_713, %c48_714] : memref<1x9x9x64xbf16, #tpu.memory_space<vmem>>, vector<1x1x8x16xbf16>
    %370 = vector.shape_cast %369 : vector<1x1x8x16xbf16> to vector<8x16xbf16>
    %c24_715 = arith.constant 24 : index
    %c240_716 = arith.constant 240 : index
    %371 = vector.load %arg4[%c24_715, %c240_716] : memref<64x256xbf16, #tpu.memory_space<vmem>>, vector<8x16xbf16>
    tpu.vector_store %arg4[%c24_715, %c240_716], %370 {strides = array<i32>} : memref<64x256xbf16, #tpu.memory_space<vmem>>, vector<8x16xbf16>,
    %c0_717 = arith.constant 0 : index
    %c5_718 = arith.constant 5 : index
    %c1_719 = arith.constant 1 : index
    %c48_720 = arith.constant 48 : index
    %372 = vector.load %arg1[%c0_717, %c5_718, %c1_719, %c48_720] : memref<1x9x9x64xbf16, #tpu.memory_space<vmem>>, vector<1x1x8x16xbf16>
    %373 = vector.shape_cast %372 : vector<1x1x8x16xbf16> to vector<8x16xbf16>
    %c32_721 = arith.constant 32 : index
    %c240_722 = arith.constant 240 : index
    %374 = vector.load %arg4[%c32_721, %c240_722] : memref<64x256xbf16, #tpu.memory_space<vmem>>, vector<8x16xbf16>
    tpu.vector_store %arg4[%c32_721, %c240_722], %373 {strides = array<i32>} : memref<64x256xbf16, #tpu.memory_space<vmem>>, vector<8x16xbf16>,
    %c0_723 = arith.constant 0 : index
    %c6_724 = arith.constant 6 : index
    %c1_725 = arith.constant 1 : index
    %c48_726 = arith.constant 48 : index
    %375 = vector.load %arg1[%c0_723, %c6_724, %c1_725, %c48_726] : memref<1x9x9x64xbf16, #tpu.memory_space<vmem>>, vector<1x1x8x16xbf16>
    %376 = vector.shape_cast %375 : vector<1x1x8x16xbf16> to vector<8x16xbf16>
    %c40_727 = arith.constant 40 : index
    %c240_728 = arith.constant 240 : index
    %377 = vector.load %arg4[%c40_727, %c240_728] : memref<64x256xbf16, #tpu.memory_space<vmem>>, vector<8x16xbf16>
    tpu.vector_store %arg4[%c40_727, %c240_728], %376 {strides = array<i32>} : memref<64x256xbf16, #tpu.memory_space<vmem>>, vector<8x16xbf16>,
    %c0_729 = arith.constant 0 : index
    %c7_730 = arith.constant 7 : index
    %c1_731 = arith.constant 1 : index
    %c48_732 = arith.constant 48 : index
    %378 = vector.load %arg1[%c0_729, %c7_730, %c1_731, %c48_732] : memref<1x9x9x64xbf16, #tpu.memory_space<vmem>>, vector<1x1x8x16xbf16>
    %379 = vector.shape_cast %378 : vector<1x1x8x16xbf16> to vector<8x16xbf16>
    %c48_733 = arith.constant 48 : index
    %c240_734 = arith.constant 240 : index
    %380 = vector.load %arg4[%c48_733, %c240_734] : memref<64x256xbf16, #tpu.memory_space<vmem>>, vector<8x16xbf16>
    tpu.vector_store %arg4[%c48_733, %c240_734], %379 {strides = array<i32>} : memref<64x256xbf16, #tpu.memory_space<vmem>>, vector<8x16xbf16>,
    %c0_735 = arith.constant 0 : index
    %c8_736 = arith.constant 8 : index
    %c1_737 = arith.constant 1 : index
    %c48_738 = arith.constant 48 : index
    %381 = vector.load %arg1[%c0_735, %c8_736, %c1_737, %c48_738] : memref<1x9x9x64xbf16, #tpu.memory_space<vmem>>, vector<1x1x8x16xbf16>
    %382 = vector.shape_cast %381 : vector<1x1x8x16xbf16> to vector<8x16xbf16>
    %c56_739 = arith.constant 56 : index
    %c240_740 = arith.constant 240 : index
    %383 = vector.load %arg4[%c56_739, %c240_740] : memref<64x256xbf16, #tpu.memory_space<vmem>>, vector<8x16xbf16>
    tpu.vector_store %arg4[%c56_739, %c240_740], %382 {strides = array<i32>} : memref<64x256xbf16, #tpu.memory_space<vmem>>, vector<8x16xbf16>,
    %c0_741 = arith.constant 0 : index
    %c0_742 = arith.constant 0 : index
    %384 = vector.load %arg4[%c0_741, %c0_742] : memref<64x256xbf16, #tpu.memory_space<vmem>>, vector<64x256xbf16>
    %c0_743 = arith.constant 0 : index
    %c0_744 = arith.constant 0 : index
    %385 = vector.load %arg2[%c0_743, %c0_744] : memref<256x8xbf16, #tpu.memory_space<vmem>>, vector<256x8xbf16>
    %cst = arith.constant dense<0.000000e+00> : vector<64x8xf32>
    %386 = tpu.matmul %384, %385, %cst {dimension_numbers = #tpu.dot_dimension_numbers<[1], [0], [0], [1], [0, 0, 1, 1], [], []>} : vector<64x256xbf16>, vector<256x8xbf16>, vector<64x8xf32> -> vector<64x8xf32>
    %cst_745 = arith.constant 2.000000e-01 : f32
    %387 = vector.broadcast %cst_745 : f32 to vector<64x8xf32>
    %388 = arith.mulf %387, %386 : vector<64x8xf32>
    %389 = arith.maximumf %386, %388 : vector<64x8xf32>
    %390 = arith.truncf %389 : vector<64x8xf32> to vector<64x8xbf16>
    %c0_746 = arith.constant 0 : index
    %c0_747 = arith.constant 0 : index
    %c0_748 = arith.constant 0 : index
    %391 = vector.load %arg3[%c0_746, %c0_747, %c0_748] : memref<1x64x8xbf16, #tpu.memory_space<vmem>>, vector<1x64x8xbf16>
    %392 = vector.shape_cast %391 : vector<1x64x8xbf16> to vector<64x8xbf16>
    %393 = vector.shape_cast %390 : vector<64x8xbf16> to vector<1x64x8xbf16>
    tpu.vector_store %arg3[%c0_746, %c0_747, %c0_748], %393 {strides = array<i32>} : memref<1x64x8xbf16, #tpu.memory_space<vmem>>, vector<1x64x8xbf16>,
    return
  }
  func.func @transform_0(%arg0: i32) -> (i32, i32, i32, i32) {
    %c0_i32 = arith.constant 0 : i32
    %c0_i32_0 = arith.constant 0 : i32
    %c0_i32_1 = arith.constant 0 : i32
    %c0_i32_2 = arith.constant 0 : i32
    return %arg0, %c0_i32, %c0_i32_0, %c0_i32_1 : i32, i32, i32, i32
  }
  func.func @transform_1(%arg0: i32) -> (i32, i32) {
    %c0_i32 = arith.constant 0 : i32
    %c0_i32_0 = arith.constant 0 : i32
    %c0_i32_1 = arith.constant 0 : i32
    return %c0_i32, %c0_i32_0 : i32, i32
  }
  func.func @transform_2(%arg0: i32) -> (i32, i32, i32) {
    %c0_i32 = arith.constant 0 : i32
    %c0_i32_0 = arith.constant 0 : i32
    %c0_i32_1 = arith.constant 0 : i32
    return %arg0, %c0_i32, %c0_i32_0 : i32, i32, i32
  }
}

module attributes {stable_mosaic.version = 11 : i64} {
  func.func @_conv_stats_kernel(%arg0: i32, %arg1: i32, %arg2: memref<1x4x4x72xbf16, #tpu.memory_space<vmem>>, %arg3: memref<128x16xbf16, #tpu.memory_space<vmem>>, %arg4: memref<1x9x16xbf16, #tpu.memory_space<vmem>>, %arg5: memref<1x2x16xf32, #tpu.memory_space<vmem>>, %arg6: memref<9x128xbf16, #tpu.memory_space<vmem>>) attributes {dimension_semantics = [#tpu.dimension_semantics<parallel>, #tpu.dimension_semantics<arbitrary>], iteration_bounds = array<i64: 2, 1>, scalar_prefetch = 0 : i64, scratch_operands = 1 : i64, tpu.core_type = #tpu.core_type<tc>, window_params = [{transform_indices = @transform_0, window_bounds = array<i64: 1, 4, 4, 72>}, {pipeline_mode = #tpu.pipeline_mode<synchronous>, transform_indices = @transform_1, window_bounds = array<i64: 128, 16>}, {transform_indices = @transform_2, window_bounds = array<i64: 1, 9, 16>}, {transform_indices = @transform_3, window_bounds = array<i64: 1, 2, 16>}]} {
    %c0 = arith.constant 0 : index
    %c0_0 = arith.constant 0 : index
    %c0_1 = arith.constant 0 : index
    %c0_2 = arith.constant 0 : index
    %0 = vector.load %arg2[%c0, %c0_0, %c0_1, %c0_2] : memref<1x4x4x72xbf16, #tpu.memory_space<vmem>>, vector<1x1x3x8xbf16>
    %1 = vector.shape_cast %0 : vector<1x1x3x8xbf16> to vector<3x8xbf16>
    %c0_3 = arith.constant 0 : index
    %c0_4 = arith.constant 0 : index
    %2 = vector.load %arg6[%c0_3, %c0_4] : memref<9x128xbf16, #tpu.memory_space<vmem>>, vector<3x8xbf16>
    tpu.vector_store %arg6[%c0_3, %c0_4], %1 {strides = array<i32>} : memref<9x128xbf16, #tpu.memory_space<vmem>>, vector<3x8xbf16>,
    %c0_5 = arith.constant 0 : index
    %c1 = arith.constant 1 : index
    %c0_6 = arith.constant 0 : index
    %c0_7 = arith.constant 0 : index
    %3 = vector.load %arg2[%c0_5, %c1, %c0_6, %c0_7] : memref<1x4x4x72xbf16, #tpu.memory_space<vmem>>, vector<1x1x3x8xbf16>
    %4 = vector.shape_cast %3 : vector<1x1x3x8xbf16> to vector<3x8xbf16>
    %c3 = arith.constant 3 : index
    %c0_8 = arith.constant 0 : index
    %5 = vector.load %arg6[%c3, %c0_8] : memref<9x128xbf16, #tpu.memory_space<vmem>>, vector<3x8xbf16>
    tpu.vector_store %arg6[%c3, %c0_8], %4 {strides = array<i32>} : memref<9x128xbf16, #tpu.memory_space<vmem>>, vector<3x8xbf16>,
    %c0_9 = arith.constant 0 : index
    %c2 = arith.constant 2 : index
    %c0_10 = arith.constant 0 : index
    %c0_11 = arith.constant 0 : index
    %6 = vector.load %arg2[%c0_9, %c2, %c0_10, %c0_11] : memref<1x4x4x72xbf16, #tpu.memory_space<vmem>>, vector<1x1x3x8xbf16>
    %7 = vector.shape_cast %6 : vector<1x1x3x8xbf16> to vector<3x8xbf16>
    %c6 = arith.constant 6 : index
    %c0_12 = arith.constant 0 : index
    %8 = vector.load %arg6[%c6, %c0_12] : memref<9x128xbf16, #tpu.memory_space<vmem>>, vector<3x8xbf16>
    tpu.vector_store %arg6[%c6, %c0_12], %7 {strides = array<i32>} : memref<9x128xbf16, #tpu.memory_space<vmem>>, vector<3x8xbf16>,
    %c0_13 = arith.constant 0 : index
    %c0_14 = arith.constant 0 : index
    %c0_15 = arith.constant 0 : index
    %c8 = arith.constant 8 : index
    %9 = vector.load %arg2[%c0_13, %c0_14, %c0_15, %c8] : memref<1x4x4x72xbf16, #tpu.memory_space<vmem>>, vector<1x1x3x8xbf16>
    %10 = vector.shape_cast %9 : vector<1x1x3x8xbf16> to vector<3x8xbf16>
    %c0_16 = arith.constant 0 : index
    %c8_17 = arith.constant 8 : index
    %11 = vector.load %arg6[%c0_16, %c8_17] : memref<9x128xbf16, #tpu.memory_space<vmem>>, vector<3x8xbf16>
    tpu.vector_store %arg6[%c0_16, %c8_17], %10 {strides = array<i32>} : memref<9x128xbf16, #tpu.memory_space<vmem>>, vector<3x8xbf16>,
    %c0_18 = arith.constant 0 : index
    %c1_19 = arith.constant 1 : index
    %c0_20 = arith.constant 0 : index
    %c8_21 = arith.constant 8 : index
    %12 = vector.load %arg2[%c0_18, %c1_19, %c0_20, %c8_21] : memref<1x4x4x72xbf16, #tpu.memory_space<vmem>>, vector<1x1x3x8xbf16>
    %13 = vector.shape_cast %12 : vector<1x1x3x8xbf16> to vector<3x8xbf16>
    %c3_22 = arith.constant 3 : index
    %c8_23 = arith.constant 8 : index
    %14 = vector.load %arg6[%c3_22, %c8_23] : memref<9x128xbf16, #tpu.memory_space<vmem>>, vector<3x8xbf16>
    tpu.vector_store %arg6[%c3_22, %c8_23], %13 {strides = array<i32>} : memref<9x128xbf16, #tpu.memory_space<vmem>>, vector<3x8xbf16>,
    %c0_24 = arith.constant 0 : index
    %c2_25 = arith.constant 2 : index
    %c0_26 = arith.constant 0 : index
    %c8_27 = arith.constant 8 : index
    %15 = vector.load %arg2[%c0_24, %c2_25, %c0_26, %c8_27] : memref<1x4x4x72xbf16, #tpu.memory_space<vmem>>, vector<1x1x3x8xbf16>
    %16 = vector.shape_cast %15 : vector<1x1x3x8xbf16> to vector<3x8xbf16>
    %c6_28 = arith.constant 6 : index
    %c8_29 = arith.constant 8 : index
    %17 = vector.load %arg6[%c6_28, %c8_29] : memref<9x128xbf16, #tpu.memory_space<vmem>>, vector<3x8xbf16>
    tpu.vector_store %arg6[%c6_28, %c8_29], %16 {strides = array<i32>} : memref<9x128xbf16, #tpu.memory_space<vmem>>, vector<3x8xbf16>,
    %c0_30 = arith.constant 0 : index
    %c0_31 = arith.constant 0 : index
    %c0_32 = arith.constant 0 : index
    %c16 = arith.constant 16 : index
    %18 = vector.load %arg2[%c0_30, %c0_31, %c0_32, %c16] : memref<1x4x4x72xbf16, #tpu.memory_space<vmem>>, vector<1x1x3x8xbf16>
    %19 = vector.shape_cast %18 : vector<1x1x3x8xbf16> to vector<3x8xbf16>
    %c0_33 = arith.constant 0 : index
    %c16_34 = arith.constant 16 : index
    %20 = vector.load %arg6[%c0_33, %c16_34] : memref<9x128xbf16, #tpu.memory_space<vmem>>, vector<3x8xbf16>
    tpu.vector_store %arg6[%c0_33, %c16_34], %19 {strides = array<i32>} : memref<9x128xbf16, #tpu.memory_space<vmem>>, vector<3x8xbf16>,
    %c0_35 = arith.constant 0 : index
    %c1_36 = arith.constant 1 : index
    %c0_37 = arith.constant 0 : index
    %c16_38 = arith.constant 16 : index
    %21 = vector.load %arg2[%c0_35, %c1_36, %c0_37, %c16_38] : memref<1x4x4x72xbf16, #tpu.memory_space<vmem>>, vector<1x1x3x8xbf16>
    %22 = vector.shape_cast %21 : vector<1x1x3x8xbf16> to vector<3x8xbf16>
    %c3_39 = arith.constant 3 : index
    %c16_40 = arith.constant 16 : index
    %23 = vector.load %arg6[%c3_39, %c16_40] : memref<9x128xbf16, #tpu.memory_space<vmem>>, vector<3x8xbf16>
    tpu.vector_store %arg6[%c3_39, %c16_40], %22 {strides = array<i32>} : memref<9x128xbf16, #tpu.memory_space<vmem>>, vector<3x8xbf16>,
    %c0_41 = arith.constant 0 : index
    %c2_42 = arith.constant 2 : index
    %c0_43 = arith.constant 0 : index
    %c16_44 = arith.constant 16 : index
    %24 = vector.load %arg2[%c0_41, %c2_42, %c0_43, %c16_44] : memref<1x4x4x72xbf16, #tpu.memory_space<vmem>>, vector<1x1x3x8xbf16>
    %25 = vector.shape_cast %24 : vector<1x1x3x8xbf16> to vector<3x8xbf16>
    %c6_45 = arith.constant 6 : index
    %c16_46 = arith.constant 16 : index
    %26 = vector.load %arg6[%c6_45, %c16_46] : memref<9x128xbf16, #tpu.memory_space<vmem>>, vector<3x8xbf16>
    tpu.vector_store %arg6[%c6_45, %c16_46], %25 {strides = array<i32>} : memref<9x128xbf16, #tpu.memory_space<vmem>>, vector<3x8xbf16>,
    %c0_47 = arith.constant 0 : index
    %c0_48 = arith.constant 0 : index
    %c1_49 = arith.constant 1 : index
    %c0_50 = arith.constant 0 : index
    %27 = vector.load %arg2[%c0_47, %c0_48, %c1_49, %c0_50] : memref<1x4x4x72xbf16, #tpu.memory_space<vmem>>, vector<1x1x3x8xbf16>
    %28 = vector.shape_cast %27 : vector<1x1x3x8xbf16> to vector<3x8xbf16>
    %c0_51 = arith.constant 0 : index
    %c24 = arith.constant 24 : index
    %29 = vector.load %arg6[%c0_51, %c24] : memref<9x128xbf16, #tpu.memory_space<vmem>>, vector<3x8xbf16>
    tpu.vector_store %arg6[%c0_51, %c24], %28 {strides = array<i32>} : memref<9x128xbf16, #tpu.memory_space<vmem>>, vector<3x8xbf16>,
    %c0_52 = arith.constant 0 : index
    %c1_53 = arith.constant 1 : index
    %c1_54 = arith.constant 1 : index
    %c0_55 = arith.constant 0 : index
    %30 = vector.load %arg2[%c0_52, %c1_53, %c1_54, %c0_55] : memref<1x4x4x72xbf16, #tpu.memory_space<vmem>>, vector<1x1x3x8xbf16>
    %31 = vector.shape_cast %30 : vector<1x1x3x8xbf16> to vector<3x8xbf16>
    %c3_56 = arith.constant 3 : index
    %c24_57 = arith.constant 24 : index
    %32 = vector.load %arg6[%c3_56, %c24_57] : memref<9x128xbf16, #tpu.memory_space<vmem>>, vector<3x8xbf16>
    tpu.vector_store %arg6[%c3_56, %c24_57], %31 {strides = array<i32>} : memref<9x128xbf16, #tpu.memory_space<vmem>>, vector<3x8xbf16>,
    %c0_58 = arith.constant 0 : index
    %c2_59 = arith.constant 2 : index
    %c1_60 = arith.constant 1 : index
    %c0_61 = arith.constant 0 : index
    %33 = vector.load %arg2[%c0_58, %c2_59, %c1_60, %c0_61] : memref<1x4x4x72xbf16, #tpu.memory_space<vmem>>, vector<1x1x3x8xbf16>
    %34 = vector.shape_cast %33 : vector<1x1x3x8xbf16> to vector<3x8xbf16>
    %c6_62 = arith.constant 6 : index
    %c24_63 = arith.constant 24 : index
    %35 = vector.load %arg6[%c6_62, %c24_63] : memref<9x128xbf16, #tpu.memory_space<vmem>>, vector<3x8xbf16>
    tpu.vector_store %arg6[%c6_62, %c24_63], %34 {strides = array<i32>} : memref<9x128xbf16, #tpu.memory_space<vmem>>, vector<3x8xbf16>,
    %c0_64 = arith.constant 0 : index
    %c0_65 = arith.constant 0 : index
    %c0_66 = arith.constant 0 : index
    %c24_67 = arith.constant 24 : index
    %36 = vector.load %arg2[%c0_64, %c0_65, %c0_66, %c24_67] : memref<1x4x4x72xbf16, #tpu.memory_space<vmem>>, vector<1x1x3x8xbf16>
    %37 = vector.shape_cast %36 : vector<1x1x3x8xbf16> to vector<3x8xbf16>
    %c0_68 = arith.constant 0 : index
    %c32 = arith.constant 32 : index
    %38 = vector.load %arg6[%c0_68, %c32] : memref<9x128xbf16, #tpu.memory_space<vmem>>, vector<3x8xbf16>
    tpu.vector_store %arg6[%c0_68, %c32], %37 {strides = array<i32>} : memref<9x128xbf16, #tpu.memory_space<vmem>>, vector<3x8xbf16>,
    %c0_69 = arith.constant 0 : index
    %c1_70 = arith.constant 1 : index
    %c0_71 = arith.constant 0 : index
    %c24_72 = arith.constant 24 : index
    %39 = vector.load %arg2[%c0_69, %c1_70, %c0_71, %c24_72] : memref<1x4x4x72xbf16, #tpu.memory_space<vmem>>, vector<1x1x3x8xbf16>
    %40 = vector.shape_cast %39 : vector<1x1x3x8xbf16> to vector<3x8xbf16>
    %c3_73 = arith.constant 3 : index
    %c32_74 = arith.constant 32 : index
    %41 = vector.load %arg6[%c3_73, %c32_74] : memref<9x128xbf16, #tpu.memory_space<vmem>>, vector<3x8xbf16>
    tpu.vector_store %arg6[%c3_73, %c32_74], %40 {strides = array<i32>} : memref<9x128xbf16, #tpu.memory_space<vmem>>, vector<3x8xbf16>,
    %c0_75 = arith.constant 0 : index
    %c2_76 = arith.constant 2 : index
    %c0_77 = arith.constant 0 : index
    %c24_78 = arith.constant 24 : index
    %42 = vector.load %arg2[%c0_75, %c2_76, %c0_77, %c24_78] : memref<1x4x4x72xbf16, #tpu.memory_space<vmem>>, vector<1x1x3x8xbf16>
    %43 = vector.shape_cast %42 : vector<1x1x3x8xbf16> to vector<3x8xbf16>
    %c6_79 = arith.constant 6 : index
    %c32_80 = arith.constant 32 : index
    %44 = vector.load %arg6[%c6_79, %c32_80] : memref<9x128xbf16, #tpu.memory_space<vmem>>, vector<3x8xbf16>
    tpu.vector_store %arg6[%c6_79, %c32_80], %43 {strides = array<i32>} : memref<9x128xbf16, #tpu.memory_space<vmem>>, vector<3x8xbf16>,
    %c0_81 = arith.constant 0 : index
    %c0_82 = arith.constant 0 : index
    %c0_83 = arith.constant 0 : index
    %c32_84 = arith.constant 32 : index
    %45 = vector.load %arg2[%c0_81, %c0_82, %c0_83, %c32_84] : memref<1x4x4x72xbf16, #tpu.memory_space<vmem>>, vector<1x1x3x8xbf16>
    %46 = vector.shape_cast %45 : vector<1x1x3x8xbf16> to vector<3x8xbf16>
    %c0_85 = arith.constant 0 : index
    %c40 = arith.constant 40 : index
    %47 = vector.load %arg6[%c0_85, %c40] : memref<9x128xbf16, #tpu.memory_space<vmem>>, vector<3x8xbf16>
    tpu.vector_store %arg6[%c0_85, %c40], %46 {strides = array<i32>} : memref<9x128xbf16, #tpu.memory_space<vmem>>, vector<3x8xbf16>,
    %c0_86 = arith.constant 0 : index
    %c1_87 = arith.constant 1 : index
    %c0_88 = arith.constant 0 : index
    %c32_89 = arith.constant 32 : index
    %48 = vector.load %arg2[%c0_86, %c1_87, %c0_88, %c32_89] : memref<1x4x4x72xbf16, #tpu.memory_space<vmem>>, vector<1x1x3x8xbf16>
    %49 = vector.shape_cast %48 : vector<1x1x3x8xbf16> to vector<3x8xbf16>
    %c3_90 = arith.constant 3 : index
    %c40_91 = arith.constant 40 : index
    %50 = vector.load %arg6[%c3_90, %c40_91] : memref<9x128xbf16, #tpu.memory_space<vmem>>, vector<3x8xbf16>
    tpu.vector_store %arg6[%c3_90, %c40_91], %49 {strides = array<i32>} : memref<9x128xbf16, #tpu.memory_space<vmem>>, vector<3x8xbf16>,
    %c0_92 = arith.constant 0 : index
    %c2_93 = arith.constant 2 : index
    %c0_94 = arith.constant 0 : index
    %c32_95 = arith.constant 32 : index
    %51 = vector.load %arg2[%c0_92, %c2_93, %c0_94, %c32_95] : memref<1x4x4x72xbf16, #tpu.memory_space<vmem>>, vector<1x1x3x8xbf16>
    %52 = vector.shape_cast %51 : vector<1x1x3x8xbf16> to vector<3x8xbf16>
    %c6_96 = arith.constant 6 : index
    %c40_97 = arith.constant 40 : index
    %53 = vector.load %arg6[%c6_96, %c40_97] : memref<9x128xbf16, #tpu.memory_space<vmem>>, vector<3x8xbf16>
    tpu.vector_store %arg6[%c6_96, %c40_97], %52 {strides = array<i32>} : memref<9x128xbf16, #tpu.memory_space<vmem>>, vector<3x8xbf16>,
    %c0_98 = arith.constant 0 : index
    %c0_99 = arith.constant 0 : index
    %c0_100 = arith.constant 0 : index
    %c40_101 = arith.constant 40 : index
    %54 = vector.load %arg2[%c0_98, %c0_99, %c0_100, %c40_101] : memref<1x4x4x72xbf16, #tpu.memory_space<vmem>>, vector<1x1x3x8xbf16>
    %55 = vector.shape_cast %54 : vector<1x1x3x8xbf16> to vector<3x8xbf16>
    %c0_102 = arith.constant 0 : index
    %c48 = arith.constant 48 : index
    %56 = vector.load %arg6[%c0_102, %c48] : memref<9x128xbf16, #tpu.memory_space<vmem>>, vector<3x8xbf16>
    tpu.vector_store %arg6[%c0_102, %c48], %55 {strides = array<i32>} : memref<9x128xbf16, #tpu.memory_space<vmem>>, vector<3x8xbf16>,
    %c0_103 = arith.constant 0 : index
    %c1_104 = arith.constant 1 : index
    %c0_105 = arith.constant 0 : index
    %c40_106 = arith.constant 40 : index
    %57 = vector.load %arg2[%c0_103, %c1_104, %c0_105, %c40_106] : memref<1x4x4x72xbf16, #tpu.memory_space<vmem>>, vector<1x1x3x8xbf16>
    %58 = vector.shape_cast %57 : vector<1x1x3x8xbf16> to vector<3x8xbf16>
    %c3_107 = arith.constant 3 : index
    %c48_108 = arith.constant 48 : index
    %59 = vector.load %arg6[%c3_107, %c48_108] : memref<9x128xbf16, #tpu.memory_space<vmem>>, vector<3x8xbf16>
    tpu.vector_store %arg6[%c3_107, %c48_108], %58 {strides = array<i32>} : memref<9x128xbf16, #tpu.memory_space<vmem>>, vector<3x8xbf16>,
    %c0_109 = arith.constant 0 : index
    %c2_110 = arith.constant 2 : index
    %c0_111 = arith.constant 0 : index
    %c40_112 = arith.constant 40 : index
    %60 = vector.load %arg2[%c0_109, %c2_110, %c0_111, %c40_112] : memref<1x4x4x72xbf16, #tpu.memory_space<vmem>>, vector<1x1x3x8xbf16>
    %61 = vector.shape_cast %60 : vector<1x1x3x8xbf16> to vector<3x8xbf16>
    %c6_113 = arith.constant 6 : index
    %c48_114 = arith.constant 48 : index
    %62 = vector.load %arg6[%c6_113, %c48_114] : memref<9x128xbf16, #tpu.memory_space<vmem>>, vector<3x8xbf16>
    tpu.vector_store %arg6[%c6_113, %c48_114], %61 {strides = array<i32>} : memref<9x128xbf16, #tpu.memory_space<vmem>>, vector<3x8xbf16>,
    %c0_115 = arith.constant 0 : index
    %c0_116 = arith.constant 0 : index
    %c1_117 = arith.constant 1 : index
    %c24_118 = arith.constant 24 : index
    %63 = vector.load %arg2[%c0_115, %c0_116, %c1_117, %c24_118] : memref<1x4x4x72xbf16, #tpu.memory_space<vmem>>, vector<1x1x3x8xbf16>
    %64 = vector.shape_cast %63 : vector<1x1x3x8xbf16> to vector<3x8xbf16>
    %c0_119 = arith.constant 0 : index
    %c56 = arith.constant 56 : index
    %65 = vector.load %arg6[%c0_119, %c56] : memref<9x128xbf16, #tpu.memory_space<vmem>>, vector<3x8xbf16>
    tpu.vector_store %arg6[%c0_119, %c56], %64 {strides = array<i32>} : memref<9x128xbf16, #tpu.memory_space<vmem>>, vector<3x8xbf16>,
    %c0_120 = arith.constant 0 : index
    %c1_121 = arith.constant 1 : index
    %c1_122 = arith.constant 1 : index
    %c24_123 = arith.constant 24 : index
    %66 = vector.load %arg2[%c0_120, %c1_121, %c1_122, %c24_123] : memref<1x4x4x72xbf16, #tpu.memory_space<vmem>>, vector<1x1x3x8xbf16>
    %67 = vector.shape_cast %66 : vector<1x1x3x8xbf16> to vector<3x8xbf16>
    %c3_124 = arith.constant 3 : index
    %c56_125 = arith.constant 56 : index
    %68 = vector.load %arg6[%c3_124, %c56_125] : memref<9x128xbf16, #tpu.memory_space<vmem>>, vector<3x8xbf16>
    tpu.vector_store %arg6[%c3_124, %c56_125], %67 {strides = array<i32>} : memref<9x128xbf16, #tpu.memory_space<vmem>>, vector<3x8xbf16>,
    %c0_126 = arith.constant 0 : index
    %c2_127 = arith.constant 2 : index
    %c1_128 = arith.constant 1 : index
    %c24_129 = arith.constant 24 : index
    %69 = vector.load %arg2[%c0_126, %c2_127, %c1_128, %c24_129] : memref<1x4x4x72xbf16, #tpu.memory_space<vmem>>, vector<1x1x3x8xbf16>
    %70 = vector.shape_cast %69 : vector<1x1x3x8xbf16> to vector<3x8xbf16>
    %c6_130 = arith.constant 6 : index
    %c56_131 = arith.constant 56 : index
    %71 = vector.load %arg6[%c6_130, %c56_131] : memref<9x128xbf16, #tpu.memory_space<vmem>>, vector<3x8xbf16>
    tpu.vector_store %arg6[%c6_130, %c56_131], %70 {strides = array<i32>} : memref<9x128xbf16, #tpu.memory_space<vmem>>, vector<3x8xbf16>,
    %c0_132 = arith.constant 0 : index
    %c0_133 = arith.constant 0 : index
    %c0_134 = arith.constant 0 : index
    %c48_135 = arith.constant 48 : index
    %72 = vector.load %arg2[%c0_132, %c0_133, %c0_134, %c48_135] : memref<1x4x4x72xbf16, #tpu.memory_space<vmem>>, vector<1x1x3x8xbf16>
    %73 = vector.shape_cast %72 : vector<1x1x3x8xbf16> to vector<3x8xbf16>
    %c0_136 = arith.constant 0 : index
    %c64 = arith.constant 64 : index
    %74 = vector.load %arg6[%c0_136, %c64] : memref<9x128xbf16, #tpu.memory_space<vmem>>, vector<3x8xbf16>
    tpu.vector_store %arg6[%c0_136, %c64], %73 {strides = array<i32>} : memref<9x128xbf16, #tpu.memory_space<vmem>>, vector<3x8xbf16>,
    %c0_137 = arith.constant 0 : index
    %c1_138 = arith.constant 1 : index
    %c0_139 = arith.constant 0 : index
    %c48_140 = arith.constant 48 : index
    %75 = vector.load %arg2[%c0_137, %c1_138, %c0_139, %c48_140] : memref<1x4x4x72xbf16, #tpu.memory_space<vmem>>, vector<1x1x3x8xbf16>
    %76 = vector.shape_cast %75 : vector<1x1x3x8xbf16> to vector<3x8xbf16>
    %c3_141 = arith.constant 3 : index
    %c64_142 = arith.constant 64 : index
    %77 = vector.load %arg6[%c3_141, %c64_142] : memref<9x128xbf16, #tpu.memory_space<vmem>>, vector<3x8xbf16>
    tpu.vector_store %arg6[%c3_141, %c64_142], %76 {strides = array<i32>} : memref<9x128xbf16, #tpu.memory_space<vmem>>, vector<3x8xbf16>,
    %c0_143 = arith.constant 0 : index
    %c2_144 = arith.constant 2 : index
    %c0_145 = arith.constant 0 : index
    %c48_146 = arith.constant 48 : index
    %78 = vector.load %arg2[%c0_143, %c2_144, %c0_145, %c48_146] : memref<1x4x4x72xbf16, #tpu.memory_space<vmem>>, vector<1x1x3x8xbf16>
    %79 = vector.shape_cast %78 : vector<1x1x3x8xbf16> to vector<3x8xbf16>
    %c6_147 = arith.constant 6 : index
    %c64_148 = arith.constant 64 : index
    %80 = vector.load %arg6[%c6_147, %c64_148] : memref<9x128xbf16, #tpu.memory_space<vmem>>, vector<3x8xbf16>
    tpu.vector_store %arg6[%c6_147, %c64_148], %79 {strides = array<i32>} : memref<9x128xbf16, #tpu.memory_space<vmem>>, vector<3x8xbf16>,
    %c0_149 = arith.constant 0 : index
    %c0_150 = arith.constant 0 : index
    %c0_151 = arith.constant 0 : index
    %c56_152 = arith.constant 56 : index
    %81 = vector.load %arg2[%c0_149, %c0_150, %c0_151, %c56_152] : memref<1x4x4x72xbf16, #tpu.memory_space<vmem>>, vector<1x1x3x8xbf16>
    %82 = vector.shape_cast %81 : vector<1x1x3x8xbf16> to vector<3x8xbf16>
    %c0_153 = arith.constant 0 : index
    %c72 = arith.constant 72 : index
    %83 = vector.load %arg6[%c0_153, %c72] : memref<9x128xbf16, #tpu.memory_space<vmem>>, vector<3x8xbf16>
    tpu.vector_store %arg6[%c0_153, %c72], %82 {strides = array<i32>} : memref<9x128xbf16, #tpu.memory_space<vmem>>, vector<3x8xbf16>,
    %c0_154 = arith.constant 0 : index
    %c1_155 = arith.constant 1 : index
    %c0_156 = arith.constant 0 : index
    %c56_157 = arith.constant 56 : index
    %84 = vector.load %arg2[%c0_154, %c1_155, %c0_156, %c56_157] : memref<1x4x4x72xbf16, #tpu.memory_space<vmem>>, vector<1x1x3x8xbf16>
    %85 = vector.shape_cast %84 : vector<1x1x3x8xbf16> to vector<3x8xbf16>
    %c3_158 = arith.constant 3 : index
    %c72_159 = arith.constant 72 : index
    %86 = vector.load %arg6[%c3_158, %c72_159] : memref<9x128xbf16, #tpu.memory_space<vmem>>, vector<3x8xbf16>
    tpu.vector_store %arg6[%c3_158, %c72_159], %85 {strides = array<i32>} : memref<9x128xbf16, #tpu.memory_space<vmem>>, vector<3x8xbf16>,
    %c0_160 = arith.constant 0 : index
    %c2_161 = arith.constant 2 : index
    %c0_162 = arith.constant 0 : index
    %c56_163 = arith.constant 56 : index
    %87 = vector.load %arg2[%c0_160, %c2_161, %c0_162, %c56_163] : memref<1x4x4x72xbf16, #tpu.memory_space<vmem>>, vector<1x1x3x8xbf16>
    %88 = vector.shape_cast %87 : vector<1x1x3x8xbf16> to vector<3x8xbf16>
    %c6_164 = arith.constant 6 : index
    %c72_165 = arith.constant 72 : index
    %89 = vector.load %arg6[%c6_164, %c72_165] : memref<9x128xbf16, #tpu.memory_space<vmem>>, vector<3x8xbf16>
    tpu.vector_store %arg6[%c6_164, %c72_165], %88 {strides = array<i32>} : memref<9x128xbf16, #tpu.memory_space<vmem>>, vector<3x8xbf16>,
    %c0_166 = arith.constant 0 : index
    %c0_167 = arith.constant 0 : index
    %c0_168 = arith.constant 0 : index
    %c64_169 = arith.constant 64 : index
    %90 = vector.load %arg2[%c0_166, %c0_167, %c0_168, %c64_169] : memref<1x4x4x72xbf16, #tpu.memory_space<vmem>>, vector<1x1x3x8xbf16>
    %91 = vector.shape_cast %90 : vector<1x1x3x8xbf16> to vector<3x8xbf16>
    %c0_170 = arith.constant 0 : index
    %c80 = arith.constant 80 : index
    %92 = vector.load %arg6[%c0_170, %c80] : memref<9x128xbf16, #tpu.memory_space<vmem>>, vector<3x8xbf16>
    tpu.vector_store %arg6[%c0_170, %c80], %91 {strides = array<i32>} : memref<9x128xbf16, #tpu.memory_space<vmem>>, vector<3x8xbf16>,
    %c0_171 = arith.constant 0 : index
    %c1_172 = arith.constant 1 : index
    %c0_173 = arith.constant 0 : index
    %c64_174 = arith.constant 64 : index
    %93 = vector.load %arg2[%c0_171, %c1_172, %c0_173, %c64_174] : memref<1x4x4x72xbf16, #tpu.memory_space<vmem>>, vector<1x1x3x8xbf16>
    %94 = vector.shape_cast %93 : vector<1x1x3x8xbf16> to vector<3x8xbf16>
    %c3_175 = arith.constant 3 : index
    %c80_176 = arith.constant 80 : index
    %95 = vector.load %arg6[%c3_175, %c80_176] : memref<9x128xbf16, #tpu.memory_space<vmem>>, vector<3x8xbf16>
    tpu.vector_store %arg6[%c3_175, %c80_176], %94 {strides = array<i32>} : memref<9x128xbf16, #tpu.memory_space<vmem>>, vector<3x8xbf16>,
    %c0_177 = arith.constant 0 : index
    %c2_178 = arith.constant 2 : index
    %c0_179 = arith.constant 0 : index
    %c64_180 = arith.constant 64 : index
    %96 = vector.load %arg2[%c0_177, %c2_178, %c0_179, %c64_180] : memref<1x4x4x72xbf16, #tpu.memory_space<vmem>>, vector<1x1x3x8xbf16>
    %97 = vector.shape_cast %96 : vector<1x1x3x8xbf16> to vector<3x8xbf16>
    %c6_181 = arith.constant 6 : index
    %c80_182 = arith.constant 80 : index
    %98 = vector.load %arg6[%c6_181, %c80_182] : memref<9x128xbf16, #tpu.memory_space<vmem>>, vector<3x8xbf16>
    tpu.vector_store %arg6[%c6_181, %c80_182], %97 {strides = array<i32>} : memref<9x128xbf16, #tpu.memory_space<vmem>>, vector<3x8xbf16>,
    %c0_183 = arith.constant 0 : index
    %c0_184 = arith.constant 0 : index
    %c1_185 = arith.constant 1 : index
    %c48_186 = arith.constant 48 : index
    %99 = vector.load %arg2[%c0_183, %c0_184, %c1_185, %c48_186] : memref<1x4x4x72xbf16, #tpu.memory_space<vmem>>, vector<1x1x3x8xbf16>
    %100 = vector.shape_cast %99 : vector<1x1x3x8xbf16> to vector<3x8xbf16>
    %c0_187 = arith.constant 0 : index
    %c88 = arith.constant 88 : index
    %101 = vector.load %arg6[%c0_187, %c88] : memref<9x128xbf16, #tpu.memory_space<vmem>>, vector<3x8xbf16>
    tpu.vector_store %arg6[%c0_187, %c88], %100 {strides = array<i32>} : memref<9x128xbf16, #tpu.memory_space<vmem>>, vector<3x8xbf16>,
    %c0_188 = arith.constant 0 : index
    %c1_189 = arith.constant 1 : index
    %c1_190 = arith.constant 1 : index
    %c48_191 = arith.constant 48 : index
    %102 = vector.load %arg2[%c0_188, %c1_189, %c1_190, %c48_191] : memref<1x4x4x72xbf16, #tpu.memory_space<vmem>>, vector<1x1x3x8xbf16>
    %103 = vector.shape_cast %102 : vector<1x1x3x8xbf16> to vector<3x8xbf16>
    %c3_192 = arith.constant 3 : index
    %c88_193 = arith.constant 88 : index
    %104 = vector.load %arg6[%c3_192, %c88_193] : memref<9x128xbf16, #tpu.memory_space<vmem>>, vector<3x8xbf16>
    tpu.vector_store %arg6[%c3_192, %c88_193], %103 {strides = array<i32>} : memref<9x128xbf16, #tpu.memory_space<vmem>>, vector<3x8xbf16>,
    %c0_194 = arith.constant 0 : index
    %c2_195 = arith.constant 2 : index
    %c1_196 = arith.constant 1 : index
    %c48_197 = arith.constant 48 : index
    %105 = vector.load %arg2[%c0_194, %c2_195, %c1_196, %c48_197] : memref<1x4x4x72xbf16, #tpu.memory_space<vmem>>, vector<1x1x3x8xbf16>
    %106 = vector.shape_cast %105 : vector<1x1x3x8xbf16> to vector<3x8xbf16>
    %c6_198 = arith.constant 6 : index
    %c88_199 = arith.constant 88 : index
    %107 = vector.load %arg6[%c6_198, %c88_199] : memref<9x128xbf16, #tpu.memory_space<vmem>>, vector<3x8xbf16>
    tpu.vector_store %arg6[%c6_198, %c88_199], %106 {strides = array<i32>} : memref<9x128xbf16, #tpu.memory_space<vmem>>, vector<3x8xbf16>,
    %c0_200 = arith.constant 0 : index
    %c1_201 = arith.constant 1 : index
    %c0_202 = arith.constant 0 : index
    %c0_203 = arith.constant 0 : index
    %108 = vector.load %arg2[%c0_200, %c1_201, %c0_202, %c0_203] : memref<1x4x4x72xbf16, #tpu.memory_space<vmem>>, vector<1x1x3x8xbf16>
    %109 = vector.shape_cast %108 : vector<1x1x3x8xbf16> to vector<3x8xbf16>
    %c0_204 = arith.constant 0 : index
    %c96 = arith.constant 96 : index
    %110 = vector.load %arg6[%c0_204, %c96] : memref<9x128xbf16, #tpu.memory_space<vmem>>, vector<3x8xbf16>
    tpu.vector_store %arg6[%c0_204, %c96], %109 {strides = array<i32>} : memref<9x128xbf16, #tpu.memory_space<vmem>>, vector<3x8xbf16>,
    %c0_205 = arith.constant 0 : index
    %c2_206 = arith.constant 2 : index
    %c0_207 = arith.constant 0 : index
    %c0_208 = arith.constant 0 : index
    %111 = vector.load %arg2[%c0_205, %c2_206, %c0_207, %c0_208] : memref<1x4x4x72xbf16, #tpu.memory_space<vmem>>, vector<1x1x3x8xbf16>
    %112 = vector.shape_cast %111 : vector<1x1x3x8xbf16> to vector<3x8xbf16>
    %c3_209 = arith.constant 3 : index
    %c96_210 = arith.constant 96 : index
    %113 = vector.load %arg6[%c3_209, %c96_210] : memref<9x128xbf16, #tpu.memory_space<vmem>>, vector<3x8xbf16>
    tpu.vector_store %arg6[%c3_209, %c96_210], %112 {strides = array<i32>} : memref<9x128xbf16, #tpu.memory_space<vmem>>, vector<3x8xbf16>,
    %c0_211 = arith.constant 0 : index
    %c3_212 = arith.constant 3 : index
    %c0_213 = arith.constant 0 : index
    %c0_214 = arith.constant 0 : index
    %114 = vector.load %arg2[%c0_211, %c3_212, %c0_213, %c0_214] : memref<1x4x4x72xbf16, #tpu.memory_space<vmem>>, vector<1x1x3x8xbf16>
    %115 = vector.shape_cast %114 : vector<1x1x3x8xbf16> to vector<3x8xbf16>
    %c6_215 = arith.constant 6 : index
    %c96_216 = arith.constant 96 : index
    %116 = vector.load %arg6[%c6_215, %c96_216] : memref<9x128xbf16, #tpu.memory_space<vmem>>, vector<3x8xbf16>
    tpu.vector_store %arg6[%c6_215, %c96_216], %115 {strides = array<i32>} : memref<9x128xbf16, #tpu.memory_space<vmem>>, vector<3x8xbf16>,
    %c0_217 = arith.constant 0 : index
    %c1_218 = arith.constant 1 : index
    %c0_219 = arith.constant 0 : index
    %c8_220 = arith.constant 8 : index
    %117 = vector.load %arg2[%c0_217, %c1_218, %c0_219, %c8_220] : memref<1x4x4x72xbf16, #tpu.memory_space<vmem>>, vector<1x1x3x8xbf16>
    %118 = vector.shape_cast %117 : vector<1x1x3x8xbf16> to vector<3x8xbf16>
    %c0_221 = arith.constant 0 : index
    %c104 = arith.constant 104 : index
    %119 = vector.load %arg6[%c0_221, %c104] : memref<9x128xbf16, #tpu.memory_space<vmem>>, vector<3x8xbf16>
    tpu.vector_store %arg6[%c0_221, %c104], %118 {strides = array<i32>} : memref<9x128xbf16, #tpu.memory_space<vmem>>, vector<3x8xbf16>,
    %c0_222 = arith.constant 0 : index
    %c2_223 = arith.constant 2 : index
    %c0_224 = arith.constant 0 : index
    %c8_225 = arith.constant 8 : index
    %120 = vector.load %arg2[%c0_222, %c2_223, %c0_224, %c8_225] : memref<1x4x4x72xbf16, #tpu.memory_space<vmem>>, vector<1x1x3x8xbf16>
    %121 = vector.shape_cast %120 : vector<1x1x3x8xbf16> to vector<3x8xbf16>
    %c3_226 = arith.constant 3 : index
    %c104_227 = arith.constant 104 : index
    %122 = vector.load %arg6[%c3_226, %c104_227] : memref<9x128xbf16, #tpu.memory_space<vmem>>, vector<3x8xbf16>
    tpu.vector_store %arg6[%c3_226, %c104_227], %121 {strides = array<i32>} : memref<9x128xbf16, #tpu.memory_space<vmem>>, vector<3x8xbf16>,
    %c0_228 = arith.constant 0 : index
    %c3_229 = arith.constant 3 : index
    %c0_230 = arith.constant 0 : index
    %c8_231 = arith.constant 8 : index
    %123 = vector.load %arg2[%c0_228, %c3_229, %c0_230, %c8_231] : memref<1x4x4x72xbf16, #tpu.memory_space<vmem>>, vector<1x1x3x8xbf16>
    %124 = vector.shape_cast %123 : vector<1x1x3x8xbf16> to vector<3x8xbf16>
    %c6_232 = arith.constant 6 : index
    %c104_233 = arith.constant 104 : index
    %125 = vector.load %arg6[%c6_232, %c104_233] : memref<9x128xbf16, #tpu.memory_space<vmem>>, vector<3x8xbf16>
    tpu.vector_store %arg6[%c6_232, %c104_233], %124 {strides = array<i32>} : memref<9x128xbf16, #tpu.memory_space<vmem>>, vector<3x8xbf16>,
    %c0_234 = arith.constant 0 : index
    %c1_235 = arith.constant 1 : index
    %c0_236 = arith.constant 0 : index
    %c16_237 = arith.constant 16 : index
    %126 = vector.load %arg2[%c0_234, %c1_235, %c0_236, %c16_237] : memref<1x4x4x72xbf16, #tpu.memory_space<vmem>>, vector<1x1x3x8xbf16>
    %127 = vector.shape_cast %126 : vector<1x1x3x8xbf16> to vector<3x8xbf16>
    %c0_238 = arith.constant 0 : index
    %c112 = arith.constant 112 : index
    %128 = vector.load %arg6[%c0_238, %c112] : memref<9x128xbf16, #tpu.memory_space<vmem>>, vector<3x8xbf16>
    tpu.vector_store %arg6[%c0_238, %c112], %127 {strides = array<i32>} : memref<9x128xbf16, #tpu.memory_space<vmem>>, vector<3x8xbf16>,
    %c0_239 = arith.constant 0 : index
    %c2_240 = arith.constant 2 : index
    %c0_241 = arith.constant 0 : index
    %c16_242 = arith.constant 16 : index
    %129 = vector.load %arg2[%c0_239, %c2_240, %c0_241, %c16_242] : memref<1x4x4x72xbf16, #tpu.memory_space<vmem>>, vector<1x1x3x8xbf16>
    %130 = vector.shape_cast %129 : vector<1x1x3x8xbf16> to vector<3x8xbf16>
    %c3_243 = arith.constant 3 : index
    %c112_244 = arith.constant 112 : index
    %131 = vector.load %arg6[%c3_243, %c112_244] : memref<9x128xbf16, #tpu.memory_space<vmem>>, vector<3x8xbf16>
    tpu.vector_store %arg6[%c3_243, %c112_244], %130 {strides = array<i32>} : memref<9x128xbf16, #tpu.memory_space<vmem>>, vector<3x8xbf16>,
    %c0_245 = arith.constant 0 : index
    %c3_246 = arith.constant 3 : index
    %c0_247 = arith.constant 0 : index
    %c16_248 = arith.constant 16 : index
    %132 = vector.load %arg2[%c0_245, %c3_246, %c0_247, %c16_248] : memref<1x4x4x72xbf16, #tpu.memory_space<vmem>>, vector<1x1x3x8xbf16>
    %133 = vector.shape_cast %132 : vector<1x1x3x8xbf16> to vector<3x8xbf16>
    %c6_249 = arith.constant 6 : index
    %c112_250 = arith.constant 112 : index
    %134 = vector.load %arg6[%c6_249, %c112_250] : memref<9x128xbf16, #tpu.memory_space<vmem>>, vector<3x8xbf16>
    tpu.vector_store %arg6[%c6_249, %c112_250], %133 {strides = array<i32>} : memref<9x128xbf16, #tpu.memory_space<vmem>>, vector<3x8xbf16>,
    %c0_251 = arith.constant 0 : index
    %c1_252 = arith.constant 1 : index
    %c1_253 = arith.constant 1 : index
    %c0_254 = arith.constant 0 : index
    %135 = vector.load %arg2[%c0_251, %c1_252, %c1_253, %c0_254] : memref<1x4x4x72xbf16, #tpu.memory_space<vmem>>, vector<1x1x3x8xbf16>
    %136 = vector.shape_cast %135 : vector<1x1x3x8xbf16> to vector<3x8xbf16>
    %c0_255 = arith.constant 0 : index
    %c120 = arith.constant 120 : index
    %137 = vector.load %arg6[%c0_255, %c120] : memref<9x128xbf16, #tpu.memory_space<vmem>>, vector<3x8xbf16>
    tpu.vector_store %arg6[%c0_255, %c120], %136 {strides = array<i32>} : memref<9x128xbf16, #tpu.memory_space<vmem>>, vector<3x8xbf16>,
    %c0_256 = arith.constant 0 : index
    %c2_257 = arith.constant 2 : index
    %c1_258 = arith.constant 1 : index
    %c0_259 = arith.constant 0 : index
    %138 = vector.load %arg2[%c0_256, %c2_257, %c1_258, %c0_259] : memref<1x4x4x72xbf16, #tpu.memory_space<vmem>>, vector<1x1x3x8xbf16>
    %139 = vector.shape_cast %138 : vector<1x1x3x8xbf16> to vector<3x8xbf16>
    %c3_260 = arith.constant 3 : index
    %c120_261 = arith.constant 120 : index
    %140 = vector.load %arg6[%c3_260, %c120_261] : memref<9x128xbf16, #tpu.memory_space<vmem>>, vector<3x8xbf16>
    tpu.vector_store %arg6[%c3_260, %c120_261], %139 {strides = array<i32>} : memref<9x128xbf16, #tpu.memory_space<vmem>>, vector<3x8xbf16>,
    %c0_262 = arith.constant 0 : index
    %c3_263 = arith.constant 3 : index
    %c1_264 = arith.constant 1 : index
    %c0_265 = arith.constant 0 : index
    %141 = vector.load %arg2[%c0_262, %c3_263, %c1_264, %c0_265] : memref<1x4x4x72xbf16, #tpu.memory_space<vmem>>, vector<1x1x3x8xbf16>
    %142 = vector.shape_cast %141 : vector<1x1x3x8xbf16> to vector<3x8xbf16>
    %c6_266 = arith.constant 6 : index
    %c120_267 = arith.constant 120 : index
    %143 = vector.load %arg6[%c6_266, %c120_267] : memref<9x128xbf16, #tpu.memory_space<vmem>>, vector<3x8xbf16>
    tpu.vector_store %arg6[%c6_266, %c120_267], %142 {strides = array<i32>} : memref<9x128xbf16, #tpu.memory_space<vmem>>, vector<3x8xbf16>,
    %c0_268 = arith.constant 0 : index
    %c0_269 = arith.constant 0 : index
    %144 = vector.load %arg6[%c0_268, %c0_269] : memref<9x128xbf16, #tpu.memory_space<vmem>>, vector<9x128xbf16>
    %c0_270 = arith.constant 0 : index
    %c0_271 = arith.constant 0 : index
    %145 = vector.load %arg3[%c0_270, %c0_271] : memref<128x16xbf16, #tpu.memory_space<vmem>>, vector<128x16xbf16>
    %cst = arith.constant dense<0.000000e+00> : vector<9x16xf32>
    %146 = tpu.matmul %144, %145, %cst {dimension_numbers = #tpu.dot_dimension_numbers<[1], [0], [0], [1], [0, 0, 1, 1], [], []>} : vector<9x128xbf16>, vector<128x16xbf16>, vector<9x16xf32> -> vector<9x16xf32>
    %c0_i32 = arith.constant 0 : i32
    %147 = arith.cmpi eq, %arg1, %c0_i32 : i32
    %148 = arith.extui %147 : i1 to i32
    %c0_i32_272 = arith.constant 0 : i32
    %149 = arith.cmpi ne, %148, %c0_i32_272 : i32
    scf.if %149 {
      %cst_290 = arith.constant 0.000000e+00 : f32
      %171 = vector.broadcast %cst_290 : f32 to vector<1x2x16xf32>
      %c0_291 = arith.constant 0 : index
      %c0_292 = arith.constant 0 : index
      %c0_293 = arith.constant 0 : index
      %172 = vector.load %arg5[%c0_291, %c0_292, %c0_293] : memref<1x2x16xf32, #tpu.memory_space<vmem>>, vector<1x2x16xf32>
      tpu.vector_store %arg5[%c0_291, %c0_292, %c0_293], %171 {strides = array<i32>} : memref<1x2x16xf32, #tpu.memory_space<vmem>>, vector<1x2x16xf32>,
    } else {
    }
    %c0_273 = arith.constant 0 : index
    %c0_274 = arith.constant 0 : index
    %c0_275 = arith.constant 0 : index
    %150 = vector.load %arg5[%c0_273, %c0_274, %c0_275] : memref<1x2x16xf32, #tpu.memory_space<vmem>>, vector<1x1x16xf32>
    %151 = vector.shape_cast %150 : vector<1x1x16xf32> to vector<1x16xf32>
    %cst_276 = arith.constant dense<0.000000e+00> : vector<16xf32>
    %152 = vector.multi_reduction <add>, %146, %cst_276 [0] : vector<9x16xf32> to vector<16xf32>
    %153 = vector.shape_cast %152 : vector<16xf32> to vector<1x16xf32>
    %154 = arith.addf %151, %153 : vector<1x16xf32>
    %c0_277 = arith.constant 0 : index
    %c0_278 = arith.constant 0 : index
    %c0_279 = arith.constant 0 : index
    %155 = vector.load %arg5[%c0_277, %c0_278, %c0_279] : memref<1x2x16xf32, #tpu.memory_space<vmem>>, vector<1x1x16xf32>
    %156 = vector.shape_cast %155 : vector<1x1x16xf32> to vector<1x16xf32>
    %157 = vector.shape_cast %154 : vector<1x16xf32> to vector<1x1x16xf32>
    tpu.vector_store %arg5[%c0_277, %c0_278, %c0_279], %157 {strides = array<i32>} : memref<1x2x16xf32, #tpu.memory_space<vmem>>, vector<1x1x16xf32>,
    %c0_280 = arith.constant 0 : index
    %c1_281 = arith.constant 1 : index
    %c0_282 = arith.constant 0 : index
    %158 = vector.load %arg5[%c0_280, %c1_281, %c0_282] : memref<1x2x16xf32, #tpu.memory_space<vmem>>, vector<1x1x16xf32>
    %159 = vector.shape_cast %158 : vector<1x1x16xf32> to vector<1x16xf32>
    %160 = arith.mulf %146, %146 : vector<9x16xf32>
    %cst_283 = arith.constant dense<0.000000e+00> : vector<16xf32>
    %161 = vector.multi_reduction <add>, %160, %cst_283 [0] : vector<9x16xf32> to vector<16xf32>
    %162 = vector.shape_cast %161 : vector<16xf32> to vector<1x16xf32>
    %163 = arith.addf %159, %162 : vector<1x16xf32>
    %c0_284 = arith.constant 0 : index
    %c1_285 = arith.constant 1 : index
    %c0_286 = arith.constant 0 : index
    %164 = vector.load %arg5[%c0_284, %c1_285, %c0_286] : memref<1x2x16xf32, #tpu.memory_space<vmem>>, vector<1x1x16xf32>
    %165 = vector.shape_cast %164 : vector<1x1x16xf32> to vector<1x16xf32>
    %166 = vector.shape_cast %163 : vector<1x16xf32> to vector<1x1x16xf32>
    tpu.vector_store %arg5[%c0_284, %c1_285, %c0_286], %166 {strides = array<i32>} : memref<1x2x16xf32, #tpu.memory_space<vmem>>, vector<1x1x16xf32>,
    %167 = arith.truncf %146 : vector<9x16xf32> to vector<9x16xbf16>
    %c0_287 = arith.constant 0 : index
    %c0_288 = arith.constant 0 : index
    %c0_289 = arith.constant 0 : index
    %168 = vector.load %arg4[%c0_287, %c0_288, %c0_289] : memref<1x9x16xbf16, #tpu.memory_space<vmem>>, vector<1x9x16xbf16>
    %169 = vector.shape_cast %168 : vector<1x9x16xbf16> to vector<9x16xbf16>
    %170 = vector.shape_cast %167 : vector<9x16xbf16> to vector<1x9x16xbf16>
    tpu.vector_store %arg4[%c0_287, %c0_288, %c0_289], %170 {strides = array<i32>} : memref<1x9x16xbf16, #tpu.memory_space<vmem>>, vector<1x9x16xbf16>,
    return
  }
  func.func @transform_0(%arg0: i32, %arg1: i32) -> (i32, i32, i32, i32) {
    %c1_i32 = arith.constant 1 : i32
    %0 = arith.muli %arg0, %c1_i32 : i32
    %1 = arith.addi %0, %arg1 : i32
    %c0_i32 = arith.constant 0 : i32
    %c0_i32_0 = arith.constant 0 : i32
    %c0_i32_1 = arith.constant 0 : i32
    %c0_i32_2 = arith.constant 0 : i32
    return %1, %c0_i32, %c0_i32_0, %c0_i32_1 : i32, i32, i32, i32
  }
  func.func @transform_1(%arg0: i32, %arg1: i32) -> (i32, i32) {
    %c0_i32 = arith.constant 0 : i32
    %c0_i32_0 = arith.constant 0 : i32
    %c0_i32_1 = arith.constant 0 : i32
    return %c0_i32, %c0_i32_0 : i32, i32
  }
  func.func @transform_2(%arg0: i32, %arg1: i32) -> (i32, i32, i32) {
    %c1_i32 = arith.constant 1 : i32
    %0 = arith.muli %arg0, %c1_i32 : i32
    %1 = arith.addi %0, %arg1 : i32
    %c0_i32 = arith.constant 0 : i32
    %c0_i32_0 = arith.constant 0 : i32
    %c0_i32_1 = arith.constant 0 : i32
    return %1, %c0_i32, %c0_i32_0 : i32, i32, i32
  }
  func.func @transform_3(%arg0: i32, %arg1: i32) -> (i32, i32, i32) {
    %c0_i32 = arith.constant 0 : i32
    %c0_i32_0 = arith.constant 0 : i32
    %c0_i32_1 = arith.constant 0 : i32
    return %arg0, %c0_i32, %c0_i32_0 : i32, i32, i32
  }
}

module attributes {stable_mosaic.version = 11 : i64} {
  func.func @_scale_shift_lrelu_kernel(%arg0: i32, %arg1: memref<1x9x16xbf16, #tpu.memory_space<vmem>>, %arg2: memref<1x1x16xf32, #tpu.memory_space<vmem>>, %arg3: memref<1x1x16xf32, #tpu.memory_space<vmem>>, %arg4: memref<1x9x16xbf16, #tpu.memory_space<vmem>>) attributes {dimension_semantics = [#tpu.dimension_semantics<parallel>], iteration_bounds = array<i64: 2>, scalar_prefetch = 0 : i64, scratch_operands = 0 : i64, tpu.core_type = #tpu.core_type<tc>, window_params = [{transform_indices = @transform_0, window_bounds = array<i64: 1, 9, 16>}, {pipeline_mode = #tpu.pipeline_mode<synchronous>, transform_indices = @transform_1, window_bounds = array<i64: 1, 1, 16>}, {pipeline_mode = #tpu.pipeline_mode<synchronous>, transform_indices = @transform_2, window_bounds = array<i64: 1, 1, 16>}, {transform_indices = @transform_3, window_bounds = array<i64: 1, 9, 16>}]} {
    %c0 = arith.constant 0 : index
    %c0_0 = arith.constant 0 : index
    %c0_1 = arith.constant 0 : index
    %0 = vector.load %arg1[%c0, %c0_0, %c0_1] : memref<1x9x16xbf16, #tpu.memory_space<vmem>>, vector<1x9x16xbf16>
    %1 = arith.extf %0 : vector<1x9x16xbf16> to vector<1x9x16xf32>
    %c0_2 = arith.constant 0 : index
    %c0_3 = arith.constant 0 : index
    %c0_4 = arith.constant 0 : index
    %2 = vector.load %arg2[%c0_2, %c0_3, %c0_4] : memref<1x1x16xf32, #tpu.memory_space<vmem>>, vector<1x1x16xf32>
    %3 = vector.broadcast %2 : vector<1x1x16xf32> to vector<1x9x16xf32>
    %4 = arith.mulf %1, %3 : vector<1x9x16xf32>
    %c0_5 = arith.constant 0 : index
    %c0_6 = arith.constant 0 : index
    %c0_7 = arith.constant 0 : index
    %5 = vector.load %arg3[%c0_5, %c0_6, %c0_7] : memref<1x1x16xf32, #tpu.memory_space<vmem>>, vector<1x1x16xf32>
    %6 = vector.broadcast %5 : vector<1x1x16xf32> to vector<1x9x16xf32>
    %7 = arith.addf %4, %6 : vector<1x9x16xf32>
    %cst = arith.constant 2.000000e-01 : f32
    %8 = vector.broadcast %cst : f32 to vector<1x9x16xf32>
    %9 = arith.mulf %8, %7 : vector<1x9x16xf32>
    %10 = arith.maximumf %7, %9 : vector<1x9x16xf32>
    %11 = arith.truncf %10 : vector<1x9x16xf32> to vector<1x9x16xbf16>
    %c0_8 = arith.constant 0 : index
    %c0_9 = arith.constant 0 : index
    %c0_10 = arith.constant 0 : index
    %12 = vector.load %arg4[%c0_8, %c0_9, %c0_10] : memref<1x9x16xbf16, #tpu.memory_space<vmem>>, vector<1x9x16xbf16>
    tpu.vector_store %arg4[%c0_8, %c0_9, %c0_10], %11 {strides = array<i32>} : memref<1x9x16xbf16, #tpu.memory_space<vmem>>, vector<1x9x16xbf16>,
    return
  }
  func.func @transform_0(%arg0: i32) -> (i32, i32, i32) {
    %c0_i32 = arith.constant 0 : i32
    %c0_i32_0 = arith.constant 0 : i32
    %c0_i32_1 = arith.constant 0 : i32
    return %arg0, %c0_i32, %c0_i32_0 : i32, i32, i32
  }
  func.func @transform_1(%arg0: i32) -> (i32, i32, i32) {
    %c0_i32 = arith.constant 0 : i32
    %c0_i32_0 = arith.constant 0 : i32
    %c0_i32_1 = arith.constant 0 : i32
    %c0_i32_2 = arith.constant 0 : i32
    return %c0_i32, %c0_i32_0, %c0_i32_1 : i32, i32, i32
  }
  func.func @transform_2(%arg0: i32) -> (i32, i32, i32) {
    %c0_i32 = arith.constant 0 : i32
    %c0_i32_0 = arith.constant 0 : i32
    %c0_i32_1 = arith.constant 0 : i32
    %c0_i32_2 = arith.constant 0 : i32
    return %c0_i32, %c0_i32_0, %c0_i32_1 : i32, i32, i32
  }
  func.func @transform_3(%arg0: i32) -> (i32, i32, i32) {
    %c0_i32 = arith.constant 0 : i32
    %c0_i32_0 = arith.constant 0 : i32
    %c0_i32_1 = arith.constant 0 : i32
    return %arg0, %c0_i32, %c0_i32_0 : i32, i32, i32
  }
}

module attributes {stable_mosaic.version = 11 : i64} {
  func.func @_scale_shift_lrelu_kernel(%arg0: i32, %arg1: memref<1x4x32xbf16, #tpu.memory_space<vmem>>, %arg2: memref<1x1x32xf32, #tpu.memory_space<vmem>>, %arg3: memref<1x1x32xf32, #tpu.memory_space<vmem>>, %arg4: memref<1x4x32xbf16, #tpu.memory_space<vmem>>) attributes {dimension_semantics = [#tpu.dimension_semantics<parallel>], iteration_bounds = array<i64: 2>, scalar_prefetch = 0 : i64, scratch_operands = 0 : i64, tpu.core_type = #tpu.core_type<tc>, window_params = [{transform_indices = @transform_0, window_bounds = array<i64: 1, 4, 32>}, {pipeline_mode = #tpu.pipeline_mode<synchronous>, transform_indices = @transform_1, window_bounds = array<i64: 1, 1, 32>}, {pipeline_mode = #tpu.pipeline_mode<synchronous>, transform_indices = @transform_2, window_bounds = array<i64: 1, 1, 32>}, {transform_indices = @transform_3, window_bounds = array<i64: 1, 4, 32>}]} {
    %c0 = arith.constant 0 : index
    %c0_0 = arith.constant 0 : index
    %c0_1 = arith.constant 0 : index
    %0 = vector.load %arg1[%c0, %c0_0, %c0_1] : memref<1x4x32xbf16, #tpu.memory_space<vmem>>, vector<1x4x32xbf16>
    %1 = arith.extf %0 : vector<1x4x32xbf16> to vector<1x4x32xf32>
    %c0_2 = arith.constant 0 : index
    %c0_3 = arith.constant 0 : index
    %c0_4 = arith.constant 0 : index
    %2 = vector.load %arg2[%c0_2, %c0_3, %c0_4] : memref<1x1x32xf32, #tpu.memory_space<vmem>>, vector<1x1x32xf32>
    %3 = vector.broadcast %2 : vector<1x1x32xf32> to vector<1x4x32xf32>
    %4 = arith.mulf %1, %3 : vector<1x4x32xf32>
    %c0_5 = arith.constant 0 : index
    %c0_6 = arith.constant 0 : index
    %c0_7 = arith.constant 0 : index
    %5 = vector.load %arg3[%c0_5, %c0_6, %c0_7] : memref<1x1x32xf32, #tpu.memory_space<vmem>>, vector<1x1x32xf32>
    %6 = vector.broadcast %5 : vector<1x1x32xf32> to vector<1x4x32xf32>
    %7 = arith.addf %4, %6 : vector<1x4x32xf32>
    %cst = arith.constant 2.000000e-01 : f32
    %8 = vector.broadcast %cst : f32 to vector<1x4x32xf32>
    %9 = arith.mulf %8, %7 : vector<1x4x32xf32>
    %10 = arith.maximumf %7, %9 : vector<1x4x32xf32>
    %11 = arith.truncf %10 : vector<1x4x32xf32> to vector<1x4x32xbf16>
    %c0_8 = arith.constant 0 : index
    %c0_9 = arith.constant 0 : index
    %c0_10 = arith.constant 0 : index
    %12 = vector.load %arg4[%c0_8, %c0_9, %c0_10] : memref<1x4x32xbf16, #tpu.memory_space<vmem>>, vector<1x4x32xbf16>
    tpu.vector_store %arg4[%c0_8, %c0_9, %c0_10], %11 {strides = array<i32>} : memref<1x4x32xbf16, #tpu.memory_space<vmem>>, vector<1x4x32xbf16>,
    return
  }
  func.func @transform_0(%arg0: i32) -> (i32, i32, i32) {
    %c0_i32 = arith.constant 0 : i32
    %c0_i32_0 = arith.constant 0 : i32
    %c0_i32_1 = arith.constant 0 : i32
    return %arg0, %c0_i32, %c0_i32_0 : i32, i32, i32
  }
  func.func @transform_1(%arg0: i32) -> (i32, i32, i32) {
    %c0_i32 = arith.constant 0 : i32
    %c0_i32_0 = arith.constant 0 : i32
    %c0_i32_1 = arith.constant 0 : i32
    %c0_i32_2 = arith.constant 0 : i32
    return %c0_i32, %c0_i32_0, %c0_i32_1 : i32, i32, i32
  }
  func.func @transform_2(%arg0: i32) -> (i32, i32, i32) {
    %c0_i32 = arith.constant 0 : i32
    %c0_i32_0 = arith.constant 0 : i32
    %c0_i32_1 = arith.constant 0 : i32
    %c0_i32_2 = arith.constant 0 : i32
    return %c0_i32, %c0_i32_0, %c0_i32_1 : i32, i32, i32
  }
  func.func @transform_3(%arg0: i32) -> (i32, i32, i32) {
    %c0_i32 = arith.constant 0 : i32
    %c0_i32_0 = arith.constant 0 : i32
    %c0_i32_1 = arith.constant 0 : i32
    return %arg0, %c0_i32, %c0_i32_0 : i32, i32, i32
  }
}

module attributes {stable_mosaic.version = 11 : i64} {
  func.func @_conv_stats_kernel(%arg0: i32, %arg1: i32, %arg2: memref<1x3x3x144xbf16, #tpu.memory_space<vmem>>, %arg3: memref<256x32xbf16, #tpu.memory_space<vmem>>, %arg4: memref<1x4x32xbf16, #tpu.memory_space<vmem>>, %arg5: memref<1x2x32xf32, #tpu.memory_space<vmem>>, %arg6: memref<4x256xbf16, #tpu.memory_space<vmem>>) attributes {dimension_semantics = [#tpu.dimension_semantics<parallel>, #tpu.dimension_semantics<arbitrary>], iteration_bounds = array<i64: 2, 1>, scalar_prefetch = 0 : i64, scratch_operands = 1 : i64, tpu.core_type = #tpu.core_type<tc>, window_params = [{transform_indices = @transform_0, window_bounds = array<i64: 1, 3, 3, 144>}, {pipeline_mode = #tpu.pipeline_mode<synchronous>, transform_indices = @transform_1, window_bounds = array<i64: 256, 32>}, {transform_indices = @transform_2, window_bounds = array<i64: 1, 4, 32>}, {transform_indices = @transform_3, window_bounds = array<i64: 1, 2, 32>}]} {
    %c0 = arith.constant 0 : index
    %c0_0 = arith.constant 0 : index
    %c0_1 = arith.constant 0 : index
    %c0_2 = arith.constant 0 : index
    %0 = vector.load %arg2[%c0, %c0_0, %c0_1, %c0_2] : memref<1x3x3x144xbf16, #tpu.memory_space<vmem>>, vector<1x1x2x16xbf16>
    %1 = vector.shape_cast %0 : vector<1x1x2x16xbf16> to vector<2x16xbf16>
    %c0_3 = arith.constant 0 : index
    %c0_4 = arith.constant 0 : index
    %2 = vector.load %arg6[%c0_3, %c0_4] : memref<4x256xbf16, #tpu.memory_space<vmem>>, vector<2x16xbf16>
    tpu.vector_store %arg6[%c0_3, %c0_4], %1 {strides = array<i32>} : memref<4x256xbf16, #tpu.memory_space<vmem>>, vector<2x16xbf16>,
    %c0_5 = arith.constant 0 : index
    %c1 = arith.constant 1 : index
    %c0_6 = arith.constant 0 : index
    %c0_7 = arith.constant 0 : index
    %3 = vector.load %arg2[%c0_5, %c1, %c0_6, %c0_7] : memref<1x3x3x144xbf16, #tpu.memory_space<vmem>>, vector<1x1x2x16xbf16>
    %4 = vector.shape_cast %3 : vector<1x1x2x16xbf16> to vector<2x16xbf16>
    %c2 = arith.constant 2 : index
    %c0_8 = arith.constant 0 : index
    %5 = vector.load %arg6[%c2, %c0_8] : memref<4x256xbf16, #tpu.memory_space<vmem>>, vector<2x16xbf16>
    tpu.vector_store %arg6[%c2, %c0_8], %4 {strides = array<i32>} : memref<4x256xbf16, #tpu.memory_space<vmem>>, vector<2x16xbf16>,
    %c0_9 = arith.constant 0 : index
    %c0_10 = arith.constant 0 : index
    %c0_11 = arith.constant 0 : index
    %c16 = arith.constant 16 : index
    %6 = vector.load %arg2[%c0_9, %c0_10, %c0_11, %c16] : memref<1x3x3x144xbf16, #tpu.memory_space<vmem>>, vector<1x1x2x16xbf16>
    %7 = vector.shape_cast %6 : vector<1x1x2x16xbf16> to vector<2x16xbf16>
    %c0_12 = arith.constant 0 : index
    %c16_13 = arith.constant 16 : index
    %8 = vector.load %arg6[%c0_12, %c16_13] : memref<4x256xbf16, #tpu.memory_space<vmem>>, vector<2x16xbf16>
    tpu.vector_store %arg6[%c0_12, %c16_13], %7 {strides = array<i32>} : memref<4x256xbf16, #tpu.memory_space<vmem>>, vector<2x16xbf16>,
    %c0_14 = arith.constant 0 : index
    %c1_15 = arith.constant 1 : index
    %c0_16 = arith.constant 0 : index
    %c16_17 = arith.constant 16 : index
    %9 = vector.load %arg2[%c0_14, %c1_15, %c0_16, %c16_17] : memref<1x3x3x144xbf16, #tpu.memory_space<vmem>>, vector<1x1x2x16xbf16>
    %10 = vector.shape_cast %9 : vector<1x1x2x16xbf16> to vector<2x16xbf16>
    %c2_18 = arith.constant 2 : index
    %c16_19 = arith.constant 16 : index
    %11 = vector.load %arg6[%c2_18, %c16_19] : memref<4x256xbf16, #tpu.memory_space<vmem>>, vector<2x16xbf16>
    tpu.vector_store %arg6[%c2_18, %c16_19], %10 {strides = array<i32>} : memref<4x256xbf16, #tpu.memory_space<vmem>>, vector<2x16xbf16>,
    %c0_20 = arith.constant 0 : index
    %c0_21 = arith.constant 0 : index
    %c0_22 = arith.constant 0 : index
    %c32 = arith.constant 32 : index
    %12 = vector.load %arg2[%c0_20, %c0_21, %c0_22, %c32] : memref<1x3x3x144xbf16, #tpu.memory_space<vmem>>, vector<1x1x2x16xbf16>
    %13 = vector.shape_cast %12 : vector<1x1x2x16xbf16> to vector<2x16xbf16>
    %c0_23 = arith.constant 0 : index
    %c32_24 = arith.constant 32 : index
    %14 = vector.load %arg6[%c0_23, %c32_24] : memref<4x256xbf16, #tpu.memory_space<vmem>>, vector<2x16xbf16>
    tpu.vector_store %arg6[%c0_23, %c32_24], %13 {strides = array<i32>} : memref<4x256xbf16, #tpu.memory_space<vmem>>, vector<2x16xbf16>,
    %c0_25 = arith.constant 0 : index
    %c1_26 = arith.constant 1 : index
    %c0_27 = arith.constant 0 : index
    %c32_28 = arith.constant 32 : index
    %15 = vector.load %arg2[%c0_25, %c1_26, %c0_27, %c32_28] : memref<1x3x3x144xbf16, #tpu.memory_space<vmem>>, vector<1x1x2x16xbf16>
    %16 = vector.shape_cast %15 : vector<1x1x2x16xbf16> to vector<2x16xbf16>
    %c2_29 = arith.constant 2 : index
    %c32_30 = arith.constant 32 : index
    %17 = vector.load %arg6[%c2_29, %c32_30] : memref<4x256xbf16, #tpu.memory_space<vmem>>, vector<2x16xbf16>
    tpu.vector_store %arg6[%c2_29, %c32_30], %16 {strides = array<i32>} : memref<4x256xbf16, #tpu.memory_space<vmem>>, vector<2x16xbf16>,
    %c0_31 = arith.constant 0 : index
    %c0_32 = arith.constant 0 : index
    %c1_33 = arith.constant 1 : index
    %c0_34 = arith.constant 0 : index
    %18 = vector.load %arg2[%c0_31, %c0_32, %c1_33, %c0_34] : memref<1x3x3x144xbf16, #tpu.memory_space<vmem>>, vector<1x1x2x16xbf16>
    %19 = vector.shape_cast %18 : vector<1x1x2x16xbf16> to vector<2x16xbf16>
    %c0_35 = arith.constant 0 : index
    %c48 = arith.constant 48 : index
    %20 = vector.load %arg6[%c0_35, %c48] : memref<4x256xbf16, #tpu.memory_space<vmem>>, vector<2x16xbf16>
    tpu.vector_store %arg6[%c0_35, %c48], %19 {strides = array<i32>} : memref<4x256xbf16, #tpu.memory_space<vmem>>, vector<2x16xbf16>,
    %c0_36 = arith.constant 0 : index
    %c1_37 = arith.constant 1 : index
    %c1_38 = arith.constant 1 : index
    %c0_39 = arith.constant 0 : index
    %21 = vector.load %arg2[%c0_36, %c1_37, %c1_38, %c0_39] : memref<1x3x3x144xbf16, #tpu.memory_space<vmem>>, vector<1x1x2x16xbf16>
    %22 = vector.shape_cast %21 : vector<1x1x2x16xbf16> to vector<2x16xbf16>
    %c2_40 = arith.constant 2 : index
    %c48_41 = arith.constant 48 : index
    %23 = vector.load %arg6[%c2_40, %c48_41] : memref<4x256xbf16, #tpu.memory_space<vmem>>, vector<2x16xbf16>
    tpu.vector_store %arg6[%c2_40, %c48_41], %22 {strides = array<i32>} : memref<4x256xbf16, #tpu.memory_space<vmem>>, vector<2x16xbf16>,
    %c0_42 = arith.constant 0 : index
    %c0_43 = arith.constant 0 : index
    %c0_44 = arith.constant 0 : index
    %c48_45 = arith.constant 48 : index
    %24 = vector.load %arg2[%c0_42, %c0_43, %c0_44, %c48_45] : memref<1x3x3x144xbf16, #tpu.memory_space<vmem>>, vector<1x1x2x16xbf16>
    %25 = vector.shape_cast %24 : vector<1x1x2x16xbf16> to vector<2x16xbf16>
    %c0_46 = arith.constant 0 : index
    %c64 = arith.constant 64 : index
    %26 = vector.load %arg6[%c0_46, %c64] : memref<4x256xbf16, #tpu.memory_space<vmem>>, vector<2x16xbf16>
    tpu.vector_store %arg6[%c0_46, %c64], %25 {strides = array<i32>} : memref<4x256xbf16, #tpu.memory_space<vmem>>, vector<2x16xbf16>,
    %c0_47 = arith.constant 0 : index
    %c1_48 = arith.constant 1 : index
    %c0_49 = arith.constant 0 : index
    %c48_50 = arith.constant 48 : index
    %27 = vector.load %arg2[%c0_47, %c1_48, %c0_49, %c48_50] : memref<1x3x3x144xbf16, #tpu.memory_space<vmem>>, vector<1x1x2x16xbf16>
    %28 = vector.shape_cast %27 : vector<1x1x2x16xbf16> to vector<2x16xbf16>
    %c2_51 = arith.constant 2 : index
    %c64_52 = arith.constant 64 : index
    %29 = vector.load %arg6[%c2_51, %c64_52] : memref<4x256xbf16, #tpu.memory_space<vmem>>, vector<2x16xbf16>
    tpu.vector_store %arg6[%c2_51, %c64_52], %28 {strides = array<i32>} : memref<4x256xbf16, #tpu.memory_space<vmem>>, vector<2x16xbf16>,
    %c0_53 = arith.constant 0 : index
    %c0_54 = arith.constant 0 : index
    %c0_55 = arith.constant 0 : index
    %c64_56 = arith.constant 64 : index
    %30 = vector.load %arg2[%c0_53, %c0_54, %c0_55, %c64_56] : memref<1x3x3x144xbf16, #tpu.memory_space<vmem>>, vector<1x1x2x16xbf16>
    %31 = vector.shape_cast %30 : vector<1x1x2x16xbf16> to vector<2x16xbf16>
    %c0_57 = arith.constant 0 : index
    %c80 = arith.constant 80 : index
    %32 = vector.load %arg6[%c0_57, %c80] : memref<4x256xbf16, #tpu.memory_space<vmem>>, vector<2x16xbf16>
    tpu.vector_store %arg6[%c0_57, %c80], %31 {strides = array<i32>} : memref<4x256xbf16, #tpu.memory_space<vmem>>, vector<2x16xbf16>,
    %c0_58 = arith.constant 0 : index
    %c1_59 = arith.constant 1 : index
    %c0_60 = arith.constant 0 : index
    %c64_61 = arith.constant 64 : index
    %33 = vector.load %arg2[%c0_58, %c1_59, %c0_60, %c64_61] : memref<1x3x3x144xbf16, #tpu.memory_space<vmem>>, vector<1x1x2x16xbf16>
    %34 = vector.shape_cast %33 : vector<1x1x2x16xbf16> to vector<2x16xbf16>
    %c2_62 = arith.constant 2 : index
    %c80_63 = arith.constant 80 : index
    %35 = vector.load %arg6[%c2_62, %c80_63] : memref<4x256xbf16, #tpu.memory_space<vmem>>, vector<2x16xbf16>
    tpu.vector_store %arg6[%c2_62, %c80_63], %34 {strides = array<i32>} : memref<4x256xbf16, #tpu.memory_space<vmem>>, vector<2x16xbf16>,
    %c0_64 = arith.constant 0 : index
    %c0_65 = arith.constant 0 : index
    %c0_66 = arith.constant 0 : index
    %c80_67 = arith.constant 80 : index
    %36 = vector.load %arg2[%c0_64, %c0_65, %c0_66, %c80_67] : memref<1x3x3x144xbf16, #tpu.memory_space<vmem>>, vector<1x1x2x16xbf16>
    %37 = vector.shape_cast %36 : vector<1x1x2x16xbf16> to vector<2x16xbf16>
    %c0_68 = arith.constant 0 : index
    %c96 = arith.constant 96 : index
    %38 = vector.load %arg6[%c0_68, %c96] : memref<4x256xbf16, #tpu.memory_space<vmem>>, vector<2x16xbf16>
    tpu.vector_store %arg6[%c0_68, %c96], %37 {strides = array<i32>} : memref<4x256xbf16, #tpu.memory_space<vmem>>, vector<2x16xbf16>,
    %c0_69 = arith.constant 0 : index
    %c1_70 = arith.constant 1 : index
    %c0_71 = arith.constant 0 : index
    %c80_72 = arith.constant 80 : index
    %39 = vector.load %arg2[%c0_69, %c1_70, %c0_71, %c80_72] : memref<1x3x3x144xbf16, #tpu.memory_space<vmem>>, vector<1x1x2x16xbf16>
    %40 = vector.shape_cast %39 : vector<1x1x2x16xbf16> to vector<2x16xbf16>
    %c2_73 = arith.constant 2 : index
    %c96_74 = arith.constant 96 : index
    %41 = vector.load %arg6[%c2_73, %c96_74] : memref<4x256xbf16, #tpu.memory_space<vmem>>, vector<2x16xbf16>
    tpu.vector_store %arg6[%c2_73, %c96_74], %40 {strides = array<i32>} : memref<4x256xbf16, #tpu.memory_space<vmem>>, vector<2x16xbf16>,
    %c0_75 = arith.constant 0 : index
    %c0_76 = arith.constant 0 : index
    %c1_77 = arith.constant 1 : index
    %c48_78 = arith.constant 48 : index
    %42 = vector.load %arg2[%c0_75, %c0_76, %c1_77, %c48_78] : memref<1x3x3x144xbf16, #tpu.memory_space<vmem>>, vector<1x1x2x16xbf16>
    %43 = vector.shape_cast %42 : vector<1x1x2x16xbf16> to vector<2x16xbf16>
    %c0_79 = arith.constant 0 : index
    %c112 = arith.constant 112 : index
    %44 = vector.load %arg6[%c0_79, %c112] : memref<4x256xbf16, #tpu.memory_space<vmem>>, vector<2x16xbf16>
    tpu.vector_store %arg6[%c0_79, %c112], %43 {strides = array<i32>} : memref<4x256xbf16, #tpu.memory_space<vmem>>, vector<2x16xbf16>,
    %c0_80 = arith.constant 0 : index
    %c1_81 = arith.constant 1 : index
    %c1_82 = arith.constant 1 : index
    %c48_83 = arith.constant 48 : index
    %45 = vector.load %arg2[%c0_80, %c1_81, %c1_82, %c48_83] : memref<1x3x3x144xbf16, #tpu.memory_space<vmem>>, vector<1x1x2x16xbf16>
    %46 = vector.shape_cast %45 : vector<1x1x2x16xbf16> to vector<2x16xbf16>
    %c2_84 = arith.constant 2 : index
    %c112_85 = arith.constant 112 : index
    %47 = vector.load %arg6[%c2_84, %c112_85] : memref<4x256xbf16, #tpu.memory_space<vmem>>, vector<2x16xbf16>
    tpu.vector_store %arg6[%c2_84, %c112_85], %46 {strides = array<i32>} : memref<4x256xbf16, #tpu.memory_space<vmem>>, vector<2x16xbf16>,
    %c0_86 = arith.constant 0 : index
    %c0_87 = arith.constant 0 : index
    %c0_88 = arith.constant 0 : index
    %c96_89 = arith.constant 96 : index
    %48 = vector.load %arg2[%c0_86, %c0_87, %c0_88, %c96_89] : memref<1x3x3x144xbf16, #tpu.memory_space<vmem>>, vector<1x1x2x16xbf16>
    %49 = vector.shape_cast %48 : vector<1x1x2x16xbf16> to vector<2x16xbf16>
    %c0_90 = arith.constant 0 : index
    %c128 = arith.constant 128 : index
    %50 = vector.load %arg6[%c0_90, %c128] : memref<4x256xbf16, #tpu.memory_space<vmem>>, vector<2x16xbf16>
    tpu.vector_store %arg6[%c0_90, %c128], %49 {strides = array<i32>} : memref<4x256xbf16, #tpu.memory_space<vmem>>, vector<2x16xbf16>,
    %c0_91 = arith.constant 0 : index
    %c1_92 = arith.constant 1 : index
    %c0_93 = arith.constant 0 : index
    %c96_94 = arith.constant 96 : index
    %51 = vector.load %arg2[%c0_91, %c1_92, %c0_93, %c96_94] : memref<1x3x3x144xbf16, #tpu.memory_space<vmem>>, vector<1x1x2x16xbf16>
    %52 = vector.shape_cast %51 : vector<1x1x2x16xbf16> to vector<2x16xbf16>
    %c2_95 = arith.constant 2 : index
    %c128_96 = arith.constant 128 : index
    %53 = vector.load %arg6[%c2_95, %c128_96] : memref<4x256xbf16, #tpu.memory_space<vmem>>, vector<2x16xbf16>
    tpu.vector_store %arg6[%c2_95, %c128_96], %52 {strides = array<i32>} : memref<4x256xbf16, #tpu.memory_space<vmem>>, vector<2x16xbf16>,
    %c0_97 = arith.constant 0 : index
    %c0_98 = arith.constant 0 : index
    %c0_99 = arith.constant 0 : index
    %c112_100 = arith.constant 112 : index
    %54 = vector.load %arg2[%c0_97, %c0_98, %c0_99, %c112_100] : memref<1x3x3x144xbf16, #tpu.memory_space<vmem>>, vector<1x1x2x16xbf16>
    %55 = vector.shape_cast %54 : vector<1x1x2x16xbf16> to vector<2x16xbf16>
    %c0_101 = arith.constant 0 : index
    %c144 = arith.constant 144 : index
    %56 = vector.load %arg6[%c0_101, %c144] : memref<4x256xbf16, #tpu.memory_space<vmem>>, vector<2x16xbf16>
    tpu.vector_store %arg6[%c0_101, %c144], %55 {strides = array<i32>} : memref<4x256xbf16, #tpu.memory_space<vmem>>, vector<2x16xbf16>,
    %c0_102 = arith.constant 0 : index
    %c1_103 = arith.constant 1 : index
    %c0_104 = arith.constant 0 : index
    %c112_105 = arith.constant 112 : index
    %57 = vector.load %arg2[%c0_102, %c1_103, %c0_104, %c112_105] : memref<1x3x3x144xbf16, #tpu.memory_space<vmem>>, vector<1x1x2x16xbf16>
    %58 = vector.shape_cast %57 : vector<1x1x2x16xbf16> to vector<2x16xbf16>
    %c2_106 = arith.constant 2 : index
    %c144_107 = arith.constant 144 : index
    %59 = vector.load %arg6[%c2_106, %c144_107] : memref<4x256xbf16, #tpu.memory_space<vmem>>, vector<2x16xbf16>
    tpu.vector_store %arg6[%c2_106, %c144_107], %58 {strides = array<i32>} : memref<4x256xbf16, #tpu.memory_space<vmem>>, vector<2x16xbf16>,
    %c0_108 = arith.constant 0 : index
    %c0_109 = arith.constant 0 : index
    %c0_110 = arith.constant 0 : index
    %c128_111 = arith.constant 128 : index
    %60 = vector.load %arg2[%c0_108, %c0_109, %c0_110, %c128_111] : memref<1x3x3x144xbf16, #tpu.memory_space<vmem>>, vector<1x1x2x16xbf16>
    %61 = vector.shape_cast %60 : vector<1x1x2x16xbf16> to vector<2x16xbf16>
    %c0_112 = arith.constant 0 : index
    %c160 = arith.constant 160 : index
    %62 = vector.load %arg6[%c0_112, %c160] : memref<4x256xbf16, #tpu.memory_space<vmem>>, vector<2x16xbf16>
    tpu.vector_store %arg6[%c0_112, %c160], %61 {strides = array<i32>} : memref<4x256xbf16, #tpu.memory_space<vmem>>, vector<2x16xbf16>,
    %c0_113 = arith.constant 0 : index
    %c1_114 = arith.constant 1 : index
    %c0_115 = arith.constant 0 : index
    %c128_116 = arith.constant 128 : index
    %63 = vector.load %arg2[%c0_113, %c1_114, %c0_115, %c128_116] : memref<1x3x3x144xbf16, #tpu.memory_space<vmem>>, vector<1x1x2x16xbf16>
    %64 = vector.shape_cast %63 : vector<1x1x2x16xbf16> to vector<2x16xbf16>
    %c2_117 = arith.constant 2 : index
    %c160_118 = arith.constant 160 : index
    %65 = vector.load %arg6[%c2_117, %c160_118] : memref<4x256xbf16, #tpu.memory_space<vmem>>, vector<2x16xbf16>
    tpu.vector_store %arg6[%c2_117, %c160_118], %64 {strides = array<i32>} : memref<4x256xbf16, #tpu.memory_space<vmem>>, vector<2x16xbf16>,
    %c0_119 = arith.constant 0 : index
    %c0_120 = arith.constant 0 : index
    %c1_121 = arith.constant 1 : index
    %c96_122 = arith.constant 96 : index
    %66 = vector.load %arg2[%c0_119, %c0_120, %c1_121, %c96_122] : memref<1x3x3x144xbf16, #tpu.memory_space<vmem>>, vector<1x1x2x16xbf16>
    %67 = vector.shape_cast %66 : vector<1x1x2x16xbf16> to vector<2x16xbf16>
    %c0_123 = arith.constant 0 : index
    %c176 = arith.constant 176 : index
    %68 = vector.load %arg6[%c0_123, %c176] : memref<4x256xbf16, #tpu.memory_space<vmem>>, vector<2x16xbf16>
    tpu.vector_store %arg6[%c0_123, %c176], %67 {strides = array<i32>} : memref<4x256xbf16, #tpu.memory_space<vmem>>, vector<2x16xbf16>,
    %c0_124 = arith.constant 0 : index
    %c1_125 = arith.constant 1 : index
    %c1_126 = arith.constant 1 : index
    %c96_127 = arith.constant 96 : index
    %69 = vector.load %arg2[%c0_124, %c1_125, %c1_126, %c96_127] : memref<1x3x3x144xbf16, #tpu.memory_space<vmem>>, vector<1x1x2x16xbf16>
    %70 = vector.shape_cast %69 : vector<1x1x2x16xbf16> to vector<2x16xbf16>
    %c2_128 = arith.constant 2 : index
    %c176_129 = arith.constant 176 : index
    %71 = vector.load %arg6[%c2_128, %c176_129] : memref<4x256xbf16, #tpu.memory_space<vmem>>, vector<2x16xbf16>
    tpu.vector_store %arg6[%c2_128, %c176_129], %70 {strides = array<i32>} : memref<4x256xbf16, #tpu.memory_space<vmem>>, vector<2x16xbf16>,
    %c0_130 = arith.constant 0 : index
    %c1_131 = arith.constant 1 : index
    %c0_132 = arith.constant 0 : index
    %c0_133 = arith.constant 0 : index
    %72 = vector.load %arg2[%c0_130, %c1_131, %c0_132, %c0_133] : memref<1x3x3x144xbf16, #tpu.memory_space<vmem>>, vector<1x1x2x16xbf16>
    %73 = vector.shape_cast %72 : vector<1x1x2x16xbf16> to vector<2x16xbf16>
    %c0_134 = arith.constant 0 : index
    %c192 = arith.constant 192 : index
    %74 = vector.load %arg6[%c0_134, %c192] : memref<4x256xbf16, #tpu.memory_space<vmem>>, vector<2x16xbf16>
    tpu.vector_store %arg6[%c0_134, %c192], %73 {strides = array<i32>} : memref<4x256xbf16, #tpu.memory_space<vmem>>, vector<2x16xbf16>,
    %c0_135 = arith.constant 0 : index
    %c2_136 = arith.constant 2 : index
    %c0_137 = arith.constant 0 : index
    %c0_138 = arith.constant 0 : index
    %75 = vector.load %arg2[%c0_135, %c2_136, %c0_137, %c0_138] : memref<1x3x3x144xbf16, #tpu.memory_space<vmem>>, vector<1x1x2x16xbf16>
    %76 = vector.shape_cast %75 : vector<1x1x2x16xbf16> to vector<2x16xbf16>
    %c2_139 = arith.constant 2 : index
    %c192_140 = arith.constant 192 : index
    %77 = vector.load %arg6[%c2_139, %c192_140] : memref<4x256xbf16, #tpu.memory_space<vmem>>, vector<2x16xbf16>
    tpu.vector_store %arg6[%c2_139, %c192_140], %76 {strides = array<i32>} : memref<4x256xbf16, #tpu.memory_space<vmem>>, vector<2x16xbf16>,
    %c0_141 = arith.constant 0 : index
    %c1_142 = arith.constant 1 : index
    %c0_143 = arith.constant 0 : index
    %c16_144 = arith.constant 16 : index
    %78 = vector.load %arg2[%c0_141, %c1_142, %c0_143, %c16_144] : memref<1x3x3x144xbf16, #tpu.memory_space<vmem>>, vector<1x1x2x16xbf16>
    %79 = vector.shape_cast %78 : vector<1x1x2x16xbf16> to vector<2x16xbf16>
    %c0_145 = arith.constant 0 : index
    %c208 = arith.constant 208 : index
    %80 = vector.load %arg6[%c0_145, %c208] : memref<4x256xbf16, #tpu.memory_space<vmem>>, vector<2x16xbf16>
    tpu.vector_store %arg6[%c0_145, %c208], %79 {strides = array<i32>} : memref<4x256xbf16, #tpu.memory_space<vmem>>, vector<2x16xbf16>,
    %c0_146 = arith.constant 0 : index
    %c2_147 = arith.constant 2 : index
    %c0_148 = arith.constant 0 : index
    %c16_149 = arith.constant 16 : index
    %81 = vector.load %arg2[%c0_146, %c2_147, %c0_148, %c16_149] : memref<1x3x3x144xbf16, #tpu.memory_space<vmem>>, vector<1x1x2x16xbf16>
    %82 = vector.shape_cast %81 : vector<1x1x2x16xbf16> to vector<2x16xbf16>
    %c2_150 = arith.constant 2 : index
    %c208_151 = arith.constant 208 : index
    %83 = vector.load %arg6[%c2_150, %c208_151] : memref<4x256xbf16, #tpu.memory_space<vmem>>, vector<2x16xbf16>
    tpu.vector_store %arg6[%c2_150, %c208_151], %82 {strides = array<i32>} : memref<4x256xbf16, #tpu.memory_space<vmem>>, vector<2x16xbf16>,
    %c0_152 = arith.constant 0 : index
    %c1_153 = arith.constant 1 : index
    %c0_154 = arith.constant 0 : index
    %c32_155 = arith.constant 32 : index
    %84 = vector.load %arg2[%c0_152, %c1_153, %c0_154, %c32_155] : memref<1x3x3x144xbf16, #tpu.memory_space<vmem>>, vector<1x1x2x16xbf16>
    %85 = vector.shape_cast %84 : vector<1x1x2x16xbf16> to vector<2x16xbf16>
    %c0_156 = arith.constant 0 : index
    %c224 = arith.constant 224 : index
    %86 = vector.load %arg6[%c0_156, %c224] : memref<4x256xbf16, #tpu.memory_space<vmem>>, vector<2x16xbf16>
    tpu.vector_store %arg6[%c0_156, %c224], %85 {strides = array<i32>} : memref<4x256xbf16, #tpu.memory_space<vmem>>, vector<2x16xbf16>,
    %c0_157 = arith.constant 0 : index
    %c2_158 = arith.constant 2 : index
    %c0_159 = arith.constant 0 : index
    %c32_160 = arith.constant 32 : index
    %87 = vector.load %arg2[%c0_157, %c2_158, %c0_159, %c32_160] : memref<1x3x3x144xbf16, #tpu.memory_space<vmem>>, vector<1x1x2x16xbf16>
    %88 = vector.shape_cast %87 : vector<1x1x2x16xbf16> to vector<2x16xbf16>
    %c2_161 = arith.constant 2 : index
    %c224_162 = arith.constant 224 : index
    %89 = vector.load %arg6[%c2_161, %c224_162] : memref<4x256xbf16, #tpu.memory_space<vmem>>, vector<2x16xbf16>
    tpu.vector_store %arg6[%c2_161, %c224_162], %88 {strides = array<i32>} : memref<4x256xbf16, #tpu.memory_space<vmem>>, vector<2x16xbf16>,
    %c0_163 = arith.constant 0 : index
    %c1_164 = arith.constant 1 : index
    %c1_165 = arith.constant 1 : index
    %c0_166 = arith.constant 0 : index
    %90 = vector.load %arg2[%c0_163, %c1_164, %c1_165, %c0_166] : memref<1x3x3x144xbf16, #tpu.memory_space<vmem>>, vector<1x1x2x16xbf16>
    %91 = vector.shape_cast %90 : vector<1x1x2x16xbf16> to vector<2x16xbf16>
    %c0_167 = arith.constant 0 : index
    %c240 = arith.constant 240 : index
    %92 = vector.load %arg6[%c0_167, %c240] : memref<4x256xbf16, #tpu.memory_space<vmem>>, vector<2x16xbf16>
    tpu.vector_store %arg6[%c0_167, %c240], %91 {strides = array<i32>} : memref<4x256xbf16, #tpu.memory_space<vmem>>, vector<2x16xbf16>,
    %c0_168 = arith.constant 0 : index
    %c2_169 = arith.constant 2 : index
    %c1_170 = arith.constant 1 : index
    %c0_171 = arith.constant 0 : index
    %93 = vector.load %arg2[%c0_168, %c2_169, %c1_170, %c0_171] : memref<1x3x3x144xbf16, #tpu.memory_space<vmem>>, vector<1x1x2x16xbf16>
    %94 = vector.shape_cast %93 : vector<1x1x2x16xbf16> to vector<2x16xbf16>
    %c2_172 = arith.constant 2 : index
    %c240_173 = arith.constant 240 : index
    %95 = vector.load %arg6[%c2_172, %c240_173] : memref<4x256xbf16, #tpu.memory_space<vmem>>, vector<2x16xbf16>
    tpu.vector_store %arg6[%c2_172, %c240_173], %94 {strides = array<i32>} : memref<4x256xbf16, #tpu.memory_space<vmem>>, vector<2x16xbf16>,
    %c0_174 = arith.constant 0 : index
    %c0_175 = arith.constant 0 : index
    %96 = vector.load %arg6[%c0_174, %c0_175] : memref<4x256xbf16, #tpu.memory_space<vmem>>, vector<4x256xbf16>
    %c0_176 = arith.constant 0 : index
    %c0_177 = arith.constant 0 : index
    %97 = vector.load %arg3[%c0_176, %c0_177] : memref<256x32xbf16, #tpu.memory_space<vmem>>, vector<256x32xbf16>
    %cst = arith.constant dense<0.000000e+00> : vector<4x32xf32>
    %98 = tpu.matmul %96, %97, %cst {dimension_numbers = #tpu.dot_dimension_numbers<[1], [0], [0], [1], [0, 0, 1, 1], [], []>} : vector<4x256xbf16>, vector<256x32xbf16>, vector<4x32xf32> -> vector<4x32xf32>
    %c0_i32 = arith.constant 0 : i32
    %99 = arith.cmpi eq, %arg1, %c0_i32 : i32
    %100 = arith.extui %99 : i1 to i32
    %c0_i32_178 = arith.constant 0 : i32
    %101 = arith.cmpi ne, %100, %c0_i32_178 : i32
    scf.if %101 {
      %cst_196 = arith.constant 0.000000e+00 : f32
      %123 = vector.broadcast %cst_196 : f32 to vector<1x2x32xf32>
      %c0_197 = arith.constant 0 : index
      %c0_198 = arith.constant 0 : index
      %c0_199 = arith.constant 0 : index
      %124 = vector.load %arg5[%c0_197, %c0_198, %c0_199] : memref<1x2x32xf32, #tpu.memory_space<vmem>>, vector<1x2x32xf32>
      tpu.vector_store %arg5[%c0_197, %c0_198, %c0_199], %123 {strides = array<i32>} : memref<1x2x32xf32, #tpu.memory_space<vmem>>, vector<1x2x32xf32>,
    } else {
    }
    %c0_179 = arith.constant 0 : index
    %c0_180 = arith.constant 0 : index
    %c0_181 = arith.constant 0 : index
    %102 = vector.load %arg5[%c0_179, %c0_180, %c0_181] : memref<1x2x32xf32, #tpu.memory_space<vmem>>, vector<1x1x32xf32>
    %103 = vector.shape_cast %102 : vector<1x1x32xf32> to vector<1x32xf32>
    %cst_182 = arith.constant dense<0.000000e+00> : vector<32xf32>
    %104 = vector.multi_reduction <add>, %98, %cst_182 [0] : vector<4x32xf32> to vector<32xf32>
    %105 = vector.shape_cast %104 : vector<32xf32> to vector<1x32xf32>
    %106 = arith.addf %103, %105 : vector<1x32xf32>
    %c0_183 = arith.constant 0 : index
    %c0_184 = arith.constant 0 : index
    %c0_185 = arith.constant 0 : index
    %107 = vector.load %arg5[%c0_183, %c0_184, %c0_185] : memref<1x2x32xf32, #tpu.memory_space<vmem>>, vector<1x1x32xf32>
    %108 = vector.shape_cast %107 : vector<1x1x32xf32> to vector<1x32xf32>
    %109 = vector.shape_cast %106 : vector<1x32xf32> to vector<1x1x32xf32>
    tpu.vector_store %arg5[%c0_183, %c0_184, %c0_185], %109 {strides = array<i32>} : memref<1x2x32xf32, #tpu.memory_space<vmem>>, vector<1x1x32xf32>,
    %c0_186 = arith.constant 0 : index
    %c1_187 = arith.constant 1 : index
    %c0_188 = arith.constant 0 : index
    %110 = vector.load %arg5[%c0_186, %c1_187, %c0_188] : memref<1x2x32xf32, #tpu.memory_space<vmem>>, vector<1x1x32xf32>
    %111 = vector.shape_cast %110 : vector<1x1x32xf32> to vector<1x32xf32>
    %112 = arith.mulf %98, %98 : vector<4x32xf32>
    %cst_189 = arith.constant dense<0.000000e+00> : vector<32xf32>
    %113 = vector.multi_reduction <add>, %112, %cst_189 [0] : vector<4x32xf32> to vector<32xf32>
    %114 = vector.shape_cast %113 : vector<32xf32> to vector<1x32xf32>
    %115 = arith.addf %111, %114 : vector<1x32xf32>
    %c0_190 = arith.constant 0 : index
    %c1_191 = arith.constant 1 : index
    %c0_192 = arith.constant 0 : index
    %116 = vector.load %arg5[%c0_190, %c1_191, %c0_192] : memref<1x2x32xf32, #tpu.memory_space<vmem>>, vector<1x1x32xf32>
    %117 = vector.shape_cast %116 : vector<1x1x32xf32> to vector<1x32xf32>
    %118 = vector.shape_cast %115 : vector<1x32xf32> to vector<1x1x32xf32>
    tpu.vector_store %arg5[%c0_190, %c1_191, %c0_192], %118 {strides = array<i32>} : memref<1x2x32xf32, #tpu.memory_space<vmem>>, vector<1x1x32xf32>,
    %119 = arith.truncf %98 : vector<4x32xf32> to vector<4x32xbf16>
    %c0_193 = arith.constant 0 : index
    %c0_194 = arith.constant 0 : index
    %c0_195 = arith.constant 0 : index
    %120 = vector.load %arg4[%c0_193, %c0_194, %c0_195] : memref<1x4x32xbf16, #tpu.memory_space<vmem>>, vector<1x4x32xbf16>
    %121 = vector.shape_cast %120 : vector<1x4x32xbf16> to vector<4x32xbf16>
    %122 = vector.shape_cast %119 : vector<4x32xbf16> to vector<1x4x32xbf16>
    tpu.vector_store %arg4[%c0_193, %c0_194, %c0_195], %122 {strides = array<i32>} : memref<1x4x32xbf16, #tpu.memory_space<vmem>>, vector<1x4x32xbf16>,
    return
  }
  func.func @transform_0(%arg0: i32, %arg1: i32) -> (i32, i32, i32, i32) {
    %c1_i32 = arith.constant 1 : i32
    %0 = arith.muli %arg0, %c1_i32 : i32
    %1 = arith.addi %0, %arg1 : i32
    %c0_i32 = arith.constant 0 : i32
    %c0_i32_0 = arith.constant 0 : i32
    %c0_i32_1 = arith.constant 0 : i32
    %c0_i32_2 = arith.constant 0 : i32
    return %1, %c0_i32, %c0_i32_0, %c0_i32_1 : i32, i32, i32, i32
  }
  func.func @transform_1(%arg0: i32, %arg1: i32) -> (i32, i32) {
    %c0_i32 = arith.constant 0 : i32
    %c0_i32_0 = arith.constant 0 : i32
    %c0_i32_1 = arith.constant 0 : i32
    return %c0_i32, %c0_i32_0 : i32, i32
  }
  func.func @transform_2(%arg0: i32, %arg1: i32) -> (i32, i32, i32) {
    %c1_i32 = arith.constant 1 : i32
    %0 = arith.muli %arg0, %c1_i32 : i32
    %1 = arith.addi %0, %arg1 : i32
    %c0_i32 = arith.constant 0 : i32
    %c0_i32_0 = arith.constant 0 : i32
    %c0_i32_1 = arith.constant 0 : i32
    return %1, %c0_i32, %c0_i32_0 : i32, i32, i32
  }
  func.func @transform_3(%arg0: i32, %arg1: i32) -> (i32, i32, i32) {
    %c0_i32 = arith.constant 0 : i32
    %c0_i32_0 = arith.constant 0 : i32
    %c0_i32_1 = arith.constant 0 : i32
    return %arg0, %c0_i32, %c0_i32_0 : i32, i32, i32
  }
}

module attributes {stable_mosaic.version = 11 : i64} {
  func.func @_conv_stats_kernel(%arg0: i32, %arg1: i32, %arg2: memref<1x2x2x288xbf16, #tpu.memory_space<vmem>>, %arg3: memref<512x64xbf16, #tpu.memory_space<vmem>>, %arg4: memref<1x1x64xbf16, #tpu.memory_space<vmem>>, %arg5: memref<1x2x64xf32, #tpu.memory_space<vmem>>, %arg6: memref<1x512xbf16, #tpu.memory_space<vmem>>) attributes {dimension_semantics = [#tpu.dimension_semantics<parallel>, #tpu.dimension_semantics<arbitrary>], iteration_bounds = array<i64: 2, 1>, scalar_prefetch = 0 : i64, scratch_operands = 1 : i64, tpu.core_type = #tpu.core_type<tc>, window_params = [{transform_indices = @transform_0, window_bounds = array<i64: 1, 2, 2, 288>}, {pipeline_mode = #tpu.pipeline_mode<synchronous>, transform_indices = @transform_1, window_bounds = array<i64: 512, 64>}, {transform_indices = @transform_2, window_bounds = array<i64: 1, 1, 64>}, {transform_indices = @transform_3, window_bounds = array<i64: 1, 2, 64>}]} {
    %c0 = arith.constant 0 : index
    %c0_0 = arith.constant 0 : index
    %c0_1 = arith.constant 0 : index
    %c0_2 = arith.constant 0 : index
    %0 = vector.load %arg2[%c0, %c0_0, %c0_1, %c0_2] : memref<1x2x2x288xbf16, #tpu.memory_space<vmem>>, vector<1x1x1x32xbf16>
    %1 = vector.shape_cast %0 : vector<1x1x1x32xbf16> to vector<1x32xbf16>
    %c0_3 = arith.constant 0 : index
    %c0_4 = arith.constant 0 : index
    %2 = vector.load %arg6[%c0_3, %c0_4] : memref<1x512xbf16, #tpu.memory_space<vmem>>, vector<1x32xbf16>
    tpu.vector_store %arg6[%c0_3, %c0_4], %1 {strides = array<i32>} : memref<1x512xbf16, #tpu.memory_space<vmem>>, vector<1x32xbf16>,
    %c0_5 = arith.constant 0 : index
    %c0_6 = arith.constant 0 : index
    %c0_7 = arith.constant 0 : index
    %c32 = arith.constant 32 : index
    %3 = vector.load %arg2[%c0_5, %c0_6, %c0_7, %c32] : memref<1x2x2x288xbf16, #tpu.memory_space<vmem>>, vector<1x1x1x32xbf16>
    %4 = vector.shape_cast %3 : vector<1x1x1x32xbf16> to vector<1x32xbf16>
    %c0_8 = arith.constant 0 : index
    %c32_9 = arith.constant 32 : index
    %5 = vector.load %arg6[%c0_8, %c32_9] : memref<1x512xbf16, #tpu.memory_space<vmem>>, vector<1x32xbf16>
    tpu.vector_store %arg6[%c0_8, %c32_9], %4 {strides = array<i32>} : memref<1x512xbf16, #tpu.memory_space<vmem>>, vector<1x32xbf16>,
    %c0_10 = arith.constant 0 : index
    %c0_11 = arith.constant 0 : index
    %c0_12 = arith.constant 0 : index
    %c64 = arith.constant 64 : index
    %6 = vector.load %arg2[%c0_10, %c0_11, %c0_12, %c64] : memref<1x2x2x288xbf16, #tpu.memory_space<vmem>>, vector<1x1x1x32xbf16>
    %7 = vector.shape_cast %6 : vector<1x1x1x32xbf16> to vector<1x32xbf16>
    %c0_13 = arith.constant 0 : index
    %c64_14 = arith.constant 64 : index
    %8 = vector.load %arg6[%c0_13, %c64_14] : memref<1x512xbf16, #tpu.memory_space<vmem>>, vector<1x32xbf16>
    tpu.vector_store %arg6[%c0_13, %c64_14], %7 {strides = array<i32>} : memref<1x512xbf16, #tpu.memory_space<vmem>>, vector<1x32xbf16>,
    %c0_15 = arith.constant 0 : index
    %c0_16 = arith.constant 0 : index
    %c1 = arith.constant 1 : index
    %c0_17 = arith.constant 0 : index
    %9 = vector.load %arg2[%c0_15, %c0_16, %c1, %c0_17] : memref<1x2x2x288xbf16, #tpu.memory_space<vmem>>, vector<1x1x1x32xbf16>
    %10 = vector.shape_cast %9 : vector<1x1x1x32xbf16> to vector<1x32xbf16>
    %c0_18 = arith.constant 0 : index
    %c96 = arith.constant 96 : index
    %11 = vector.load %arg6[%c0_18, %c96] : memref<1x512xbf16, #tpu.memory_space<vmem>>, vector<1x32xbf16>
    tpu.vector_store %arg6[%c0_18, %c96], %10 {strides = array<i32>} : memref<1x512xbf16, #tpu.memory_space<vmem>>, vector<1x32xbf16>,
    %c0_19 = arith.constant 0 : index
    %c0_20 = arith.constant 0 : index
    %c0_21 = arith.constant 0 : index
    %c96_22 = arith.constant 96 : index
    %12 = vector.load %arg2[%c0_19, %c0_20, %c0_21, %c96_22] : memref<1x2x2x288xbf16, #tpu.memory_space<vmem>>, vector<1x1x1x32xbf16>
    %13 = vector.shape_cast %12 : vector<1x1x1x32xbf16> to vector<1x32xbf16>
    %c0_23 = arith.constant 0 : index
    %c128 = arith.constant 128 : index
    %14 = vector.load %arg6[%c0_23, %c128] : memref<1x512xbf16, #tpu.memory_space<vmem>>, vector<1x32xbf16>
    tpu.vector_store %arg6[%c0_23, %c128], %13 {strides = array<i32>} : memref<1x512xbf16, #tpu.memory_space<vmem>>, vector<1x32xbf16>,
    %c0_24 = arith.constant 0 : index
    %c0_25 = arith.constant 0 : index
    %c0_26 = arith.constant 0 : index
    %c128_27 = arith.constant 128 : index
    %15 = vector.load %arg2[%c0_24, %c0_25, %c0_26, %c128_27] : memref<1x2x2x288xbf16, #tpu.memory_space<vmem>>, vector<1x1x1x32xbf16>
    %16 = vector.shape_cast %15 : vector<1x1x1x32xbf16> to vector<1x32xbf16>
    %c0_28 = arith.constant 0 : index
    %c160 = arith.constant 160 : index
    %17 = vector.load %arg6[%c0_28, %c160] : memref<1x512xbf16, #tpu.memory_space<vmem>>, vector<1x32xbf16>
    tpu.vector_store %arg6[%c0_28, %c160], %16 {strides = array<i32>} : memref<1x512xbf16, #tpu.memory_space<vmem>>, vector<1x32xbf16>,
    %c0_29 = arith.constant 0 : index
    %c0_30 = arith.constant 0 : index
    %c0_31 = arith.constant 0 : index
    %c160_32 = arith.constant 160 : index
    %18 = vector.load %arg2[%c0_29, %c0_30, %c0_31, %c160_32] : memref<1x2x2x288xbf16, #tpu.memory_space<vmem>>, vector<1x1x1x32xbf16>
    %19 = vector.shape_cast %18 : vector<1x1x1x32xbf16> to vector<1x32xbf16>
    %c0_33 = arith.constant 0 : index
    %c192 = arith.constant 192 : index
    %20 = vector.load %arg6[%c0_33, %c192] : memref<1x512xbf16, #tpu.memory_space<vmem>>, vector<1x32xbf16>
    tpu.vector_store %arg6[%c0_33, %c192], %19 {strides = array<i32>} : memref<1x512xbf16, #tpu.memory_space<vmem>>, vector<1x32xbf16>,
    %c0_34 = arith.constant 0 : index
    %c0_35 = arith.constant 0 : index
    %c1_36 = arith.constant 1 : index
    %c96_37 = arith.constant 96 : index
    %21 = vector.load %arg2[%c0_34, %c0_35, %c1_36, %c96_37] : memref<1x2x2x288xbf16, #tpu.memory_space<vmem>>, vector<1x1x1x32xbf16>
    %22 = vector.shape_cast %21 : vector<1x1x1x32xbf16> to vector<1x32xbf16>
    %c0_38 = arith.constant 0 : index
    %c224 = arith.constant 224 : index
    %23 = vector.load %arg6[%c0_38, %c224] : memref<1x512xbf16, #tpu.memory_space<vmem>>, vector<1x32xbf16>
    tpu.vector_store %arg6[%c0_38, %c224], %22 {strides = array<i32>} : memref<1x512xbf16, #tpu.memory_space<vmem>>, vector<1x32xbf16>,
    %c0_39 = arith.constant 0 : index
    %c0_40 = arith.constant 0 : index
    %c0_41 = arith.constant 0 : index
    %c192_42 = arith.constant 192 : index
    %24 = vector.load %arg2[%c0_39, %c0_40, %c0_41, %c192_42] : memref<1x2x2x288xbf16, #tpu.memory_space<vmem>>, vector<1x1x1x32xbf16>
    %25 = vector.shape_cast %24 : vector<1x1x1x32xbf16> to vector<1x32xbf16>
    %c0_43 = arith.constant 0 : index
    %c256 = arith.constant 256 : index
    %26 = vector.load %arg6[%c0_43, %c256] : memref<1x512xbf16, #tpu.memory_space<vmem>>, vector<1x32xbf16>
    tpu.vector_store %arg6[%c0_43, %c256], %25 {strides = array<i32>} : memref<1x512xbf16, #tpu.memory_space<vmem>>, vector<1x32xbf16>,
    %c0_44 = arith.constant 0 : index
    %c0_45 = arith.constant 0 : index
    %c0_46 = arith.constant 0 : index
    %c224_47 = arith.constant 224 : index
    %27 = vector.load %arg2[%c0_44, %c0_45, %c0_46, %c224_47] : memref<1x2x2x288xbf16, #tpu.memory_space<vmem>>, vector<1x1x1x32xbf16>
    %28 = vector.shape_cast %27 : vector<1x1x1x32xbf16> to vector<1x32xbf16>
    %c0_48 = arith.constant 0 : index
    %c288 = arith.constant 288 : index
    %29 = vector.load %arg6[%c0_48, %c288] : memref<1x512xbf16, #tpu.memory_space<vmem>>, vector<1x32xbf16>
    tpu.vector_store %arg6[%c0_48, %c288], %28 {strides = array<i32>} : memref<1x512xbf16, #tpu.memory_space<vmem>>, vector<1x32xbf16>,
    %c0_49 = arith.constant 0 : index
    %c0_50 = arith.constant 0 : index
    %c0_51 = arith.constant 0 : index
    %c256_52 = arith.constant 256 : index
    %30 = vector.load %arg2[%c0_49, %c0_50, %c0_51, %c256_52] : memref<1x2x2x288xbf16, #tpu.memory_space<vmem>>, vector<1x1x1x32xbf16>
    %31 = vector.shape_cast %30 : vector<1x1x1x32xbf16> to vector<1x32xbf16>
    %c0_53 = arith.constant 0 : index
    %c320 = arith.constant 320 : index
    %32 = vector.load %arg6[%c0_53, %c320] : memref<1x512xbf16, #tpu.memory_space<vmem>>, vector<1x32xbf16>
    tpu.vector_store %arg6[%c0_53, %c320], %31 {strides = array<i32>} : memref<1x512xbf16, #tpu.memory_space<vmem>>, vector<1x32xbf16>,
    %c0_54 = arith.constant 0 : index
    %c0_55 = arith.constant 0 : index
    %c1_56 = arith.constant 1 : index
    %c192_57 = arith.constant 192 : index
    %33 = vector.load %arg2[%c0_54, %c0_55, %c1_56, %c192_57] : memref<1x2x2x288xbf16, #tpu.memory_space<vmem>>, vector<1x1x1x32xbf16>
    %34 = vector.shape_cast %33 : vector<1x1x1x32xbf16> to vector<1x32xbf16>
    %c0_58 = arith.constant 0 : index
    %c352 = arith.constant 352 : index
    %35 = vector.load %arg6[%c0_58, %c352] : memref<1x512xbf16, #tpu.memory_space<vmem>>, vector<1x32xbf16>
    tpu.vector_store %arg6[%c0_58, %c352], %34 {strides = array<i32>} : memref<1x512xbf16, #tpu.memory_space<vmem>>, vector<1x32xbf16>,
    %c0_59 = arith.constant 0 : index
    %c1_60 = arith.constant 1 : index
    %c0_61 = arith.constant 0 : index
    %c0_62 = arith.constant 0 : index
    %36 = vector.load %arg2[%c0_59, %c1_60, %c0_61, %c0_62] : memref<1x2x2x288xbf16, #tpu.memory_space<vmem>>, vector<1x1x1x32xbf16>
    %37 = vector.shape_cast %36 : vector<1x1x1x32xbf16> to vector<1x32xbf16>
    %c0_63 = arith.constant 0 : index
    %c384 = arith.constant 384 : index
    %38 = vector.load %arg6[%c0_63, %c384] : memref<1x512xbf16, #tpu.memory_space<vmem>>, vector<1x32xbf16>
    tpu.vector_store %arg6[%c0_63, %c384], %37 {strides = array<i32>} : memref<1x512xbf16, #tpu.memory_space<vmem>>, vector<1x32xbf16>,
    %c0_64 = arith.constant 0 : index
    %c1_65 = arith.constant 1 : index
    %c0_66 = arith.constant 0 : index
    %c32_67 = arith.constant 32 : index
    %39 = vector.load %arg2[%c0_64, %c1_65, %c0_66, %c32_67] : memref<1x2x2x288xbf16, #tpu.memory_space<vmem>>, vector<1x1x1x32xbf16>
    %40 = vector.shape_cast %39 : vector<1x1x1x32xbf16> to vector<1x32xbf16>
    %c0_68 = arith.constant 0 : index
    %c416 = arith.constant 416 : index
    %41 = vector.load %arg6[%c0_68, %c416] : memref<1x512xbf16, #tpu.memory_space<vmem>>, vector<1x32xbf16>
    tpu.vector_store %arg6[%c0_68, %c416], %40 {strides = array<i32>} : memref<1x512xbf16, #tpu.memory_space<vmem>>, vector<1x32xbf16>,
    %c0_69 = arith.constant 0 : index
    %c1_70 = arith.constant 1 : index
    %c0_71 = arith.constant 0 : index
    %c64_72 = arith.constant 64 : index
    %42 = vector.load %arg2[%c0_69, %c1_70, %c0_71, %c64_72] : memref<1x2x2x288xbf16, #tpu.memory_space<vmem>>, vector<1x1x1x32xbf16>
    %43 = vector.shape_cast %42 : vector<1x1x1x32xbf16> to vector<1x32xbf16>
    %c0_73 = arith.constant 0 : index
    %c448 = arith.constant 448 : index
    %44 = vector.load %arg6[%c0_73, %c448] : memref<1x512xbf16, #tpu.memory_space<vmem>>, vector<1x32xbf16>
    tpu.vector_store %arg6[%c0_73, %c448], %43 {strides = array<i32>} : memref<1x512xbf16, #tpu.memory_space<vmem>>, vector<1x32xbf16>,
    %c0_74 = arith.constant 0 : index
    %c1_75 = arith.constant 1 : index
    %c1_76 = arith.constant 1 : index
    %c0_77 = arith.constant 0 : index
    %45 = vector.load %arg2[%c0_74, %c1_75, %c1_76, %c0_77] : memref<1x2x2x288xbf16, #tpu.memory_space<vmem>>, vector<1x1x1x32xbf16>
    %46 = vector.shape_cast %45 : vector<1x1x1x32xbf16> to vector<1x32xbf16>
    %c0_78 = arith.constant 0 : index
    %c480 = arith.constant 480 : index
    %47 = vector.load %arg6[%c0_78, %c480] : memref<1x512xbf16, #tpu.memory_space<vmem>>, vector<1x32xbf16>
    tpu.vector_store %arg6[%c0_78, %c480], %46 {strides = array<i32>} : memref<1x512xbf16, #tpu.memory_space<vmem>>, vector<1x32xbf16>,
    %c0_79 = arith.constant 0 : index
    %c0_80 = arith.constant 0 : index
    %48 = vector.load %arg6[%c0_79, %c0_80] : memref<1x512xbf16, #tpu.memory_space<vmem>>, vector<1x512xbf16>
    %c0_81 = arith.constant 0 : index
    %c0_82 = arith.constant 0 : index
    %49 = vector.load %arg3[%c0_81, %c0_82] : memref<512x64xbf16, #tpu.memory_space<vmem>>, vector<512x64xbf16>
    %cst = arith.constant dense<0.000000e+00> : vector<1x64xf32>
    %50 = tpu.matmul %48, %49, %cst {dimension_numbers = #tpu.dot_dimension_numbers<[1], [0], [0], [1], [0, 0, 1, 1], [], []>} : vector<1x512xbf16>, vector<512x64xbf16>, vector<1x64xf32> -> vector<1x64xf32>
    %c0_i32 = arith.constant 0 : i32
    %51 = arith.cmpi eq, %arg1, %c0_i32 : i32
    %52 = arith.extui %51 : i1 to i32
    %c0_i32_83 = arith.constant 0 : i32
    %53 = arith.cmpi ne, %52, %c0_i32_83 : i32
    scf.if %53 {
      %cst_101 = arith.constant 0.000000e+00 : f32
      %75 = vector.broadcast %cst_101 : f32 to vector<1x2x64xf32>
      %c0_102 = arith.constant 0 : index
      %c0_103 = arith.constant 0 : index
      %c0_104 = arith.constant 0 : index
      %76 = vector.load %arg5[%c0_102, %c0_103, %c0_104] : memref<1x2x64xf32, #tpu.memory_space<vmem>>, vector<1x2x64xf32>
      tpu.vector_store %arg5[%c0_102, %c0_103, %c0_104], %75 {strides = array<i32>} : memref<1x2x64xf32, #tpu.memory_space<vmem>>, vector<1x2x64xf32>,
    } else {
    }
    %c0_84 = arith.constant 0 : index
    %c0_85 = arith.constant 0 : index
    %c0_86 = arith.constant 0 : index
    %54 = vector.load %arg5[%c0_84, %c0_85, %c0_86] : memref<1x2x64xf32, #tpu.memory_space<vmem>>, vector<1x1x64xf32>
    %55 = vector.shape_cast %54 : vector<1x1x64xf32> to vector<1x64xf32>
    %cst_87 = arith.constant dense<0.000000e+00> : vector<64xf32>
    %56 = vector.multi_reduction <add>, %50, %cst_87 [0] : vector<1x64xf32> to vector<64xf32>
    %57 = vector.shape_cast %56 : vector<64xf32> to vector<1x64xf32>
    %58 = arith.addf %55, %57 : vector<1x64xf32>
    %c0_88 = arith.constant 0 : index
    %c0_89 = arith.constant 0 : index
    %c0_90 = arith.constant 0 : index
    %59 = vector.load %arg5[%c0_88, %c0_89, %c0_90] : memref<1x2x64xf32, #tpu.memory_space<vmem>>, vector<1x1x64xf32>
    %60 = vector.shape_cast %59 : vector<1x1x64xf32> to vector<1x64xf32>
    %61 = vector.shape_cast %58 : vector<1x64xf32> to vector<1x1x64xf32>
    tpu.vector_store %arg5[%c0_88, %c0_89, %c0_90], %61 {strides = array<i32>} : memref<1x2x64xf32, #tpu.memory_space<vmem>>, vector<1x1x64xf32>,
    %c0_91 = arith.constant 0 : index
    %c1_92 = arith.constant 1 : index
    %c0_93 = arith.constant 0 : index
    %62 = vector.load %arg5[%c0_91, %c1_92, %c0_93] : memref<1x2x64xf32, #tpu.memory_space<vmem>>, vector<1x1x64xf32>
    %63 = vector.shape_cast %62 : vector<1x1x64xf32> to vector<1x64xf32>
    %64 = arith.mulf %50, %50 : vector<1x64xf32>
    %cst_94 = arith.constant dense<0.000000e+00> : vector<64xf32>
    %65 = vector.multi_reduction <add>, %64, %cst_94 [0] : vector<1x64xf32> to vector<64xf32>
    %66 = vector.shape_cast %65 : vector<64xf32> to vector<1x64xf32>
    %67 = arith.addf %63, %66 : vector<1x64xf32>
    %c0_95 = arith.constant 0 : index
    %c1_96 = arith.constant 1 : index
    %c0_97 = arith.constant 0 : index
    %68 = vector.load %arg5[%c0_95, %c1_96, %c0_97] : memref<1x2x64xf32, #tpu.memory_space<vmem>>, vector<1x1x64xf32>
    %69 = vector.shape_cast %68 : vector<1x1x64xf32> to vector<1x64xf32>
    %70 = vector.shape_cast %67 : vector<1x64xf32> to vector<1x1x64xf32>
    tpu.vector_store %arg5[%c0_95, %c1_96, %c0_97], %70 {strides = array<i32>} : memref<1x2x64xf32, #tpu.memory_space<vmem>>, vector<1x1x64xf32>,
    %71 = arith.truncf %50 : vector<1x64xf32> to vector<1x64xbf16>
    %c0_98 = arith.constant 0 : index
    %c0_99 = arith.constant 0 : index
    %c0_100 = arith.constant 0 : index
    %72 = vector.load %arg4[%c0_98, %c0_99, %c0_100] : memref<1x1x64xbf16, #tpu.memory_space<vmem>>, vector<1x1x64xbf16>
    %73 = vector.shape_cast %72 : vector<1x1x64xbf16> to vector<1x64xbf16>
    %74 = vector.shape_cast %71 : vector<1x64xbf16> to vector<1x1x64xbf16>
    tpu.vector_store %arg4[%c0_98, %c0_99, %c0_100], %74 {strides = array<i32>} : memref<1x1x64xbf16, #tpu.memory_space<vmem>>, vector<1x1x64xbf16>,
    return
  }
  func.func @transform_0(%arg0: i32, %arg1: i32) -> (i32, i32, i32, i32) {
    %c1_i32 = arith.constant 1 : i32
    %0 = arith.muli %arg0, %c1_i32 : i32
    %1 = arith.addi %0, %arg1 : i32
    %c0_i32 = arith.constant 0 : i32
    %c0_i32_0 = arith.constant 0 : i32
    %c0_i32_1 = arith.constant 0 : i32
    %c0_i32_2 = arith.constant 0 : i32
    return %1, %c0_i32, %c0_i32_0, %c0_i32_1 : i32, i32, i32, i32
  }
  func.func @transform_1(%arg0: i32, %arg1: i32) -> (i32, i32) {
    %c0_i32 = arith.constant 0 : i32
    %c0_i32_0 = arith.constant 0 : i32
    %c0_i32_1 = arith.constant 0 : i32
    return %c0_i32, %c0_i32_0 : i32, i32
  }
  func.func @transform_2(%arg0: i32, %arg1: i32) -> (i32, i32, i32) {
    %c1_i32 = arith.constant 1 : i32
    %0 = arith.muli %arg0, %c1_i32 : i32
    %1 = arith.addi %0, %arg1 : i32
    %c0_i32 = arith.constant 0 : i32
    %c0_i32_0 = arith.constant 0 : i32
    %c0_i32_1 = arith.constant 0 : i32
    return %1, %c0_i32, %c0_i32_0 : i32, i32, i32
  }
  func.func @transform_3(%arg0: i32, %arg1: i32) -> (i32, i32, i32) {
    %c0_i32 = arith.constant 0 : i32
    %c0_i32_0 = arith.constant 0 : i32
    %c0_i32_1 = arith.constant 0 : i32
    return %arg0, %c0_i32, %c0_i32_0 : i32, i32, i32
  }
}

module attributes {stable_mosaic.version = 11 : i64} {
  func.func @_scale_shift_lrelu_kernel(%arg0: i32, %arg1: memref<1x1x64xbf16, #tpu.memory_space<vmem>>, %arg2: memref<1x1x64xf32, #tpu.memory_space<vmem>>, %arg3: memref<1x1x64xf32, #tpu.memory_space<vmem>>, %arg4: memref<1x1x64xbf16, #tpu.memory_space<vmem>>) attributes {dimension_semantics = [#tpu.dimension_semantics<parallel>], iteration_bounds = array<i64: 2>, scalar_prefetch = 0 : i64, scratch_operands = 0 : i64, tpu.core_type = #tpu.core_type<tc>, window_params = [{transform_indices = @transform_0, window_bounds = array<i64: 1, 1, 64>}, {pipeline_mode = #tpu.pipeline_mode<synchronous>, transform_indices = @transform_1, window_bounds = array<i64: 1, 1, 64>}, {pipeline_mode = #tpu.pipeline_mode<synchronous>, transform_indices = @transform_2, window_bounds = array<i64: 1, 1, 64>}, {transform_indices = @transform_3, window_bounds = array<i64: 1, 1, 64>}]} {
    %c0 = arith.constant 0 : index
    %c0_0 = arith.constant 0 : index
    %c0_1 = arith.constant 0 : index
    %0 = vector.load %arg1[%c0, %c0_0, %c0_1] : memref<1x1x64xbf16, #tpu.memory_space<vmem>>, vector<1x1x64xbf16>
    %1 = arith.extf %0 : vector<1x1x64xbf16> to vector<1x1x64xf32>
    %c0_2 = arith.constant 0 : index
    %c0_3 = arith.constant 0 : index
    %c0_4 = arith.constant 0 : index
    %2 = vector.load %arg2[%c0_2, %c0_3, %c0_4] : memref<1x1x64xf32, #tpu.memory_space<vmem>>, vector<1x1x64xf32>
    %3 = arith.mulf %1, %2 : vector<1x1x64xf32>
    %c0_5 = arith.constant 0 : index
    %c0_6 = arith.constant 0 : index
    %c0_7 = arith.constant 0 : index
    %4 = vector.load %arg3[%c0_5, %c0_6, %c0_7] : memref<1x1x64xf32, #tpu.memory_space<vmem>>, vector<1x1x64xf32>
    %5 = arith.addf %3, %4 : vector<1x1x64xf32>
    %cst = arith.constant 2.000000e-01 : f32
    %6 = vector.broadcast %cst : f32 to vector<1x1x64xf32>
    %7 = arith.mulf %6, %5 : vector<1x1x64xf32>
    %8 = arith.maximumf %5, %7 : vector<1x1x64xf32>
    %9 = arith.truncf %8 : vector<1x1x64xf32> to vector<1x1x64xbf16>
    %c0_8 = arith.constant 0 : index
    %c0_9 = arith.constant 0 : index
    %c0_10 = arith.constant 0 : index
    %10 = vector.load %arg4[%c0_8, %c0_9, %c0_10] : memref<1x1x64xbf16, #tpu.memory_space<vmem>>, vector<1x1x64xbf16>
    tpu.vector_store %arg4[%c0_8, %c0_9, %c0_10], %9 {strides = array<i32>} : memref<1x1x64xbf16, #tpu.memory_space<vmem>>, vector<1x1x64xbf16>,
    return
  }
  func.func @transform_0(%arg0: i32) -> (i32, i32, i32) {
    %c0_i32 = arith.constant 0 : i32
    %c0_i32_0 = arith.constant 0 : i32
    %c0_i32_1 = arith.constant 0 : i32
    return %arg0, %c0_i32, %c0_i32_0 : i32, i32, i32
  }
  func.func @transform_1(%arg0: i32) -> (i32, i32, i32) {
    %c0_i32 = arith.constant 0 : i32
    %c0_i32_0 = arith.constant 0 : i32
    %c0_i32_1 = arith.constant 0 : i32
    %c0_i32_2 = arith.constant 0 : i32
    return %c0_i32, %c0_i32_0, %c0_i32_1 : i32, i32, i32
  }
  func.func @transform_2(%arg0: i32) -> (i32, i32, i32) {
    %c0_i32 = arith.constant 0 : i32
    %c0_i32_0 = arith.constant 0 : i32
    %c0_i32_1 = arith.constant 0 : i32
    %c0_i32_2 = arith.constant 0 : i32
    return %c0_i32, %c0_i32_0, %c0_i32_1 : i32, i32, i32
  }
  func.func @transform_3(%arg0: i32) -> (i32, i32, i32) {
    %c0_i32 = arith.constant 0 : i32
    %c0_i32_0 = arith.constant 0 : i32
    %c0_i32_1 = arith.constant 0 : i32
    return %arg0, %c0_i32, %c0_i32_0 : i32, i32, i32
  }
}

module attributes {stable_mosaic.version = 11 : i64} {
  func.func @_conv_stats_kernel(%arg0: i32, %arg1: i32, %arg2: memref<1x2x2x576xbf16, #tpu.memory_space<vmem>>, %arg3: memref<1024x128xbf16, #tpu.memory_space<vmem>>, %arg4: memref<1x1x128xbf16, #tpu.memory_space<vmem>>, %arg5: memref<1x2x128xf32, #tpu.memory_space<vmem>>, %arg6: memref<1x1024xbf16, #tpu.memory_space<vmem>>) attributes {dimension_semantics = [#tpu.dimension_semantics<parallel>, #tpu.dimension_semantics<arbitrary>], iteration_bounds = array<i64: 2, 1>, scalar_prefetch = 0 : i64, scratch_operands = 1 : i64, tpu.core_type = #tpu.core_type<tc>, window_params = [{transform_indices = @transform_0, window_bounds = array<i64: 1, 2, 2, 576>}, {pipeline_mode = #tpu.pipeline_mode<synchronous>, transform_indices = @transform_1, window_bounds = array<i64: 1024, 128>}, {transform_indices = @transform_2, window_bounds = array<i64: 1, 1, 128>}, {transform_indices = @transform_3, window_bounds = array<i64: 1, 2, 128>}]} {
    %c0 = arith.constant 0 : index
    %c0_0 = arith.constant 0 : index
    %c0_1 = arith.constant 0 : index
    %c0_2 = arith.constant 0 : index
    %0 = vector.load %arg2[%c0, %c0_0, %c0_1, %c0_2] : memref<1x2x2x576xbf16, #tpu.memory_space<vmem>>, vector<1x1x1x64xbf16>
    %1 = vector.shape_cast %0 : vector<1x1x1x64xbf16> to vector<1x64xbf16>
    %c0_3 = arith.constant 0 : index
    %c0_4 = arith.constant 0 : index
    %2 = vector.load %arg6[%c0_3, %c0_4] : memref<1x1024xbf16, #tpu.memory_space<vmem>>, vector<1x64xbf16>
    tpu.vector_store %arg6[%c0_3, %c0_4], %1 {strides = array<i32>} : memref<1x1024xbf16, #tpu.memory_space<vmem>>, vector<1x64xbf16>,
    %c0_5 = arith.constant 0 : index
    %c0_6 = arith.constant 0 : index
    %c0_7 = arith.constant 0 : index
    %c64 = arith.constant 64 : index
    %3 = vector.load %arg2[%c0_5, %c0_6, %c0_7, %c64] : memref<1x2x2x576xbf16, #tpu.memory_space<vmem>>, vector<1x1x1x64xbf16>
    %4 = vector.shape_cast %3 : vector<1x1x1x64xbf16> to vector<1x64xbf16>
    %c0_8 = arith.constant 0 : index
    %c64_9 = arith.constant 64 : index
    %5 = vector.load %arg6[%c0_8, %c64_9] : memref<1x1024xbf16, #tpu.memory_space<vmem>>, vector<1x64xbf16>
    tpu.vector_store %arg6[%c0_8, %c64_9], %4 {strides = array<i32>} : memref<1x1024xbf16, #tpu.memory_space<vmem>>, vector<1x64xbf16>,
    %c0_10 = arith.constant 0 : index
    %c0_11 = arith.constant 0 : index
    %c0_12 = arith.constant 0 : index
    %c128 = arith.constant 128 : index
    %6 = vector.load %arg2[%c0_10, %c0_11, %c0_12, %c128] : memref<1x2x2x576xbf16, #tpu.memory_space<vmem>>, vector<1x1x1x64xbf16>
    %7 = vector.shape_cast %6 : vector<1x1x1x64xbf16> to vector<1x64xbf16>
    %c0_13 = arith.constant 0 : index
    %c128_14 = arith.constant 128 : index
    %8 = vector.load %arg6[%c0_13, %c128_14] : memref<1x1024xbf16, #tpu.memory_space<vmem>>, vector<1x64xbf16>
    tpu.vector_store %arg6[%c0_13, %c128_14], %7 {strides = array<i32>} : memref<1x1024xbf16, #tpu.memory_space<vmem>>, vector<1x64xbf16>,
    %c0_15 = arith.constant 0 : index
    %c0_16 = arith.constant 0 : index
    %c1 = arith.constant 1 : index
    %c0_17 = arith.constant 0 : index
    %9 = vector.load %arg2[%c0_15, %c0_16, %c1, %c0_17] : memref<1x2x2x576xbf16, #tpu.memory_space<vmem>>, vector<1x1x1x64xbf16>
    %10 = vector.shape_cast %9 : vector<1x1x1x64xbf16> to vector<1x64xbf16>
    %c0_18 = arith.constant 0 : index
    %c192 = arith.constant 192 : index
    %11 = vector.load %arg6[%c0_18, %c192] : memref<1x1024xbf16, #tpu.memory_space<vmem>>, vector<1x64xbf16>
    tpu.vector_store %arg6[%c0_18, %c192], %10 {strides = array<i32>} : memref<1x1024xbf16, #tpu.memory_space<vmem>>, vector<1x64xbf16>,
    %c0_19 = arith.constant 0 : index
    %c0_20 = arith.constant 0 : index
    %c0_21 = arith.constant 0 : index
    %c192_22 = arith.constant 192 : index
    %12 = vector.load %arg2[%c0_19, %c0_20, %c0_21, %c192_22] : memref<1x2x2x576xbf16, #tpu.memory_space<vmem>>, vector<1x1x1x64xbf16>
    %13 = vector.shape_cast %12 : vector<1x1x1x64xbf16> to vector<1x64xbf16>
    %c0_23 = arith.constant 0 : index
    %c256 = arith.constant 256 : index
    %14 = vector.load %arg6[%c0_23, %c256] : memref<1x1024xbf16, #tpu.memory_space<vmem>>, vector<1x64xbf16>
    tpu.vector_store %arg6[%c0_23, %c256], %13 {strides = array<i32>} : memref<1x1024xbf16, #tpu.memory_space<vmem>>, vector<1x64xbf16>,
    %c0_24 = arith.constant 0 : index
    %c0_25 = arith.constant 0 : index
    %c0_26 = arith.constant 0 : index
    %c256_27 = arith.constant 256 : index
    %15 = vector.load %arg2[%c0_24, %c0_25, %c0_26, %c256_27] : memref<1x2x2x576xbf16, #tpu.memory_space<vmem>>, vector<1x1x1x64xbf16>
    %16 = vector.shape_cast %15 : vector<1x1x1x64xbf16> to vector<1x64xbf16>
    %c0_28 = arith.constant 0 : index
    %c320 = arith.constant 320 : index
    %17 = vector.load %arg6[%c0_28, %c320] : memref<1x1024xbf16, #tpu.memory_space<vmem>>, vector<1x64xbf16>
    tpu.vector_store %arg6[%c0_28, %c320], %16 {strides = array<i32>} : memref<1x1024xbf16, #tpu.memory_space<vmem>>, vector<1x64xbf16>,
    %c0_29 = arith.constant 0 : index
    %c0_30 = arith.constant 0 : index
    %c0_31 = arith.constant 0 : index
    %c320_32 = arith.constant 320 : index
    %18 = vector.load %arg2[%c0_29, %c0_30, %c0_31, %c320_32] : memref<1x2x2x576xbf16, #tpu.memory_space<vmem>>, vector<1x1x1x64xbf16>
    %19 = vector.shape_cast %18 : vector<1x1x1x64xbf16> to vector<1x64xbf16>
    %c0_33 = arith.constant 0 : index
    %c384 = arith.constant 384 : index
    %20 = vector.load %arg6[%c0_33, %c384] : memref<1x1024xbf16, #tpu.memory_space<vmem>>, vector<1x64xbf16>
    tpu.vector_store %arg6[%c0_33, %c384], %19 {strides = array<i32>} : memref<1x1024xbf16, #tpu.memory_space<vmem>>, vector<1x64xbf16>,
    %c0_34 = arith.constant 0 : index
    %c0_35 = arith.constant 0 : index
    %c1_36 = arith.constant 1 : index
    %c192_37 = arith.constant 192 : index
    %21 = vector.load %arg2[%c0_34, %c0_35, %c1_36, %c192_37] : memref<1x2x2x576xbf16, #tpu.memory_space<vmem>>, vector<1x1x1x64xbf16>
    %22 = vector.shape_cast %21 : vector<1x1x1x64xbf16> to vector<1x64xbf16>
    %c0_38 = arith.constant 0 : index
    %c448 = arith.constant 448 : index
    %23 = vector.load %arg6[%c0_38, %c448] : memref<1x1024xbf16, #tpu.memory_space<vmem>>, vector<1x64xbf16>
    tpu.vector_store %arg6[%c0_38, %c448], %22 {strides = array<i32>} : memref<1x1024xbf16, #tpu.memory_space<vmem>>, vector<1x64xbf16>,
    %c0_39 = arith.constant 0 : index
    %c0_40 = arith.constant 0 : index
    %c0_41 = arith.constant 0 : index
    %c384_42 = arith.constant 384 : index
    %24 = vector.load %arg2[%c0_39, %c0_40, %c0_41, %c384_42] : memref<1x2x2x576xbf16, #tpu.memory_space<vmem>>, vector<1x1x1x64xbf16>
    %25 = vector.shape_cast %24 : vector<1x1x1x64xbf16> to vector<1x64xbf16>
    %c0_43 = arith.constant 0 : index
    %c512 = arith.constant 512 : index
    %26 = vector.load %arg6[%c0_43, %c512] : memref<1x1024xbf16, #tpu.memory_space<vmem>>, vector<1x64xbf16>
    tpu.vector_store %arg6[%c0_43, %c512], %25 {strides = array<i32>} : memref<1x1024xbf16, #tpu.memory_space<vmem>>, vector<1x64xbf16>,
    %c0_44 = arith.constant 0 : index
    %c0_45 = arith.constant 0 : index
    %c0_46 = arith.constant 0 : index
    %c448_47 = arith.constant 448 : index
    %27 = vector.load %arg2[%c0_44, %c0_45, %c0_46, %c448_47] : memref<1x2x2x576xbf16, #tpu.memory_space<vmem>>, vector<1x1x1x64xbf16>
    %28 = vector.shape_cast %27 : vector<1x1x1x64xbf16> to vector<1x64xbf16>
    %c0_48 = arith.constant 0 : index
    %c576 = arith.constant 576 : index
    %29 = vector.load %arg6[%c0_48, %c576] : memref<1x1024xbf16, #tpu.memory_space<vmem>>, vector<1x64xbf16>
    tpu.vector_store %arg6[%c0_48, %c576], %28 {strides = array<i32>} : memref<1x1024xbf16, #tpu.memory_space<vmem>>, vector<1x64xbf16>,
    %c0_49 = arith.constant 0 : index
    %c0_50 = arith.constant 0 : index
    %c0_51 = arith.constant 0 : index
    %c512_52 = arith.constant 512 : index
    %30 = vector.load %arg2[%c0_49, %c0_50, %c0_51, %c512_52] : memref<1x2x2x576xbf16, #tpu.memory_space<vmem>>, vector<1x1x1x64xbf16>
    %31 = vector.shape_cast %30 : vector<1x1x1x64xbf16> to vector<1x64xbf16>
    %c0_53 = arith.constant 0 : index
    %c640 = arith.constant 640 : index
    %32 = vector.load %arg6[%c0_53, %c640] : memref<1x1024xbf16, #tpu.memory_space<vmem>>, vector<1x64xbf16>
    tpu.vector_store %arg6[%c0_53, %c640], %31 {strides = array<i32>} : memref<1x1024xbf16, #tpu.memory_space<vmem>>, vector<1x64xbf16>,
    %c0_54 = arith.constant 0 : index
    %c0_55 = arith.constant 0 : index
    %c1_56 = arith.constant 1 : index
    %c384_57 = arith.constant 384 : index
    %33 = vector.load %arg2[%c0_54, %c0_55, %c1_56, %c384_57] : memref<1x2x2x576xbf16, #tpu.memory_space<vmem>>, vector<1x1x1x64xbf16>
    %34 = vector.shape_cast %33 : vector<1x1x1x64xbf16> to vector<1x64xbf16>
    %c0_58 = arith.constant 0 : index
    %c704 = arith.constant 704 : index
    %35 = vector.load %arg6[%c0_58, %c704] : memref<1x1024xbf16, #tpu.memory_space<vmem>>, vector<1x64xbf16>
    tpu.vector_store %arg6[%c0_58, %c704], %34 {strides = array<i32>} : memref<1x1024xbf16, #tpu.memory_space<vmem>>, vector<1x64xbf16>,
    %c0_59 = arith.constant 0 : index
    %c1_60 = arith.constant 1 : index
    %c0_61 = arith.constant 0 : index
    %c0_62 = arith.constant 0 : index
    %36 = vector.load %arg2[%c0_59, %c1_60, %c0_61, %c0_62] : memref<1x2x2x576xbf16, #tpu.memory_space<vmem>>, vector<1x1x1x64xbf16>
    %37 = vector.shape_cast %36 : vector<1x1x1x64xbf16> to vector<1x64xbf16>
    %c0_63 = arith.constant 0 : index
    %c768 = arith.constant 768 : index
    %38 = vector.load %arg6[%c0_63, %c768] : memref<1x1024xbf16, #tpu.memory_space<vmem>>, vector<1x64xbf16>
    tpu.vector_store %arg6[%c0_63, %c768], %37 {strides = array<i32>} : memref<1x1024xbf16, #tpu.memory_space<vmem>>, vector<1x64xbf16>,
    %c0_64 = arith.constant 0 : index
    %c1_65 = arith.constant 1 : index
    %c0_66 = arith.constant 0 : index
    %c64_67 = arith.constant 64 : index
    %39 = vector.load %arg2[%c0_64, %c1_65, %c0_66, %c64_67] : memref<1x2x2x576xbf16, #tpu.memory_space<vmem>>, vector<1x1x1x64xbf16>
    %40 = vector.shape_cast %39 : vector<1x1x1x64xbf16> to vector<1x64xbf16>
    %c0_68 = arith.constant 0 : index
    %c832 = arith.constant 832 : index
    %41 = vector.load %arg6[%c0_68, %c832] : memref<1x1024xbf16, #tpu.memory_space<vmem>>, vector<1x64xbf16>
    tpu.vector_store %arg6[%c0_68, %c832], %40 {strides = array<i32>} : memref<1x1024xbf16, #tpu.memory_space<vmem>>, vector<1x64xbf16>,
    %c0_69 = arith.constant 0 : index
    %c1_70 = arith.constant 1 : index
    %c0_71 = arith.constant 0 : index
    %c128_72 = arith.constant 128 : index
    %42 = vector.load %arg2[%c0_69, %c1_70, %c0_71, %c128_72] : memref<1x2x2x576xbf16, #tpu.memory_space<vmem>>, vector<1x1x1x64xbf16>
    %43 = vector.shape_cast %42 : vector<1x1x1x64xbf16> to vector<1x64xbf16>
    %c0_73 = arith.constant 0 : index
    %c896 = arith.constant 896 : index
    %44 = vector.load %arg6[%c0_73, %c896] : memref<1x1024xbf16, #tpu.memory_space<vmem>>, vector<1x64xbf16>
    tpu.vector_store %arg6[%c0_73, %c896], %43 {strides = array<i32>} : memref<1x1024xbf16, #tpu.memory_space<vmem>>, vector<1x64xbf16>,
    %c0_74 = arith.constant 0 : index
    %c1_75 = arith.constant 1 : index
    %c1_76 = arith.constant 1 : index
    %c0_77 = arith.constant 0 : index
    %45 = vector.load %arg2[%c0_74, %c1_75, %c1_76, %c0_77] : memref<1x2x2x576xbf16, #tpu.memory_space<vmem>>, vector<1x1x1x64xbf16>
    %46 = vector.shape_cast %45 : vector<1x1x1x64xbf16> to vector<1x64xbf16>
    %c0_78 = arith.constant 0 : index
    %c960 = arith.constant 960 : index
    %47 = vector.load %arg6[%c0_78, %c960] : memref<1x1024xbf16, #tpu.memory_space<vmem>>, vector<1x64xbf16>
    tpu.vector_store %arg6[%c0_78, %c960], %46 {strides = array<i32>} : memref<1x1024xbf16, #tpu.memory_space<vmem>>, vector<1x64xbf16>,
    %c0_79 = arith.constant 0 : index
    %c0_80 = arith.constant 0 : index
    %48 = vector.load %arg6[%c0_79, %c0_80] : memref<1x1024xbf16, #tpu.memory_space<vmem>>, vector<1x1024xbf16>
    %c0_81 = arith.constant 0 : index
    %c0_82 = arith.constant 0 : index
    %49 = vector.load %arg3[%c0_81, %c0_82] : memref<1024x128xbf16, #tpu.memory_space<vmem>>, vector<1024x128xbf16>
    %cst = arith.constant dense<0.000000e+00> : vector<1x128xf32>
    %50 = tpu.matmul %48, %49, %cst {dimension_numbers = #tpu.dot_dimension_numbers<[1], [0], [0], [1], [0, 0, 1, 1], [], []>} : vector<1x1024xbf16>, vector<1024x128xbf16>, vector<1x128xf32> -> vector<1x128xf32>
    %c0_i32 = arith.constant 0 : i32
    %51 = arith.cmpi eq, %arg1, %c0_i32 : i32
    %52 = arith.extui %51 : i1 to i32
    %c0_i32_83 = arith.constant 0 : i32
    %53 = arith.cmpi ne, %52, %c0_i32_83 : i32
    scf.if %53 {
      %cst_101 = arith.constant 0.000000e+00 : f32
      %75 = vector.broadcast %cst_101 : f32 to vector<1x2x128xf32>
      %c0_102 = arith.constant 0 : index
      %c0_103 = arith.constant 0 : index
      %c0_104 = arith.constant 0 : index
      %76 = vector.load %arg5[%c0_102, %c0_103, %c0_104] : memref<1x2x128xf32, #tpu.memory_space<vmem>>, vector<1x2x128xf32>
      tpu.vector_store %arg5[%c0_102, %c0_103, %c0_104], %75 {strides = array<i32>} : memref<1x2x128xf32, #tpu.memory_space<vmem>>, vector<1x2x128xf32>,
    } else {
    }
    %c0_84 = arith.constant 0 : index
    %c0_85 = arith.constant 0 : index
    %c0_86 = arith.constant 0 : index
    %54 = vector.load %arg5[%c0_84, %c0_85, %c0_86] : memref<1x2x128xf32, #tpu.memory_space<vmem>>, vector<1x1x128xf32>
    %55 = vector.shape_cast %54 : vector<1x1x128xf32> to vector<1x128xf32>
    %cst_87 = arith.constant dense<0.000000e+00> : vector<128xf32>
    %56 = vector.multi_reduction <add>, %50, %cst_87 [0] : vector<1x128xf32> to vector<128xf32>
    %57 = vector.shape_cast %56 : vector<128xf32> to vector<1x128xf32>
    %58 = arith.addf %55, %57 : vector<1x128xf32>
    %c0_88 = arith.constant 0 : index
    %c0_89 = arith.constant 0 : index
    %c0_90 = arith.constant 0 : index
    %59 = vector.load %arg5[%c0_88, %c0_89, %c0_90] : memref<1x2x128xf32, #tpu.memory_space<vmem>>, vector<1x1x128xf32>
    %60 = vector.shape_cast %59 : vector<1x1x128xf32> to vector<1x128xf32>
    %61 = vector.shape_cast %58 : vector<1x128xf32> to vector<1x1x128xf32>
    tpu.vector_store %arg5[%c0_88, %c0_89, %c0_90], %61 {strides = array<i32>} : memref<1x2x128xf32, #tpu.memory_space<vmem>>, vector<1x1x128xf32>,
    %c0_91 = arith.constant 0 : index
    %c1_92 = arith.constant 1 : index
    %c0_93 = arith.constant 0 : index
    %62 = vector.load %arg5[%c0_91, %c1_92, %c0_93] : memref<1x2x128xf32, #tpu.memory_space<vmem>>, vector<1x1x128xf32>
    %63 = vector.shape_cast %62 : vector<1x1x128xf32> to vector<1x128xf32>
    %64 = arith.mulf %50, %50 : vector<1x128xf32>
    %cst_94 = arith.constant dense<0.000000e+00> : vector<128xf32>
    %65 = vector.multi_reduction <add>, %64, %cst_94 [0] : vector<1x128xf32> to vector<128xf32>
    %66 = vector.shape_cast %65 : vector<128xf32> to vector<1x128xf32>
    %67 = arith.addf %63, %66 : vector<1x128xf32>
    %c0_95 = arith.constant 0 : index
    %c1_96 = arith.constant 1 : index
    %c0_97 = arith.constant 0 : index
    %68 = vector.load %arg5[%c0_95, %c1_96, %c0_97] : memref<1x2x128xf32, #tpu.memory_space<vmem>>, vector<1x1x128xf32>
    %69 = vector.shape_cast %68 : vector<1x1x128xf32> to vector<1x128xf32>
    %70 = vector.shape_cast %67 : vector<1x128xf32> to vector<1x1x128xf32>
    tpu.vector_store %arg5[%c0_95, %c1_96, %c0_97], %70 {strides = array<i32>} : memref<1x2x128xf32, #tpu.memory_space<vmem>>, vector<1x1x128xf32>,
    %71 = arith.truncf %50 : vector<1x128xf32> to vector<1x128xbf16>
    %c0_98 = arith.constant 0 : index
    %c0_99 = arith.constant 0 : index
    %c0_100 = arith.constant 0 : index
    %72 = vector.load %arg4[%c0_98, %c0_99, %c0_100] : memref<1x1x128xbf16, #tpu.memory_space<vmem>>, vector<1x1x128xbf16>
    %73 = vector.shape_cast %72 : vector<1x1x128xbf16> to vector<1x128xbf16>
    %74 = vector.shape_cast %71 : vector<1x128xbf16> to vector<1x1x128xbf16>
    tpu.vector_store %arg4[%c0_98, %c0_99, %c0_100], %74 {strides = array<i32>} : memref<1x1x128xbf16, #tpu.memory_space<vmem>>, vector<1x1x128xbf16>,
    return
  }
  func.func @transform_0(%arg0: i32, %arg1: i32) -> (i32, i32, i32, i32) {
    %c1_i32 = arith.constant 1 : i32
    %0 = arith.muli %arg0, %c1_i32 : i32
    %1 = arith.addi %0, %arg1 : i32
    %c0_i32 = arith.constant 0 : i32
    %c0_i32_0 = arith.constant 0 : i32
    %c0_i32_1 = arith.constant 0 : i32
    %c0_i32_2 = arith.constant 0 : i32
    return %1, %c0_i32, %c0_i32_0, %c0_i32_1 : i32, i32, i32, i32
  }
  func.func @transform_1(%arg0: i32, %arg1: i32) -> (i32, i32) {
    %c0_i32 = arith.constant 0 : i32
    %c0_i32_0 = arith.constant 0 : i32
    %c0_i32_1 = arith.constant 0 : i32
    return %c0_i32, %c0_i32_0 : i32, i32
  }
  func.func @transform_2(%arg0: i32, %arg1: i32) -> (i32, i32, i32) {
    %c1_i32 = arith.constant 1 : i32
    %0 = arith.muli %arg0, %c1_i32 : i32
    %1 = arith.addi %0, %arg1 : i32
    %c0_i32 = arith.constant 0 : i32
    %c0_i32_0 = arith.constant 0 : i32
    %c0_i32_1 = arith.constant 0 : i32
    return %1, %c0_i32, %c0_i32_0 : i32, i32, i32
  }
  func.func @transform_3(%arg0: i32, %arg1: i32) -> (i32, i32, i32) {
    %c0_i32 = arith.constant 0 : i32
    %c0_i32_0 = arith.constant 0 : i32
    %c0_i32_1 = arith.constant 0 : i32
    return %arg0, %c0_i32, %c0_i32_0 : i32, i32, i32
  }
}

module attributes {stable_mosaic.version = 11 : i64} {
  func.func @_scale_shift_lrelu_kernel(%arg0: i32, %arg1: memref<1x1x128xbf16, #tpu.memory_space<vmem>>, %arg2: memref<1x1x128xf32, #tpu.memory_space<vmem>>, %arg3: memref<1x1x128xf32, #tpu.memory_space<vmem>>, %arg4: memref<1x1x128xbf16, #tpu.memory_space<vmem>>) attributes {dimension_semantics = [#tpu.dimension_semantics<parallel>], iteration_bounds = array<i64: 2>, scalar_prefetch = 0 : i64, scratch_operands = 0 : i64, tpu.core_type = #tpu.core_type<tc>, window_params = [{transform_indices = @transform_0, window_bounds = array<i64: 1, 1, 128>}, {pipeline_mode = #tpu.pipeline_mode<synchronous>, transform_indices = @transform_1, window_bounds = array<i64: 1, 1, 128>}, {pipeline_mode = #tpu.pipeline_mode<synchronous>, transform_indices = @transform_2, window_bounds = array<i64: 1, 1, 128>}, {transform_indices = @transform_3, window_bounds = array<i64: 1, 1, 128>}]} {
    %c0 = arith.constant 0 : index
    %c0_0 = arith.constant 0 : index
    %c0_1 = arith.constant 0 : index
    %0 = vector.load %arg1[%c0, %c0_0, %c0_1] : memref<1x1x128xbf16, #tpu.memory_space<vmem>>, vector<1x1x128xbf16>
    %1 = arith.extf %0 : vector<1x1x128xbf16> to vector<1x1x128xf32>
    %c0_2 = arith.constant 0 : index
    %c0_3 = arith.constant 0 : index
    %c0_4 = arith.constant 0 : index
    %2 = vector.load %arg2[%c0_2, %c0_3, %c0_4] : memref<1x1x128xf32, #tpu.memory_space<vmem>>, vector<1x1x128xf32>
    %3 = arith.mulf %1, %2 : vector<1x1x128xf32>
    %c0_5 = arith.constant 0 : index
    %c0_6 = arith.constant 0 : index
    %c0_7 = arith.constant 0 : index
    %4 = vector.load %arg3[%c0_5, %c0_6, %c0_7] : memref<1x1x128xf32, #tpu.memory_space<vmem>>, vector<1x1x128xf32>
    %5 = arith.addf %3, %4 : vector<1x1x128xf32>
    %cst = arith.constant 2.000000e-01 : f32
    %6 = vector.broadcast %cst : f32 to vector<1x1x128xf32>
    %7 = arith.mulf %6, %5 : vector<1x1x128xf32>
    %8 = arith.maximumf %5, %7 : vector<1x1x128xf32>
    %9 = arith.truncf %8 : vector<1x1x128xf32> to vector<1x1x128xbf16>
    %c0_8 = arith.constant 0 : index
    %c0_9 = arith.constant 0 : index
    %c0_10 = arith.constant 0 : index
    %10 = vector.load %arg4[%c0_8, %c0_9, %c0_10] : memref<1x1x128xbf16, #tpu.memory_space<vmem>>, vector<1x1x128xbf16>
    tpu.vector_store %arg4[%c0_8, %c0_9, %c0_10], %9 {strides = array<i32>} : memref<1x1x128xbf16, #tpu.memory_space<vmem>>, vector<1x1x128xbf16>,
    return
  }
  func.func @transform_0(%arg0: i32) -> (i32, i32, i32) {
    %c0_i32 = arith.constant 0 : i32
    %c0_i32_0 = arith.constant 0 : i32
    %c0_i32_1 = arith.constant 0 : i32
    return %arg0, %c0_i32, %c0_i32_0 : i32, i32, i32
  }
  func.func @transform_1(%arg0: i32) -> (i32, i32, i32) {
    %c0_i32 = arith.constant 0 : i32
    %c0_i32_0 = arith.constant 0 : i32
    %c0_i32_1 = arith.constant 0 : i32
    %c0_i32_2 = arith.constant 0 : i32
    return %c0_i32, %c0_i32_0, %c0_i32_1 : i32, i32, i32
  }
  func.func @transform_2(%arg0: i32) -> (i32, i32, i32) {
    %c0_i32 = arith.constant 0 : i32
    %c0_i32_0 = arith.constant 0 : i32
    %c0_i32_1 = arith.constant 0 : i32
    %c0_i32_2 = arith.constant 0 : i32
    return %c0_i32, %c0_i32_0, %c0_i32_1 : i32, i32, i32
  }
  func.func @transform_3(%arg0: i32) -> (i32, i32, i32) {
    %c0_i32 = arith.constant 0 : i32
    %c0_i32_0 = arith.constant 0 : i32
    %c0_i32_1 = arith.constant 0 : i32
    return %arg0, %c0_i32, %c0_i32_0 : i32, i32, i32
  }
}

</mosaic_0001>

<bundles_post_ra>
// kernel: discriminator_forward.11
= control target key start
LH: loop header
LB: loop body
LE: loop exit
PB: predicated region body
PF: predicated region fallthrough
CT: control target
= control target key end

     0   :  { %s323_s12 = smov 0   ;;  %s346_s0 = inlined_call_operand.vmem [shape: bf16[2,9,16], index: 0, kind: input, shape index: {}]   ;;  %s347_s1 = inlined_call_operand.vmem [shape: f32[1,1,16], index: 1, kind: input, shape index: {}]   ;;  %s348_s2 = inlined_call_operand.vmem [shape: f32[1,1,16], index: 2, kind: input, shape index: {}]   ;;  %s349_s3 = inlined_call_operand.vmem [shape: bf16[2,9,16], index: 3, kind: output, shape index: {}]  }
   0x1 LB: > { %s268_s13 = sadd.s32 4294967295, %s301_s12   ;;  %p272_p0 = scmp.ge.s32.totalorder %s301_s12, 1  ;;  %s301_s12 = sphi %s323_s12, %s13_s12  }
   0x2   : > { %p137_p1 = scmp.lt.s32.totalorder %s301_s12, 3 }
   0x4   : > { %p138_p2 = pnand %p272_p0, %p137_p1 }
   0x5   : > { %p161_p3 = scmp.lt.s32.totalorder (!%p138_p2), %s268_s13, 1  ;;  %v277_v2 = vld [vmem:[%s347_s1] ss:$0 sm:$0xff] (!%p138_p2)  ;;  %vm207_vm0 = vcmask (!%p138_p2), 122880   ;;  %vm208_vm1 = vsmask.f32 (!%p138_p2), 256 }
   0x6   : > { %141 = sbr.rel (%p138_p2) target bundleno = 31 (0x1f), region = 32  ;;  %v278_v5 = vld [vmem:[%s348_s2] ss:$0 sm:$0xff] (!%p138_p2)  ;;  %vm205_vm2 = vcmask (!%p138_p2), 125952   ;;  %vm209_vm3 = vmand (!%p138_p2), %vm207_vm0, %vm208_vm1 }
   0xd   : > { %s351_s13 = smov (!%p161_p3, %s268_s13), 1 }
   0xe   : > { %s283_s14 = sshll.u32 %s351_s13, 3 }
   0xf   : > { %s165_s17 = scalar_lea.vmem %s346_s0, %s283_s14  ;;  %s170_s24 = scalar_lea.vmem %s349_s3, %s283_s14 }
  0x10   : > { %v171_v0 = vld [vmem:[%s165_s17] sm:$0xf]  ;;  %v172_v1 = vld [vmem:[%s165_s17 + $0x4] sm:$0x1] }
  0x11   : > { %v173_v3 = vunpack.c.l.bf16 %v171_v0  ;;  %v174_v4 = vunpack.c.l.bf16 %v172_v1  ;;  %v210_v14 = vld [vmem:[%s170_s24 + $0x4] sm:$0x1] }
  0x13   : > { %v182_v6 = vmul.f32 %v277_v2, %v173_v3  ;;  %v183_v7 = vmul.f32 %v277_v2, %v174_v4 }
  0x15   : > { %v191_v8 = vadd.f32 %v278_v5, %v182_v6  ;;  %v192_v9 = vadd.f32 %v278_v5, %v183_v7 }
  0x17   : > { %v193_v10 = vmul.f32 0.2, %v191_v8  ;;  %v194_v11 = vmul.f32 0.2, %v192_v9 }
  0x19   : > { %v195_v12 = vmax.f32 %v191_v8, %v193_v10  ;;  %v196_v13 = vmax.f32 %v192_v9, %v194_v11 }
  0x1b   : > { %v285_v15 = vpack.c.bf16 %v195_v12, %v195_v12  ;;  %v286_v16 = vpack.c.bf16 %v196_v13, %v196_v13 }
  0x1d   : > { %206 = vst.msk [vmem:[%s170_s24] sm:$0xf] %vm205_vm2, %v285_v15  ;;  %v211_v17 = vsel %vm209_vm3, %v286_v16, %v210_v14 }
  0x1e   : > { %212 = vst [vmem:[%s170_s24 + $0x4] sm:$0x1] %v211_v17 }
  0x1f PF: > { %s13_s12 = sadd.s32 1, %s301_s12  }
  0x20   : > { %p10_p4 = scmp.ge.s32.totalorder %s13_s12, 4  }
  0x22   :  { %12 = sbr.rel (!%p10_p4) target bundleno = 1 (0x1), region = 62 }

// kernel: discriminator_forward.13
= control target key start
LH: loop header
LB: loop body
LE: loop exit
PB: predicated region body
PF: predicated region fallthrough
CT: control target
= control target key end

     0   :  { %s265_s12 = smov 0   ;;  %s301_s0 = inlined_call_operand.vmem [shape: bf16[2,4,32], index: 0, kind: input, shape index: {}]   ;;  %s302_s1 = inlined_call_operand.vmem [shape: f32[1,1,32], index: 1, kind: input, shape index: {}]   ;;  %s303_s2 = inlined_call_operand.vmem [shape: f32[1,1,32], index: 2, kind: input, shape index: {}]   ;;  %s304_s3 = inlined_call_operand.vmem [shape: bf16[2,4,32], index: 3, kind: output, shape index: {}]  }
   0x1 LB: > { %s242_s13 = sadd.s32 4294967295, %s267_s12   ;;  %p246_p0 = scmp.ge.s32.totalorder %s267_s12, 1  ;;  %s267_s12 = sphi %s265_s12, %s13_s12  }
   0x2   : > { %p136_p1 = scmp.lt.s32.totalorder %s267_s12, 3 }
   0x4   : > { %p137_p2 = pnand %p246_p0, %p136_p1 }
   0x5   : > { %p158_p3 = scmp.lt.s32.totalorder (!%p137_p2), %s242_s13, 1  ;;  %v249_v1 = vld [vmem:[%s302_s1] ss:$0 sm:$0xff] (!%p137_p2)  ;;  %vm187_vm0 = vcmask (!%p137_p2), 254976  }
   0x6   : > { %140 = sbr.rel (%p137_p2) target bundleno = 30 (0x1e), region = 32  ;;  %v250_v3 = vld [vmem:[%s303_s2] ss:$0 sm:$0xff] (!%p137_p2) }
   0xd   : > { %s306_s13 = smov (!%p158_p3, %s242_s13), 1 }
   0xe   : > { %s247_s14 = sshll.u32 %s306_s13, 1 }
   0xf   : > { %s161_s17 = scalar_lea.vmem %s301_s0, %s247_s14  ;;  %s165_s24 = scalar_lea.vmem %s304_s3, %s247_s14 }
  0x10   : > { %v166_v0 = vld [vmem:[%s161_s17] sm:$0x3] }
  0x11   : > { %v167_v2 = vunpack.c.l.bf16 %v166_v0 }
  0x13   : > { %v175_v4 = vmul.f32 %v249_v1, %v167_v2 }
  0x15   : > { %v183_v5 = vadd.f32 %v250_v3, %v175_v4 }
  0x17   : > { %v184_v6 = vmul.f32 0.2, %v183_v5 }
  0x19   : > { %v185_v7 = vmax.f32 %v183_v5, %v184_v6 }
  0x1b   : > { %v186_v8 = vpack.c.bf16 %v185_v7, %v185_v7 }
  0x1d   : > { %188 = vst.msk [vmem:[%s165_s24] sm:$0x3] %vm187_vm0, %v186_v8 }
  0x1e PF: > { %s13_s12 = sadd.s32 1, %s267_s12  }
  0x1f   : > { %p10_p4 = scmp.ge.s32.totalorder %s13_s12, 4  }
  0x21   :  { %12 = sbr.rel (!%p10_p4) target bundleno = 1 (0x1), region = 62 }

// kernel: discriminator_forward.10
= control target key start
LH: loop header
LB: loop body
LE: loop exit
PB: predicated region body
PF: predicated region fallthrough
CT: control target
= control target key end

     0   :  { %s1746_s12 = smov 0   ;;  %s1748_s13 = smov 0   ;;  %s2079_s0 = inlined_call_operand.vmem [shape: bf16[2,4,4,72], index: 0, kind: input, shape index: {}]   ;;  %s2080_s1 = inlined_call_operand.vmem [shape: bf16[128,16], index: 1, kind: input, shape index: {}]   ;;  %s2081_s2 = inlined_call_operand.vmem [shape: bf16[2,9,16], index: 2, kind: output, shape index: {0}]   ;;  %s2082_s3 = inlined_call_operand.vmem [shape: f32[2,2,16], index: 3, kind: output, shape index: {1}]  }
   0x1   :  { %s1750_s14 = smov 0  }
   0x2 LB: > { %s26_s15 = sadd.s32 1, %s1711_s13  ;;  %p1518_p0 = scmp.ge.s32.totalorder %s1715_s14, 1  ;;  %s1715_s14 = sphi %s1750_s14, %s14_s14   ;;  %s1711_s13 = sphi %s1748_s13, %s2084_s13   ;;  %s1707_s12 = sphi %s1746_s12, %s2083_s12  }
   0x3   : > { %p28_p1 = scmp.ge.s32.totalorder %s26_s15, 2  ;;  %p158_p2 = scmp.lt.s32.totalorder %s1715_s14, 3 }
   0x5   : > { %s2086_s15 = smov (%p28_p1, %s26_s15), 0  ;;  %p159_p3 = pnand %p1518_p0, %p158_p2 }
   0x6   : > { %p189_p4 = scmp.lt.s32.totalorder (!%p159_p3), %s1707_s12, 1  ;;  %vm208_vm0 = vcmask (!%p159_p3), 58368   ;;  %vm209_vm1 = vsmask.f32 (!%p159_p3), 1280  ;;  %v211_v0 = vld [vmem:[#allocation2] sm:$0x3] (!%p159_p3) }
   0x7   : > { %162 = sbr.rel (%p159_p3) target bundleno = 609 (0x261), region = 28  ;;  %vm210_vm2 = vmand (!%p159_p3), %vm208_vm0, %vm209_vm1  ;;  %s1717_s20 = smov (!%p159_p3), 8   ;;  %vm233_vm3 = vcmask (!%p159_p3), 59393   ;;  %vm234_vm4 = vsmask.f32 (!%p159_p3), 7942  ;;  %vm262_vm6 = vcmask (!%p159_p3), 123968  }
   0x8   : > { %vm235_vm5 = vmand (!%p159_p3), %vm233_vm3, %vm234_vm4  ;;  %s1718_s21 = smov (!%p159_p3), 24   ;;  %s1719_s22 = smov (!%p159_p3), 32   ;;  %vm285_vm8 = vcmask (!%p159_p3), 124993   ;;  %vm311_vm10 = vcmask (!%p159_p3), 189568   ;;  %vm334_vm12 = vcmask (!%p159_p3), 190593   ;;  %vm255_vm14 = vcmask (!%p159_p3), 57344  }
   0x9   : > { %vm263_vm7 = vmand (!%p159_p3), %vm262_vm6, %vm209_vm1  ;;  %s1720_s23 = smov (!%p159_p3), 16   ;;  %s1721_s24 = smov (!%p159_p3), 40   ;;  %vm256_vm15 = vsmask.f32 (!%p159_p3), 256  ;;  %v258_v42 = vld [vmem:[#allocation2 + $0x4] sm:$0x1] (!%p159_p3) }
   0xa   : > { %vm286_vm9 = vmand (!%p159_p3), %vm285_vm8, %vm234_vm4  ;;  %s1722_s25 = smov (!%p159_p3), 96   ;;  %s1723_s26 = smov (!%p159_p3), 120  }
   0xb   : > { %vm312_vm11 = vmand (!%p159_p3), %vm311_vm10, %vm209_vm1 }
   0xc   : > { %vm335_vm13 = vmand (!%p159_p3), %vm334_vm12, %vm234_vm4  ;;  %vm429_vm12 = vcmask (!%p159_p3), 254144  }
   0xd   : > { %vm257_vm0 = vmand (!%p159_p3), %vm255_vm14, %vm256_vm15 }
   0xe   : > { %s2088_s12 = smov (!%p189_p4, %s1707_s12), 1  ;;  %vm430_vm14 = vmand %vm429_vm12, %vm256_vm15 }
   0xf   : > { %s1618_s16 = sshll.u32 %s2088_s12, 3 }
  0x10   : > { %s1773_s19 = scalar_lea.vmem %s2079_s0, %s1618_s16  ;;  %s200_s27 = scalar_lea.vmem %s2081_s2, %s1618_s16 }
  0x11   : > { %v1776_v1 = vld.sshfl [vmem:[%s1773_s19] sm:$0x3 pattern:$0x76325410] }
  0x12   : > { %v207_v2 = vld [vmem:[%s1773_s19] sm:$0x3]  ;;  %v369_v3 = vshrl.u32 %v1776_v1, 16  ;;  %v372_v4 = vshll.u32 %v1776_v1, 16  ;;  %443 = vrot.lane.b32.xlu1 %v1776_v1, %s1717_s20 }
  0x13   : > { %v1782_v5 = vld.sshfl [vmem:[%s1773_s19 + $0x2] sm:$0x3 pattern:$0x76325410]  ;;  %v212_v6 = vsel %vm210_vm2, %v207_v2, %v211_v0  ;;  %v261_v21 = vld [vmem:[%s1773_s19] sm:$0x3] }
  0x14   : > { %v461_v7 = vshrl.u32 %v1782_v5, 16  ;;  %v464_v8 = vshll.u32 %v1782_v5, 16  ;;  %213 = vst [vmem:[#allocation2] sm:$0x3] %v212_v6  ;;  %v371_v9 = vrot.slane %v369_v3, 4  ;;  %v374_v10 = vrot.slane %v372_v4, 5 }
  0x15   : > { %v394_v16 = vrot.slane %v1782_v5, 7  ;;  %v1799_v19 = vld.sshfl [vmem:[%s1773_s19 + $0x4] sm:$0x3 pattern:$0x76325410]  ;;  %vm305_vm2 = vcmask 122944  }
  0x16   : > { %v463_v11 = vrot.slane %v461_v7, 6  ;;  %v466_v12 = vrot.slane %v464_v8, 7  ;;  %v375_v13 = vor.u32 %v374_v10, %v371_v9  ;;  %v413_v20 = vshrl.u32 %v1799_v19, 16  ;;  %v310_v30 = vld [vmem:[%s1773_s19] sm:$0x3]  ;;  %vm306_vm3 = vmand %vm305_vm2, %vm256_vm15 }
  0x17   : > { %v1815_v26 = vrot.slane %v1799_v19, 5  ;;  %v1010_v35 = vshll.u32 %v1799_v19, 16  ;;  %v1586_v39 = vld.sshfl [vmem:[%s1773_s19 + $0x6] sm:$0x3 pattern:$0x76325410] }
  0x18   : > { %v467_v14 = vor.u32 %v466_v12, %v463_v11  ;;  %v376_v15 = vrot.slane %v375_v13, 4  ;;  %v1808_v24 = vrot.slane %v413_v20, 5  ;;  %v1009_v36 = vrot.slane %v413_v20, 6 }
  0x19   : > { %v1821_v28 = vrot.slane %v1815_v26, 4  ;;  %v1012_v37 = vrot.slane %v1010_v35, 7  ;;  %v1032_v40 = vrot.slane %v1586_v39, 5  ;;  %v418_v43 = vrot.slane %v1010_v35, 6 }
  0x1a   : > { %468 = vrot.lane.b32.xlu1 %v467_v14, %s1717_s20  ;;  %377 = vrot.lane.b32.xlu0 %v376_v15, %s1718_s21  ;;  %v420_v25 = vrot.slane %v1808_v24, 4  ;;  %v1191_v46 = vrot.slane %v461_v7, 4  ;;  %v1194_v47 = vrot.slane %v464_v8, 5  ;;  %v1233_v54 = vshrl.u32 %v1586_v39, 16 }
  0x1b   : > { %v236_v17 = vld [vmem:[#allocation2] sm:$0x6]  ;;  %v1013_v38 = vor.u32 %v1012_v37, %v1009_v36  ;;  %v1033_v41 = vrot.slane %v1032_v40, 4  ;;  %v259_v44 = vsel %vm257_vm0, %v1821_v28, %v258_v42  ;;  %v419_v45 = vor.u32 %v418_v43, %v1808_v24 }
  0x1c   : > { %v237_v18 = vsel %vm235_vm5, %v467_v14, %v236_v17  ;;  %260 = vst [vmem:[#allocation2 + $0x4] sm:$0x1] %v259_v44  ;;  %v1195_v50 = vor.u32 %v1194_v47, %v1191_v46  ;;  %vm354_vm5 = vcmask 188544   ;;  %v1214_v55 = vrot.slane %v1799_v19, 7 }
  0x1d   : > { %238 = vst [vmem:[#allocation2] sm:$0x6] %v237_v18  ;;  %vm355_vm6 = vmand %vm354_vm5, %vm256_vm15  ;;  %v1235_v56 = vrot.slane %v1233_v54, 5  ;;  %v1236_v57 = vshll.u32 %v1586_v39, 16  ;;  %vm471_vm0 = vcmask 321793   ;;  %vm495_vm2 = vcmask 319744  }
  0x1e   : > { %534 = vrot.lane.b32.xlu1 %v467_v14, %s1717_s20  ;;  %395 = vrot.lane.b32.xlu0 %v394_v16, %s1718_s21  ;;  %v1196_v51 = vrot.slane %v1195_v50, 4  ;;  %vm496_vm5 = vmand %vm495_vm2, %vm256_vm15 }
  0x1f   : > { %v1238_v58 = vrot.slane %v1236_v57, 6  ;;  %v1240_v59 = vrot.slane %v1235_v56, 4 }
  0x21   : > { %v1239_v60 = vor.u32 %v1238_v58, %v1235_v56 }
  0x22   : > { %600 = vrot.lane.b32.xlu1 %v467_v14, %s1717_s20  ;;  %509 = vrot.lane.b32.xlu0 %v1776_v1, %s1717_s20 }
  0x23   : > { %v307_v48 = vld [vmem:[#allocation2 + $0x4] sm:$0x1] }
  0x24   : > { %v264_v22 = vld [vmem:[#allocation2] sm:$0x3]  ;;  %v308_v49 = vsel %vm306_vm3, %v1821_v28, %v307_v48  ;;  %vm472_vm3 = vmand %vm471_vm0, %vm234_vm4  ;;  %vm702_vm0 = vcmask 516544  }
  0x25   : > { %v265_v23 = vsel %vm263_vm7, %v261_v21, %v264_v22  ;;  %309 = vst [vmem:[#allocation2 + $0x4] sm:$0x1] %v308_v49  ;;  %vm380_vm7 = vcmask 255168  }
  0x26   : > { %668 = vrot.lane.b32.xlu1 %v394_v16, %s1719_s22  ;;  %266 = vst [vmem:[#allocation2] sm:$0x3] %v265_v23  ;;  %575 = vrot.lane.b32.xlu0 %v1776_v1, %s1717_s20  ;;  %vm381_vm8 = vmand %vm380_vm7, %vm209_vm1  ;;  %vm561_vm7 = vcmask 385344  }
  0x2a   : > { %741 = vrot.lane.b32.xlu1 %v467_v14, %s1720_s23  ;;  %650 = vrot.lane.b32.xlu0 %v376_v15, %s1719_s22 }
  0x2c   : > { %v356_v52 = vld [vmem:[#allocation2 + $0x4] sm:$0x1] }
  0x2d   : > { %v287_v27 = vld [vmem:[#allocation2] sm:$0x6]  ;;  %v357_v53 = vsel %vm355_vm6, %v1821_v28, %v356_v52  ;;  %vm512_vm6 = vcmask 386368  }
  0x2e   : > { %423 = vrot.lane.b32.xlu1 %v420_v25, %s1718_s21  ;;  %v288_v29 = vsel %vm286_vm9, %v467_v14, %v287_v27  ;;  %716 = vrot.lane.b32.xlu0 %v1776_v1, %s1720_s23  ;;  %358 = vst [vmem:[#allocation2 + $0x4] sm:$0x1] %v357_v53  ;;  %vm398_vm9 = vcmask 256193  }
  0x2f   : > { %289 = vst [vmem:[#allocation2] sm:$0x6] %v288_v29  ;;  %vm399_vm10 = vmand %vm398_vm9, %vm234_vm4 }
  0x30   : > { %vm562_vm9 = vmand %vm561_vm7, %vm256_vm15 }
  0x32   : > { %489 = vrot.lane.b32.xlu1 %v1821_v28, %s1717_s20  ;;  %782 = vrot.lane.b32.xlu0 %v1776_v1, %s1720_s23 }
  0x35   : > { %v431_v12 = vld [vmem:[#allocation2 + $0x4] sm:$0x1] }
  0x36   : > { %v313_v31 = vld [vmem:[#allocation2] sm:$0x3]  ;;  %555 = vrot.lane.b32.xlu1 %v1821_v28, %s1717_s20  ;;  %807 = vrot.lane.b32.xlu0 %v467_v14, %s1720_s23 }
  0x37   : > { %v314_v32 = vsel %vm312_vm11, %v310_v30, %v313_v31  ;;  %vm446_vm11 = vcmask 320768  }
  0x38   : > { %315 = vst [vmem:[#allocation2] sm:$0x3] %v314_v32 }
  0x3a   : > { %621 = vrot.lane.b32.xlu1 %v1821_v28, %s1717_s20  ;;  %848 = vrot.lane.b32.xlu0 %v1776_v1, %s1720_s23 }
  0x3e   : > { %696 = vrot.lane.b32.xlu1 %v420_v25, %s1719_s22  ;;  %873 = vrot.lane.b32.xlu0 %v467_v14, %s1720_s23 }
  0x3f   : > { %v336_v33 = vld [vmem:[#allocation2] sm:$0x6] }
  0x40   : > { %v337_v34 = vsel %vm335_vm13, %v467_v14, %v336_v33  ;;  %vm447_vm13 = vmand %vm446_vm11, %vm209_vm1  ;;  %vm627_vm11 = vcmask 450944  }
  0x41   : > { %338 = vst [vmem:[#allocation2] sm:$0x6] %v337_v34 }
  0x42   : > { %762 = vrot.lane.b32.xlu1 %v1821_v28, %s1720_s23  ;;  %923 = vrot.lane.b32.xlu0 %v376_v15, %s1721_s24 }
  0x46   : > { %828 = vrot.lane.b32.xlu1 %v1821_v28, %s1720_s23  ;;  %941 = vrot.lane.b32.xlu0 %v394_v16, %s1721_s24 }
  0x48   : > { %v382_v62 = vld [vmem:[#allocation2] sm:$0x3] }
  0x4a   : > { %894 = vrot.lane.b32.xlu1 %v1821_v28, %s1720_s23  ;;  %989 = vrot.lane.b32.xlu0 %v1782_v5, %s1722_s25 }
  0x4e   : > { %969 = vrot.lane.b32.xlu1 %v420_v25, %s1721_s24  ;;  %1014 = vrot.lane.b32.xlu0 %v1013_v38, %s1722_s25 }
  0x52   : > { %1036 = vrot.lane.b32.xlu1 %v1033_v41, %s1722_s25  ;;  %1056 = vrot.lane.b32.xlu0 %v1782_v5, %s1722_s25 }
  0x56   : > { %1102 = vrot.lane.b32.xlu1 %v1033_v41, %s1722_s25  ;;  %1081 = vrot.lane.b32.xlu0 %v1013_v38, %s1722_s25 }
  0x5a   : > { %1122 = vrot.lane.b32.xlu0 %v1782_v5, %s1722_s25  ;;  %421 = vrot.lane.b32.xlu1 %v419_v45, %s1718_s21  ;;  %s1523_s21 = sshll.u32 %s2088_s12, 1 }
  0x5e   : > { %1147 = vrot.lane.b32.xlu0 %v1013_v38, %s1722_s25  ;;  %553 = vrot.lane.b32.xlu1 %v1815_v26, %s1717_s20 }
  0x62   : > { %487 = vrot.lane.b32.xlu0 %v1815_v26, %s1717_s20  ;;  %1197 = vrot.lane.b32.xlu1 %v1196_v51, %s1723_s26 }
  0x66   : > { %1168 = vrot.lane.b32.xlu0 %v1033_v41, %s1722_s25  ;;  %694 = vrot.lane.b32.xlu1 %v419_v45, %s1719_s22 }
  0x6a   : > { %619 = vrot.lane.b32.xlu0 %v1815_v26, %s1717_s20  ;;  %826 = vrot.lane.b32.xlu1 %v1815_v26, %s1720_s23 }
  0x6e   : > { %760 = vrot.lane.b32.xlu0 %v1815_v26, %s1720_s23  ;;  %967 = vrot.lane.b32.xlu1 %v419_v45, %s1721_s24  ;;  %s2051_s24 = scalar_lea.vmem %s2082_s3, %s1523_s21 }
  0x72   : > { %892 = vrot.lane.b32.xlu0 %v1815_v26, %s1720_s23  ;;  %1100 = vrot.lane.b32.xlu1 %v1032_v40, %s1722_s25 }
  0x76   : > { %1034 = vrot.lane.b32.xlu0 %v1032_v40, %s1722_s25  ;;  %1215 = vrot.lane.b32.xlu1 %v1214_v55, %s1723_s26 }
  0x7a   : > { %1166 = vrot.lane.b32.xlu0 %v1032_v40, %s1722_s25  ;;  %1241 = vrot.lane.b32.xlu1 %v1239_v60, %s1723_s26 }
  0x7e   : > { %1243 = vrot.lane.b32.xlu0 %v1240_v59, %s1723_s26 }
  0x84   : > { %v444_v61 = vpop.permute.xlu1 %443 }
  0x8c   : > { %v469_v63 = vpop.permute.xlu1 %468  ;;  %v378_v0 = vpop.permute.xlu0 %377 }
  0x8d   : > { %v383_v1 = vsel %vm381_vm8, %v378_v0, %v382_v62  ;;  %vm513_vm8 = vmand %vm512_vm6, %vm209_vm1  ;;  %vm768_vm6 = vcmask 582144  }
  0x8e   : > { %384 = vst [vmem:[#allocation2] sm:$0x3] %v383_v1 }
  0x90   : > { %v1895_v2 = vpop.permute.xlu1 %534  ;;  %v396_v3 = vpop.permute.xlu0 %395 }
  0x94   : > { %v1898_v4 = vpop.permute.xlu1 %600  ;;  %v510_v5 = vpop.permute.xlu0 %509 }
  0x95   : > { %v400_v6 = vld [vmem:[#allocation2] sm:$0x6] }
  0x96   : > { %v401_v7 = vsel %vm399_vm10, %v396_v3, %v400_v6  ;;  %vm537_vm10 = vcmask 387393   ;;  %v1724_v6 = vmov 0.0  }
  0x97   : > { %402 = vst [vmem:[#allocation2] sm:$0x6] %v401_v7  ;;  %vm538_vm12 = vmand %vm537_vm10, %vm234_vm4  ;;  %vm303_vm10 = vcmask 126019   ;;  %1631 = vmatprep.subr.bf16.mxu0 %v1724_v6 }
  0x98   : > { %v1900_v8 = vpop.permute.xlu1 %668  ;;  %v1902_v9 = vpop.permute.xlu0 %575 }
  0x9c   : > { %v1904_v10 = vpop.permute.xlu1 %741  ;;  %v1907_v11 = vpop.permute.xlu0 %650 }
  0x9e   : > { %v448_v13 = vld [vmem:[#allocation2] sm:$0x3] }
  0x9f   : > { %v449_v14 = vsel %vm447_vm13, %v444_v61, %v448_v13  ;;  %vm628_vm13 = vmand %vm627_vm11, %vm256_vm15  ;;  %vm352_vm11 = vcmask 191619  }
  0xa0   : > { %v424_v15 = vpop.permute.xlu1 %423  ;;  %450 = vst [vmem:[#allocation2] sm:$0x3] %v449_v14  ;;  %v1910_v16 = vpop.permute.xlu0 %716 }
  0xa1   : > { %v432_v17 = vsel %vm430_vm14, %v424_v15, %v431_v12  ;;  %vm578_vm14 = vcmask 451968  }
  0xa2   : > { %433 = vst [vmem:[#allocation2 + $0x4] sm:$0x1] %v432_v17  ;;  %vm579_vm2 = vmand %vm578_vm14, %vm209_vm1  ;;  %vm834_vm14 = vcmask 647744  }
  0xa4   : > { %v1912_v18 = vpop.permute.xlu0 %782  ;;  %v490_v19 = vpop.permute.xlu1 %489 }
  0xa7   : > { %v473_v20 = vld [vmem:[#allocation2] sm:$0x6] }
  0xa8   : > { %v474_v21 = vsel %vm472_vm3, %v469_v63, %v473_v20  ;;  %v1916_v23 = vpop.permute.xlu0 %807  ;;  %v556_v25 = vpop.permute.xlu1 %555  ;;  %vm703_vm3 = vmand %vm702_vm0, %vm256_vm15 }
  0xa9   : > { %v497_v22 = vld [vmem:[#allocation2 + $0x4] sm:$0x1]  ;;  %475 = vst [vmem:[#allocation2] sm:$0x6] %v474_v21  ;;  %v1687_v21 = vld [vmem:[%s2080_s1 + $0x18] sm:$0xff]  }
  0xaa   : > { %v498_v24 = vsel %vm496_vm5, %v490_v19, %v497_v22  ;;  %vm603_vm5 = vcmask 452993   ;;  %v1686_v19 = vld [vmem:[%s2080_s1 + $0x10] sm:$0xff]  }
  0xab   : > { %499 = vst [vmem:[#allocation2 + $0x4] sm:$0x1] %v498_v24  ;;  %vm604_vm7 = vmand %vm603_vm5, %vm234_vm4  ;;  %vm559_vm5 = vcmask 388419  }
  0xac   : > { %v1918_v27 = vpop.permute.xlu0 %848  ;;  %v622_v28 = vpop.permute.xlu1 %621 }
  0xb0   : > { %v514_v29 = vld [vmem:[#allocation2] sm:$0x3]  ;;  %v1922_v30 = vpop.permute.xlu0 %873  ;;  %v697_v34 = vpop.permute.xlu1 %696 }
  0xb1   : > { %v515_v31 = vsel %vm513_vm8, %v510_v5, %v514_v29  ;;  %vm769_vm8 = vmand %vm768_vm6, %vm256_vm15  ;;  %vm671_vm6 = vcmask 518593  }
  0xb2   : > { %v563_v32 = vld [vmem:[#allocation2 + $0x4] sm:$0x1]  ;;  %516 = vst [vmem:[#allocation2] sm:$0x3] %v515_v31 }
  0xb3   : > { %v564_v33 = vsel %vm562_vm9, %v556_v25, %v563_v32  ;;  %vm253_vm9 = vcmask 60419  }
  0xb4   : > { %565 = vst [vmem:[#allocation2 + $0x4] sm:$0x1] %v564_v33  ;;  %v1924_v35 = vpop.permute.xlu0 %923  ;;  %v763_v36 = vpop.permute.xlu1 %762  ;;  %254 = vst.msk [vmem:[#allocation2] sm:$0x8] %vm253_vm9, %v1815_v26 }
  0xb5   : > { %304 = vst.msk [vmem:[#allocation2] sm:$0x8] %vm303_vm10, %v1815_v26  ;;  %vm672_vm9 = vmand %vm671_vm6, %vm234_vm4  ;;  %vm700_vm10 = vcmask 519619  }
  0xb6   : > { %353 = vst.msk [vmem:[#allocation2] sm:$0x8] %vm352_vm11, %v1815_v26 }
  0xb8   : > { %v1928_v37 = vpop.permute.xlu0 %941  ;;  %v829_v41 = vpop.permute.xlu1 %828 }
  0xb9   : > { %v539_v38 = vld [vmem:[#allocation2] sm:$0x6] }
  0xba   : > { %v540_v39 = vsel %vm538_vm12, %v1895_v2, %v539_v38  ;;  %vm427_vm12 = vcmask 257219  }
  0xbb   : > { %v629_v40 = vld [vmem:[#allocation2 + $0x4] sm:$0x1]  ;;  %541 = vst [vmem:[#allocation2] sm:$0x6] %v540_v39 }
  0xbc   : > { %v630_v42 = vsel %vm628_vm13, %v622_v28, %v629_v40  ;;  %v1931_v43 = vpop.permute.xlu0 %989  ;;  %v1933_v44 = vpop.permute.xlu1 %894  ;;  %vm653_vm13 = vcmask 517568   ;;  %v1688_v28 = vld [vmem:[%s2080_s1 + $0x20] sm:$0xff]   ;;  %v1690_v40 = vld [vmem:[%s2080_s1 + $0x30] sm:$0xff]  }
  0xbd   : > { %631 = vst [vmem:[#allocation2 + $0x4] sm:$0x1] %v630_v42  ;;  %vm654_vm0 = vmand %vm653_vm13, %vm209_vm1  ;;  %vm832_vm13 = vcmask 650819  }
  0xc0   : > { %v1936_v45 = vpop.permute.xlu0 %1014  ;;  %v1939_v47 = vpop.permute.xlu1 %969 }
  0xc2   : > { %v580_v46 = vld [vmem:[#allocation2] sm:$0x3] }
  0xc3   : > { %v581_v48 = vsel %vm579_vm2, %v1902_v9, %v580_v46  ;;  %vm493_vm2 = vcmask 322819   ;;  %v1685_v9 = vld [vmem:[%s2080_s1 + $0x8] sm:$0xff]   ;;  %v1691_v46 = vld [vmem:[%s2080_s1 + $0x38] sm:$0xff]  }
  0xc4   : > { %v704_v49 = vld [vmem:[#allocation2 + $0x4] sm:$0x1]  ;;  %582 = vst [vmem:[#allocation2] sm:$0x3] %v581_v48  ;;  %v1942_v51 = vpop.permute.xlu0 %1056  ;;  %v1944_v52 = vpop.permute.xlu1 %1036 }
  0xc5   : > { %v705_v50 = vsel %vm703_vm3, %v697_v34, %v704_v49  ;;  %vm835_vm3 = vmand %vm834_vm14, %vm256_vm15  ;;  %vm719_vm14 = vcmask 583168  }
  0xc6   : > { %706 = vst [vmem:[#allocation2 + $0x4] sm:$0x1] %v705_v50 }
  0xc8   : > { %v1946_v53 = vpop.permute.xlu0 %1081  ;;  %v1950_v54 = vpop.permute.xlu1 %1102 }
  0xcb   : > { %v605_v55 = vld [vmem:[#allocation2] sm:$0x6] }
  0xcc   : > { %v606_v56 = vsel %vm604_vm7, %v1898_v4, %v605_v55  ;;  %v1953_v58 = vpop.permute.xlu0 %1122  ;;  %v422_v60 = vpop.permute.xlu1 %421  ;;  %v1684_v4 = vld [vmem:[%s2080_s1] sm:$0xff]   ;;  %vm900_vm7 = vcmask 713344  }
  0xcd   : > { %v770_v57 = vld [vmem:[#allocation2 + $0x4] sm:$0x1]  ;;  %607 = vst [vmem:[#allocation2] sm:$0x6] %v606_v56  ;;  %428 = vst.msk [vmem:[#allocation2] sm:$0x8] %vm427_vm12, %v422_v60  ;;  %1632 = vmatpush3.bf16.msra.mxu0 %v1684_v4 }
  0xce   : > { %v771_v59 = vsel %vm769_vm8, %v763_v36, %v770_v57  ;;  %vm625_vm8 = vcmask 454019   ;;  %1633 = vmatprep.subr.bf16.mxu0 %v1724_v6  ;;  %vm901_vm11 = vmand %vm900_vm7, %vm256_vm15  ;;  %vm766_vm12 = vcmask 585219   ;;  %vm1040_vm7 = vcmask 847619  }
  0xcf   : > { %772 = vst [vmem:[#allocation2 + $0x4] sm:$0x1] %v771_v59 }
  0xd0   : > { %v1958_v61 = vpop.permute.xlu0 %1147  ;;  %v554_v62 = vpop.permute.xlu1 %553 }
  0xd1   : > { %1634 = vmatpush3.bf16.msra.mxu0 %v1685_v9 }
  0xd2   : > { %1635 = vmatprep.subr.bf16.mxu0 %v1724_v6 }
  0xd4   : > { %v655_v63 = vld [vmem:[#allocation2] sm:$0x3]  ;;  %v488_v0 = vpop.permute.xlu0 %487  ;;  %v1963_v3 = vpop.permute.xlu1 %1197 }
  0xd5   : > { %v656_v1 = vsel %vm654_vm0, %v1907_v11, %v655_v63  ;;  %494 = vst.msk [vmem:[#allocation2] sm:$0x8] %vm493_vm2, %v488_v0  ;;  %1636 = vmatpush3.bf16.msra.mxu0 %v1686_v19  ;;  %vm975_vm0 = vcmask 778944   ;;  %vm898_vm2 = vcmask 716419   ;;  %v1413_v19 = vld [vmem:[%s200_s27 + $0x4] sm:$0x1] }
  0xd6   : > { %v836_v2 = vld [vmem:[#allocation2 + $0x4] sm:$0x1]  ;;  %657 = vst [vmem:[#allocation2] sm:$0x3] %v656_v1  ;;  %560 = vst.msk [vmem:[#allocation2] sm:$0x8] %vm559_vm5, %v554_v62  ;;  %1637 = vmatprep.subr.bf16.mxu0 %v1724_v6 }
  0xd7   : > { %v837_v26 = vsel %vm835_vm3, %v829_v41, %v836_v2  ;;  %vm973_vm3 = vcmask 782019   ;;  %vm720_vm5 = vmand %vm719_vm14, %vm209_vm1  ;;  %vm1247_vm14 = vcmask 1044419  }
  0xd8   : > { %838 = vst [vmem:[#allocation2 + $0x4] sm:$0x1] %v837_v26  ;;  %v1968_v5 = vpop.permute.xlu0 %1168  ;;  %v695_v7 = vpop.permute.xlu1 %694  ;;  %vm976_vm6 = vmand %vm975_vm0, %vm256_vm15  ;;  %vm1725_vm0 = vmmov 0  }
  0xd9   : > { %1638 = vmatpush3.bf16.msra.mxu0 %v1687_v21  ;;  %1647 = vmatprep.mubr.msk.bf16.mxu0 %vm1725_vm0, %v1724_v6  ;;  %vm876_vm0 = vcmask 715393  }
  0xda   : > { %1639 = vmatprep.subr.bf16.mxu0 %v1724_v6 }
  0xdc   : > { %v620_v11 = vpop.permute.xlu0 %619  ;;  %v827_v15 = vpop.permute.xlu1 %826 }
  0xdd   : > { %v673_v12 = vld [vmem:[#allocation2] sm:$0x6]  ;;  %626 = vst.msk [vmem:[#allocation2] sm:$0x8] %vm625_vm8, %v620_v11  ;;  %vm1106_vm8 = vcmask 913219   ;;  %1640 = vmatpush3.bf16.msra.mxu0 %v1688_v28 }
  0xde   : > { %v674_v13 = vsel %vm672_vm9, %v1900_v8, %v673_v12  ;;  %701 = vst.msk [vmem:[#allocation2] sm:$0x8] %vm700_vm10, %v695_v7  ;;  %vm744_vm9 = vcmask 584193   ;;  %1641 = vmatprep.subr.bf16.mxu0 %v1724_v6  ;;  %vm1172_vm10 = vcmask 978819  }
  0xdf   : > { %v902_v14 = vld [vmem:[#allocation2 + $0x4] sm:$0x1]  ;;  %675 = vst [vmem:[#allocation2] sm:$0x6] %v674_v13 }
  0xe0   : > { %v903_v17 = vsel %vm901_vm11, %v1933_v44, %v902_v14  ;;  %v761_v20 = vpop.permute.xlu0 %760  ;;  %v968_v8 = vpop.permute.xlu1 %967  ;;  %vm1042_vm11 = vcmask 844544  }
  0xe1   : > { %904 = vst [vmem:[#allocation2 + $0x4] sm:$0x1] %v903_v17  ;;  %767 = vst.msk [vmem:[#allocation2] sm:$0x8] %vm766_vm12, %v761_v20 }
  0xe2   : > { %833 = vst.msk [vmem:[#allocation2] sm:$0x8] %vm832_vm13, %v827_v15  ;;  %vm745_vm12 = vmand %vm744_vm9, %vm234_vm4 }
  0xe3   : > { %vm1043_vm13 = vmand %vm1042_vm11, %vm256_vm15  ;;  %vm851_vm11 = vcmask 714368  }
  0xe4   : > { %v893_v22 = vpop.permute.xlu0 %892  ;;  %v1101_v25 = vpop.permute.xlu1 %1100 }
  0xe5   : > { %899 = vst.msk [vmem:[#allocation2] sm:$0x8] %vm898_vm2, %v893_v22  ;;  %vm785_vm2 = vcmask 648768  }
  0xe6   : > { %v721_v24 = vld [vmem:[#allocation2] sm:$0x3]  ;;  %974 = vst.msk [vmem:[#allocation2] sm:$0x8] %vm973_vm3, %v968_v8  ;;  %vm1108_vm3 = vcmask 910144  }
  0xe7   : > { %v722_v29 = vsel %vm720_vm5, %v1910_v16, %v721_v24  ;;  %v1689_v16 = vld [vmem:[%s2080_s1 + $0x28] sm:$0xff]   ;;  %vm786_vm5 = vmand %vm785_vm2, %vm209_vm1 }
  0xe8   : > { %v977_v31 = vld [vmem:[#allocation2 + $0x4] sm:$0x1]  ;;  %723 = vst [vmem:[#allocation2] sm:$0x3] %v722_v29  ;;  %v1035_v33 = vpop.permute.xlu0 %1034  ;;  %v1995_v34 = vpop.permute.xlu1 %1215  ;;  %1642 = vmatpush3.bf16.msra.mxu0 %v1689_v16  ;;  %vm877_vm2 = vmand %vm876_vm0, %vm234_vm4 }
  0xe9   : > { %v978_v32 = vsel %vm976_vm6, %v1939_v47, %v977_v31  ;;  %1041 = vst.msk [vmem:[#allocation2] sm:$0x8] %vm1040_vm7, %v1035_v33  ;;  %1643 = vmatprep.subr.bf16.mxu0 %v1724_v6  ;;  %vm1109_vm6 = vmand %vm1108_vm3, %vm256_vm15  ;;  %vm810_vm7 = vcmask 649793   ;;  %vm926_vm3 = vcmask 779968  }
  0xea   : > { %979 = vst [vmem:[#allocation2 + $0x4] sm:$0x1] %v978_v32  ;;  %1107 = vst.msk [vmem:[#allocation2] sm:$0x8] %vm1106_vm8, %v1101_v25  ;;  %vm1174_vm8 = vcmask 975744  }
  0xeb   : > { %vm811_vm9 = vmand %vm810_vm7, %vm234_vm4 }
  0xec   : > { %v1167_v36 = vpop.permute.xlu0 %1166  ;;  %v1242_v38 = vpop.permute.xlu1 %1241  ;;  %1644 = vmatpush3.bf16.msra.mxu0 %v1690_v40 }
  0xed   : > { %1173 = vst.msk [vmem:[#allocation2] sm:$0x8] %vm1172_vm10, %v1167_v36  ;;  %1645 = vmatprep.subr.bf16.mxu0 %v1724_v6  ;;  %vm1175_vm10 = vmand %vm1174_vm8, %vm256_vm15  ;;  %vm992_vm8 = vcmask 845568  }
  0xee   : > { %1248 = vst.msk [vmem:[#allocation2] sm:$0x8] %vm1247_vm14, %v1242_v38 }
  0xef   : > { %v746_v39 = vld [vmem:[#allocation2] sm:$0x6] }
  0xf0   : > { %v747_v41 = vsel %vm745_vm12, %v1904_v10, %v746_v39  ;;  %1646 = vmatpush3.bf16.msra.mxu0 %v1691_v46  ;;  %vm1249_vm12 = vcmask 1041344  }
  0xf1   : > { %v1044_v42 = vld [vmem:[#allocation2 + $0x4] sm:$0x1]  ;;  %748 = vst [vmem:[#allocation2] sm:$0x6] %v747_v41  ;;  %vm1250_vm14 = vmand %vm1249_vm12, %vm256_vm15  ;;  %vm1059_vm12 = vcmask 911168  }
  0xf2   : > { %v1045_v44 = vsel %vm1043_vm13, %v1944_v52, %v1044_v42  ;;  %vm852_vm13 = vmand %vm851_vm11, %vm209_vm1 }
  0xf3   : > { %1046 = vst [vmem:[#allocation2 + $0x4] sm:$0x1] %v1045_v44 }
  0xf8   : > { %v787_v10 = vld [vmem:[#allocation2] sm:$0x3] }
  0xf9   : > { %v788_v47 = vsel %vm786_vm5, %v1912_v18, %v787_v10  ;;  %v1244_v18 = vpop.permute.xlu0 %1243  ;;  %vm927_vm5 = vmand %vm926_vm3, %vm209_vm1 }
  0xfa   : > { %v1110_v48 = vld [vmem:[#allocation2 + $0x4] sm:$0x1]  ;;  %789 = vst [vmem:[#allocation2] sm:$0x3] %v788_v47 }
  0xfb   : > { %v1111_v49 = vsel %vm1109_vm6, %v1950_v54, %v1110_v48  ;;  %vm944_vm6 = vcmask 780993  }
  0xfc   : > { %1112 = vst [vmem:[#allocation2 + $0x4] sm:$0x1] %v1111_v49  ;;  %vm945_vm7 = vmand %vm944_vm6, %vm234_vm4 }
 0x101   : > { %v812_v50 = vld [vmem:[#allocation2] sm:$0x6] }
 0x102   : > { %v813_v52 = vsel %vm811_vm9, %v1916_v23, %v812_v50  ;;  %vm993_vm9 = vmand %vm992_vm8, %vm209_vm1 }
 0x103   : > { %v1176_v55 = vld [vmem:[#allocation2 + $0x4] sm:$0x1]  ;;  %814 = vst [vmem:[#allocation2] sm:$0x6] %v813_v52 }
 0x104   : > { %v1177_v56 = vsel %vm1175_vm10, %v1968_v5, %v1176_v55  ;;  %vm1017_vm10 = vcmask 846593  }
 0x105   : > { %1178 = vst [vmem:[#allocation2 + $0x4] sm:$0x1] %v1177_v56  ;;  %vm1018_vm11 = vmand %vm1017_vm10, %vm234_vm4 }
 0x10a   : > { %v853_v54 = vld [vmem:[#allocation2] sm:$0x3] }
 0x10b   : > { %v854_v57 = vsel %vm852_vm13, %v1918_v27, %v853_v54  ;;  %vm1060_vm13 = vmand %vm1059_vm12, %vm209_vm1  ;;  %vm1409_vm12 = vcmask 125952  }
 0x10c   : > { %v1251_v59 = vld [vmem:[#allocation2 + $0x4] sm:$0x1]  ;;  %855 = vst [vmem:[#allocation2] sm:$0x3] %v854_v57 }
 0x10d   : > { %v1252_v60 = vsel %vm1250_vm14, %v1244_v18, %v1251_v59  ;;  %vm1084_vm14 = vcmask 912193  }
 0x10e   : > { %1253 = vst [vmem:[#allocation2 + $0x4] sm:$0x1] %v1252_v60  ;;  %vm1085_vm0 = vmand %vm1084_vm14, %vm234_vm4 }
 0x113   : > { %v878_v23 = vld [vmem:[#allocation2] sm:$0x6] }
 0x114   : > { %v879_v62 = vsel %vm877_vm2, %v1922_v30, %v878_v23  ;;  %vm1125_vm2 = vcmask 976768  }
 0x115   : > { %880 = vst [vmem:[#allocation2] sm:$0x6] %v879_v62  ;;  %vm1126_vm3 = vmand %vm1125_vm2, %vm209_vm1 }
 0x11c   : > { %v928_v63 = vld [vmem:[#allocation2] sm:$0x3] }
 0x11d   : > { %v929_v0 = vsel %vm927_vm5, %v1924_v35, %v928_v63  ;;  %vm1150_vm5 = vcmask 977793  }
 0x11e   : > { %930 = vst [vmem:[#allocation2] sm:$0x3] %v929_v0  ;;  %vm1151_vm6 = vmand %vm1150_vm5, %vm234_vm4 }
 0x125   : > { %v946_v27 = vld [vmem:[#allocation2] sm:$0x6] }
 0x126   : > { %v947_v1 = vsel %vm945_vm7, %v1928_v37, %v946_v27  ;;  %vm1200_vm7 = vcmask 1042368  }
 0x127   : > { %948 = vst [vmem:[#allocation2] sm:$0x6] %v947_v1  ;;  %vm1201_vm8 = vmand %vm1200_vm7, %vm209_vm1  ;;  %vm1376_vm1 = vcmask 122880  }
 0x12e   : > { %v994_v2 = vld [vmem:[#allocation2] sm:$0x3] }
 0x12f   : > { %v995_v30 = vsel %vm993_vm9, %v1931_v43, %v994_v2  ;;  %vm1218_vm9 = vcmask 1043393  }
 0x130   : > { %996 = vst [vmem:[#allocation2] sm:$0x3] %v995_v30  ;;  %vm1219_vm10 = vmand %vm1218_vm9, %vm234_vm4  ;;  %vm1374_vm4 = vcmask 130048  }
 0x137   : > { %v1019_v26 = vld [vmem:[#allocation2] sm:$0x6] }
 0x138   : > { %v1020_v35 = vsel %vm1018_vm11, %v1936_v45, %v1019_v26  ;;  %vm1371_vm11 = vcmask 123904  }
 0x139   : > { %1021 = vst [vmem:[#allocation2] sm:$0x6] %v1020_v35  ;;  %1372 = vst.msk [vmem:[%s2051_s24] sm:$0x3] %vm1371_vm11, %v1724_v6 }
 0x140   : > { %v1061_v4 = vld [vmem:[#allocation2] sm:$0x3] }
 0x141   : > { %v1062_v37 = vsel %vm1060_vm13, %v1942_v51, %v1061_v4  ;;  %vm1412_vm13 = vmand %vm1376_vm1, %vm256_vm15  ;;  %v1373_v42 = vld [vmem:[%s2051_s24] sm:$0x1]  ;;  %v1387_v10 = vld [vmem:[%s2051_s24 + $0x1] sm:$0x1] }
 0x142   : > { %1063 = vst [vmem:[#allocation2] sm:$0x3] %v1062_v37 }
 0x149   : > { %v1086_v5 = vld [vmem:[#allocation2] sm:$0x6] }
 0x14a   : > { %v1087_v43 = vsel %vm1085_vm0, %v1946_v53, %v1086_v5 }
 0x14b   : > { %1088 = vst [vmem:[#allocation2] sm:$0x6] %v1087_v43 }
 0x152   : > { %v1127_v7 = vld [vmem:[#allocation2] sm:$0x3] }
 0x153   : > { %v1128_v45 = vsel %vm1126_vm3, %v1953_v58, %v1127_v7 }
 0x154   : > { %1129 = vst [vmem:[#allocation2] sm:$0x3] %v1128_v45 }
 0x15b   : > { %v1152_v51 = vld [vmem:[#allocation2] sm:$0x6] }
 0x15c   : > { %v1153_v9 = vsel %vm1151_vm6, %v1958_v61, %v1152_v51 }
 0x15d   : > { %1154 = vst [vmem:[#allocation2] sm:$0x6] %v1153_v9 }
 0x164   : > { %v1202_v53 = vld [vmem:[#allocation2] sm:$0x3] }
 0x165   : > { %v1203_v11 = vsel %vm1201_vm8, %v1963_v3, %v1202_v53 }
 0x166   : > { %1204 = vst [vmem:[#allocation2] sm:$0x3] %v1203_v11 }
 0x16d   : > { %v1220_v58 = vld [vmem:[#allocation2] sm:$0x6] }
 0x16e   : > { %v1221_v12 = vsel %vm1219_vm10, %v1995_v34, %v1220_v58 }
 0x16f   : > { %1222 = vst [vmem:[#allocation2] sm:$0x6] %v1221_v12 }
 0x176   : > { %v1692_v13 = vld [vmem:[#allocation2] sm:$0x1f]  }
 0x177   : > { %1648 = vmatmul.mubr.bf16.vlgmr.msra.gmra.mrb[0].mxu0 %v1692_v13 }
 0x24a   : > { %v1360_v61 = vpop.f32.mrb[0].mxu0 }
 0x24b   : > { %v1388_v3 = vmul.f32 %v1360_v61, %v1360_v61  ;;  %v1620_v14 = vpack.c.bf16 %v1360_v61, %v1360_v61  ;;  %v1649_v15 = vpop.f32.mrb[1].mxu0  ;;  %v1375_v20 = vsel %vm1374_vm4, %v1360_v61, 0.0 }
 0x24c   : > { %v1363_v17 = vpop.f32.mrb[2].mxu0 }
 0x24d   : > { %1410 = vst.msk [vmem:[%s200_s27] sm:$0xf] %vm1409_vm12, %v1620_v14  ;;  %v1377_v6 = vsel %vm1376_vm1, %v1363_v17, 0.0  ;;  %v1389_v8 = vmul.f32 %v1363_v17, %v1363_v17  ;;  %v1621_v21 = vpack.c.bf16 %v1363_v17, %v1363_v17  ;;  %v1650_v22 = vpop.f32.mrb[3].mxu0  ;;  %v1390_v25 = vsel %vm1374_vm4, %v1388_v3, 0.0 }
 0x24e   : > { %v1378_v24 = vadd.f32 %v1377_v6, %v1375_v20 }
 0x24f   : > { %v1391_v28 = vsel %vm1376_vm1, %v1389_v8, 0.0  ;;  %v1414_v29 = vsel %vm1412_vm13, %v1621_v21, %v1413_v19 }
 0x250   : > { %v1379_v31 = vrot.slane %v1378_v24, 4  ;;  %v1392_v32 = vadd.f32 %v1391_v28, %v1390_v25  ;;  %1415 = vst [vmem:[%s200_s27 + $0x4] sm:$0x1] %v1414_v29 }
 0x252   : > { %v1380_v33 = vadd.f32 %v1379_v31, %v1378_v24  ;;  %v1393_v34 = vrot.slane %v1392_v32, 4 }
 0x254   : > { %v1381_v16 = vrot.slane %v1380_v33, 2  ;;  %v1394_v36 = vadd.f32 %v1393_v34, %v1392_v32 }
 0x256   : > { %v1382_v38 = vadd.f32 %v1381_v16, %v1380_v33  ;;  %v1395_v39 = vrot.slane %v1394_v36, 2 }
 0x258   : > { %v1383_v40 = vrot.slane %v1382_v38, 1  ;;  %v1396_v41 = vadd.f32 %v1395_v39, %v1394_v36 }
 0x25a   : > { %v1384_v44 = vadd.f32 %v1383_v40, %v1382_v38  ;;  %v1397_v46 = vrot.slane %v1396_v41, 1 }
 0x25c   : > { %v1385_v47 = vadd.f32 %v1384_v44, %v1373_v42  ;;  %v1398_v48 = vadd.f32 %v1397_v46, %v1396_v41 }
 0x25e   : > { %1386 = vst.msk [vmem:[%s2051_s24] sm:$0x1] %vm1376_vm1, %v1385_v47  ;;  %v1399_v49 = vadd.f32 %v1398_v48, %v1387_v10 }
 0x260   : > { %1400 = vst.msk [vmem:[%s2051_s24 + $0x1] sm:$0x1] %vm1376_vm1, %v1399_v49 }
 0x261 PF: > { %s14_s14 = sadd.s32 1, %s1715_s14   ;;  %s2083_s12 = smov %s1711_s13 }
 0x262   : > { %p11_p5 = scmp.ge.s32.totalorder %s14_s14, 4   ;;  %s2084_s13 = smov %s2086_s15 }
 0x264   :  { %13 = sbr.rel (!%p11_p5) target bundleno = 2 (0x2), region = 77 }

// kernel: discriminator_forward.9
= control target key start
LH: loop header
LB: loop body
LE: loop exit
PB: predicated region body
PF: predicated region fallthrough
CT: control target
= control target key end

     0   :  { %s2605_s9 = smov 0   ;;  %s3093_s0 = inlined_call_operand.vmem [shape: bf16[2,9,9,64], index: 0, kind: input, shape index: {}]   ;;  %s3094_s1 = inlined_call_operand.vmem [shape: bf16[256,8], index: 1, kind: input, shape index: {}]   ;;  %s3095_s2 = inlined_call_operand.vmem [shape: bf16[2,64,8], index: 2, kind: output, shape index: {}]  }
   0x1 LB: > { %s2050_s10 = sadd.s32 4294967295, %s2586_s9   ;;  %p2054_p0 = scmp.ge.s32.totalorder %s2586_s9, 1  ;;  %s2586_s9 = sphi %s2605_s9, %s12_s9  }
   0x2   : > { %p112_p1 = scmp.lt.s32.totalorder %s2586_s9, 3 }
   0x4   : > { %p113_p2 = pnand %p2054_p0, %p112_p1 }
   0x5   : > { %p134_p3 = scmp.lt.s32.totalorder (!%p113_p2), %s2050_s10, 1  ;;  %s2588_s15 = smov (!%p113_p2), 32   ;;  %vm146_vm0 = vcmask (!%p113_p2), 125952   ;;  %vm187_vm1 = vcmask (!%p113_p2), 257152   ;;  %vm154_vm2 = vcmask (!%p113_p2), 130052   ;;  %vm194_vm3 = vcmask (!%p113_p2), 261252  }
   0x6   : > { %116 = sbr.rel (%p113_p2) target bundleno = 560 (0x230), region = 28  ;;  %s2589_s26 = smov (!%p113_p2), 64   ;;  %vm237_vm4 = vcmask (!%p113_p2), 388352   ;;  %vm257_vm5 = vcmask (!%p113_p2), 392452   ;;  %vm407_vm6 = vcmask (!%p113_p2), 523652   ;;  %vm387_vm7 = vcmask (!%p113_p2), 519552  }
   0x7   : > { %vm536_vm8 = vcmask (!%p113_p2), 654852   ;;  %vm527_vm9 = vcmask (!%p113_p2), 650752   ;;  %vm602_vm10 = vcmask (!%p113_p2), 786052   ;;  %vm593_vm11 = vcmask (!%p113_p2), 781952  }
   0x8   : > { %vm689_vm12 = vcmask (!%p113_p2), 917252   ;;  %vm669_vm13 = vcmask (!%p113_p2), 913152   ;;  %vm839_vm14 = vcmask (!%p113_p2), 1048452   ;;  %vm819_vm15 = vcmask (!%p113_p2), 1044352  }
   0xd   : > { %s3097_s10 = smov (!%p134_p3, %s2050_s10), 1 }
   0xe   : > { %s2441_s11 = smul.u32 72, %s3097_s10 }
  0x10   : > { %s2619_s14 = scalar_lea.vmem %s3093_s0, %s2441_s11 }
  0x11   : > { %v2452_v0 = vld [vmem:[%s2619_s14 + $0x28] sm:$0x1f]   ;;  %v2454_v6 = vld [vmem:[%s2619_s14 + $0x30] sm:$0x1f]   ;;  %v2457_v23 = vld [vmem:[%s2619_s14] sm:$0x1f]  }
  0x12   : > { %v2453_v1 = vld [vmem:[%s2619_s14 + $0x8] sm:$0x1f]   ;;  %v1099_v2 = vshrl.u32 %v2452_v0, 16  ;;  %v1101_v3 = vshll.u32 %v2452_v0, 16  ;;  %v2455_v8 = vld [vmem:[%s2619_s14 + $0x10] sm:$0x1f]  }
  0x13   : > { %v1025_v4 = vshrl.u32 %v2453_v1, 16  ;;  %v1027_v5 = vshll.u32 %v2453_v1, 16  ;;  %v1117_v10 = vshrl.u32 %v2454_v6, 16  ;;  %v1120_v11 = vshll.u32 %v2454_v6, 16  ;;  %v2456_v15 = vld [vmem:[%s2619_s14 + $0x8] sm:$0x1f]  }
  0x14   : > { %v1103_v7 = vrot.slane %v1101_v3, 1  ;;  %v1043_v13 = vshrl.u32 %v2455_v8, 16  ;;  %v1046_v14 = vshll.u32 %v2455_v8, 16  ;;  %v247_v21 = vshrl.u32 %v2456_v15, 16  ;;  %v2458_v25 = vld [vmem:[%s2619_s14 + $0x28] sm:$0x1f]  }
  0x15   : > { %v1029_v9 = vrot.slane %v1027_v5, 1  ;;  %v1119_v17 = vrot.slane %v1117_v10, 4  ;;  %v1122_v18 = vrot.slane %v1120_v11, 5  ;;  %v250_v22 = vshll.u32 %v2456_v15, 16  ;;  %v2459_v34 = vld [vmem:[%s2619_s14 + $0x20] sm:$0x1f]  }
  0x16   : > { %v1104_v12 = vor.u32 %v1103_v7, %v1099_v2  ;;  %v1045_v19 = vrot.slane %v1043_v13, 4  ;;  %v1048_v20 = vrot.slane %v1046_v14, 5  ;;  %v249_v27 = vrot.slane %v247_v21, 4  ;;  %v2460_v38 = vld [vmem:[%s2619_s14 + $0x10] sm:$0x1f]  }
  0x17   : > { %v1030_v16 = vor.u32 %v1029_v9, %v1025_v4  ;;  %v1123_v24 = vor.u32 %v1122_v18, %v1119_v17  ;;  %v252_v28 = vrot.slane %v250_v22, 5  ;;  %v228_v29 = vshrl.u32 %v2457_v23, 16  ;;  %v2461_v44 = vld [vmem:[%s2619_s14 + $0x8] sm:$0x1f]   ;;  %v2462_v47 = vld [vmem:[%s2619_s14 + $0x30] sm:$0x1f]  }
  0x18   : > { %1105 = vrot.lane.b32.xlu1 %v1104_v12, %s2588_s15  ;;  %v1049_v26 = vor.u32 %v1048_v20, %v1045_v19  ;;  %v230_v30 = vshll.u32 %v2457_v23, 16  ;;  %v322_v31 = vshrl.u32 %v2458_v25, 16  ;;  %v325_v32 = vshll.u32 %v2458_v25, 16  ;;  %v2463_v55 = vld [vmem:[%s2619_s14 + $0x28] sm:$0x1f]  }
  0x19   : > { %1031 = vrot.lane.b32.xlu0 %v1030_v16, %s2588_s15  ;;  %v253_v33 = vor.u32 %v252_v28, %v249_v27  ;;  %v304_v39 = vshrl.u32 %v2459_v34, 16  ;;  %v306_v40 = vshll.u32 %v2459_v34, 16  ;;  %v1191_v42 = vshrl.u32 %v2460_v38, 16  ;;  %v2464_v62 = vld [vmem:[%s2619_s14 + $0x8] sm:$0x1f]  }
  0x1a   : > { %v232_v35 = vrot.slane %v230_v30, 1  ;;  %v324_v36 = vrot.slane %v322_v31, 4  ;;  %v327_v37 = vrot.slane %v325_v32, 5  ;;  %v1194_v43 = vshll.u32 %v2460_v38, 16  ;;  %v2465_v0 = vld [vmem:[%s2619_s14] sm:$0x1f]  }
  0x1b   : > { %v308_v46 = vrot.slane %v306_v40, 1  ;;  %v1193_v48 = vrot.slane %v1191_v42, 4  ;;  %v1173_v50 = vshrl.u32 %v2461_v44, 16  ;;  %v1175_v51 = vshll.u32 %v2461_v44, 16  ;;  %v2466_v6 = vld [vmem:[%s2619_s14 + $0x28] sm:$0x1f]  }
  0x1c   : > { %1124 = vrot.lane.b32.xlu1 %v1123_v24, %s2588_s15  ;;  %v233_v41 = vor.u32 %v232_v35, %v228_v29  ;;  %v328_v45 = vor.u32 %v327_v37, %v324_v36  ;;  %v1196_v49 = vrot.slane %v1194_v43, 5  ;;  %v1265_v53 = vshrl.u32 %v2462_v47, 16  ;;  %v2467_v14 = vld [vmem:[%s2619_s14 + $0x20] sm:$0x1f]   ;;  %v2468_v24 = vld [vmem:[%s2619_s14 + $0x10] ss:$0 sps:$4 sm:$0xff]  }
  0x1d   : > { %1050 = vrot.lane.b32.xlu0 %v1049_v26, %s2588_s15  ;;  %v309_v52 = vor.u32 %v308_v46, %v304_v39  ;;  %v1268_v54 = vshll.u32 %v2462_v47, 16  ;;  %v1177_v57 = vrot.slane %v1175_v51, 1  ;;  %v1247_v60 = vshrl.u32 %v2463_v55, 16  ;;  %v2469_v25 = vld [vmem:[%s2619_s14 + $0x8] ss:$0 sps:$4 sm:$0xff]   ;;  %v2550_v46 = vld [vmem:[%s3094_s1 + $0x40] sm:$0xff]  }
  0x1e   : > { %v1197_v56 = vor.u32 %v1196_v49, %v1193_v48  ;;  %v1267_v58 = vrot.slane %v1265_v53, 4  ;;  %v1249_v61 = vshll.u32 %v2463_v55, 16  ;;  %v397_v2 = vshrl.u32 %v2464_v62, 16  ;;  %v2470_v26 = vld [vmem:[%s2619_s14 + $0x30] ss:$0 sps:$4 sm:$0xff]   ;;  %2385 = vmatprep.subr.bf16.mxu0 %v2550_v46  ;;  %2425 = vmatprep.subr.bf16.mxu1 %v2550_v46 }
  0x1f   : > { %v1270_v59 = vrot.slane %v1268_v54, 5  ;;  %v1178_v63 = vor.u32 %v1177_v57, %v1173_v50  ;;  %v400_v3 = vshll.u32 %v2464_v62, 16  ;;  %v378_v4 = vshrl.u32 %v2465_v0, 16  ;;  %v2471_v27 = vld [vmem:[%s2619_s14 + $0x28] ss:$0 sps:$4 sm:$0xff]  }
  0x20   : > { %254 = vrot.lane.b32.xlu1 %v253_v33, %s2588_s15  ;;  %v1251_v1 = vrot.slane %v1249_v61, 1  ;;  %v380_v5 = vshll.u32 %v2465_v0, 16  ;;  %v399_v8 = vrot.slane %v397_v2, 4  ;;  %v472_v12 = vshrl.u32 %v2466_v6, 16  ;;  %v2472_v28 = vld [vmem:[%s2619_s14 + $0x8] ss:$0 sps:$4 sm:$0xff]  }
  0x21   : > { %234 = vrot.lane.b32.xlu0 %v233_v41, %s2588_s15  ;;  %v1271_v7 = vor.u32 %v1270_v59, %v1267_v58  ;;  %v402_v9 = vrot.slane %v400_v3, 5  ;;  %v475_v13 = vshll.u32 %v2466_v6, 16  ;;  %v456_v18 = vshll.u32 %v2467_v14, 16  ;;  %v2473_v29 = vld [vmem:[%s2619_s14] ss:$0 sps:$4 sm:$0xff]   ;;  %v2554_v2 = vld [vmem:[%s3094_s1 + $0x48] sm:$0xff]  }
  0x22   : > { %v1252_v10 = vor.u32 %v1251_v1, %v1247_v60  ;;  %v382_v11 = vrot.slane %v380_v5, 1  ;;  %v474_v16 = vrot.slane %v472_v12, 4  ;;  %v454_v20 = vshrl.u32 %v2467_v14, 16  ;;  %v2474_v30 = vld [vmem:[%s2619_s14 + $0x28] ss:$0 sps:$4 sm:$0xff]  }
  0x23   : > { %v403_v15 = vor.u32 %v402_v9, %v399_v8  ;;  %v477_v17 = vrot.slane %v475_v13, 5  ;;  %v458_v21 = vrot.slane %v456_v18, 1  ;;  %v2475_v31 = vld [vmem:[%s2619_s14 + $0x20] ss:$0 sps:$4 sm:$0xff]   ;;  %v2476_v32 = vld [vmem:[%s2619_s14 + $0x10] ss:$0 sps:$4 sm:$0xff]  }
  0x24   : > { %329 = vrot.lane.b32.xlu1 %v328_v45, %s2588_s15  ;;  %v383_v19 = vor.u32 %v382_v11, %v378_v4  ;;  %v2477_v33 = vld [vmem:[%s2619_s14 + $0x8] ss:$0 sps:$4 sm:$0xff]   ;;  %v2484_v34 = vld [vmem:[%s2619_s14 + $0x10] sm:$0x1f]   ;;  %v2481_v45 = vld [vmem:[%s2619_s14] ss:$0 sps:$4 sm:$0xff]  }
  0x25   : > { %310 = vrot.lane.b32.xlu0 %v309_v52, %s2588_s15  ;;  %v478_v22 = vor.u32 %v477_v17, %v474_v16  ;;  %v459_v23 = vor.u32 %v458_v21, %v454_v20  ;;  %v2485_v35 = vld [vmem:[%s2619_s14 + $0x8] sm:$0x1f]   ;;  %v2486_v36 = vld [vmem:[%s2619_s14 + $0x30] sm:$0x1f]   ;;  %v1467_v41 = vshrl.u32 %v2484_v34, 16  ;;  %v1470_v42 = vshll.u32 %v2484_v34, 16 }
  0x26   : > { %v2478_v37 = vld [vmem:[%s2619_s14 + $0x30] ss:$0 sps:$4 sm:$0xff]   ;;  %v2479_v38 = vld [vmem:[%s2619_s14 + $0x28] ss:$0 sps:$4 sm:$0xff]   ;;  %v1451_v43 = vshll.u32 %v2485_v35, 16  ;;  %v1541_v44 = vshrl.u32 %v2486_v36, 16 }
  0x27   : > { %v2487_v39 = vld [vmem:[%s2619_s14 + $0x28] sm:$0x1f]   ;;  %v1544_v47 = vshll.u32 %v2486_v36, 16  ;;  %v1469_v51 = vrot.slane %v1467_v41, 4  ;;  %v1449_v52 = vshrl.u32 %v2485_v35, 16  ;;  %v1472_v54 = vrot.slane %v1470_v42, 5 }
  0x28   : > { %1198 = vrot.lane.b32.xlu1 %v1197_v56, %s2588_s15  ;;  %v2480_v40 = vld [vmem:[%s2619_s14 + $0x8] ss:$0 sps:$4 sm:$0xff]   ;;  %v1525_v48 = vshll.u32 %v2487_v39, 16  ;;  %v2483_v53 = vld [vmem:[%s2619_s14 + $0x20] ss:$0 sps:$4 sm:$0xff]   ;;  %v1453_v55 = vrot.slane %v1451_v43, 1 }
  0x29   : > { %1179 = vrot.lane.b32.xlu0 %v1178_v63, %s2588_s15  ;;  %v2488_v49 = vld [vmem:[%s2619_s14 + $0x8] sm:$0x1f]   ;;  %v1543_v56 = vrot.slane %v1541_v44, 4  ;;  %v1523_v57 = vshrl.u32 %v2487_v39, 16  ;;  %v2690_v58 = vld [vmem:[%s2619_s14] sm:$0x1f]   ;;  %v1473_v4 = vor.u32 %v1472_v54, %v1469_v51 }
  0x2a   : > { %v2482_v50 = vld [vmem:[%s2619_s14 + $0x28] ss:$0 sps:$4 sm:$0xff]   ;;  %v1546_v60 = vrot.slane %v1544_v47, 5  ;;  %v1527_v61 = vrot.slane %v1525_v48, 1  ;;  %v679_v62 = vshrl.u32 %v2488_v49, 16  ;;  %v2551_v63 = vld [vmem:[%s3094_s1] sm:$0xff]  }
  0x2b   : > { %v2490_v59 = vld [vmem:[%s2619_s14 + $0x28] sm:$0x1f]   ;;  %v682_v0 = vshll.u32 %v2488_v49, 16  ;;  %v2699_v1 = vld [vmem:[%s2619_s14 + $0x20] sm:$0x1f]   ;;  %2386 = vmatpush3.bf16.msra.mxu0 %v2551_v63  ;;  %2433 = vmatpush3.bf16.msra.mxu1 %v2551_v63  ;;  %v662_v5 = vshll.u32 %v2690_v58, 16 }
  0x2c   : > { %1272 = vrot.lane.b32.xlu1 %v1271_v7, %s2588_s15  ;;  %v2492_v3 = vld [vmem:[%s2619_s14 + $0x10] sm:$0x1f]   ;;  %v754_v6 = vshrl.u32 %v2490_v59, 16  ;;  %v757_v7 = vshll.u32 %v2490_v59, 16  ;;  %v2708_v8 = vld [vmem:[%s2619_s14 + $0x8] sm:$0x1f]   ;;  %2387 = vmatprep.subr.bf16.mxu0 %v2554_v2  ;;  %v1547_v12 = vor.u32 %v1546_v60, %v1543_v56  ;;  %v1528_v16 = vor.u32 %v1527_v61, %v1523_v57 }
  0x2d   : > { %1253 = vrot.lane.b32.xlu0 %v1252_v10, %s2588_s15  ;;  %v2555_v9 = vld [vmem:[%s3094_s1 + $0x8] sm:$0xff]   ;;  %v1454_v10 = vor.u32 %v1453_v55, %v1449_v52  ;;  %v2494_v11 = vld [vmem:[%s2619_s14 + $0x30] sm:$0x1f]   ;;  %2426 = vmatprep.subr.bf16.mxu1 %v2554_v2  ;;  %v681_v13 = vrot.slane %v679_v62, 4  ;;  %v684_v14 = vrot.slane %v682_v0, 5  ;;  %v660_v17 = vshrl.u32 %v2690_v58, 16 }
  0x2e   : > { %v738_v18 = vshll.u32 %v2699_v1, 16  ;;  %v2558_v20 = vld [vmem:[%s3094_s1 + $0x50] sm:$0xff]   ;;  %v664_v21 = vrot.slane %v662_v5, 1  ;;  %v2735_v34 = vld [vmem:[%s2619_s14] sm:$0x1f]   ;;  %v1597_v39 = vshrl.u32 %v2708_v8, 16 }
  0x2f   : > { %2388 = vmatpush3.bf16.msra.mxu0 %v2555_v9  ;;  %2434 = vmatpush3.bf16.msra.mxu1 %v2555_v9  ;;  %v685_v35 = vor.u32 %v684_v14, %v681_v13  ;;  %v2498_v36 = vld [vmem:[%s2619_s14 + $0x28] sm:$0x1f]   ;;  %v2562_v41 = vld [vmem:[%s3094_s1 + $0x58] sm:$0xff]   ;;  %v812_v49 = vshll.u32 %v2735_v34, 16  ;;  %v2752_v52 = vld [vmem:[%s2619_s14 + $0x20] sm:$0x1f]  }
  0x30   : > { %404 = vrot.lane.b32.xlu1 %v403_v15, %s2588_s15  ;;  %v2716_v15 = vld [vmem:[%s2619_s14 + $0x28] sm:$0x1f]   ;;  %2389 = vmatprep.subr.bf16.mxu0 %v2558_v20  ;;  %v907_v51 = vshll.u32 %v2498_v36, 16  ;;  %v810_v58 = vshrl.u32 %v2735_v34, 16  ;;  %v2500_v59 = vld [vmem:[%s2619_s14 + $0x20] sm:$0x1f]  }
  0x31   : > { %384 = vrot.lane.b32.xlu0 %v383_v19, %s2588_s15  ;;  %v1615_v19 = vshrl.u32 %v2492_v3, 16  ;;  %2427 = vmatprep.subr.bf16.mxu1 %v2558_v20  ;;  %v1671_v44 = vshrl.u32 %v2716_v15, 16  ;;  %v2204_v55 = vld [vmem:[%s2619_s14 + $0x28] sm:$0xf]  ;;  %v2564_v61 = vld [vmem:[%s3094_s1 + $0x60] sm:$0xff]   ;;  %v888_v2 = vshll.u32 %v2752_v52, 16 }
  0x32   : > { %v2216_v56 = vld [vmem:[%s2619_s14 + $0x28] sm:$0xf]  ;;  %969 = vst.msk [vmem:[#allocation2 + $0x28] sm:$0xf] %vm146_vm0, %v2204_v55  ;;  %v2777_v5 = vrot.slane %v907_v51, 5  ;;  %v1083_v14 = vshll.u32 %v2500_v59, 16 }
  0x33   : > { %v2198_v57 = vld [vmem:[%s2619_s14 + $0x8] sm:$0xf]  ;;  %1002 = vst.msk [vmem:[#allocation2 + $0x28] sm:$0xf] %vm187_vm1, %v2216_v56  ;;  %v2512_v9 = vld [vmem:[%s2619_s14 + $0x30] ss:$0 sps:$4 sm:$0xff]  }
  0x34   : > { %479 = vrot.lane.b32.xlu1 %v478_v22, %s2588_s15  ;;  %v756_v22 = vrot.slane %v754_v6, 4  ;;  %953 = vst.msk [vmem:[#allocation2 + $0x8] sm:$0xf] %vm146_vm0, %v2198_v57  ;;  %v2210_v60 = vld [vmem:[%s2619_s14 + $0x8] sm:$0xf]  ;;  %v890_v13 = vrot.slane %v888_v2, 1 }
  0x35   : > { %460 = vrot.lane.b32.xlu0 %v459_v23, %s2588_s15  ;;  %v759_v23 = vrot.slane %v757_v7, 5  ;;  %986 = vst.msk [vmem:[#allocation2 + $0x8] sm:$0xf] %vm187_vm1, %v2210_v60  ;;  %v2780_v6 = vld [vmem:[%s2619_s14 + $0x18] sm:$0x1f]   ;;  %v886_v7 = vshrl.u32 %v2752_v52, 16 }
  0x36   : > { %975 = vst.msk [vmem:[#allocation2 + $0x28] sm:$0xf0] %vm154_vm2, %v2512_v9  ;;  %v2799_v20 = vld [vmem:[%s2619_s14 + $0x38] sm:$0x1f]   ;;  %v2507_v52 = vld [vmem:[%s2619_s14 + $0x30] sm:$0x1f]  }
  0x37   : > { %v760_v48 = vor.u32 %v759_v23, %v756_v22  ;;  %v2508_v55 = vld [vmem:[%s2619_s14 + $0x20] sm:$0x1f]   ;;  %v2509_v56 = vld [vmem:[%s2619_s14 + $0x18] sm:$0x1f]  }
  0x38   : > { %1325 = vrot.lane.b32.xlu1 %v2468_v24, %s2588_s15  ;;  %v736_v24 = vshrl.u32 %v2699_v1, 16  ;;  %v814_v1 = vrot.slane %v812_v49, 1  ;;  %v2074_v49 = vld [vmem:[%s2619_s14 + $0x20] sm:$0xf]  ;;  %v1228_v2 = vshrl.u32 %v2508_v55, 16 }
  0x39   : > { %1317 = vrot.lane.b32.xlu0 %v2469_v25, %s2588_s15  ;;  %v1618_v25 = vshll.u32 %v2492_v3, 16 }
  0x3c   : > { %1357 = vrot.lane.b32.xlu1 %v2470_v26, %s2588_s15  ;;  %v1599_v26 = vshll.u32 %v2708_v8, 16  ;;  %v1080_v8 = vshrl.u32 %v2500_v59, 16 }
  0x3d   : > { %1349 = vrot.lane.b32.xlu0 %v2471_v27, %s2588_s15  ;;  %v1689_v27 = vshrl.u32 %v2494_v11, 16 }
  0x3f   : > { %v2744_v42 = vrot.slane %v1689_v27, 4  ;;  %v815_v27 = vor.u32 %v814_v1, %v810_v58  ;;  %v343_v1 = vshll.u32 %v2507_v52, 16 }
  0x40   : > { %533 = vrot.lane.b32.xlu1 %v2472_v28, %s2588_s15  ;;  %v1692_v28 = vshll.u32 %v2494_v11, 16  ;;  %v2513_v11 = vld [vmem:[%s2619_s14 + $0x30] ss:$0 sps:$4 sm:$0xff]  }
  0x41   : > { %524 = vrot.lane.b32.xlu0 %v2473_v29, %s2588_s15  ;;  %v1673_v29 = vshll.u32 %v2716_v15, 16  ;;  %v2514_v15 = vld [vmem:[%s2619_s14 + $0x10] ss:$0 sps:$4 sm:$0xff]   ;;  %1008 = vst.msk [vmem:[#allocation2 + $0x28] sm:$0xf0] %vm194_vm3, %v2513_v11 }
  0x42   : > { %v2746_v43 = vrot.slane %v1692_v28, 5  ;;  %959 = vst.msk [vmem:[#allocation2 + $0x8] sm:$0xf0] %vm154_vm2, %v2514_v15  ;;  %v2504_v28 = vld [vmem:[%s2619_s14 + $0x18] sm:$0x1f]   ;;  %v1210_v15 = vshrl.u32 %v2509_v56, 16 }
  0x44   : > { %566 = vrot.lane.b32.xlu1 %v2474_v30, %s2588_s15  ;;  %v2559_v30 = vld [vmem:[%s3094_s1 + $0x10] sm:$0xff]  }
  0x45   : > { %558 = vrot.lane.b32.xlu0 %v2475_v31, %s2588_s15  ;;  %v740_v31 = vrot.slane %v738_v18, 1  ;;  %2390 = vmatpush3.bf16.msra.mxu0 %v2559_v30  ;;  %v2515_v18 = vld [vmem:[%s2619_s14 + $0x10] ss:$0 sps:$4 sm:$0xff]  }
  0x46   : > { %2435 = vmatpush3.bf16.msra.mxu1 %v2559_v30  ;;  %2391 = vmatprep.subr.bf16.mxu0 %v2562_v41  ;;  %992 = vst.msk [vmem:[#allocation2 + $0x8] sm:$0xf0] %vm194_vm3, %v2515_v18  ;;  %v145_v30 = vld [vmem:[%s2619_s14] sm:$0xf]  ;;  %v2516_v18 = vld [vmem:[%s2619_s14 + $0x18] sm:$0x1f]  }
  0x47   : > { %2428 = vmatprep.subr.bf16.mxu1 %v2562_v41  ;;  %v741_v54 = vor.u32 %v740_v31, %v736_v24  ;;  %v1082_v24 = vrot.slane %v1080_v8, 4  ;;  %v1062_v31 = vshrl.u32 %v2780_v6, 16  ;;  %147 = vst.msk [vmem:[#allocation2] sm:$0xf] %vm146_vm0, %v145_v30  ;;  %v1136_v41 = vshrl.u32 %v2799_v20, 16 }
  0x48   : > { %1389 = vrot.lane.b32.xlu1 %v2476_v32, %s2588_s15  ;;  %v2731_v32 = vrot.slane %v1615_v19, 4  ;;  %v2565_v19 = vld [vmem:[%s3094_s1 + $0x20] sm:$0xff]   ;;  %v2520_v30 = vld [vmem:[%s2619_s14 + $0x38] sm:$0x1f]  }
  0x49   : > { %1381 = vrot.lane.b32.xlu0 %v2477_v33, %s2588_s15  ;;  %v2496_v33 = vld [vmem:[%s2619_s14 + $0x8] sm:$0x1f]  }
  0x4a   : > { %v829_v46 = vshrl.u32 %v2496_v33, 16  ;;  %v832_v47 = vshll.u32 %v2496_v33, 16  ;;  %v186_v33 = vld [vmem:[%s2619_s14] sm:$0xf] }
  0x4b   : > { %188 = vst.msk [vmem:[#allocation2] sm:$0xf] %vm187_vm1, %v186_v33 }
  0x4c   : > { %1421 = vrot.lane.b32.xlu1 %v2478_v37, %s2588_s15  ;;  %v665_v37 = vor.u32 %v664_v21, %v660_v17  ;;  %v831_v62 = vrot.slane %v829_v46, 4  ;;  %v834_v63 = vrot.slane %v832_v47, 5  ;;  %v1064_v17 = vshll.u32 %v2780_v6, 16  ;;  %v2523_v46 = vld [vmem:[%s2619_s14 + $0x28] ss:$0 sps:$4 sm:$0xff]  }
  0x4d   : > { %1413 = vrot.lane.b32.xlu0 %v2479_v38, %s2588_s15  ;;  %v1620_v38 = vrot.slane %v1618_v25, 5  ;;  %v1085_v25 = vrot.slane %v1083_v14, 5  ;;  %v2506_v47 = vld [vmem:[%s2619_s14 + $0x38] sm:$0x1f]   ;;  %v341_v6 = vshrl.u32 %v2507_v52, 16 }
  0x4e   : > { %v835_v23 = vor.u32 %v834_v63, %v831_v62  ;;  %v1066_v34 = vrot.slane %v1064_v17, 1  ;;  %v359_v62 = vshrl.u32 %v2506_v47, 16  ;;  %v362_v63 = vshll.u32 %v2506_v47, 16 }
  0x4f   : > { %v1621_v0 = vor.u32 %v1620_v38, %v2731_v32  ;;  %v1138_v32 = vshll.u32 %v2799_v20, 16 }
  0x50   : > { %599 = vrot.lane.b32.xlu1 %v2480_v40, %s2588_s15  ;;  %v1601_v40 = vrot.slane %v1599_v26, 1  ;;  %v2518_v26 = vld [vmem:[%s2619_s14 + $0x8] ss:$0 sps:$4 sm:$0xff]   ;;  %v361_v8 = vrot.slane %v359_v62, 4  ;;  %v364_v9 = vrot.slane %v362_v63, 5 }
  0x51   : > { %590 = vrot.lane.b32.xlu0 %v2481_v45, %s2588_s15  ;;  %v1675_v45 = vrot.slane %v1673_v29, 1  ;;  %v2519_v29 = vld [vmem:[%s2619_s14 + $0x8] ss:$0 sps:$4 sm:$0xff]   ;;  %155 = vst.msk [vmem:[#allocation2] sm:$0xf0] %vm154_vm2, %v2518_v26  ;;  %v435_v26 = vshrl.u32 %v2516_v18, 16 }
  0x52   : > { %v1602_v3 = vor.u32 %v1601_v40, %v1597_v39  ;;  %195 = vst.msk [vmem:[#allocation2] sm:$0xf0] %vm194_vm3, %v2519_v29  ;;  %v2505_v39 = vld [vmem:[%s2619_s14 + $0x10] sm:$0x1f]   ;;  %v891_v40 = vor.u32 %v890_v13, %v886_v7  ;;  %v1230_v13 = vrot.slane %v1228_v2, 4 }
  0x53   : > { %v269_v51 = vshll.u32 %v2505_v39, 16  ;;  %v267_v60 = vshrl.u32 %v2505_v39, 16  ;;  %v2524_v62 = vld [vmem:[%s2619_s14 + $0x20] ss:$0 sps:$4 sm:$0xff]   ;;  %v2525_v63 = vld [vmem:[%s2619_s14 + $0x18] ss:$0 sps:$4 sm:$0xff]  }
  0x54   : > { %632 = vrot.lane.b32.xlu1 %v2482_v50, %s2588_s15  ;;  %v904_v50 = vshrl.u32 %v2498_v36, 16  ;;  %v2526_v2 = vld [vmem:[%s2619_s14 + $0x40] ss:$0 sps:$4 sm:$0xff]  }
  0x55   : > { %624 = vrot.lane.b32.xlu0 %v2483_v53, %s2588_s15  ;;  %v2563_v53 = vld [vmem:[%s3094_s1 + $0x18] sm:$0xff]  }
  0x56   : > { %2392 = vmatpush3.bf16.msra.mxu0 %v2563_v53  ;;  %2436 = vmatpush3.bf16.msra.mxu1 %v2563_v53  ;;  %v2567_v53 = vld [vmem:[%s3094_s1 + $0x28] sm:$0xff]  }
  0x57   : > { %2393 = vmatprep.subr.bf16.mxu0 %v2564_v61  ;;  %2429 = vmatprep.subr.bf16.mxu1 %v2564_v61  ;;  %v271_v61 = vrot.slane %v269_v51, 1 }
  0x58   : > { %1474 = vrot.lane.b32.xlu1 %v1473_v4, %s2589_s26  ;;  %v2775_v4 = vrot.slane %v904_v50, 4  ;;  %v1086_v50 = vor.u32 %v1085_v25, %v1082_v24 }
  0x59   : > { %1455 = vrot.lane.b32.xlu0 %v1454_v10, %s2589_s26  ;;  %v2502_v10 = vld [vmem:[%s2619_s14 + $0x40] sm:$0x1f]   ;;  %v272_v11 = vor.u32 %v271_v61, %v267_v60 }
  0x5a   : > { %v1154_v21 = vshrl.u32 %v2502_v10, 16  ;;  %v1157_v22 = vshll.u32 %v2502_v10, 16  ;;  %2394 = vmatpush3.bf16.msra.mxu0 %v2565_v19  ;;  %2437 = vmatpush3.bf16.msra.mxu1 %v2565_v19  ;;  %v910_v38 = vor.u32 %v2777_v5, %v2775_v4  ;;  %v1212_v4 = vshll.u32 %v2509_v56, 16  ;;  %v2510_v5 = vld [vmem:[%s2619_s14 + $0x40] sm:$0x1f]  }
  0x5b   : > { %v2511_v10 = vld [vmem:[%s2619_s14 + $0x38] sm:$0x1f]   ;;  %v1302_v17 = vshrl.u32 %v2510_v5, 16  ;;  %v365_v19 = vor.u32 %v364_v9, %v361_v8  ;;  %v1305_v20 = vshll.u32 %v2510_v5, 16 }
  0x5c   : > { %1548 = vrot.lane.b32.xlu1 %v1547_v12, %s2589_s26  ;;  %v1695_v12 = vor.u32 %v2746_v43, %v2744_v42  ;;  %v1159_v36 = vrot.slane %v1157_v22, 5  ;;  %v285_v42 = vshrl.u32 %v2504_v28, 16  ;;  %v2522_v43 = vld [vmem:[%s2619_s14 + $0x28] ss:$0 sps:$4 sm:$0xff]   ;;  %v1284_v25 = vshrl.u32 %v2511_v10, 16 }
  0x5d   : > { %1529 = vrot.lane.b32.xlu0 %v1528_v16, %s2589_s26  ;;  %v1676_v16 = vor.u32 %v1675_v45, %v1671_v44  ;;  %v1140_v44 = vrot.slane %v1138_v32, 1  ;;  %v288_v45 = vshll.u32 %v2504_v28, 16  ;;  %175 = vst.msk [vmem:[#allocation2 + $0x20] sm:$0xf0] %vm154_vm2, %v2522_v43  ;;  %v1304_v24 = vrot.slane %v1302_v17, 4 }
  0x5e   : > { %211 = vst.msk [vmem:[#allocation2 + $0x20] sm:$0xf0] %vm194_vm3, %v2523_v46  ;;  %v287_v58 = vrot.slane %v285_v42, 4  ;;  %v1307_v29 = vrot.slane %v1305_v20, 5  ;;  %v2570_v46 = vld [vmem:[%s3094_s1 + $0x78] sm:$0xff]  }
  0x5f   : > { %v290_v59 = vrot.slane %v288_v45, 5  ;;  %v2530_v9 = vld [vmem:[%s2619_s14 + $0x38] ss:$0 sps:$4 sm:$0xff]  }
  0x60   : > { %686 = vrot.lane.b32.xlu1 %v685_v35, %s2589_s26  ;;  %v1156_v35 = vrot.slane %v1154_v21, 4  ;;  %v1286_v21 = vshll.u32 %v2511_v10, 16  ;;  %v1308_v39 = vor.u32 %v1307_v29, %v1304_v24  ;;  %v2213_v17 = vld [vmem:[%s2619_s14 + $0x18] sm:$0xf] }
  0x61   : > { %666 = vrot.lane.b32.xlu0 %v665_v37, %s2589_s26  ;;  %v2566_v37 = vld [vmem:[%s3094_s1 + $0x68] sm:$0xff]   ;;  %v291_v7 = vor.u32 %v290_v59, %v287_v58  ;;  %v2533_v20 = vld [vmem:[%s2619_s14 + $0x18] ss:$0 sps:$4 sm:$0xff]  }
  0x62   : > { %2395 = vmatprep.subr.bf16.mxu0 %v2566_v37  ;;  %2430 = vmatprep.subr.bf16.mxu1 %v2566_v37  ;;  %v1160_v57 = vor.u32 %v1159_v36, %v1156_v35  ;;  %v1288_v33 = vrot.slane %v1286_v21, 1  ;;  %v2521_v35 = vld [vmem:[%s2619_s14 + $0x30] sm:$0x1f]   ;;  %v437_v36 = vrot.slane %v435_v26, 4  ;;  %v2575_v21 = vld [vmem:[%s2619_s14 + $0x40] ss:$0 sps:$4 sm:$0xff]  }
  0x63   : > { %2396 = vmatpush3.bf16.msra.mxu0 %v2567_v53  ;;  %2438 = vmatpush3.bf16.msra.mxu1 %v2567_v53  ;;  %v493_v45 = vshll.u32 %v2521_v35, 16  ;;  %v2576_v24 = vld [vmem:[%s2619_s14 + $0x18] ss:$0 sps:$4 sm:$0xff]   ;;  %v2060_v26 = vld [vmem:[%s2619_s14 + $0x10] sm:$0xf] }
  0x64   : > { %761 = vrot.lane.b32.xlu1 %v760_v48, %s2589_s26  ;;  %v2063_v48 = vld [vmem:[%s2619_s14 + $0x20] sm:$0xf]  ;;  %v1289_v42 = vor.u32 %v1288_v33, %v1284_v25  ;;  %v2577_v25 = vld [vmem:[%s2619_s14 + $0x18] ss:$0 sps:$4 sm:$0xff]   ;;  %165 = vst.msk [vmem:[#allocation2 + $0x10] sm:$0xf0] %vm154_vm2, %v2576_v24 }
  0x65   : > { %742 = vrot.lane.b32.xlu0 %v741_v54, %s2589_s26  ;;  %168 = vst.msk [vmem:[#allocation2 + $0x20] sm:$0xf] %vm146_vm0, %v2063_v48  ;;  %v1067_v54 = vor.u32 %v1066_v34, %v1062_v31  ;;  %v2568_v31 = vld [vmem:[%s3094_s1 + $0x70] sm:$0xff]   ;;  %v2571_v48 = vld [vmem:[%s3094_s1 + $0x38] sm:$0xff]   ;;  %158 = vst.msk [vmem:[#allocation2 + $0x10] sm:$0xf] %vm146_vm0, %v2060_v26 }
  0x66   : > { %205 = vst.msk [vmem:[#allocation2 + $0x20] sm:$0xf] %vm187_vm1, %v2074_v49  ;;  %2397 = vmatprep.subr.bf16.mxu0 %v2568_v31  ;;  %2431 = vmatprep.subr.bf16.mxu1 %v2568_v31  ;;  %v2578_v29 = vld [vmem:[%s2619_s14 + $0x38] ss:$0 sps:$4 sm:$0xff]   ;;  %v2534_v33 = vld [vmem:[%s2619_s14 + $0x40] ss:$0 sps:$4 sm:$0xff]  }
  0x67   : > { %203 = vst.msk [vmem:[#allocation2 + $0x10] sm:$0xf0] %vm194_vm3, %v2577_v25  ;;  %v2579_v31 = vld [vmem:[%s2619_s14 + $0x38] ss:$0 sps:$4 sm:$0xff]   ;;  %v2552_v25 = vld [vmem:[%s2619_s14 + $0x40] sm:$0x1f]  }
  0x68   : > { %1622 = vrot.lane.b32.xlu1 %v1621_v0, %s2589_s26  ;;  %v1141_v0 = vor.u32 %v1140_v44, %v1136_v41  ;;  %v512_v41 = vshll.u32 %v2520_v30, 16  ;;  %185 = vst.msk [vmem:[#allocation2 + $0x30] sm:$0xf0] %vm154_vm2, %v2578_v29 }
  0x69   : > { %1603 = vrot.lane.b32.xlu0 %v1602_v3, %s2589_s26  ;;  %v1231_v3 = vshll.u32 %v2508_v55, 16  ;;  %v495_v55 = vrot.slane %v493_v45, 1  ;;  %219 = vst.msk [vmem:[#allocation2 + $0x30] sm:$0xf0] %vm194_vm3, %v2579_v31 }
  0x6a   : > { %v514_v52 = vrot.slane %v512_v41, 5 }
  0x6b   : > { %v1233_v14 = vrot.slane %v1231_v3, 5  ;;  %v2527_v3 = vld [vmem:[%s2619_s14 + $0x38] ss:$0 sps:$4 sm:$0xff]  }
  0x6c   : > { %1696 = vrot.lane.b32.xlu1 %v1695_v12, %s2589_s26  ;;  %v345_v12 = vrot.slane %v343_v1, 1 }
  0x6d   : > { %1677 = vrot.lane.b32.xlu0 %v1676_v16, %s2589_s26  ;;  %v1214_v16 = vrot.slane %v1212_v4, 1  ;;  %v1234_v28 = vor.u32 %v1233_v14, %v1230_v13  ;;  %v2573_v13 = vld [vmem:[%s2619_s14 + $0x20] ss:$0 sps:$4 sm:$0xff]   ;;  %v2201_v14 = vld [vmem:[%s2619_s14 + $0x18] sm:$0xf] }
  0x6e   : > { %v346_v22 = vor.u32 %v345_v12, %v341_v6  ;;  %v2528_v6 = vld [vmem:[%s2619_s14 + $0x18] ss:$0 sps:$4 sm:$0xff]   ;;  %v2572_v12 = vld [vmem:[%s2619_s14 + $0x20] ss:$0 sps:$4 sm:$0xff]   ;;  %961 = vst.msk [vmem:[#allocation2 + $0x18] sm:$0xf] %vm146_vm0, %v2201_v14 }
  0x6f   : > { %v1215_v32 = vor.u32 %v1214_v16, %v1210_v15  ;;  %v2532_v16 = vld [vmem:[%s2619_s14 + $0x20] ss:$0 sps:$4 sm:$0xff]   ;;  %967 = vst.msk [vmem:[#allocation2 + $0x18] sm:$0xf0] %vm154_vm2, %v2572_v12 }
  0x70   : > { %836 = vrot.lane.b32.xlu1 %v835_v23, %s2589_s26  ;;  %v2517_v23 = vld [vmem:[%s2619_s14 + $0x10] sm:$0x1f]   ;;  %1000 = vst.msk [vmem:[#allocation2 + $0x18] sm:$0xf0] %vm194_vm3, %v2573_v13 }
  0x71   : > { %816 = vrot.lane.b32.xlu0 %v815_v27, %s2589_s26  ;;  %v438_v27 = vshll.u32 %v2516_v18, 16  ;;  %v419_v34 = vshll.u32 %v2517_v23, 16  ;;  %v417_v43 = vshrl.u32 %v2517_v23, 16  ;;  %v2574_v18 = vld [vmem:[%s2619_s14 + $0x40] ss:$0 sps:$4 sm:$0xff]  }
  0x72   : > { %994 = vst.msk [vmem:[#allocation2 + $0x18] sm:$0xf] %vm187_vm1, %v2213_v17  ;;  %v2219_v23 = vld [vmem:[%s2619_s14 + $0x38] sm:$0xf] }
  0x73   : > { %v440_v37 = vrot.slane %v438_v27, 5  ;;  %v421_v44 = vrot.slane %v419_v34, 1  ;;  %984 = vst.msk [vmem:[#allocation2 + $0x38] sm:$0xf0] %vm154_vm2, %v2574_v18  ;;  %v2540_v34 = vld [vmem:[%s2619_s14 + $0x20] sm:$0x1f]  }
  0x74   : > { %911 = vrot.lane.b32.xlu1 %v910_v38, %s2589_s26  ;;  %v2569_v38 = vld [vmem:[%s3094_s1 + $0x30] sm:$0xff]   ;;  %1016 = vst.msk [vmem:[#allocation2 + $0x38] sm:$0xf0] %vm194_vm3, %v2575_v21  ;;  %v1504_v41 = vshrl.u32 %v2540_v34, 16  ;;  %v2549_v21 = vld [vmem:[%s2619_s14 + $0x18] sm:$0x1f]  }
  0x75   : > { %892 = vrot.lane.b32.xlu0 %v891_v40, %s2589_s26  ;;  %v509_v40 = vshrl.u32 %v2520_v30, 16  ;;  %2398 = vmatpush3.bf16.msra.mxu0 %v2569_v38  ;;  %v422_v53 = vor.u32 %v421_v44, %v417_v43  ;;  %v2542_v43 = vld [vmem:[%s2619_s14 + $0x40] sm:$0x1f]   ;;  %v2537_v44 = vld [vmem:[%s2619_s14 + $0x10] ss:$0 sps:$4 sm:$0xff]  }
  0x76   : > { %2439 = vmatpush3.bf16.msra.mxu1 %v2569_v38  ;;  %2399 = vmatprep.subr.bf16.mxu0 %v2570_v46 }
  0x77   : > { %2432 = vmatprep.subr.bf16.mxu1 %v2570_v46  ;;  %v511_v51 = vrot.slane %v509_v40, 4  ;;  %v2536_v40 = vld [vmem:[%s2619_s14 + $0x18] ss:$0 sps:$4 sm:$0xff]  }
  0x78   : > { %1087 = vrot.lane.b32.xlu1 %v1086_v50, %s2588_s15  ;;  %v441_v50 = vor.u32 %v440_v37, %v437_v36  ;;  %v2535_v36 = vld [vmem:[%s2619_s14 + $0x38] ss:$0 sps:$4 sm:$0xff]  }
  0x79   : > { %1068 = vrot.lane.b32.xlu0 %v1067_v54, %s2588_s15  ;;  %v491_v54 = vshrl.u32 %v2521_v35, 16  ;;  %2400 = vmatpush3.bf16.msra.mxu0 %v2571_v48  ;;  %v515_v58 = vor.u32 %v514_v52, %v511_v51  ;;  %v2077_v35 = vld [vmem:[%s2619_s14 + $0x30] sm:$0xf]  ;;  %v2541_v37 = vld [vmem:[%s2619_s14 + $0x18] sm:$0x1f]   ;;  %v1506_v52 = vrot.slane %v1504_v41, 4 }
  0x7a   : > { %2440 = vmatpush3.bf16.msra.mxu1 %v2571_v48  ;;  %v1488_v45 = vshll.u32 %v2541_v37, 16  ;;  %v2543_v46 = vld [vmem:[%s2619_s14 + $0x38] sm:$0x1f]   ;;  %v2539_v51 = vld [vmem:[%s2619_s14 + $0x30] ss:$0 sps:$4 sm:$0xff]  }
  0x7b   : > { %v496_v59 = vor.u32 %v495_v55, %v491_v54  ;;  %v1578_v54 = vshrl.u32 %v2542_v43, 16  ;;  %v1581_v55 = vshll.u32 %v2542_v43, 16 }
  0x7c   : > { %1161 = vrot.lane.b32.xlu1 %v1160_v57, %s2588_s15 }
  0x7d   : > { %1142 = vrot.lane.b32.xlu0 %v1141_v0, %s2588_s15 }
  0x80   : > { %292 = vrot.lane.b32.xlu1 %v291_v7, %s2588_s15  ;;  %v2529_v7 = vld [vmem:[%s2619_s14 + $0x10] ss:$0 sps:$4 sm:$0xff]  }
  0x81   : > { %273 = vrot.lane.b32.xlu0 %v272_v11, %s2588_s15  ;;  %v2531_v11 = vld [vmem:[%s2619_s14 + $0x30] ss:$0 sps:$4 sm:$0xff]  }
  0x84   : > { %366 = vrot.lane.b32.xlu1 %v365_v19, %s2588_s15 }
  0x85   : > { %347 = vrot.lane.b32.xlu0 %v346_v22, %s2588_s15  ;;  %v2207_v22 = vld [vmem:[%s2619_s14 + $0x38] sm:$0xf] }
  0x86   : > { %977 = vst.msk [vmem:[#allocation2 + $0x38] sm:$0xf] %vm146_vm0, %v2207_v22 }
  0x87   : > { %1010 = vst.msk [vmem:[#allocation2 + $0x38] sm:$0xf] %vm187_vm1, %v2219_v23 }
  0x88   : > { %1235 = vrot.lane.b32.xlu1 %v1234_v28, %s2588_s15  ;;  %v2071_v28 = vld [vmem:[%s2619_s14 + $0x10] sm:$0xf] }
  0x89   : > { %1216 = vrot.lane.b32.xlu0 %v1215_v32, %s2588_s15  ;;  %197 = vst.msk [vmem:[#allocation2 + $0x10] sm:$0xf] %vm187_vm1, %v2071_v28  ;;  %v2066_v32 = vld [vmem:[%s2619_s14 + $0x30] sm:$0xf] }
  0x8a   : > { %v1106_v47 = vpop.permute.xlu1 %1105  ;;  %178 = vst.msk [vmem:[#allocation2 + $0x30] sm:$0xf] %vm146_vm0, %v2066_v32  ;;  %vm1986_vm0 = vcmask 60416  }
  0x8b   : > { %1108 = vst.msk [vmem:[#allocation2 + $0x28] sm:$0xf] %vm237_vm4, %v1106_v47  ;;  %v1032_v49 = vpop.permute.xlu0 %1031 }
  0x8c   : > { %1034 = vst.msk [vmem:[#allocation2 + $0x8] sm:$0xf] %vm237_vm4, %v1032_v49  ;;  %1309 = vrot.lane.b32.xlu1 %v1308_v39, %s2588_s15  ;;  %v2538_v49 = vld [vmem:[%s2619_s14 + $0x38] ss:$0 sps:$4 sm:$0xff]  }
  0x8d   : > { %1290 = vrot.lane.b32.xlu0 %v1289_v42, %s2588_s15  ;;  %213 = vst.msk [vmem:[#allocation2 + $0x30] sm:$0xf] %vm187_vm1, %v2077_v35  ;;  %v1507_v42 = vshll.u32 %v2540_v34, 16  ;;  %v2553_v34 = vld [vmem:[%s2619_s14 + $0x38] sm:$0x1f]  }
  0x8e   : > { %v1125_v56 = vpop.permute.xlu1 %1124 }
  0x8f   : > { %1127 = vst.msk [vmem:[#allocation2 + $0x28] sm:$0xf0] %vm257_vm5, %v1125_v56  ;;  %v1051_v57 = vpop.permute.xlu0 %1050  ;;  %v1486_v56 = vshrl.u32 %v2541_v37, 16  ;;  %v1726_v37 = vshrl.u32 %v2552_v25, 16 }
  0x90   : > { %1053 = vst.msk [vmem:[#allocation2 + $0x8] sm:$0xf0] %vm257_vm5, %v1051_v57  ;;  %442 = vrot.lane.b32.xlu1 %v441_v50, %s2588_s15  ;;  %v2544_v50 = vld [vmem:[%s2619_s14 + $0x18] sm:$0x1f]   ;;  %v1490_v57 = vrot.slane %v1488_v45, 1 }
  0x91   : > { %423 = vrot.lane.b32.xlu0 %v422_v53, %s2588_s15  ;;  %v1509_v53 = vrot.slane %v1507_v42, 5  ;;  %v2556_v42 = vld [vmem:[%s2619_s14 + $0x18] sm:$0x1f]  }
  0x92   : > { %v255_v60 = vpop.permute.xlu1 %254 }
  0x93   : > { %258 = vst.msk [vmem:[#allocation2] sm:$0xf0] %vm257_vm5, %v255_v60  ;;  %v235_v61 = vpop.permute.xlu0 %234 }
  0x94   : > { %238 = vst.msk [vmem:[#allocation2] sm:$0xf] %vm237_vm4, %v235_v61  ;;  %516 = vrot.lane.b32.xlu1 %v515_v58, %s2588_s15  ;;  %v1562_v58 = vshll.u32 %v2543_v46, 16 }
  0x95   : > { %497 = vrot.lane.b32.xlu0 %v496_v59, %s2588_s15  ;;  %v2545_v59 = vld [vmem:[%s2619_s14 + $0x10] sm:$0x1f]  }
  0x96   : > { %v330_v0 = vpop.permute.xlu1 %329  ;;  %v699_v18 = vshrl.u32 %v2545_v59, 16 }
  0x97   : > { %332 = vst.msk [vmem:[#allocation2 + $0x20] sm:$0xf0] %vm257_vm5, %v330_v0  ;;  %v311_v1 = vpop.permute.xlu0 %310  ;;  %v1510_v0 = vor.u32 %v1509_v53, %v1506_v52  ;;  %v867_v53 = vshrl.u32 %v2556_v42, 16 }
  0x98   : > { %313 = vst.msk [vmem:[#allocation2 + $0x20] sm:$0xf] %vm237_vm4, %v311_v1  ;;  %1341 = vrot.lane.b32.xlu1 %v2524_v62, %s2588_s15  ;;  %v717_v62 = vshrl.u32 %v2544_v50, 16  ;;  %v1580_v1 = vrot.slane %v1578_v54, 4  ;;  %v870_v54 = vshll.u32 %v2556_v42, 16 }
  0x99   : > { %1333 = vrot.lane.b32.xlu0 %v2525_v63, %s2588_s15  ;;  %v720_v63 = vshll.u32 %v2544_v50, 16  ;;  %v1728_v50 = vrot.slane %v1726_v37, 4 }
  0x9a   : > { %v1199_v4 = vpop.permute.xlu1 %1198 }
  0x9b   : > { %1201 = vst.msk [vmem:[#allocation2 + $0x8] sm:$0xf0] %vm407_vm6, %v1199_v4  ;;  %v1180_v5 = vpop.permute.xlu0 %1179  ;;  %v1491_v4 = vor.u32 %v1490_v57, %v1486_v56  ;;  %v722_v12 = vrot.slane %v720_v63, 5  ;;  %v1708_v57 = vshrl.u32 %v2553_v34, 16 }
  0x9c   : > { %1182 = vst.msk [vmem:[#allocation2 + $0x8] sm:$0xf] %vm387_vm7, %v1180_v5  ;;  %1373 = vrot.lane.b32.xlu1 %v2526_v2, %s2588_s15  ;;  %v1583_v2 = vrot.slane %v1581_v55, 5  ;;  %v1560_v5 = vshrl.u32 %v2543_v46, 16  ;;  %v1710_v46 = vshll.u32 %v2553_v34, 16 }
  0x9d   : > { %1365 = vrot.lane.b32.xlu0 %v2527_v3, %s2588_s15  ;;  %v2546_v3 = vld [vmem:[%s2619_s14 + $0x38] sm:$0x1f]  }
  0x9e   : > { %v1273_v8 = vpop.permute.xlu1 %1272  ;;  %v1584_v13 = vor.u32 %v1583_v2, %v1580_v1  ;;  %v791_v14 = vshrl.u32 %v2546_v3, 16  ;;  %v2560_v55 = vld [vmem:[%s2619_s14 + $0x38] sm:$0x1f]   ;;  %v872_v1 = vrot.slane %v870_v54, 5 }
  0x9f   : > { %1275 = vst.msk [vmem:[#allocation2 + $0x28] sm:$0xf0] %vm407_vm6, %v1273_v8  ;;  %v1254_v10 = vpop.permute.xlu0 %1253  ;;  %v2547_v8 = vld [vmem:[%s2619_s14 + $0x30] sm:$0x1f]   ;;  %v941_v2 = vshrl.u32 %v2560_v55, 16 }
  0xa0   : > { %1256 = vst.msk [vmem:[#allocation2 + $0x28] sm:$0xf] %vm387_vm7, %v1254_v10  ;;  %550 = vrot.lane.b32.xlu1 %v2528_v6, %s2588_s15  ;;  %v1564_v6 = vrot.slane %v1562_v58, 1  ;;  %v793_v26 = vrot.slane %v791_v14, 4  ;;  %v773_v31 = vshrl.u32 %v2547_v8, 16  ;;  %v1712_v58 = vrot.slane %v1710_v46, 1 }
  0xa1   : > { %542 = vrot.lane.b32.xlu0 %v2529_v7, %s2588_s15  ;;  %v701_v7 = vshll.u32 %v2545_v59, 16 }
  0xa2   : > { %v405_v15 = vpop.permute.xlu1 %404  ;;  %v1565_v17 = vor.u32 %v1564_v6, %v1560_v5 }
  0xa3   : > { %408 = vst.msk [vmem:[#allocation2] sm:$0xf0] %vm407_vm6, %v405_v15  ;;  %v385_v19 = vpop.permute.xlu0 %384  ;;  %v794_v15 = vshll.u32 %v2546_v3, 16  ;;  %v944_v3 = vshll.u32 %v2560_v55, 16 }
  0xa4   : > { %388 = vst.msk [vmem:[#allocation2] sm:$0xf] %vm387_vm7, %v385_v19  ;;  %582 = vrot.lane.b32.xlu1 %v2530_v9, %s2588_s15  ;;  %v703_v19 = vrot.slane %v701_v7, 1 }
  0xa5   : > { %574 = vrot.lane.b32.xlu0 %v2531_v11, %s2588_s15  ;;  %v719_v11 = vrot.slane %v717_v62, 4 }
  0xa6   : > { %v480_v27 = vpop.permute.xlu1 %479 }
  0xa7   : > { %482 = vst.msk [vmem:[#allocation2 + $0x20] sm:$0xf0] %vm407_vm6, %v480_v27  ;;  %v461_v30 = vpop.permute.xlu0 %460  ;;  %v723_v24 = vor.u32 %v722_v12, %v719_v11  ;;  %v796_v27 = vrot.slane %v794_v15, 5  ;;  %v943_v11 = vrot.slane %v941_v2, 4  ;;  %v946_v12 = vrot.slane %v944_v3, 5 }
  0xa8   : > { %463 = vst.msk [vmem:[#allocation2 + $0x20] sm:$0xf] %vm387_vm7, %v461_v30  ;;  %1405 = vrot.lane.b32.xlu1 %v2532_v16, %s2588_s15  ;;  %v2548_v16 = vld [vmem:[%s2619_s14 + $0x20] sm:$0x1f]   ;;  %v704_v30 = vor.u32 %v703_v19, %v699_v18 }
  0xa9   : > { %1397 = vrot.lane.b32.xlu0 %v2533_v20, %s2588_s15  ;;  %v775_v20 = vshll.u32 %v2547_v8, 16  ;;  %v1652_v28 = vshrl.u32 %v2548_v16, 16  ;;  %v1655_v29 = vshll.u32 %v2548_v16, 16  ;;  %v947_v18 = vor.u32 %v946_v12, %v943_v11 }
  0xaa   : > { %v1326_v38 = vpop.permute.xlu1 %1325 }
  0xab   : > { %1328 = vst.msk [vmem:[#allocation2 + $0x8] sm:$0xf0] %vm536_vm8, %v1326_v38  ;;  %v1318_v39 = vpop.permute.xlu0 %1317  ;;  %v777_v32 = vrot.slane %v775_v20, 1  ;;  %v1729_v38 = vshll.u32 %v2552_v25, 16  ;;  %v1657_v41 = vrot.slane %v1655_v29, 5 }
  0xac   : > { %1320 = vst.msk [vmem:[#allocation2 + $0x8] sm:$0xf] %vm527_vm9, %v1318_v39  ;;  %1437 = vrot.lane.b32.xlu1 %v2534_v33, %s2588_s15  ;;  %v1636_v33 = vshll.u32 %v2549_v21, 16  ;;  %v797_v39 = vor.u32 %v796_v27, %v793_v26 }
  0xad   : > { %1429 = vrot.lane.b32.xlu0 %v2535_v36, %s2588_s15  ;;  %v778_v43 = vor.u32 %v777_v32, %v773_v31 }
  0xae   : > { %v1358_v47 = vpop.permute.xlu1 %1357  ;;  %v1638_v45 = vrot.slane %v1636_v33, 1 }
  0xaf   : > { %1360 = vst.msk [vmem:[#allocation2 + $0x28] sm:$0xf0] %vm536_vm8, %v1358_v47  ;;  %v1350_v48 = vpop.permute.xlu0 %1349  ;;  %v2557_v47 = vld [vmem:[%s2619_s14 + $0x10] sm:$0x1f]  }
  0xb0   : > { %1352 = vst.msk [vmem:[#allocation2 + $0x28] sm:$0xf] %vm527_vm9, %v1350_v48  ;;  %616 = vrot.lane.b32.xlu1 %v2536_v40, %s2588_s15  ;;  %v1654_v40 = vrot.slane %v1652_v28, 4  ;;  %v851_v59 = vshll.u32 %v2557_v47, 16  ;;  %v849_v5 = vshrl.u32 %v2557_v47, 16 }
  0xb1   : > { %608 = vrot.lane.b32.xlu0 %v2537_v44, %s2588_s15  ;;  %v1634_v44 = vshrl.u32 %v2549_v21, 16 }
  0xb2   : > { %v534_v60 = vpop.permute.xlu1 %533  ;;  %v1658_v52 = vor.u32 %v1657_v41, %v1654_v40  ;;  %v853_v6 = vrot.slane %v851_v59, 1 }
  0xb3   : > { %537 = vst.msk [vmem:[#allocation2] sm:$0xf0] %vm536_vm8, %v534_v60  ;;  %v525_v61 = vpop.permute.xlu0 %524  ;;  %v1639_v56 = vor.u32 %v1638_v45, %v1634_v44  ;;  %v2561_v60 = vld [vmem:[%s2619_s14 + $0x30] sm:$0x1f]   ;;  %s2376_s14 = sshll.u32 %s3097_s10, 5 }
  0xb4   : > { %528 = vst.msk [vmem:[#allocation2] sm:$0xf] %vm527_vm9, %v525_v61  ;;  %648 = vrot.lane.b32.xlu1 %v2538_v49, %s2588_s15  ;;  %v925_v7 = vshll.u32 %v2561_v60, 16  ;;  %v923_v14 = vshrl.u32 %v2561_v60, 16 }
  0xb5   : > { %640 = vrot.lane.b32.xlu0 %v2539_v51, %s2588_s15  ;;  %v1731_v51 = vrot.slane %v1729_v38, 5 }
  0xb6   : > { %v567_v9 = vpop.permute.xlu1 %566  ;;  %v927_v15 = vrot.slane %v925_v7, 1 }
  0xb7   : > { %569 = vst.msk [vmem:[#allocation2 + $0x20] sm:$0xf0] %vm536_vm8, %v567_v9  ;;  %v559_v10 = vpop.permute.xlu0 %558  ;;  %v1732_v63 = vor.u32 %v1731_v51, %v1728_v50 }
  0xb8   : > { %561 = vst.msk [vmem:[#allocation2 + $0x20] sm:$0xf] %vm527_vm9, %v559_v10  ;;  %1511 = vrot.lane.b32.xlu1 %v1510_v0, %s2589_s26  ;;  %v869_v0 = vrot.slane %v867_v53, 4  ;;  %v928_v19 = vor.u32 %v927_v15, %v923_v14 }
  0xb9   : > { %1492 = vrot.lane.b32.xlu0 %v1491_v4, %s2589_s26  ;;  %v1713_v4 = vor.u32 %v1712_v58, %v1708_v57 }
  0xba   : > { %v1390_v22 = vpop.permute.xlu1 %1389  ;;  %v873_v10 = vor.u32 %v872_v1, %v869_v0 }
  0xbb   : > { %1392 = vst.msk [vmem:[#allocation2 + $0x8] sm:$0xf0] %vm602_vm10, %v1390_v22  ;;  %v1382_v23 = vpop.permute.xlu0 %1381 }
  0xbc   : > { %1384 = vst.msk [vmem:[#allocation2 + $0x8] sm:$0xf] %vm593_vm11, %v1382_v23  ;;  %1585 = vrot.lane.b32.xlu1 %v1584_v13, %s2589_s26  ;;  %v854_v13 = vor.u32 %v853_v6, %v849_v5 }
  0xbd   : > { %1566 = vrot.lane.b32.xlu0 %v1565_v17, %s2589_s26 }
  0xbe   : > { %v1422_v35 = vpop.permute.xlu1 %1421 }
  0xbf   : > { %1424 = vst.msk [vmem:[#allocation2 + $0x28] sm:$0xf0] %vm602_vm10, %v1422_v35  ;;  %v1414_v36 = vpop.permute.xlu0 %1413 }
  0xc0   : > { %1416 = vst.msk [vmem:[#allocation2 + $0x28] sm:$0xf] %vm593_vm11, %v1414_v36  ;;  %724 = vrot.lane.b32.xlu1 %v723_v24, %s2589_s26 }
  0xc1   : > { %705 = vrot.lane.b32.xlu0 %v704_v30, %s2589_s26 }
  0xc2   : > { %v600_v48 = vpop.permute.xlu1 %599 }
  0xc3   : > { %603 = vst.msk [vmem:[#allocation2] sm:$0xf0] %vm602_vm10, %v600_v48  ;;  %v591_v49 = vpop.permute.xlu0 %590 }
  0xc4   : > { %594 = vst.msk [vmem:[#allocation2] sm:$0xf] %vm593_vm11, %v591_v49  ;;  %798 = vrot.lane.b32.xlu1 %v797_v39, %s2589_s26 }
  0xc5   : > { %779 = vrot.lane.b32.xlu0 %v778_v43, %s2589_s26 }
  0xc6   : > { %v633_v61 = vpop.permute.xlu1 %632 }
  0xc7   : > { %635 = vst.msk [vmem:[#allocation2 + $0x20] sm:$0xf0] %vm602_vm10, %v633_v61  ;;  %v625_v62 = vpop.permute.xlu0 %624 }
  0xc8   : > { %627 = vst.msk [vmem:[#allocation2 + $0x20] sm:$0xf] %vm593_vm11, %v625_v62  ;;  %1659 = vrot.lane.b32.xlu1 %v1658_v52, %s2589_s26 }
  0xc9   : > { %1640 = vrot.lane.b32.xlu0 %v1639_v56, %s2589_s26 }
  0xca   : > { %v1475_v8 = vpop.permute.xlu1 %1474 }
  0xcb   : > { %1477 = vst.msk [vmem:[#allocation2 + $0x8] sm:$0xf0] %vm689_vm12, %v1475_v8  ;;  %v1456_v9 = vpop.permute.xlu0 %1455 }
  0xcc   : > { %1458 = vst.msk [vmem:[#allocation2 + $0x8] sm:$0xf] %vm669_vm13, %v1456_v9  ;;  %1733 = vrot.lane.b32.xlu1 %v1732_v63, %s2589_s26 }
  0xcd   : > { %1714 = vrot.lane.b32.xlu0 %v1713_v4, %s2589_s26 }
  0xce   : > { %v1549_v16 = vpop.permute.xlu1 %1548 }
  0xcf   : > { %1551 = vst.msk [vmem:[#allocation2 + $0x28] sm:$0xf0] %vm689_vm12, %v1549_v16  ;;  %v1530_v17 = vpop.permute.xlu0 %1529 }
  0xd0   : > { %1532 = vst.msk [vmem:[#allocation2 + $0x28] sm:$0xf] %vm669_vm13, %v1530_v17  ;;  %874 = vrot.lane.b32.xlu1 %v873_v10, %s2589_s26 }
  0xd1   : > { %855 = vrot.lane.b32.xlu0 %v854_v13, %s2589_s26 }
  0xd2   : > { %v687_v20 = vpop.permute.xlu1 %686 }
  0xd3   : > { %690 = vst.msk [vmem:[#allocation2] sm:$0xf0] %vm689_vm12, %v687_v20  ;;  %v667_v21 = vpop.permute.xlu0 %666 }
  0xd4   : > { %670 = vst.msk [vmem:[#allocation2] sm:$0xf] %vm669_vm13, %v667_v21  ;;  %948 = vrot.lane.b32.xlu1 %v947_v18, %s2589_s26 }
  0xd5   : > { %929 = vrot.lane.b32.xlu0 %v928_v19, %s2589_s26  ;;  %s3072_s26 = scalar_lea.vmem %s3095_s2, %s2376_s14 }
  0xd6   : > { %v762_v22 = vpop.permute.xlu1 %761 }
  0xd7   : > { %764 = vst.msk [vmem:[#allocation2 + $0x20] sm:$0xf0] %vm689_vm12, %v762_v22  ;;  %v743_v23 = vpop.permute.xlu0 %742 }
  0xd8   : > { %745 = vst.msk [vmem:[#allocation2 + $0x20] sm:$0xf] %vm669_vm13, %v743_v23 }
  0xda   : > { %v1623_v24 = vpop.permute.xlu1 %1622 }
  0xdb   : > { %1625 = vst.msk [vmem:[#allocation2 + $0x8] sm:$0xf0] %vm839_vm14, %v1623_v24  ;;  %v1604_v25 = vpop.permute.xlu0 %1603 }
  0xdc   : > { %1606 = vst.msk [vmem:[#allocation2 + $0x8] sm:$0xf] %vm819_vm15, %v1604_v25 }
  0xde   : > { %v1697_v26 = vpop.permute.xlu1 %1696 }
  0xdf   : > { %1699 = vst.msk [vmem:[#allocation2 + $0x28] sm:$0xf0] %vm839_vm14, %v1697_v26  ;;  %v1678_v27 = vpop.permute.xlu0 %1677 }
  0xe0   : > { %1680 = vst.msk [vmem:[#allocation2 + $0x28] sm:$0xf] %vm819_vm15, %v1678_v27 }
  0xe2   : > { %v837_v28 = vpop.permute.xlu1 %836 }
  0xe3   : > { %840 = vst.msk [vmem:[#allocation2] sm:$0xf0] %vm839_vm14, %v837_v28  ;;  %v817_v29 = vpop.permute.xlu0 %816  ;;  %v1738_v30 = vld [vmem:[#allocation2 + $0x8] sm:$0xff] }
  0xe4   : > { %820 = vst.msk [vmem:[#allocation2] sm:$0xf] %vm819_vm15, %v817_v29  ;;  %1905 = vmatprep.mubr.bf16.mxu0 %v1738_v30 }
  0xe6   : > { %v912_v31 = vpop.permute.xlu1 %911 }
  0xe7   : > { %914 = vst.msk [vmem:[#allocation2 + $0x20] sm:$0xf0] %vm839_vm14, %v912_v31  ;;  %v893_v32 = vpop.permute.xlu0 %892  ;;  %v1742_v33 = vld [vmem:[#allocation2 + $0x28] sm:$0xff] }
  0xe8   : > { %895 = vst.msk [vmem:[#allocation2 + $0x20] sm:$0xf] %vm819_vm15, %v893_v32  ;;  %1921 = vmatprep.mubr.bf16.mxu1 %v1742_v33 }
  0xea   : > { %v1088_v34 = vpop.permute.xlu1 %1087 }
  0xeb   : > { %1090 = vst.msk [vmem:[#allocation2 + $0x18] sm:$0xf0] %vm257_vm5, %v1088_v34  ;;  %v1069_v35 = vpop.permute.xlu0 %1068  ;;  %v1737_v36 = vld [vmem:[#allocation2] sm:$0xff] }
  0xec   : > { %1071 = vst.msk [vmem:[#allocation2 + $0x18] sm:$0xf] %vm237_vm4, %v1069_v35  ;;  %1906 = vmatmul.mubr.bf16.vlgmr.msra.gmra.mrb[0].mxu0 %v1737_v36 }
  0xee   : > { %v1162_v37 = vpop.permute.xlu1 %1161 }
  0xef   : > { %1164 = vst.msk [vmem:[#allocation2 + $0x38] sm:$0xf0] %vm257_vm5, %v1162_v37  ;;  %v1143_v38 = vpop.permute.xlu0 %1142  ;;  %v1741_v39 = vld [vmem:[#allocation2 + $0x20] sm:$0xff] }
  0xf0   : > { %1145 = vst.msk [vmem:[#allocation2 + $0x38] sm:$0xf] %vm237_vm4, %v1143_v38  ;;  %1922 = vmatmul.mubr.bf16.vlgmr.msra.gmra.mrb[0].mxu1 %v1741_v39 }
  0xf2   : > { %v293_v40 = vpop.permute.xlu1 %292 }
  0xf3   : > { %295 = vst.msk [vmem:[#allocation2 + $0x10] sm:$0xf0] %vm257_vm5, %v293_v40  ;;  %v274_v41 = vpop.permute.xlu0 %273 }
  0xf4   : > { %276 = vst.msk [vmem:[#allocation2 + $0x10] sm:$0xf] %vm237_vm4, %v274_v41 }
  0xf6   : > { %v367_v42 = vpop.permute.xlu1 %366 }
  0xf7   : > { %369 = vst.msk [vmem:[#allocation2 + $0x30] sm:$0xf0] %vm257_vm5, %v367_v42  ;;  %v348_v43 = vpop.permute.xlu0 %347 }
  0xf8   : > { %350 = vst.msk [vmem:[#allocation2 + $0x30] sm:$0xf] %vm237_vm4, %v348_v43 }
  0xfa   : > { %v1236_v44 = vpop.permute.xlu1 %1235 }
  0xfb   : > { %1238 = vst.msk [vmem:[#allocation2 + $0x18] sm:$0xf0] %vm407_vm6, %v1236_v44  ;;  %v1217_v45 = vpop.permute.xlu0 %1216 }
  0xfc   : > { %1219 = vst.msk [vmem:[#allocation2 + $0x18] sm:$0xf] %vm387_vm7, %v1217_v45 }
  0xfe   : > { %v1310_v46 = vpop.permute.xlu1 %1309 }
  0xff   : > { %1312 = vst.msk [vmem:[#allocation2 + $0x38] sm:$0xf0] %vm407_vm6, %v1310_v46  ;;  %v1291_v47 = vpop.permute.xlu0 %1290 }
 0x100   : > { %1293 = vst.msk [vmem:[#allocation2 + $0x38] sm:$0xf] %vm387_vm7, %v1291_v47 }
 0x102   : > { %v443_v48 = vpop.permute.xlu1 %442 }
 0x103   : > { %445 = vst.msk [vmem:[#allocation2 + $0x10] sm:$0xf0] %vm407_vm6, %v443_v48  ;;  %v424_v49 = vpop.permute.xlu0 %423 }
 0x104   : > { %426 = vst.msk [vmem:[#allocation2 + $0x10] sm:$0xf] %vm387_vm7, %v424_v49 }
 0x106   : > { %v517_v50 = vpop.permute.xlu1 %516 }
 0x107   : > { %519 = vst.msk [vmem:[#allocation2 + $0x30] sm:$0xf0] %vm407_vm6, %v517_v50  ;;  %v498_v51 = vpop.permute.xlu0 %497 }
 0x108   : > { %500 = vst.msk [vmem:[#allocation2 + $0x30] sm:$0xf] %vm387_vm7, %v498_v51 }
 0x10a   : > { %v1342_v52 = vpop.permute.xlu1 %1341 }
 0x10b   : > { %1344 = vst.msk [vmem:[#allocation2 + $0x18] sm:$0xf0] %vm536_vm8, %v1342_v52  ;;  %v1334_v53 = vpop.permute.xlu0 %1333 }
 0x10c   : > { %1336 = vst.msk [vmem:[#allocation2 + $0x18] sm:$0xf] %vm527_vm9, %v1334_v53 }
 0x10e   : > { %v1374_v54 = vpop.permute.xlu1 %1373 }
 0x10f   : > { %1376 = vst.msk [vmem:[#allocation2 + $0x38] sm:$0xf0] %vm536_vm8, %v1374_v54  ;;  %v1366_v55 = vpop.permute.xlu0 %1365 }
 0x110   : > { %1368 = vst.msk [vmem:[#allocation2 + $0x38] sm:$0xf] %vm527_vm9, %v1366_v55 }
 0x112   : > { %v551_v56 = vpop.permute.xlu1 %550 }
 0x113   : > { %553 = vst.msk [vmem:[#allocation2 + $0x10] sm:$0xf0] %vm536_vm8, %v551_v56  ;;  %v543_v57 = vpop.permute.xlu0 %542 }
 0x114   : > { %545 = vst.msk [vmem:[#allocation2 + $0x10] sm:$0xf] %vm527_vm9, %v543_v57 }
 0x116   : > { %v583_v58 = vpop.permute.xlu1 %582 }
 0x117   : > { %585 = vst.msk [vmem:[#allocation2 + $0x30] sm:$0xf0] %vm536_vm8, %v583_v58  ;;  %v575_v59 = vpop.permute.xlu0 %574 }
 0x118   : > { %577 = vst.msk [vmem:[#allocation2 + $0x30] sm:$0xf] %vm527_vm9, %v575_v59 }
 0x11a   : > { %v1406_v60 = vpop.permute.xlu1 %1405 }
 0x11b   : > { %1408 = vst.msk [vmem:[#allocation2 + $0x18] sm:$0xf0] %vm602_vm10, %v1406_v60  ;;  %v1398_v61 = vpop.permute.xlu0 %1397 }
 0x11c   : > { %1400 = vst.msk [vmem:[#allocation2 + $0x18] sm:$0xf] %vm593_vm11, %v1398_v61 }
 0x11e   : > { %v1438_v62 = vpop.permute.xlu1 %1437 }
 0x11f   : > { %1440 = vst.msk [vmem:[#allocation2 + $0x38] sm:$0xf0] %vm602_vm10, %v1438_v62  ;;  %v1430_v63 = vpop.permute.xlu0 %1429 }
 0x120   : > { %1432 = vst.msk [vmem:[#allocation2 + $0x38] sm:$0xf] %vm593_vm11, %v1430_v63 }
 0x122   : > { %v617_v0 = vpop.permute.xlu1 %616 }
 0x123   : > { %619 = vst.msk [vmem:[#allocation2 + $0x10] sm:$0xf0] %vm602_vm10, %v617_v0  ;;  %v609_v1 = vpop.permute.xlu0 %608 }
 0x124   : > { %611 = vst.msk [vmem:[#allocation2 + $0x10] sm:$0xf] %vm593_vm11, %v609_v1 }
 0x126   : > { %v649_v2 = vpop.permute.xlu1 %648 }
 0x127   : > { %651 = vst.msk [vmem:[#allocation2 + $0x30] sm:$0xf0] %vm602_vm10, %v649_v2  ;;  %v641_v3 = vpop.permute.xlu0 %640 }
 0x128   : > { %643 = vst.msk [vmem:[#allocation2 + $0x30] sm:$0xf] %vm593_vm11, %v641_v3 }
 0x12a   : > { %v1512_v4 = vpop.permute.xlu1 %1511 }
 0x12b   : > { %1514 = vst.msk [vmem:[#allocation2 + $0x18] sm:$0xf0] %vm689_vm12, %v1512_v4  ;;  %v1493_v5 = vpop.permute.xlu0 %1492 }
 0x12c   : > { %1495 = vst.msk [vmem:[#allocation2 + $0x18] sm:$0xf] %vm669_vm13, %v1493_v5 }
 0x12e   : > { %v1586_v6 = vpop.permute.xlu1 %1585 }
 0x12f   : > { %1588 = vst.msk [vmem:[#allocation2 + $0x38] sm:$0xf0] %vm689_vm12, %v1586_v6  ;;  %v1567_v7 = vpop.permute.xlu0 %1566 }
 0x130   : > { %1569 = vst.msk [vmem:[#allocation2 + $0x38] sm:$0xf] %vm669_vm13, %v1567_v7 }
 0x132   : > { %v725_v8 = vpop.permute.xlu1 %724 }
 0x133   : > { %727 = vst.msk [vmem:[#allocation2 + $0x10] sm:$0xf0] %vm689_vm12, %v725_v8  ;;  %v706_v9 = vpop.permute.xlu0 %705 }
 0x134   : > { %708 = vst.msk [vmem:[#allocation2 + $0x10] sm:$0xf] %vm669_vm13, %v706_v9 }
 0x136   : > { %v799_v10 = vpop.permute.xlu1 %798 }
 0x137   : > { %801 = vst.msk [vmem:[#allocation2 + $0x30] sm:$0xf0] %vm689_vm12, %v799_v10  ;;  %v780_v11 = vpop.permute.xlu0 %779 }
 0x138   : > { %782 = vst.msk [vmem:[#allocation2 + $0x30] sm:$0xf] %vm669_vm13, %v780_v11 }
 0x13a   : > { %v1660_v12 = vpop.permute.xlu1 %1659 }
 0x13b   : > { %1662 = vst.msk [vmem:[#allocation2 + $0x18] sm:$0xf0] %vm839_vm14, %v1660_v12  ;;  %v1641_v13 = vpop.permute.xlu0 %1640 }
 0x13c   : > { %1643 = vst.msk [vmem:[#allocation2 + $0x18] sm:$0xf] %vm819_vm15, %v1641_v13 }
 0x13e   : > { %v1734_v14 = vpop.permute.xlu1 %1733 }
 0x13f   : > { %1736 = vst.msk [vmem:[#allocation2 + $0x38] sm:$0xf0] %vm839_vm14, %v1734_v14  ;;  %v1715_v15 = vpop.permute.xlu0 %1714 }
 0x140   : > { %1717 = vst.msk [vmem:[#allocation2 + $0x38] sm:$0xf] %vm819_vm15, %v1715_v15 }
 0x142   : > { %v875_v16 = vpop.permute.xlu1 %874 }
 0x143   : > { %877 = vst.msk [vmem:[#allocation2 + $0x10] sm:$0xf0] %vm839_vm14, %v875_v16  ;;  %v856_v17 = vpop.permute.xlu0 %855  ;;  %v1740_v18 = vld [vmem:[#allocation2 + $0x18] sm:$0xff] }
 0x144   : > { %858 = vst.msk [vmem:[#allocation2 + $0x10] sm:$0xf] %vm819_vm15, %v856_v17  ;;  %1913 = vmatprep.mubr.bf16.mxu0 %v1740_v18 }
 0x146   : > { %v949_v19 = vpop.permute.xlu1 %948 }
 0x147   : > { %951 = vst.msk [vmem:[#allocation2 + $0x30] sm:$0xf0] %vm839_vm14, %v949_v19  ;;  %v930_v20 = vpop.permute.xlu0 %929  ;;  %v1744_v21 = vld [vmem:[#allocation2 + $0x38] sm:$0xff] }
 0x148   : > { %932 = vst.msk [vmem:[#allocation2 + $0x30] sm:$0xf] %vm819_vm15, %v930_v20  ;;  %1929 = vmatprep.mubr.bf16.mxu1 %v1744_v21 }
 0x14b   : > { %v1739_v22 = vld [vmem:[#allocation2 + $0x10] sm:$0xff] }
 0x14c   : > { %1914 = vmatmul.mubr.bf16.gmra.mrb[4].mxu0 %v1739_v22 }
 0x14f   : > { %v1743_v23 = vld [vmem:[#allocation2 + $0x30] sm:$0xff] }
 0x150   : > { %1930 = vmatmul.mubr.bf16.gmra.mrb[4].mxu1 %v1743_v23 }
 0x1bf   : > { %v2401_v24 = vpop.f32.mrb[0].mxu0 }
 0x1c0   : > { %v2402_v25 = vpop.f32.mrb[1].mxu0 }
 0x1c1   : > { %v2403_v26 = vadd.f32 %v2402_v25, %v2401_v24  ;;  %v2404_v27 = vpop.f32.mrb[2].mxu0 }
 0x1c2   : > { %v2405_v28 = vpop.f32.mrb[3].mxu0 }
 0x1c3   : > { %v1938_v29 = vmul.f32 0.2, %v2403_v26  ;;  %v2406_v30 = vadd.f32 %v2405_v28, %v2404_v27  ;;  %v2413_v31 = vpop.f32.mrb[0].mxu1 }
 0x1c4   : > { %v2414_v32 = vpop.f32.mrb[1].mxu1 }
 0x1c5   : > { %v1946_v33 = vmax.f32 %v2403_v26, %v1938_v29  ;;  %v1939_v34 = vmul.f32 0.2, %v2406_v30  ;;  %v2415_v35 = vadd.f32 %v2414_v32, %v2413_v31  ;;  %v2416_v36 = vpop.f32.mrb[2].mxu1 }
 0x1c6   : > { %v2417_v37 = vpop.f32.mrb[3].mxu1 }
 0x1c7   : > { %v2377_v38 = vpack.c.bf16 %v1946_v33, %v1946_v33  ;;  %v1947_v39 = vmax.f32 %v2406_v30, %v1939_v34  ;;  %v1942_v40 = vmul.f32 0.2, %v2415_v35  ;;  %v2418_v41 = vadd.f32 %v2417_v37, %v2416_v36 }
 0x1c9   : > { %1987 = vst.msk [vmem:[%s3072_s26] sm:$0xf] %vm1986_vm0, %v2377_v38  ;;  %v2378_v42 = vpack.c.bf16 %v1947_v39, %v1947_v39  ;;  %v1950_v43 = vmax.f32 %v2415_v35, %v1942_v40  ;;  %v1943_v44 = vmul.f32 0.2, %v2418_v41 }
 0x1cb   : > { %1988 = vst.msk [vmem:[%s3072_s26 + $0x4] sm:$0xf] %vm1986_vm0, %v2378_v42  ;;  %v2381_v45 = vpack.c.bf16 %v1950_v43, %v1950_v43  ;;  %v1951_v46 = vmax.f32 %v2418_v41, %v1943_v44 }
 0x1cd   : > { %1991 = vst.msk [vmem:[%s3072_s26 + $0x10] sm:$0xf] %vm1986_vm0, %v2381_v45  ;;  %v2382_v47 = vpack.c.bf16 %v1951_v46, %v1951_v46 }
 0x1cf   : > { %1992 = vst.msk [vmem:[%s3072_s26 + $0x14] sm:$0xf] %vm1986_vm0, %v2382_v47 }
 0x21f   : > { %v2407_v48 = vpop.f32.mrb[4].mxu0 }
 0x220   : > { %v2408_v49 = vpop.f32.mrb[5].mxu0 }
 0x221   : > { %v2409_v50 = vadd.f32 %v2408_v49, %v2407_v48  ;;  %v2410_v51 = vpop.f32.mrb[6].mxu0 }
 0x222   : > { %v2411_v52 = vpop.f32.mrb[7].mxu0 }
 0x223   : > { %v1940_v53 = vmul.f32 0.2, %v2409_v50  ;;  %v2412_v54 = vadd.f32 %v2411_v52, %v2410_v51  ;;  %v2419_v55 = vpop.f32.mrb[4].mxu1 }
 0x224   : > { %v2420_v56 = vpop.f32.mrb[5].mxu1 }
 0x225   : > { %v1948_v57 = vmax.f32 %v2409_v50, %v1940_v53  ;;  %v1941_v58 = vmul.f32 0.2, %v2412_v54  ;;  %v2421_v59 = vadd.f32 %v2420_v56, %v2419_v55  ;;  %v2422_v60 = vpop.f32.mrb[6].mxu1 }
 0x226   : > { %v2423_v61 = vpop.f32.mrb[7].mxu1 }
 0x227   : > { %v2379_v62 = vpack.c.bf16 %v1948_v57, %v1948_v57  ;;  %v1949_v63 = vmax.f32 %v2412_v54, %v1941_v58  ;;  %v1944_v0 = vmul.f32 0.2, %v2421_v59  ;;  %v2424_v1 = vadd.f32 %v2423_v61, %v2422_v60 }
 0x229   : > { %1989 = vst.msk [vmem:[%s3072_s26 + $0x8] sm:$0xf] %vm1986_vm0, %v2379_v62  ;;  %v2380_v2 = vpack.c.bf16 %v1949_v63, %v1949_v63  ;;  %v1952_v3 = vmax.f32 %v2421_v59, %v1944_v0  ;;  %v1945_v4 = vmul.f32 0.2, %v2424_v1 }
 0x22b   : > { %1990 = vst.msk [vmem:[%s3072_s26 + $0xc] sm:$0xf] %vm1986_vm0, %v2380_v2  ;;  %v2383_v5 = vpack.c.bf16 %v1952_v3, %v1952_v3  ;;  %v1953_v6 = vmax.f32 %v2424_v1, %v1945_v4 }
 0x22d   : > { %1993 = vst.msk [vmem:[%s3072_s26 + $0x18] sm:$0xf] %vm1986_vm0, %v2383_v5  ;;  %v2384_v7 = vpack.c.bf16 %v1953_v6, %v1953_v6 }
 0x22f   : > { %1994 = vst.msk [vmem:[%s3072_s26 + $0x1c] sm:$0xf] %vm1986_vm0, %v2384_v7 }
 0x230 PF: > { %s12_s9 = sadd.s32 1, %s2586_s9  }
 0x231   : > { %p9_p4 = scmp.ge.s32.totalorder %s12_s9, 4  }
 0x233   :  { %11 = sbr.rel (!%p9_p4) target bundleno = 1 (0x1), region = 66 }

// kernel: discriminator_forward.12
= control target key start
LH: loop header
LB: loop body
LE: loop exit
PB: predicated region body
PF: predicated region fallthrough
CT: control target
= control target key end

     0   :  { %s941_s12 = smov 0   ;;  %s943_s13 = smov 0   ;;  %s1096_s0 = inlined_call_operand.vmem [shape: bf16[2,3,3,144], index: 0, kind: input, shape index: {}]   ;;  %s1097_s1 = inlined_call_operand.vmem [shape: bf16[256,32], index: 1, kind: input, shape index: {}]   ;;  %s1098_s2 = inlined_call_operand.vmem [shape: bf16[2,4,32], index: 2, kind: output, shape index: {0}]   ;;  %s1099_s3 = inlined_call_operand.vmem [shape: f32[2,2,32], index: 3, kind: output, shape index: {1}]  }
   0x1   :  { %s945_s14 = smov 0  }
   0x2 LB: > { %s26_s15 = sadd.s32 1, %s908_s13  ;;  %p777_p0 = scmp.ge.s32.totalorder %s912_s14, 1  ;;  %s912_s14 = sphi %s945_s14, %s14_s14   ;;  %s908_s13 = sphi %s943_s13, %s1101_s13   ;;  %s904_s12 = sphi %s941_s12, %s1100_s12  }
   0x3   : > { %p28_p1 = scmp.ge.s32.totalorder %s26_s15, 2  ;;  %p158_p2 = scmp.lt.s32.totalorder %s912_s14, 3 }
   0x5   : > { %s1103_s15 = smov (%p28_p1, %s26_s15), 0  ;;  %p159_p3 = pnand %p777_p0, %p158_p2 }
   0x6   : > { %p188_p4 = scmp.lt.s32.totalorder (!%p159_p3), %s904_s12, 1  ;;  %s914_s20 = smov (!%p159_p3), 32   ;;  %vm206_vm0 = vcmask (!%p159_p3), 122880   ;;  %vm216_vm1 = vcmask (!%p159_p3), 254080   ;;  %vm225_vm2 = vcmask (!%p159_p3), 385280   ;;  %vm213_vm3 = vcmask (!%p159_p3), 123905  }
   0x7   : > { %162 = sbr.rel (%p159_p3) target bundleno = 427 (0x1ab), region = 28  ;;  %s915_s21 = smov (!%p159_p3), 48   ;;  %vm222_vm4 = vcmask (!%p159_p3), 255105   ;;  %vm231_vm5 = vcmask (!%p159_p3), 386305   ;;  %v874_v46 = vld [vmem:[%s1097_s1 + $0x40] sm:$0xff] (!%p159_p3)   ;;  %v876_v48 = vld [vmem:[%s1097_s1 + $0x48] sm:$0xff] (!%p159_p3)  }
   0x8   : > { %s916_s22 = smov (!%p159_p3), 80   ;;  %v875_v47 = vld [vmem:[%s1097_s1] sm:$0xff] (!%p159_p3)   ;;  %820 = vmatprep.subr.bf16.mxu0 (!%p159_p3), %v874_v46  ;;  %s917_s29 = smov (!%p159_p3), 16   ;;  %v877_v53 = vld [vmem:[%s1097_s1 + $0x8] sm:$0xff] (!%p159_p3)   ;;  %v878_v54 = vld [vmem:[%s1097_s1 + $0x50] sm:$0xff] (!%p159_p3)   ;;  %vm259_vm6 = vcmask (!%p159_p3), 517505  }
   0x9   : > { %821 = vmatpush3.bf16.msra.mxu0 (!%p159_p3), %v875_v47  ;;  %v879_v57 = vld [vmem:[%s1097_s1 + $0x10] sm:$0xff] (!%p159_p3)   ;;  %s918_s9 = smov (!%p159_p3), 64   ;;  %v880_v60 = vld [vmem:[%s1097_s1 + $0x58] sm:$0xff] (!%p159_p3)   ;;  %s919_s7 = smov (!%p159_p3), 112   ;;  %vm246_vm7 = vcmask (!%p159_p3), 516480   ;;  %vm274_vm8 = vcmask (!%p159_p3), 648705  }
   0xa   : > { %822 = vmatprep.subr.bf16.mxu0 (!%p159_p3), %v876_v48  ;;  %vm266_vm9 = vcmask (!%p159_p3), 647680   ;;  %vm289_vm10 = vcmask (!%p159_p3), 779905   ;;  %vm281_vm11 = vcmask (!%p159_p3), 778880   ;;  %vm304_vm12 = vcmask (!%p159_p3), 911105  }
   0xb   : > { %vm296_vm13 = vcmask (!%p159_p3), 910080   ;;  %vm332_vm14 = vcmask (!%p159_p3), 1042305   ;;  %vm319_vm15 = vcmask (!%p159_p3), 1041280  }
   0xd   : > { %823 = vmatpush3.bf16.msra.mxu0 (!%p159_p3), %v877_v53 }
   0xe   : > { %s1105_s12 = smov (!%p188_p4, %s904_s12), 1  ;;  %824 = vmatprep.subr.bf16.mxu0 %v878_v54 }
   0xf   : > { %s842_s16 = smul.u32 12, %s1105_s12  ;;  %s779_s8 = sshll.u32 %s1105_s12, 1 }
  0x10   : > { %s1077_s11 = scalar_lea.vmem %s1099_s3, %s779_s8  ;;  %s198_s18 = scalar_lea.vmem %s1098_s2, %s779_s8 }
  0x11   : > { %s965_s19 = scalar_lea.vmem %s1096_s0, %s842_s16  ;;  %825 = vmatpush3.bf16.msra.mxu0 %v879_v57 }
  0x12   : > { %v347_v0 = vld [vmem:[%s965_s19] sm:$0x1]  ;;  %v790_v2 = vld [vmem:[%s965_s19 + $0x4] sm:$0x1]  ;;  %v791_v4 = vld [vmem:[%s965_s19 + $0x6] sm:$0x1]  ;;  %826 = vmatprep.subr.bf16.mxu0 %v880_v60 }
  0x13   : > { %v334_v1 = vld [vmem:[%s965_s19] sm:$0x1]  ;;  %349 = vrot.lane.b32.xlu1 %v347_v0, %s914_s20  ;;  %v355_v3 = vrot.slane %v790_v2, 7  ;;  %v360_v5 = vld [vmem:[%s965_s19 + $0x2] sm:$0x1]  ;;  %v368_v8 = vrot.slane %v791_v4, 7 }
  0x14   : > { %336 = vrot.lane.b32.xlu0 %v334_v1, %s914_s20  ;;  %v789_v6 = vld [vmem:[%s965_s19 + $0x4] sm:$0x1]  ;;  %v233_v11 = vld [vmem:[%s965_s19] sm:$0x3]  ;;  %v794_v43 = vld [vmem:[%s965_s19 + $0x8] sm:$0x1] }
  0x15   : > { %v784_v7 = vld [vmem:[%s965_s19 + $0x4] sm:$0x3]  ;;  %v342_v9 = vrot.slane %v789_v6, 7  ;;  %v235_v12 = vshrl.u32 %v233_v11, 16  ;;  %v238_v13 = vshll.u32 %v233_v11, 16  ;;  %v408_v51 = vrot.slane %v794_v43, 7 }
  0x16   : > { %v250_v10 = vshrl.u32 %v784_v7, 16  ;;  %v792_v14 = vld [vmem:[%s965_s19 + $0x4] sm:$0x3]  ;;  %v373_v15 = vld [vmem:[%s965_s19] sm:$0x3]  ;;  %v253_v17 = vshll.u32 %v784_v7, 16 }
  0x17   : > { %356 = vrot.lane.b32.xlu1 %v355_v3, %s914_s20  ;;  %v389_v18 = vshrl.u32 %v792_v14, 16  ;;  %v375_v19 = vshrl.u32 %v373_v15, 16  ;;  %v237_v20 = vrot.slane %v235_v12, 6  ;;  %v240_v21 = vrot.slane %v238_v13, 7  ;;  %v785_v33 = vld [vmem:[%s965_s19 + $0x4] sm:$0x1] }
  0x18   : > { %362 = vrot.lane.b32.xlu0 %v360_v5, %s914_s20  ;;  %v252_v16 = vrot.slane %v250_v10, 7  ;;  %v378_v22 = vshll.u32 %v373_v15, 16  ;;  %v392_v28 = vshll.u32 %v792_v14, 16  ;;  %v205_v34 = vld [vmem:[%s965_s19] sm:$0x1]  ;;  %v270_v39 = vrot.slane %v785_v33, 7 }
  0x19   : > { %v377_v23 = vrot.slane %v375_v19, 6  ;;  %v241_v24 = vor.u32 %v240_v21, %v237_v20  ;;  %v391_v27 = vrot.slane %v389_v18, 7  ;;  %207 = vst.msk [vmem:[#allocation2] sm:$0x1] %vm206_vm0, %v205_v34  ;;  %v215_v35 = vld [vmem:[%s965_s19] sm:$0x1] }
  0x1a   : > { %v380_v25 = vrot.slane %v378_v22, 7  ;;  %v255_v26 = vor.u32 %v253_v17, %v252_v16  ;;  %v261_v36 = vld [vmem:[%s965_s19] sm:$0x1]  ;;  %217 = vst.msk [vmem:[#allocation2] sm:$0x1] %vm216_vm1, %v215_v35  ;;  %v881_v3 = vld [vmem:[%s1097_s1 + $0x18] sm:$0xff]  }
  0x1b   : > { %369 = vrot.lane.b32.xlu1 %v368_v8, %s914_s20  ;;  %v242_v29 = vrot.slane %v241_v24, 2  ;;  %v394_v31 = vor.u32 %v392_v28, %v391_v27  ;;  %v781_v37 = vld [vmem:[%s965_s19 + $0x4] sm:$0x1]  ;;  %v224_v42 = vld [vmem:[%s965_s19] sm:$0x1]  ;;  %827 = vmatpush3.bf16.msra.mxu0 %v881_v3  ;;  %v884_v15 = vld [vmem:[%s1097_s1 + $0x68] sm:$0xff]  }
  0x1c   : > { %343 = vrot.lane.b32.xlu0 %v342_v9, %s914_s20  ;;  %v381_v30 = vor.u32 %v380_v25, %v377_v23  ;;  %v782_v38 = vld [vmem:[%s965_s19 + $0x4] sm:$0x1]  ;;  %v211_v40 = vrot.slane %v781_v37, 7  ;;  %226 = vst.msk [vmem:[#allocation2] sm:$0x1] %vm225_vm2, %v224_v42  ;;  %v885_v24 = vld [vmem:[%s1097_s1 + $0x28] sm:$0xff]  }
  0x1d   : > { %v783_v41 = vld [vmem:[%s965_s19 + $0x4] sm:$0x1]  ;;  %v220_v44 = vrot.slane %v782_v38, 7  ;;  %v796_v52 = vld [vmem:[%s965_s19 + $0x8] sm:$0x1]  ;;  %v886_v25 = vld [vmem:[%s1097_s1 + $0x70] sm:$0xff]  }
  0x1e   : > { %v382_v32 = vrot.slane %v381_v30, 2  ;;  %v229_v45 = vrot.slane %v783_v41, 7  ;;  %214 = vst.msk [vmem:[#allocation2] sm:$0x2] %vm213_vm3, %v211_v40  ;;  %v793_v49 = vld [vmem:[%s965_s19 + $0x4] sm:$0x1] }
  0x1f   : > { %256 = vrot.lane.b32.xlu1 %v255_v26, %s915_s21  ;;  %v786_v50 = vld [vmem:[%s965_s19 + $0x4] sm:$0x1]  ;;  %223 = vst.msk [vmem:[#allocation2] sm:$0x2] %vm222_vm4, %v220_v44  ;;  %v276_v55 = vld [vmem:[%s965_s19] sm:$0x1] }
  0x20   : > { %243 = vrot.lane.b32.xlu0 %v242_v29, %s915_s21  ;;  %232 = vst.msk [vmem:[#allocation2] sm:$0x2] %vm231_vm5, %v229_v45  ;;  %v306_v56 = vld [vmem:[%s965_s19] sm:$0x3]  ;;  %v285_v58 = vrot.slane %v786_v50, 7  ;;  %v421_v59 = vrot.slane %v796_v52, 7 }
  0x21   : > { %v787_v61 = vld [vmem:[%s965_s19 + $0x4] sm:$0x1]  ;;  %v308_v63 = vshrl.u32 %v306_v56, 16  ;;  %v311_v0 = vshll.u32 %v306_v56, 16  ;;  %v798_v6 = vld [vmem:[%s965_s19 + $0x8] sm:$0x1] }
  0x22   : > { %v788_v62 = vld [vmem:[%s965_s19 + $0x4] sm:$0x3]  ;;  %v300_v5 = vrot.slane %v787_v61, 7  ;;  %v800_v10 = vld [vmem:[%s965_s19 + $0x8] sm:$0x3]  ;;  %v434_v16 = vrot.slane %v798_v6, 7 }
  0x23   : > { %395 = vrot.lane.b32.xlu1 %v394_v31, %s916_s22  ;;  %v795_v1 = vld [vmem:[%s965_s19 + $0x4] sm:$0x1]  ;;  %v323_v7 = vshrl.u32 %v788_v62, 16  ;;  %v310_v8 = vrot.slane %v308_v63, 6  ;;  %v313_v9 = vrot.slane %v311_v0, 7  ;;  %v326_v17 = vshll.u32 %v788_v62, 16 }
  0x24   : > { %383 = vrot.lane.b32.xlu0 %v382_v32, %s916_s22  ;;  %v799_v2 = vld [vmem:[%s965_s19 + $0x4] sm:$0x3]  ;;  %v291_v13 = vld [vmem:[%s965_s19] sm:$0x1]  ;;  %v455_v18 = vshrl.u32 %v800_v10, 16  ;;  %v458_v26 = vshll.u32 %v800_v10, 16 }
  0x25   : > { %v882_v4 = vld [vmem:[%s1097_s1 + $0x60] sm:$0xff]   ;;  %v441_v11 = vshrl.u32 %v799_v2, 16  ;;  %v444_v12 = vshll.u32 %v799_v2, 16  ;;  %v325_v19 = vrot.slane %v323_v7, 7  ;;  %v314_v20 = vor.u32 %v313_v9, %v310_v8  ;;  %v887_v31 = vld [vmem:[%s1097_s1 + $0x30] sm:$0xff]   ;;  %v888_v32 = vld [vmem:[%s1097_s1 + $0x78] sm:$0xff]  }
  0x26   : > { %v883_v14 = vld [vmem:[%s1097_s1 + $0x20] sm:$0xff]   ;;  %828 = vmatprep.subr.bf16.mxu0 %v882_v4  ;;  %v457_v29 = vrot.slane %v455_v18, 7  ;;  %v889_v35 = vld [vmem:[%s1097_s1 + $0x38] sm:$0xff]   ;;  %v920_v0 = vmov 0.0  }
  0x27   : > { %271 = vrot.lane.b32.xlu1 %v270_v39, %s917_s29  ;;  %v443_v21 = vrot.slane %v441_v11, 6  ;;  %v446_v22 = vrot.slane %v444_v12, 7  ;;  %v797_v23 = vld [vmem:[%s965_s19 + $0x4] sm:$0x1]  ;;  %829 = vmatpush3.bf16.msra.mxu0 %v883_v14  ;;  %v328_v27 = vor.u32 %v326_v17, %v325_v19  ;;  %v315_v28 = vrot.slane %v314_v20, 2 }
  0x28   : > { %263 = vrot.lane.b32.xlu0 %v261_v36, %s917_s29  ;;  %830 = vmatprep.subr.bf16.mxu0 %v884_v15  ;;  %v460_v33 = vor.u32 %v458_v26, %v457_v29 }
  0x29   : > { %v447_v30 = vor.u32 %v446_v22, %v443_v21 }
  0x2b   : > { %409 = vrot.lane.b32.xlu1 %v408_v51, %s918_s9  ;;  %831 = vmatpush3.bf16.msra.mxu0 %v885_v24  ;;  %v448_v34 = vrot.slane %v447_v30, 2 }
  0x2c   : > { %401 = vrot.lane.b32.xlu0 %v793_v49, %s918_s9  ;;  %832 = vmatprep.subr.bf16.mxu0 %v886_v25 }
  0x2f   : > { %286 = vrot.lane.b32.xlu1 %v285_v58, %s917_s29  ;;  %833 = vmatpush3.bf16.msra.mxu0 %v887_v31 }
  0x30   : > { %278 = vrot.lane.b32.xlu0 %v276_v55, %s917_s29  ;;  %834 = vmatprep.subr.bf16.mxu0 %v888_v32 }
  0x33   : > { %422 = vrot.lane.b32.xlu1 %v421_v59, %s918_s9  ;;  %835 = vmatpush3.bf16.msra.mxu0 %v889_v35 }
  0x34   : > { %415 = vrot.lane.b32.xlu0 %v795_v1, %s918_s9 }
  0x37   : > { %301 = vrot.lane.b32.xlu1 %v300_v5, %s917_s29 }
  0x38   : > { %293 = vrot.lane.b32.xlu0 %v291_v13, %s917_s29 }
  0x3b   : > { %435 = vrot.lane.b32.xlu1 %v434_v16, %s918_s9 }
  0x3c   : > { %428 = vrot.lane.b32.xlu0 %v797_v23, %s918_s9 }
  0x3f   : > { %329 = vrot.lane.b32.xlu1 %v328_v27, %s918_s9 }
  0x40   : > { %316 = vrot.lane.b32.xlu0 %v315_v28, %s918_s9 }
  0x43   : > { %461 = vrot.lane.b32.xlu1 %v460_v33, %s919_s7 }
  0x44   : > { %449 = vrot.lane.b32.xlu0 %v448_v34, %s919_s7 }
  0x85   : > { %v350_v36 = vpop.permute.xlu1 %349 }
  0x86   : > { %v337_v37 = vpop.permute.xlu0 %336 }
  0x87   : > { %339 = vst.msk [vmem:[#allocation2 + $0x2] sm:$0x1] %vm206_vm0, %v337_v37  ;;  %vm649_vm0 = vcmask 254976  }
  0x88   : > { %352 = vst.msk [vmem:[#allocation2 + $0x2] sm:$0x1] %vm216_vm1, %v350_v36  ;;  %vm652_vm1 = vcmask 257024  }
  0x89   : > { %v357_v38 = vpop.permute.xlu1 %356  ;;  %650 = vst.msk [vmem:[%s1077_s11] sm:$0x3] %vm649_vm0, %v920_v0 }
  0x8a   : > { %v363_v39 = vpop.permute.xlu0 %362 }
  0x8b   : > { %365 = vst.msk [vmem:[#allocation2 + $0x2] sm:$0x1] %vm225_vm2, %v363_v39  ;;  %vm661_vm2 = vcmask 253952  }
  0x8d   : > { %v370_v40 = vpop.permute.xlu1 %369 }
  0x8e   : > { %v344_v41 = vpop.permute.xlu0 %343 }
  0x8f   : > { %346 = vst.msk [vmem:[#allocation2 + $0x2] sm:$0x2] %vm213_vm3, %v344_v41 }
  0x90   : > { %359 = vst.msk [vmem:[#allocation2 + $0x2] sm:$0x2] %vm222_vm4, %v357_v38  ;;  %v651_v19 = vld [vmem:[%s1077_s11] sm:$0x1]  ;;  %v663_v22 = vld [vmem:[%s1077_s11 + $0x1] sm:$0x1] }
  0x91   : > { %372 = vst.msk [vmem:[#allocation2 + $0x2] sm:$0x2] %vm231_vm5, %v370_v40  ;;  %v257_v42 = vpop.permute.xlu1 %256 }
  0x92   : > { %v244_v43 = vpop.permute.xlu0 %243  ;;  %260 = vst.msk [vmem:[#allocation2] sm:$0x2] %vm259_vm6, %v257_v42 }
  0x93   : > { %247 = vst.msk [vmem:[#allocation2] sm:$0x1] %vm246_vm7, %v244_v43 }
  0x95   : > { %v396_v44 = vpop.permute.xlu1 %395 }
  0x96   : > { %v384_v45 = vpop.permute.xlu0 %383  ;;  %398 = vst.msk [vmem:[#allocation2 + $0x2] sm:$0x2] %vm259_vm6, %v396_v44 }
  0x97   : > { %386 = vst.msk [vmem:[#allocation2 + $0x2] sm:$0x1] %vm246_vm7, %v384_v45 }
  0x99   : > { %v272_v46 = vpop.permute.xlu1 %271 }
  0x9a   : > { %v264_v47 = vpop.permute.xlu0 %263  ;;  %275 = vst.msk [vmem:[#allocation2] sm:$0x2] %vm274_vm8, %v272_v46 }
  0x9b   : > { %267 = vst.msk [vmem:[#allocation2] sm:$0x1] %vm266_vm9, %v264_v47 }
  0x9d   : > { %v410_v48 = vpop.permute.xlu1 %409 }
  0x9e   : > { %v402_v49 = vpop.permute.xlu0 %401  ;;  %412 = vst.msk [vmem:[#allocation2 + $0x2] sm:$0x2] %vm274_vm8, %v410_v48 }
  0x9f   : > { %404 = vst.msk [vmem:[#allocation2 + $0x2] sm:$0x1] %vm266_vm9, %v402_v49 }
  0xa1   : > { %v287_v50 = vpop.permute.xlu1 %286 }
  0xa2   : > { %v279_v51 = vpop.permute.xlu0 %278  ;;  %290 = vst.msk [vmem:[#allocation2] sm:$0x2] %vm289_vm10, %v287_v50 }
  0xa3   : > { %282 = vst.msk [vmem:[#allocation2] sm:$0x1] %vm281_vm11, %v279_v51 }
  0xa5   : > { %v423_v52 = vpop.permute.xlu1 %422 }
  0xa6   : > { %v416_v53 = vpop.permute.xlu0 %415  ;;  %425 = vst.msk [vmem:[#allocation2 + $0x2] sm:$0x2] %vm289_vm10, %v423_v52 }
  0xa7   : > { %418 = vst.msk [vmem:[#allocation2 + $0x2] sm:$0x1] %vm281_vm11, %v416_v53 }
  0xa9   : > { %v302_v54 = vpop.permute.xlu1 %301 }
  0xaa   : > { %v294_v55 = vpop.permute.xlu0 %293  ;;  %305 = vst.msk [vmem:[#allocation2] sm:$0x2] %vm304_vm12, %v302_v54 }
  0xab   : > { %297 = vst.msk [vmem:[#allocation2] sm:$0x1] %vm296_vm13, %v294_v55 }
  0xad   : > { %v436_v56 = vpop.permute.xlu1 %435 }
  0xae   : > { %v429_v57 = vpop.permute.xlu0 %428  ;;  %438 = vst.msk [vmem:[#allocation2 + $0x2] sm:$0x2] %vm304_vm12, %v436_v56 }
  0xaf   : > { %431 = vst.msk [vmem:[#allocation2 + $0x2] sm:$0x1] %vm296_vm13, %v429_v57 }
  0xb1   : > { %v330_v58 = vpop.permute.xlu1 %329 }
  0xb2   : > { %v317_v59 = vpop.permute.xlu0 %316  ;;  %333 = vst.msk [vmem:[#allocation2] sm:$0x2] %vm332_vm14, %v330_v58 }
  0xb3   : > { %320 = vst.msk [vmem:[#allocation2] sm:$0x1] %vm319_vm15, %v317_v59 }
  0xb5   : > { %v462_v60 = vpop.permute.xlu1 %461 }
  0xb6   : > { %v450_v61 = vpop.permute.xlu0 %449  ;;  %464 = vst.msk [vmem:[#allocation2 + $0x2] sm:$0x2] %vm332_vm14, %v462_v60 }
  0xb7   : > { %452 = vst.msk [vmem:[#allocation2 + $0x2] sm:$0x1] %vm319_vm15, %v450_v61 }
  0xbe   : > { %v801_v62 = vld.sshfl [vmem:[#allocation2] sm:$0x33 pattern:$0x76325410] }
  0xbf   : > { %v506_v63 = vcombine.high %v801_v62, %v801_v62 }
  0xc1   : > { %637 = vmatprep.mubr.bf16.mxu0 %v506_v63 }
  0xc2   : > { %638 = vmatmul.mubr.bf16.vlgmr.msra.gmra.mrb[0].mxu0 %v801_v62 }
 0x195   : > { %v836_v1 = vpop.f32.mrb[0].mxu0 }
 0x196   : > { %v837_v2 = vpop.f32.mrb[1].mxu0 }
 0x197   : > { %v838_v3 = vadd.f32 %v837_v2, %v836_v1  ;;  %v839_v4 = vpop.f32.mrb[2].mxu0 }
 0x198   : > { %v840_v5 = vpop.f32.mrb[3].mxu0 }
 0x199   : > { %v653_v6 = vsel %vm652_vm1, %v838_v3, 0.0  ;;  %v664_v7 = vmul.f32 %v838_v3, %v838_v3  ;;  %v674_v8 = vpack.c.bf16 %v838_v3, %v838_v3 }
 0x19a   : > { %v654_v9 = vrot.slane %v653_v6, 4 }
 0x19b   : > { %v665_v10 = vsel %vm652_vm1, %v664_v7, 0.0  ;;  %676 = vst.msk [vmem:[%s198_s18] sm:$0x3] %vm649_vm0, %v674_v8 }
 0x19c   : > { %v655_v11 = vadd.f32 %v654_v9, %v653_v6  ;;  %v666_v12 = vrot.slane %v665_v10, 4 }
 0x19e   : > { %v656_v13 = vrot.slane %v655_v11, 2  ;;  %v667_v14 = vadd.f32 %v666_v12, %v665_v10 }
 0x1a0   : > { %v657_v15 = vadd.f32 %v656_v13, %v655_v11  ;;  %v668_v16 = vrot.slane %v667_v14, 2 }
 0x1a2   : > { %v658_v17 = vrot.slane %v657_v15, 1  ;;  %v669_v18 = vadd.f32 %v668_v16, %v667_v14 }
 0x1a4   : > { %v659_v20 = vadd.f32 %v658_v17, %v657_v15  ;;  %v670_v21 = vrot.slane %v669_v18, 1 }
 0x1a6   : > { %v660_v23 = vadd.f32 %v659_v20, %v651_v19  ;;  %v671_v24 = vadd.f32 %v670_v21, %v669_v18 }
 0x1a8   : > { %662 = vst.msk [vmem:[%s1077_s11] sm:$0x1] %vm661_vm2, %v660_v23  ;;  %v672_v25 = vadd.f32 %v671_v24, %v663_v22 }
 0x1aa   : > { %673 = vst.msk [vmem:[%s1077_s11 + $0x1] sm:$0x1] %vm661_vm2, %v672_v25 }
 0x1ab PF: > { %s14_s14 = sadd.s32 1, %s912_s14   ;;  %s1100_s12 = smov %s908_s13 }
 0x1ac   : > { %p11_p5 = scmp.ge.s32.totalorder %s14_s14, 4   ;;  %s1101_s13 = smov %s1103_s15 }
 0x1ae   :  { %13 = sbr.rel (!%p11_p5) target bundleno = 2 (0x2), region = 76 }

// kernel: discriminator_forward.14
= control target key start
LH: loop header
LB: loop body
LE: loop exit
PB: predicated region body
PF: predicated region fallthrough
CT: control target
= control target key end

     0   :  { %s1010_s12 = smov 0   ;;  %s1012_s13 = smov 0   ;;  %s1222_s0 = inlined_call_operand.vmem [shape: bf16[2,2,2,288], index: 0, kind: input, shape index: {}]   ;;  %s1223_s1 = inlined_call_operand.vmem [shape: bf16[512,64], index: 1, kind: input, shape index: {}]   ;;  %s1224_s2 = inlined_call_operand.vmem [shape: bf16[2,1,64], index: 2, kind: output, shape index: {0}]   ;;  %s1225_s3 = inlined_call_operand.vmem [shape: f32[2,2,64], index: 3, kind: output, shape index: {1}]  }
   0x1   :  { %s1014_s14 = smov 0  }
   0x2 LB: > { %s26_s15 = sadd.s32 1, %s979_s13  ;;  %p810_p0 = scmp.ge.s32.totalorder %s983_s14, 1  ;;  %s983_s14 = sphi %s1014_s14, %s14_s14   ;;  %s979_s13 = sphi %s1012_s13, %s1235_s13   ;;  %s975_s12 = sphi %s1010_s12, %s1234_s12  }
   0x3   : > { %p28_p1 = scmp.ge.s32.totalorder %s26_s15, 2  ;;  %p157_p2 = scmp.lt.s32.totalorder %s983_s14, 3 }
   0x5   : > { %s1237_s15 = smov (%p28_p1, %s26_s15), 0  ;;  %p158_p3 = pnand %p810_p0, %p157_p2 }
   0x6   : > { %p185_p4 = scmp.lt.s32.totalorder (!%p158_p3), %s975_s12, 1  ;;  %vm202_vm0 = vsmask.f32 (!%p158_p3), 256  ;;  %vm201_vm1 = vcmask (!%p158_p3), 253952   ;;  %v929_v0 = vld [vmem:[%s1223_s1 + $0x40] sm:$0xff] (!%p158_p3)   ;;  %s985_s22 = smov (!%p158_p3), 32  }
   0x7   : > { %161 = sbr.rel (%p158_p3) target bundleno = 403 (0x193), region = 28  ;;  %vm1044_vm2 = vmand (!%p158_p3), %vm201_vm1, %vm202_vm0  ;;  %v305_v4 = vld [vmem:[#allocation2 + $0x3] sm:$0x1] (!%p158_p3)  ;;  %v204_v7 = vld [vmem:[#allocation2] sm:$0x1] (!%p158_p3)  ;;  %855 = vmatprep.subr.bf16.mxu0 (!%p158_p3), %v929_v0  ;;  %s986_s25 = smov (!%p158_p3), 64  }
   0x8   : > { %v930_v13 = vld [vmem:[%s1223_s1] sm:$0xff] (!%p158_p3)   ;;  %vm208_vm3 = vcmask (!%p158_p3), 516352   ;;  %v933_v19 = vld [vmem:[%s1223_s1 + $0x48] sm:$0xff] (!%p158_p3)   ;;  %vm214_vm5 = vcmask (!%p158_p3), 778752   ;;  %v937_v29 = vld [vmem:[%s1223_s1 + $0x50] sm:$0xff] (!%p158_p3)   ;;  %s987_s17 = smov (!%p158_p3), 96  }
   0x9   : > { %v931_v16 = vld [vmem:[%s1223_s1 + $0xc0] sm:$0xff] (!%p158_p3)   ;;  %856 = vmatpush3.bf16.msra.mxu0 (!%p158_p3), %v930_v13  ;;  %v934_v22 = vld [vmem:[%s1223_s1 + $0x8] sm:$0xff] (!%p158_p3)   ;;  %vm1079_vm4 = vmand (!%p158_p3), %vm208_vm3, %vm202_vm0  ;;  %vm228_vm7 = vcmask (!%p158_p3), 1041152   ;;  %vm698_vm9 = vcmask (!%p158_p3), 517120   ;;  %vm703_vm10 = vcmask (!%p158_p3), 516096  }
   0xa   : > { %v932_v18 = vld [vmem:[%s1223_s1 + $0x80] sm:$0xff] (!%p158_p3)   ;;  %877 = vmatprep.subr.bf16.mxu1 (!%p158_p3), %v931_v16  ;;  %857 = vmatprep.subr.bf16.mxu0 (!%p158_p3), %v933_v19  ;;  %v935_v27 = vld [vmem:[%s1223_s1 + $0xc8] sm:$0xff] (!%p158_p3)   ;;  %vm1094_vm6 = vmand (!%p158_p3), %vm214_vm5, %vm202_vm0 }
   0xb   : > { %878 = vmatpush3.bf16.msra.mxu1 (!%p158_p3), %v932_v18  ;;  %v936_v28 = vld [vmem:[%s1223_s1 + $0x88] sm:$0xff] (!%p158_p3)   ;;  %v938_v35 = vld [vmem:[%s1223_s1 + $0x10] sm:$0xff] (!%p158_p3)   ;;  %v941_v39 = vld [vmem:[%s1223_s1 + $0x58] sm:$0xff] (!%p158_p3)  }
   0xc   : > { %879 = vmatprep.subr.bf16.mxu1 (!%p158_p3), %v935_v27  ;;  %v939_v37 = vld [vmem:[%s1223_s1 + $0xd0] sm:$0xff] (!%p158_p3)   ;;  %v942_v41 = vld [vmem:[%s1223_s1 + $0x18] sm:$0xff] (!%p158_p3)   ;;  %v945_v46 = vld [vmem:[%s1223_s1 + $0x60] sm:$0xff] (!%p158_p3)  }
   0xd   : > { %858 = vmatpush3.bf16.msra.mxu0 (!%p158_p3), %v934_v22  ;;  %v940_v38 = vld [vmem:[%s1223_s1 + $0x90] sm:$0xff] (!%p158_p3)   ;;  %v943_v43 = vld [vmem:[%s1223_s1 + $0xd8] sm:$0xff] (!%p158_p3)   ;;  %v946_v49 = vld [vmem:[%s1223_s1 + $0x20] sm:$0xff] (!%p158_p3)  }
   0xe   : > { %s1239_s12 = smov (!%p185_p4, %s975_s12), 1  ;;  %859 = vmatprep.subr.bf16.mxu0 %v937_v29  ;;  %v944_v44 = vld [vmem:[%s1223_s1 + $0x98] sm:$0xff]   ;;  %v947_v51 = vld [vmem:[%s1223_s1 + $0xe0] sm:$0xff]   ;;  %v949_v53 = vld [vmem:[%s1223_s1 + $0x68] sm:$0xff]  }
   0xf   : > { %s899_s16 = smul.u32 6, %s1239_s12  ;;  %880 = vmatpush3.bf16.msra.mxu1 %v936_v28  ;;  %v948_v52 = vld [vmem:[%s1223_s1 + $0xa0] sm:$0xff]   ;;  %v950_v54 = vld [vmem:[%s1223_s1 + $0x28] sm:$0xff]   ;;  %v953_v57 = vld [vmem:[%s1223_s1 + $0x70] sm:$0xff]   ;;  %s193_s26 = scalar_lea.vmem %s1224_s2, %s1239_s12 }
  0x10   : > { %881 = vmatprep.subr.bf16.mxu1 %v939_v37  ;;  %v951_v55 = vld [vmem:[%s1223_s1 + $0xe8] sm:$0xff]   ;;  %v954_v58 = vld [vmem:[%s1223_s1 + $0x30] sm:$0xff]   ;;  %v957_v61 = vld [vmem:[%s1223_s1 + $0x78] sm:$0xff]  }
  0x11   : > { %s1034_s19 = scalar_lea.vmem %s1222_s0, %s899_s16  ;;  %860 = vmatpush3.bf16.msra.mxu0 %v938_v35  ;;  %v952_v56 = vld [vmem:[%s1223_s1 + $0xa8] sm:$0xff]   ;;  %v955_v59 = vld [vmem:[%s1223_s1 + $0xf0] sm:$0xff]   ;;  %v958_v62 = vld [vmem:[%s1223_s1 + $0x38] sm:$0xff]  }
  0x12   : > { %v233_v1 = vld [vmem:[%s1034_s19] sm:$0x1]  ;;  %v241_v2 = vld [vmem:[%s1034_s19 + $0x1] sm:$0x1]  ;;  %v815_v8 = vld [vmem:[%s1034_s19 + $0x3] sm:$0x1]  ;;  %861 = vmatprep.subr.bf16.mxu0 %v941_v39 }
  0x13   : > { %235 = vrot.lane.b32.xlu0 %v233_v1, %s985_s22  ;;  %243 = vrot.lane.b32.xlu1 %v241_v2, %s985_s22  ;;  %v267_v5 = vld [vmem:[%s1034_s19 + $0x1] sm:$0x1]  ;;  %v283_v10 = vld [vmem:[%s1034_s19 + $0x2] sm:$0x1]  ;;  %v306_v11 = vsel %vm1044_vm2, %v815_v8, %v305_v4  ;;  %vm1185_vm8 = vmand %vm228_vm7, %vm202_vm0 }
  0x14   : > { %v275_v6 = vld [vmem:[%s1034_s19 + $0x1] sm:$0x1]  ;;  %v200_v12 = vld [vmem:[%s1034_s19] sm:$0x1]  ;;  %307 = vst [vmem:[#allocation2 + $0x3] sm:$0x1] %v306_v11  ;;  %882 = vmatpush3.bf16.msra.mxu1 %v940_v38  ;;  %vm712_vm11 = vmand %vm703_vm10, %vm202_vm0 }
  0x15   : > { %v249_v9 = vld [vmem:[%s1034_s19 + $0x1] sm:$0x1]  ;;  %v219_v14 = vld [vmem:[%s1034_s19] sm:$0x1]  ;;  %v205_v15 = vsel %vm1044_vm2, %v200_v12, %v204_v7  ;;  %v818_v20 = vld [vmem:[%s1034_s19 + $0x3] sm:$0x1]  ;;  %862 = vmatpush3.bf16.msra.mxu0 %v942_v41  ;;  %883 = vmatprep.subr.bf16.mxu1 %v943_v43 }
  0x16   : > { %v291_v17 = vld [vmem:[%s1034_s19 + $0x1] sm:$0x1]  ;;  %206 = vst [vmem:[#allocation2] sm:$0x1] %v205_v15  ;;  %v816_v21 = vld [vmem:[%s1034_s19 + $0x3] sm:$0x1]  ;;  %863 = vmatprep.subr.bf16.mxu0 %v945_v46 }
  0x17   : > { %269 = vrot.lane.b32.xlu0 %v267_v5, %s986_s25  ;;  %277 = vrot.lane.b32.xlu1 %v275_v6, %s986_s25  ;;  %v221_v23 = vshrl.u32 %v219_v14, 16  ;;  %v293_v24 = vshrl.u32 %v291_v17, 16  ;;  %v207_v26 = vld [vmem:[%s1034_s19] sm:$0x1]  ;;  %v318_v32 = vshrl.u32 %v818_v20, 16  ;;  %v956_v60 = vld [vmem:[%s1223_s1 + $0xb0] sm:$0xff]  }
  0x18   : > { %v817_v40 = vld [vmem:[%s1034_s19 + $0x3] sm:$0x1]  ;;  %v213_v42 = vld [vmem:[%s1034_s19] sm:$0x1]  ;;  %884 = vmatpush3.bf16.msra.mxu1 %v944_v44  ;;  %v959_v63 = vld [vmem:[%s1223_s1 + $0xf8] sm:$0xff]  }
  0x19   : > { %864 = vmatpush3.bf16.msra.mxu0 %v946_v49  ;;  %885 = vmatprep.subr.bf16.mxu1 %v947_v51  ;;  %v960_v0 = vld [vmem:[%s1223_s1 + $0xb8] sm:$0xff]   ;;  %v238_v1 = vld [vmem:[#allocation2 + $0x1] sm:$0x1]  ;;  %v272_v5 = vld [vmem:[#allocation2 + $0x2] sm:$0x1] }
  0x1a   : > { %865 = vmatprep.subr.bf16.mxu0 %v949_v53 }
  0x1b   : > { %251 = vrot.lane.b32.xlu0 %v249_v9, %s985_s22  ;;  %285 = vrot.lane.b32.xlu1 %v283_v10, %s986_s25  ;;  %v309_v30 = vld [vmem:[#allocation2 + $0x3] sm:$0x1] }
  0x1c   : > { %v310_v33 = vsel %vm1079_vm4, %v816_v21, %v309_v30  ;;  %886 = vmatpush3.bf16.msra.mxu1 %v948_v52 }
  0x1d   : > { %v210_v34 = vld [vmem:[#allocation2] sm:$0x1]  ;;  %311 = vst [vmem:[#allocation2 + $0x3] sm:$0x1] %v310_v33  ;;  %866 = vmatpush3.bf16.msra.mxu0 %v950_v54  ;;  %887 = vmatprep.subr.bf16.mxu1 %v951_v55 }
  0x1e   : > { %v211_v36 = vsel %vm1079_vm4, %v207_v26, %v210_v34  ;;  %867 = vmatprep.subr.bf16.mxu0 %v953_v57  ;;  %v405_v34 = vlaneseq }
  0x1f   : > { %225 = vrot.lane.b32.xlu0 %v221_v23, %s987_s17  ;;  %297 = vrot.lane.b32.xlu1 %v293_v24, %s985_s22  ;;  %212 = vst [vmem:[#allocation2] sm:$0x1] %v211_v36  ;;  %v257_v24 = vld [vmem:[%s1034_s19] sm:$0x1]  ;;  %s811_s19 = sshll.u32 %s1239_s12, 1 }
  0x20   : > { %888 = vmatpush3.bf16.msra.mxu1 %v952_v56  ;;  %v259_v27 = vshrl.u32 %v257_v24, 16  ;;  %v406_v31 = vshrl.u32 %v405_v34, 7  ;;  %s198_s22 = scalar_lea.vmem %s1225_s3, %s811_s19 }
  0x21   : > { %868 = vmatpush3.bf16.msra.mxu0 %v954_v58  ;;  %889 = vmatprep.subr.bf16.mxu1 %v955_v59  ;;  %v713_v59 = vld [vmem:[%s193_s26] sm:$0x1] }
  0x22   : > { %869 = vmatprep.subr.bf16.mxu0 %v957_v61 }
  0x23   : > { %322 = vrot.lane.b32.xlu0 %v318_v32, %s987_s17  ;;  %v988_v32 = vmov 1966171168  }
  0x24   : > { %v313_v45 = vld [vmem:[#allocation2 + $0x3] sm:$0x1]  ;;  %890 = vmatpush3.bf16.msra.mxu1 %v956_v60  ;;  %v403_v33 = vunpack.c.l.s4 %v988_v32 }
  0x25   : > { %v314_v47 = vsel %vm1094_vm6, %v817_v40, %v313_v45  ;;  %870 = vmatpush3.bf16.msra.mxu0 %v958_v62  ;;  %891 = vmatprep.subr.bf16.mxu1 %v959_v63  ;;  %v989_v45 = vmov 0.0  }
  0x26   : > { %v216_v48 = vld [vmem:[#allocation2] sm:$0x1]  ;;  %315 = vst [vmem:[#allocation2 + $0x3] sm:$0x1] %v314_v47  ;;  %v404_v37 = vunpack.c.0.s8 %v403_v33  ;;  %699 = vst.msk [vmem:[%s198_s22] sm:$0x3] %vm698_vm9, %v989_v45 }
  0x27   : > { %v217_v50 = vsel %vm1094_vm6, %v213_v42, %v216_v48 }
  0x28   : > { %218 = vst [vmem:[#allocation2] sm:$0x1] %v217_v50  ;;  %892 = vmatpush3.bf16.msra.mxu1 %v960_v0  ;;  %v407_v38 = vsub.s32 %v404_v37, %v406_v31 }
  0x2d   : > { %v325_v18 = vld [vmem:[#allocation2 + $0x3] sm:$0x1]  ;;  %v700_v55 = vld [vmem:[%s198_s22] sm:$0x1]  ;;  %v705_v58 = vld [vmem:[%s198_s22 + $0x1] sm:$0x1] }
  0x2f   : > { %v230_v13 = vld [vmem:[#allocation2] sm:$0x1] }
  0x85   : > { %v236_v2 = vpop.permute.xlu0 %235  ;;  %v244_v8 = vpop.permute.xlu1 %243 }
  0x86   : > { %v239_v4 = vsel %vm1044_vm2, %v236_v2, %v238_v1 }
  0x87   : > { %240 = vst [vmem:[#allocation2 + $0x1] sm:$0x1] %v239_v4 }
  0x89   : > { %v270_v6 = vpop.permute.xlu0 %269  ;;  %v278_v14 = vpop.permute.xlu1 %277 }
  0x8a   : > { %v273_v7 = vsel %vm1044_vm2, %v270_v6, %v272_v5 }
  0x8b   : > { %274 = vst [vmem:[#allocation2 + $0x2] sm:$0x1] %v273_v7 }
  0x8d   : > { %v252_v9 = vpop.permute.xlu0 %251  ;;  %v286_v23 = vpop.permute.xlu1 %285 }
  0x8e   : > { %v246_v10 = vld [vmem:[#allocation2 + $0x1] sm:$0x1] }
  0x8f   : > { %v247_v11 = vsel %vm1079_vm4, %v244_v8, %v246_v10 }
  0x90   : > { %248 = vst [vmem:[#allocation2 + $0x1] sm:$0x1] %v247_v11 }
  0x91   : > { %v226_v15 = vpop.permute.xlu0 %225  ;;  %v298_v30 = vpop.permute.xlu1 %297 }
  0x92   : > { %v280_v3 = vld [vmem:[#allocation2 + $0x2] sm:$0x1]  ;;  %v231_v16 = vsel %vm1185_vm8, %v226_v15, %v230_v13 }
  0x93   : > { %v281_v17 = vsel %vm1079_vm4, %v278_v14, %v280_v3  ;;  %232 = vst [vmem:[#allocation2] sm:$0x1] %v231_v16 }
  0x94   : > { %282 = vst [vmem:[#allocation2 + $0x2] sm:$0x1] %v281_v17 }
  0x95   : > { %v323_v19 = vpop.permute.xlu0 %322 }
  0x96   : > { %v326_v20 = vsel %vm1185_vm8, %v323_v19, %v325_v18 }
  0x97   : > { %v254_v21 = vld [vmem:[#allocation2 + $0x1] sm:$0x1]  ;;  %327 = vst [vmem:[#allocation2 + $0x3] sm:$0x1] %v326_v20 }
  0x98   : > { %v255_v22 = vsel %vm1094_vm6, %v252_v9, %v254_v21 }
  0x99   : > { %256 = vst [vmem:[#allocation2 + $0x1] sm:$0x1] %v255_v22 }
  0x9b   : > { %v288_v26 = vld [vmem:[#allocation2 + $0x2] sm:$0x1] }
  0x9c   : > { %v289_v25 = vsel %vm1094_vm6, %v286_v23, %v288_v26 }
  0x9d   : > { %290 = vst [vmem:[#allocation2 + $0x2] sm:$0x1] %v289_v25 }
  0xa0   : > { %v264_v28 = vld [vmem:[#allocation2 + $0x1] sm:$0x1] }
  0xa1   : > { %v265_v29 = vsel %vm1185_vm8, %v259_v27, %v264_v28 }
  0xa2   : > { %266 = vst [vmem:[#allocation2 + $0x1] sm:$0x1] %v265_v29 }
  0xa4   : > { %v300_v35 = vld [vmem:[#allocation2 + $0x2] sm:$0x1] }
  0xa5   : > { %v301_v36 = vsel %vm1185_vm8, %v298_v30, %v300_v35 }
  0xa6   : > { %302 = vst [vmem:[#allocation2 + $0x2] sm:$0x1] %v301_v36 }
  0xad   : > { %v820_v39 = vld.sshfl [vmem:[#allocation2] sm:$0x33 pattern:$0x75316420] }
  0xae   : > { %v401_v40 = vcombine.high %v820_v39, %v820_v39  ;;  %v408_v41 = vrot.slane %v820_v39, %v407_v38 }
  0xb0   : > { %v415_v42 = vrot.slane %v401_v40, %v407_v38  ;;  %v416_v44 = vcombine.high %v408_v41, %v408_v41 }
  0xb2   : > { %646 = vmatprep.mubr.bf16.mxu0 %v415_v42  ;;  %v417_v43 = vcombine.high %v415_v42, %v415_v42 }
  0xb3   : > { %647 = vmatmul.mubr.bf16.vlgmr.msra.gmra.mrb[0].mxu0 %v408_v41 }
  0xb4   : > { %686 = vmatprep.mubr.bf16.mxu1 %v417_v43 }
  0xb5   : > { %687 = vmatmul.mubr.bf16.vlgmr.msra.gmra.mrb[0].mxu1 %v416_v44 }
 0x186   : > { %v871_v46 = vpop.f32.mrb[0].mxu0 }
 0x187   : > { %v872_v47 = vpop.f32.mrb[1].mxu0 }
 0x188   : > { %v873_v48 = vadd.f32 %v872_v47, %v871_v46  ;;  %v874_v49 = vpop.f32.mrb[2].mxu0  ;;  %v893_v50 = vpop.f32.mrb[0].mxu1 }
 0x189   : > { %v875_v51 = vpop.f32.mrb[3].mxu0  ;;  %v894_v52 = vpop.f32.mrb[1].mxu1 }
 0x18a   : > { %v895_v53 = vadd.f32 %v894_v52, %v893_v50  ;;  %v896_v54 = vpop.f32.mrb[2].mxu1 }
 0x18b   : > { %v897_v56 = vpop.f32.mrb[3].mxu1 }
 0x18c   : > { %v689_v57 = vadd.f32 %v895_v53, %v873_v48 }
 0x18e   : > { %v702_v60 = vadd.f32 %v700_v55, %v689_v57  ;;  %v706_v61 = vmul.f32 %v689_v57, %v689_v57  ;;  %v710_v62 = vpack.c.bf16 %v689_v57, %v689_v57 }
 0x190   : > { %704 = vst.msk [vmem:[%s198_s22] sm:$0x1] %vm703_vm10, %v702_v60  ;;  %v708_v63 = vadd.f32 %v706_v61, %v705_v58  ;;  %v714_v0 = vsel %vm712_vm11, %v710_v62, %v713_v59 }
 0x191   : > { %715 = vst [vmem:[%s193_s26] sm:$0x1] %v714_v0 }
 0x192   : > { %709 = vst.msk [vmem:[%s198_s22 + $0x1] sm:$0x1] %vm703_vm10, %v708_v63 }
 0x193 PF: > { %s14_s14 = sadd.s32 1, %s983_s14   ;;  %s1234_s12 = smov %s979_s13 }
 0x194   : > { %p11_p5 = scmp.ge.s32.totalorder %s14_s14, 4   ;;  %s1235_s13 = smov %s1237_s15 }
 0x196   :  { %13 = sbr.rel (!%p11_p5) target bundleno = 2 (0x2), region = 75 }

// kernel: discriminator_forward.15
= control target key start
LH: loop header
LB: loop body
LE: loop exit
PB: predicated region body
PF: predicated region fallthrough
CT: control target
= control target key end

     0   :  { %s263_s12 = smov 0   ;;  %s280_s0 = inlined_call_operand.vmem [shape: bf16[2,1,64], index: 0, kind: input, shape index: {}]   ;;  %s281_s1 = inlined_call_operand.vmem [shape: f32[1,1,64], index: 1, kind: input, shape index: {}]   ;;  %s282_s2 = inlined_call_operand.vmem [shape: f32[1,1,64], index: 2, kind: input, shape index: {}]   ;;  %s283_s3 = inlined_call_operand.vmem [shape: bf16[2,1,64], index: 3, kind: output, shape index: {}]  }
   0x1 LB: > { %s220_s13 = sadd.s32 4294967295, %s241_s12   ;;  %p224_p0 = scmp.ge.s32.totalorder %s241_s12, 1  ;;  %s241_s12 = sphi %s263_s12, %s13_s12  }
   0x2   : > { %p135_p1 = scmp.lt.s32.totalorder %s241_s12, 3 }
   0x4   : > { %p136_p2 = pnand %p224_p0, %p135_p1 }
   0x5   : > { %p155_p3 = scmp.lt.s32.totalorder (!%p136_p2), %s220_s13, 1  ;;  %v163_v1 = vld [vmem:[%s281_s1] sm:$0x1] (!%p136_p2)  ;;  %vm170_vm0 = vcmask (!%p136_p2), 516096   ;;  %vm171_vm1 = vsmask.f32 (!%p136_p2), 256 }
   0x6   : > { %139 = sbr.rel (%p136_p2) target bundleno = 30 (0x1e), region = 32  ;;  %v165_v3 = vld [vmem:[%s282_s2] sm:$0x1] (!%p136_p2)  ;;  %vm172_vm2 = vmand (!%p136_p2), %vm170_vm0, %vm171_vm1 }
   0xd   : > { %s285_s13 = smov (!%p155_p3, %s220_s13), 1 }
   0xe   : > { %s157_s16 = scalar_lea.vmem %s280_s0, %s285_s13  ;;  %s160_s23 = scalar_lea.vmem %s283_s3, %s285_s13 }
   0xf   : > { %v161_v0 = vld [vmem:[%s157_s16] sm:$0x1] }
  0x10   : > { %v162_v2 = vunpack.c.l.bf16 %v161_v0  ;;  %v173_v8 = vld [vmem:[%s160_s23] sm:$0x1] }
  0x12   : > { %v164_v4 = vmul.f32 %v163_v1, %v162_v2 }
  0x14   : > { %v166_v5 = vadd.f32 %v165_v3, %v164_v4 }
  0x16   : > { %v167_v6 = vmul.f32 0.2, %v166_v5 }
  0x18   : > { %v168_v7 = vmax.f32 %v166_v5, %v167_v6 }
  0x1a   : > { %v169_v9 = vpack.c.bf16 %v168_v7, %v168_v7 }
  0x1c   : > { %v174_v10 = vsel %vm172_vm2, %v169_v9, %v173_v8 }
  0x1d   : > { %175 = vst [vmem:[%s160_s23] sm:$0x1] %v174_v10 }
  0x1e PF: > { %s13_s12 = sadd.s32 1, %s241_s12  }
  0x1f   : > { %p10_p4 = scmp.ge.s32.totalorder %s13_s12, 4  }
  0x21   :  { %12 = sbr.rel (!%p10_p4) target bundleno = 1 (0x1), region = 62 }

// kernel: discriminator_forward.17
= control target key start
LH: loop header
LB: loop body
LE: loop exit
PB: predicated region body
PF: predicated region fallthrough
CT: control target
= control target key end

     0   :  { %s263_s12 = smov 0   ;;  %s280_s0 = inlined_call_operand.vmem [shape: bf16[2,1,128], index: 0, kind: input, shape index: {}]   ;;  %s281_s1 = inlined_call_operand.vmem [shape: f32[1,1,128], index: 1, kind: input, shape index: {}]   ;;  %s282_s2 = inlined_call_operand.vmem [shape: f32[1,1,128], index: 2, kind: input, shape index: {}]   ;;  %s283_s3 = inlined_call_operand.vmem [shape: bf16[2,1,128], index: 3, kind: output, shape index: {}]  }
   0x1 LB: > { %s220_s13 = sadd.s32 4294967295, %s241_s12   ;;  %p224_p0 = scmp.ge.s32.totalorder %s241_s12, 1  ;;  %s241_s12 = sphi %s263_s12, %s13_s12  }
   0x2   : > { %p135_p1 = scmp.lt.s32.totalorder %s241_s12, 3 }
   0x4   : > { %p136_p2 = pnand %p224_p0, %p135_p1 }
   0x5   : > { %p155_p3 = scmp.lt.s32.totalorder (!%p136_p2), %s220_s13, 1  ;;  %v163_v1 = vld [vmem:[%s281_s1] sm:$0x1] (!%p136_p2)  ;;  %vm170_vm0 = vcmask (!%p136_p2), 1040384   ;;  %vm171_vm1 = vsmask.f32 (!%p136_p2), 256 }
   0x6   : > { %139 = sbr.rel (%p136_p2) target bundleno = 30 (0x1e), region = 32  ;;  %v165_v3 = vld [vmem:[%s282_s2] sm:$0x1] (!%p136_p2)  ;;  %vm172_vm2 = vmand (!%p136_p2), %vm170_vm0, %vm171_vm1 }
   0xd   : > { %s285_s13 = smov (!%p155_p3, %s220_s13), 1 }
   0xe   : > { %s157_s16 = scalar_lea.vmem %s280_s0, %s285_s13  ;;  %s160_s23 = scalar_lea.vmem %s283_s3, %s285_s13 }
   0xf   : > { %v161_v0 = vld [vmem:[%s157_s16] sm:$0x1] }
  0x10   : > { %v162_v2 = vunpack.c.l.bf16 %v161_v0  ;;  %v173_v8 = vld [vmem:[%s160_s23] sm:$0x1] }
  0x12   : > { %v164_v4 = vmul.f32 %v163_v1, %v162_v2 }
  0x14   : > { %v166_v5 = vadd.f32 %v165_v3, %v164_v4 }
  0x16   : > { %v167_v6 = vmul.f32 0.2, %v166_v5 }
  0x18   : > { %v168_v7 = vmax.f32 %v166_v5, %v167_v6 }
  0x1a   : > { %v169_v9 = vpack.c.bf16 %v168_v7, %v168_v7 }
  0x1c   : > { %v174_v10 = vsel %vm172_vm2, %v169_v9, %v173_v8 }
  0x1d   : > { %175 = vst [vmem:[%s160_s23] sm:$0x1] %v174_v10 }
  0x1e PF: > { %s13_s12 = sadd.s32 1, %s241_s12  }
  0x1f   : > { %p10_p4 = scmp.ge.s32.totalorder %s13_s12, 4  }
  0x21   :  { %12 = sbr.rel (!%p10_p4) target bundleno = 1 (0x1), region = 62 }

// kernel: discriminator_forward.16
= control target key start
LH: loop header
LB: loop body
LE: loop exit
PB: predicated region body
PF: predicated region fallthrough
CT: control target
= control target key end

     0   :  { %s1461_s12 = smov 0   ;;  %s1463_s13 = smov 0   ;;  %s1782_s0 = inlined_call_operand.vmem [shape: bf16[2,2,2,576], index: 0, kind: input, shape index: {}]   ;;  %s1783_s1 = inlined_call_operand.vmem [shape: bf16[1024,128], index: 1, kind: input, shape index: {}]   ;;  %s1784_s2 = inlined_call_operand.vmem [shape: bf16[2,1,128], index: 2, kind: output, shape index: {0}]   ;;  %s1785_s3 = inlined_call_operand.vmem [shape: f32[2,2,128], index: 3, kind: output, shape index: {1}]  }
   0x1   :  { %s1465_s14 = smov 0  }
   0x2 LB: > { %s26_s15 = sadd.s32 1, %s1432_s13  ;;  %p1157_p0 = scmp.ge.s32.totalorder %s1436_s14, 1  ;;  %s1436_s14 = sphi %s1465_s14, %s14_s14   ;;  %s1432_s13 = sphi %s1463_s13, %s1791_s13   ;;  %s1428_s12 = sphi %s1461_s12, %s1790_s12  }
   0x3   : > { %p28_p1 = scmp.ge.s32.totalorder %s26_s15, 2  ;;  %p157_p2 = scmp.lt.s32.totalorder %s1436_s14, 3 }
   0x5   : > { %s1793_s15 = smov (%p28_p1, %s26_s15), 0  ;;  %p158_p3 = pnand %p1157_p0, %p157_p2 }
   0x6   : > { %p185_p4 = scmp.lt.s32.totalorder (!%p158_p3), %s1428_s12, 1  ;;  %v1349_v0 = vld [vmem:[%s1783_s1 + $0x40] sm:$0xff] (!%p158_p3)   ;;  %vm201_vm0 = vcmask (!%p158_p3), 516096   ;;  %vm202_vm1 = vsmask.f32 (!%p158_p3), 256  ;;  %s1438_s28 = smov (!%p158_p3), 64  }
   0x7   : > { %161 = sbr.rel (%p158_p3) target bundleno = 419 (0x1a3), region = 28  ;;  %v1350_v1 = vld [vmem:[%s1783_s1] sm:$0xff] (!%p158_p3)   ;;  %1233 = vmatprep.subr.bf16.mxu0 (!%p158_p3), %v1349_v0  ;;  %vm1509_vm2 = vmand (!%p158_p3), %vm201_vm0, %vm202_vm1  ;;  %v1353_v19 = vld [vmem:[%s1783_s1 + $0x48] sm:$0xff] (!%p158_p3)   ;;  %vm208_vm3 = vcmask (!%p158_p3), 1040896   ;;  %vm1058_vm5 = vcmask (!%p158_p3), 1040384  }
   0x8   : > { %v1351_v2 = vld [vmem:[%s1783_s1 + $0xc0] sm:$0xff] (!%p158_p3)   ;;  %1234 = vmatpush3.bf16.msra.mxu0 (!%p158_p3), %v1350_v1  ;;  %v1354_v22 = vld [vmem:[%s1783_s1 + $0x8] sm:$0xff] (!%p158_p3)   ;;  %v1357_v27 = vld [vmem:[%s1783_s1 + $0x50] sm:$0xff] (!%p158_p3)  }
   0x9   : > { %v1352_v3 = vld [vmem:[%s1783_s1 + $0x80] sm:$0xff] (!%p158_p3)   ;;  %1255 = vmatprep.subr.bf16.mxu1 (!%p158_p3), %v1351_v2  ;;  %1235 = vmatprep.subr.bf16.mxu0 (!%p158_p3), %v1353_v19  ;;  %v1355_v25 = vld [vmem:[%s1783_s1 + $0xc8] sm:$0xff] (!%p158_p3)   ;;  %v1358_v28 = vld [vmem:[%s1783_s1 + $0x10] sm:$0xff] (!%p158_p3)  }
   0xa   : > { %1256 = vmatpush3.bf16.msra.mxu1 (!%p158_p3), %v1352_v3  ;;  %v204_v4 = vld [vmem:[#allocation2] sm:$0x1] (!%p158_p3)  ;;  %v264_v5 = vld [vmem:[#allocation2 + $0x4] sm:$0x1] (!%p158_p3)  ;;  %v289_v11 = vld [vmem:[#allocation2 + $0x6] sm:$0x1] (!%p158_p3) }
   0xb   : > { %v1356_v26 = vld [vmem:[%s1783_s1 + $0x88] sm:$0xff] (!%p158_p3)   ;;  %1257 = vmatprep.subr.bf16.mxu1 (!%p158_p3), %v1355_v25  ;;  %v214_v29 = vld [vmem:[#allocation2 + $0x1] sm:$0x1] (!%p158_p3)  ;;  %v1359_v30 = vld [vmem:[%s1783_s1 + $0xd0] sm:$0xff] (!%p158_p3)  }
   0xc   : > { %1236 = vmatpush3.bf16.msra.mxu0 (!%p158_p3), %v1354_v22  ;;  %v1360_v31 = vld [vmem:[%s1783_s1 + $0x90] sm:$0xff] (!%p158_p3)   ;;  %v1361_v32 = vld [vmem:[%s1783_s1 + $0x58] sm:$0xff] (!%p158_p3)   ;;  %v1365_v38 = vld [vmem:[%s1783_s1 + $0x60] sm:$0xff] (!%p158_p3)  }
   0xd   : > { %1237 = vmatprep.subr.bf16.mxu0 (!%p158_p3), %v1357_v27  ;;  %v1362_v35 = vld [vmem:[%s1783_s1 + $0x18] sm:$0xff] (!%p158_p3)   ;;  %v272_v40 = vld [vmem:[#allocation2 + $0x5] sm:$0x1] (!%p158_p3)  ;;  %v297_v43 = vld [vmem:[#allocation2 + $0x7] sm:$0x1] (!%p158_p3) }
   0xe   : > { %s1795_s12 = smov (!%p185_p4, %s1428_s12), 1  ;;  %1258 = vmatpush3.bf16.msra.mxu1 %v1356_v26  ;;  %v1363_v36 = vld [vmem:[%s1783_s1 + $0xd8] sm:$0xff]   ;;  %v1366_v45 = vld [vmem:[%s1783_s1 + $0x20] sm:$0xff]   ;;  %v1369_v48 = vld [vmem:[%s1783_s1 + $0x68] sm:$0xff]  }
   0xf   : > { %s1321_s22 = smul.u32 10, %s1795_s12  ;;  %1259 = vmatprep.subr.bf16.mxu1 %v1359_v30  ;;  %v1364_v37 = vld [vmem:[%s1783_s1 + $0x98] sm:$0xff]   ;;  %v1367_v46 = vld [vmem:[%s1783_s1 + $0xe0] sm:$0xff]   ;;  %v1370_v49 = vld [vmem:[%s1783_s1 + $0x28] sm:$0xff]   ;;  %v446_v30 = vlaneseq  ;;  %s1158_s9 = sshll.u32 %s1795_s12, 1 }
  0x10   : > { %1238 = vmatpush3.bf16.msra.mxu0 %v1358_v28  ;;  %v1368_v47 = vld [vmem:[%s1783_s1 + $0xa0] sm:$0xff]   ;;  %v1371_v50 = vld [vmem:[%s1783_s1 + $0xe8] sm:$0xff]   ;;  %vm1596_vm4 = vmand %vm208_vm3, %vm202_vm1  ;;  %v1439_v28 = vmov 1966171168   ;;  %s1761_s16 = scalar_lea.vmem %s1785_s3, %s1158_s9  ;;  %s193_s19 = scalar_lea.vmem %s1784_s2, %s1795_s12 }
  0x11   : > { %s1497_s27 = scalar_lea.vmem %s1782_s0, %s1321_s22  ;;  %1239 = vmatprep.subr.bf16.mxu0 %v1361_v32  ;;  %v1372_v51 = vld [vmem:[%s1783_s1 + $0xa8] sm:$0xff]   ;;  %v1373_v53 = vld [vmem:[%s1783_s1 + $0x70] sm:$0xff]   ;;  %v1377_v57 = vld [vmem:[%s1783_s1 + $0x78] sm:$0xff]  }
  0x12   : > { %v229_v6 = vld [vmem:[%s1497_s27 + $0x1] sm:$0x1]  ;;  %v245_v7 = vld [vmem:[%s1497_s27 + $0x2] sm:$0x1]  ;;  %v217_v9 = vld [vmem:[%s1497_s27] sm:$0x1]  ;;  %1260 = vmatpush3.bf16.msra.mxu1 %v1360_v31 }
  0x13   : > { %v237_v8 = vld [vmem:[%s1497_s27 + $0x2] sm:$0x1]  ;;  %231 = vrot.lane.b32.xlu0 %v229_v6, %s1438_s28  ;;  %v275_v10 = vld [vmem:[%s1497_s27 + $0x3] sm:$0x1]  ;;  %v219_v12 = vshrl.u32 %v217_v9, 16  ;;  %1261 = vmatprep.subr.bf16.mxu1 %v1363_v36  ;;  %v1374_v54 = vld [vmem:[%s1783_s1 + $0x30] sm:$0xff]  }
  0x14   : > { %239 = vrot.lane.b32.xlu1 %v237_v8, %s1438_s28  ;;  %v1165_v13 = vld [vmem:[%s1497_s27 + $0x5] sm:$0x1]  ;;  %v263_v15 = vld [vmem:[%s1497_s27 + $0x3] sm:$0x1]  ;;  %v200_v18 = vld [vmem:[%s1497_s27] sm:$0x1]  ;;  %1240 = vmatpush3.bf16.msra.mxu0 %v1362_v35 }
  0x15   : > { %v265_v16 = vsel %vm1509_vm2, %v263_v15, %v264_v5  ;;  %v1162_v17 = vld [vmem:[%s1497_s27 + $0x5] sm:$0x1]  ;;  %v205_v21 = vsel %vm1509_vm2, %v200_v18, %v204_v4  ;;  %v277_v23 = vshrl.u32 %v275_v10, 16  ;;  %v302_v24 = vshrl.u32 %v1165_v13, 16  ;;  %v213_v33 = vld [vmem:[%s1497_s27 + $0x1] sm:$0x1]  ;;  %1241 = vmatprep.subr.bf16.mxu0 %v1365_v38  ;;  %vm1059_vm6 = vmand %vm1058_vm5, %vm202_vm1 }
  0x16   : > { %266 = vst [vmem:[#allocation2 + $0x4] sm:$0x1] %v265_v16  ;;  %v290_v20 = vsel %vm1509_vm2, %v1162_v17, %v289_v11  ;;  %206 = vst [vmem:[#allocation2] sm:$0x1] %v205_v21  ;;  %v215_v34 = vsel %vm1509_vm2, %v213_v33, %v214_v29  ;;  %v271_v39 = vld [vmem:[%s1497_s27 + $0x4] sm:$0x1]  ;;  %1262 = vmatpush3.bf16.msra.mxu1 %v1364_v37  ;;  %v444_v29 = vunpack.c.l.s4 %v1439_v28 }
  0x17   : > { %247 = vrot.lane.b32.xlu0 %v245_v7, %s1438_s28  ;;  %291 = vst [vmem:[#allocation2 + $0x6] sm:$0x1] %v290_v20  ;;  %216 = vst [vmem:[#allocation2 + $0x1] sm:$0x1] %v215_v34  ;;  %v273_v41 = vsel %vm1509_vm2, %v271_v39, %v272_v40  ;;  %v1164_v42 = vld [vmem:[%s1497_s27 + $0x6] sm:$0x1]  ;;  %1263 = vmatprep.subr.bf16.mxu1 %v1367_v46 }
  0x18   : > { %223 = vrot.lane.b32.xlu1 %v219_v12, %s1438_s28  ;;  %274 = vst [vmem:[#allocation2 + $0x5] sm:$0x1] %v273_v41  ;;  %v298_v44 = vsel %vm1509_vm2, %v1164_v42, %v297_v43  ;;  %1242 = vmatpush3.bf16.msra.mxu0 %v1366_v45  ;;  %v1375_v55 = vld [vmem:[%s1783_s1 + $0xf0] sm:$0xff]   ;;  %v1378_v58 = vld [vmem:[%s1783_s1 + $0x38] sm:$0xff]   ;;  %v207_v61 = vld [vmem:[%s1497_s27] sm:$0x1]  ;;  %v445_v33 = vunpack.c.0.s8 %v444_v29 }
  0x19   : > { %299 = vst [vmem:[#allocation2 + $0x7] sm:$0x1] %v298_v44  ;;  %1243 = vmatprep.subr.bf16.mxu0 %v1369_v48  ;;  %v1376_v56 = vld [vmem:[%s1783_s1 + $0xb0] sm:$0xff]   ;;  %v1379_v59 = vld [vmem:[%s1783_s1 + $0xf8] sm:$0xff]   ;;  %v267_v63 = vld [vmem:[%s1497_s27 + $0x3] sm:$0x1] }
  0x1a   : > { %1264 = vmatpush3.bf16.msra.mxu1 %v1368_v47  ;;  %v1380_v60 = vld [vmem:[%s1783_s1 + $0xb8] sm:$0xff]   ;;  %v1163_v3 = vld [vmem:[%s1497_s27 + $0x5] sm:$0x1]  ;;  %v234_v8 = vld [vmem:[#allocation2 + $0x2] sm:$0x1]  ;;  %v447_v34 = vshrl.u32 %v446_v30, 7 }
  0x1b   : > { %281 = vrot.lane.b32.xlu0 %v277_v23, %s1438_s28  ;;  %1265 = vmatprep.subr.bf16.mxu1 %v1371_v50  ;;  %v1382_v6 = vld [vmem:[%s1783_s1 + $0x140] sm:$0xff]   ;;  %v1386_v48 = vld [vmem:[%s1783_s1 + $0x148] sm:$0xff]  }
  0x1c   : > { %306 = vrot.lane.b32.xlu1 %v302_v24, %s1438_s28  ;;  %1244 = vmatpush3.bf16.msra.mxu0 %v1370_v49  ;;  %v1384_v7 = vld [vmem:[%s1783_s1 + $0x1c0] sm:$0xff]   ;;  %v1654_v35 = vsub.s32 %v445_v33, %v447_v34  ;;  %v1388_v50 = vld [vmem:[%s1783_s1 + $0x1c8] sm:$0xff]  }
  0x1d   : > { %1245 = vmatprep.subr.bf16.mxu0 %v1373_v53  ;;  %v210_v62 = vld [vmem:[#allocation2] sm:$0x1]  ;;  %v268_v0 = vld [vmem:[#allocation2 + $0x4] sm:$0x1]  ;;  %v250_v12 = vld [vmem:[#allocation2 + $0x3] sm:$0x1] }
  0x1e   : > { %1266 = vmatpush3.bf16.msra.mxu1 %v1372_v51  ;;  %v211_v1 = vsel %vm1596_vm4, %v207_v61, %v210_v62  ;;  %v269_v2 = vsel %vm1596_vm4, %v267_v63, %v268_v0  ;;  %v293_v4 = vld [vmem:[#allocation2 + $0x6] sm:$0x1]  ;;  %v226_v13 = vld [vmem:[#allocation2 + $0x1] sm:$0x1]  ;;  %v1387_v52 = vld [vmem:[%s1783_s1 + $0x108] sm:$0xff]  }
  0x1f   : > { %1267 = vmatprep.subr.bf16.mxu1 %v1375_v55  ;;  %212 = vst [vmem:[#allocation2] sm:$0x1] %v211_v1  ;;  %270 = vst [vmem:[#allocation2 + $0x4] sm:$0x1] %v269_v2  ;;  %v294_v5 = vsel %vm1596_vm4, %v1163_v3, %v293_v4  ;;  %v284_v19 = vld [vmem:[#allocation2 + $0x5] sm:$0x1] }
  0x20   : > { %1246 = vmatpush3.bf16.msra.mxu0 %v1374_v54  ;;  %295 = vst [vmem:[#allocation2 + $0x6] sm:$0x1] %v294_v5  ;;  %v309_v20 = vld [vmem:[#allocation2 + $0x7] sm:$0x1]  ;;  %v253_v21 = vld [vmem:[%s1497_s27 + $0x1] sm:$0x1] }
  0x21   : > { %1247 = vmatprep.subr.bf16.mxu0 %v1377_v57  ;;  %v255_v27 = vshrl.u32 %v253_v21, 16  ;;  %v1383_v43 = vld [vmem:[%s1783_s1 + $0x100] sm:$0xff]   ;;  %v1390_v53 = vld [vmem:[%s1783_s1 + $0x150] sm:$0xff]   ;;  %v1389_v54 = vld [vmem:[%s1783_s1 + $0x188] sm:$0xff]  }
  0x22   : > { %1268 = vmatpush3.bf16.msra.mxu1 %v1376_v56  ;;  %v1385_v47 = vld [vmem:[%s1783_s1 + $0x180] sm:$0xff]   ;;  %v1392_v55 = vld [vmem:[%s1783_s1 + $0x1d0] sm:$0xff]   ;;  %v1394_v57 = vld [vmem:[%s1783_s1 + $0x158] sm:$0xff]  }
  0x23   : > { %1269 = vmatprep.subr.bf16.mxu1 %v1379_v59  ;;  %v1391_v56 = vld [vmem:[%s1783_s1 + $0x110] sm:$0xff]   ;;  %v1396_v59 = vld [vmem:[%s1783_s1 + $0x1d8] sm:$0xff]   ;;  %v1398_v61 = vld [vmem:[%s1783_s1 + $0x160] sm:$0xff]  }
  0x24   : > { %1248 = vmatpush3.bf16.msra.mxu0 %v1378_v58  ;;  %v1393_v58 = vld [vmem:[%s1783_s1 + $0x190] sm:$0xff]   ;;  %v1397_v62 = vld [vmem:[%s1783_s1 + $0x198] sm:$0xff]   ;;  %v1400_v63 = vld [vmem:[%s1783_s1 + $0x1e0] sm:$0xff]  }
  0x25   : > { %1277 = vmatprep.subr.bf16.mxu0 %v1382_v6  ;;  %v1399_v0 = vld [vmem:[%s1783_s1 + $0x120] sm:$0xff]   ;;  %v1402_v1 = vld [vmem:[%s1783_s1 + $0x168] sm:$0xff]   ;;  %v1406_v5 = vld [vmem:[%s1783_s1 + $0x170] sm:$0xff]  }
  0x26   : > { %1270 = vmatpush3.bf16.msra.mxu1 %v1380_v60  ;;  %v1395_v60 = vld [vmem:[%s1783_s1 + $0x118] sm:$0xff]   ;;  %v1401_v2 = vld [vmem:[%s1783_s1 + $0x1a0] sm:$0xff]   ;;  %v1404_v3 = vld [vmem:[%s1783_s1 + $0x1e8] sm:$0xff]  }
  0x27   : > { %1299 = vmatprep.subr.bf16.mxu1 %v1384_v7  ;;  %v1403_v4 = vld [vmem:[%s1783_s1 + $0x128] sm:$0xff]   ;;  %v1408_v7 = vld [vmem:[%s1783_s1 + $0x1f0] sm:$0xff]  }
  0x28   : > { %v1405_v6 = vld [vmem:[%s1783_s1 + $0x1a8] sm:$0xff]  }
  0x85   : > { %v232_v9 = vpop.permute.xlu0 %231 }
  0x86   : > { %v240_v10 = vpop.permute.xlu1 %239  ;;  %v235_v11 = vsel %vm1509_vm2, %v232_v9, %v234_v8  ;;  %v1407_v8 = vld [vmem:[%s1783_s1 + $0x130] sm:$0xff]   ;;  %v1410_v9 = vld [vmem:[%s1783_s1 + $0x178] sm:$0xff]  }
  0x87   : > { %236 = vst [vmem:[#allocation2 + $0x2] sm:$0x1] %v235_v11  ;;  %v1412_v11 = vld [vmem:[%s1783_s1 + $0x1f8] sm:$0xff]  }
  0x89   : > { %v248_v15 = vpop.permute.xlu0 %247 }
  0x8a   : > { %v224_v16 = vpop.permute.xlu1 %223  ;;  %v251_v17 = vsel %vm1509_vm2, %v248_v15, %v250_v12  ;;  %v1411_v12 = vld [vmem:[%s1783_s1 + $0x138] sm:$0xff]  }
  0x8b   : > { %v227_v18 = vsel %vm1596_vm4, %v224_v16, %v226_v13  ;;  %252 = vst [vmem:[#allocation2 + $0x3] sm:$0x1] %v251_v17  ;;  %v1413_v13 = vld [vmem:[%s1783_s1 + $0x1b8] sm:$0xff]   ;;  %v1440_v17 = vmov 0.0  }
  0x8c   : > { %228 = vst [vmem:[#allocation2 + $0x1] sm:$0x1] %v227_v18  ;;  %1047 = vst [vmem:[%s1761_s16] sm:$0x3] %v1440_v17 }
  0x8d   : > { %v282_v22 = vpop.permute.xlu0 %281 }
  0x8e   : > { %v307_v23 = vpop.permute.xlu1 %306  ;;  %v242_v24 = vld [vmem:[#allocation2 + $0x2] sm:$0x1]  ;;  %v285_v25 = vsel %vm1596_vm4, %v282_v22, %v284_v19 }
  0x8f   : > { %v310_v26 = vsel %vm1596_vm4, %v307_v23, %v309_v20  ;;  %v243_v14 = vsel %vm1596_vm4, %v240_v10, %v242_v24  ;;  %286 = vst [vmem:[#allocation2 + $0x5] sm:$0x1] %v285_v25  ;;  %v1409_v10 = vld [vmem:[%s1783_s1 + $0x1b0] sm:$0xff]  }
  0x90   : > { %311 = vst [vmem:[#allocation2 + $0x7] sm:$0x1] %v310_v26  ;;  %244 = vst [vmem:[#allocation2 + $0x2] sm:$0x1] %v243_v14 }
  0x92   : > { %v260_v31 = vld [vmem:[#allocation2 + $0x3] sm:$0x1] }
  0x93   : > { %v261_v32 = vsel %vm1596_vm4, %v255_v27, %v260_v31 }
  0x94   : > { %262 = vst [vmem:[#allocation2 + $0x3] sm:$0x1] %v261_v32 }
  0x9b   : > { %v312_v36 = vld [vmem:[#allocation2] sm:$0xff] }
  0x9c   : > { %v442_v37 = vcombine.high %v312_v36, %v312_v36  ;;  %v449_v38 = vrot.slane %v312_v36, %v1654_v35 }
  0x9e   : > { %v457_v39 = vcombine.high %v449_v38, %v449_v38  ;;  %v1658_v40 = vrot.slane %v442_v37, %v1654_v35  ;;  %v465_v41 = vrot.slane %v449_v38, %v1654_v35  ;;  %v1048_v38 = vld [vmem:[%s1761_s16] sm:$0x1] }
  0xa0   : > { %v479_v42 = vrot.slane %v457_v39, %v1654_v35  ;;  %v458_v44 = vcombine.high %v1658_v40, %v1658_v40  ;;  %v487_v49 = vcombine.high %v465_v41, %v465_v41  ;;  %v472_v15 = vrot.slane %v1658_v40, %v1654_v35 }
  0xa2   : > { %915 = vmatprep.mubr.bf16.mxu0 %v479_v42  ;;  %v489_v45 = vcombine.high %v479_v42, %v479_v42  ;;  %v486_v46 = vrot.slane %v458_v44, %v1654_v35  ;;  %v488_v16 = vcombine.high %v472_v15, %v472_v15  ;;  %v1060_v42 = vld [vmem:[%s193_s19] sm:$0x1] }
  0xa3   : > { %916 = vmatmul.mubr.bf16.vlgmr.msra.gmra.mrb[0].mxu0 %v465_v41  ;;  %v1052_v41 = vld [vmem:[%s1761_s16 + $0x1] sm:$0x1] }
  0xa4   : > { %1278 = vmatpush3.bf16.msra.mxu0 %v1383_v43  ;;  %955 = vmatprep.mubr.bf16.mxu1 %v489_v45  ;;  %v490_v51 = vcombine.high %v486_v46, %v486_v46 }
  0xa5   : > { %995 = vmatprep.mubr.bf16.mxu0 %v486_v46  ;;  %956 = vmatmul.mubr.bf16.vlgmr.msra.gmra.mrb[0].mxu1 %v487_v49 }
  0xa6   : > { %1300 = vmatpush3.bf16.msra.mxu1 %v1385_v47  ;;  %1279 = vmatprep.subr.bf16.mxu0 %v1386_v48 }
  0xa7   : > { %1035 = vmatprep.mubr.bf16.mxu1 %v490_v51  ;;  %1301 = vmatprep.subr.bf16.mxu1 %v1388_v50 }
  0xa8   : > { %1280 = vmatpush3.bf16.msra.mxu0 %v1387_v52 }
  0xa9   : > { %1281 = vmatprep.subr.bf16.mxu0 %v1390_v53 }
  0xaa   : > { %1302 = vmatpush3.bf16.msra.mxu1 %v1389_v54 }
  0xab   : > { %1303 = vmatprep.subr.bf16.mxu1 %v1392_v55 }
  0xac   : > { %1282 = vmatpush3.bf16.msra.mxu0 %v1391_v56 }
  0xad   : > { %1283 = vmatprep.subr.bf16.mxu0 %v1394_v57 }
  0xae   : > { %1304 = vmatpush3.bf16.msra.mxu1 %v1393_v58 }
  0xaf   : > { %1305 = vmatprep.subr.bf16.mxu1 %v1396_v59 }
  0xb0   : > { %1284 = vmatpush3.bf16.msra.mxu0 %v1395_v60 }
  0xb1   : > { %1285 = vmatprep.subr.bf16.mxu0 %v1398_v61 }
  0xb2   : > { %1306 = vmatpush3.bf16.msra.mxu1 %v1397_v62 }
  0xb3   : > { %1307 = vmatprep.subr.bf16.mxu1 %v1400_v63 }
  0xb4   : > { %1286 = vmatpush3.bf16.msra.mxu0 %v1399_v0 }
  0xb5   : > { %1287 = vmatprep.subr.bf16.mxu0 %v1402_v1 }
  0xb6   : > { %1308 = vmatpush3.bf16.msra.mxu1 %v1401_v2 }
  0xb7   : > { %1309 = vmatprep.subr.bf16.mxu1 %v1404_v3 }
  0xb8   : > { %1288 = vmatpush3.bf16.msra.mxu0 %v1403_v4 }
  0xb9   : > { %1289 = vmatprep.subr.bf16.mxu0 %v1406_v5 }
  0xba   : > { %1310 = vmatpush3.bf16.msra.mxu1 %v1405_v6 }
  0xbb   : > { %1311 = vmatprep.subr.bf16.mxu1 %v1408_v7 }
  0xbc   : > { %1290 = vmatpush3.bf16.msra.mxu0 %v1407_v8 }
  0xbd   : > { %1291 = vmatprep.subr.bf16.mxu0 %v1410_v9 }
  0xbe   : > { %1312 = vmatpush3.bf16.msra.mxu1 %v1409_v10 }
  0xbf   : > { %1313 = vmatprep.subr.bf16.mxu1 %v1412_v11 }
  0xc0   : > { %1292 = vmatpush3.bf16.msra.mxu0 %v1411_v12 }
  0xc2   : > { %1314 = vmatpush3.bf16.msra.mxu1 %v1413_v13 }
  0xc3   : > { %996 = vmatmul.mubr.bf16.vlgmr.msra.gmra.mrb[4].mxu0 %v472_v15 }
  0xc5   : > { %1036 = vmatmul.mubr.bf16.vlgmr.msra.gmra.mrb[4].mxu1 %v488_v16 }
 0x176   : > { %v1249_v18 = vpop.f32.mrb[0].mxu0 }
 0x177   : > { %v1250_v19 = vpop.f32.mrb[1].mxu0 }
 0x178   : > { %v1251_v20 = vadd.f32 %v1250_v19, %v1249_v18  ;;  %v1252_v21 = vpop.f32.mrb[2].mxu0  ;;  %v1271_v22 = vpop.f32.mrb[0].mxu1 }
 0x179   : > { %v1253_v23 = vpop.f32.mrb[3].mxu0  ;;  %v1272_v24 = vpop.f32.mrb[1].mxu1 }
 0x17a   : > { %v1273_v25 = vadd.f32 %v1272_v24, %v1271_v22  ;;  %v1274_v26 = vpop.f32.mrb[2].mxu1 }
 0x17b   : > { %v1275_v27 = vpop.f32.mrb[3].mxu1 }
 0x17c   : > { %v958_v14 = vadd.f32 %v1273_v25, %v1251_v20 }
 0x196   : > { %v1293_v28 = vpop.f32.mrb[4].mxu0 }
 0x197   : > { %v1294_v29 = vpop.f32.mrb[5].mxu0 }
 0x198   : > { %v1295_v30 = vadd.f32 %v1294_v29, %v1293_v28  ;;  %v1296_v31 = vpop.f32.mrb[6].mxu0  ;;  %v1315_v32 = vpop.f32.mrb[4].mxu1 }
 0x199   : > { %v1297_v33 = vpop.f32.mrb[7].mxu0  ;;  %v1316_v34 = vpop.f32.mrb[5].mxu1 }
 0x19a   : > { %v998_v35 = vadd.f32 %v1295_v30, %v958_v14  ;;  %v1317_v36 = vadd.f32 %v1316_v34, %v1315_v32  ;;  %v1318_v37 = vpop.f32.mrb[6].mxu1 }
 0x19b   : > { %v1319_v39 = vpop.f32.mrb[7].mxu1 }
 0x19c   : > { %v1038_v40 = vadd.f32 %v1317_v36, %v998_v35 }
 0x19e   : > { %v1050_v43 = vadd.f32 %v1048_v38, %v1038_v40  ;;  %v1053_v44 = vmul.f32 %v1038_v40, %v1038_v40  ;;  %v1057_v45 = vpack.c.bf16 %v1038_v40, %v1038_v40 }
 0x1a0   : > { %1051 = vst [vmem:[%s1761_s16] sm:$0x1] %v1050_v43  ;;  %v1055_v46 = vadd.f32 %v1053_v44, %v1052_v41  ;;  %v1061_v47 = vsel %vm1059_vm6, %v1057_v45, %v1060_v42 }
 0x1a1   : > { %1062 = vst [vmem:[%s193_s19] sm:$0x1] %v1061_v47 }
 0x1a2   : > { %1056 = vst [vmem:[%s1761_s16 + $0x1] sm:$0x1] %v1055_v46 }
 0x1a3 PF: > { %s14_s14 = sadd.s32 1, %s1436_s14   ;;  %s1790_s12 = smov %s1432_s13 }
 0x1a4   : > { %p11_p5 = scmp.ge.s32.totalorder %s14_s14, 4   ;;  %s1791_s13 = smov %s1793_s15 }
 0x1a6   :  { %13 = sbr.rel (!%p11_p5) target bundleno = 2 (0x2), region = 75 }

</bundles_post_ra>
